<compile_context>
chip_gen: v6e
topology: v6e:2x2x1
jax: 0.10.0
libtpu: 0.0.40
codegen_flags: <defaults>
</compile_context>

<pallas_src>
import jax
import jax.numpy as jnp
from jax import lax
from jax.experimental import pallas as pl
from jax.experimental.pallas import tpu as pltpu


IN_DIM = 4 * 16 * 16      # 1024 : flattened NCHW input
FEAT_DIM = 2048           # ResNet-50 feature dim
HID = 512                 # g head hidden dim
PROJ_DIM = 128            # feature_dim=128 projection output
SUBLANE_BF16 = 16         # bf16 sublane quantum (MXU LHS) -> pad batch to mult of 16
BATCH_TILE = 256          # full MXU LHS occupancy on v6e/v7x, multiple of 128 on v5e


def _round_up(a, m):
    return ((a + m - 1) // m) * m


def _l2_normalize(v, eps=1e-12):
    # torch.nn.functional.normalize(v, p=2, dim=-1, eps=1e-12):
    #   v / max(||v||, eps)  ==  v * rsqrt(max(||v||^2, eps^2))
    # rsqrt lowers to the (otherwise idle) EUP slot instead of a VALU divide chain.
    norm_sq = jnp.sum(v * v, axis=-1, keepdims=True)
    return v * lax.rsqrt(jnp.maximum(norm_sq, eps * eps))


def resnet50_kernel(x_ref,
                    wf_ref, bf_ref,       # backbone stem stand-in (bf16 W, f32 b)
                    wg1_ref, bg1_ref,     # g: Linear(2048,512,no bias) + folded BN
                    wg2_ref, bg2_ref,     # g: Linear(512,128)
                    featn_ref, outn_ref):
    # One batch tile per grid step. Weights arrive as bf16 (VMEM-resident across the
    # grid); MXU LHS activations are bf16 and accumulation is f32.
    x = x_ref[...]                                                   # (TM, 1024) bf16

    # --- feature = backbone stem: Linear + ReLU -> (TM, 2048), f32 ---
    feat = jnp.dot(x, wf_ref[...], preferred_element_type=jnp.float32) + bf_ref[...]
    feat = jnp.maximum(feat, 0.0)

    # --- out = g(feature): Linear(no bias) + BN(folded scale/shift) + ReLU + Linear ---
    hg = jnp.dot(feat.astype(jnp.bfloat16), wg1_ref[...],
                 preferred_element_type=jnp.float32) + bg1_ref[...]
    hg = jnp.maximum(hg, 0.0)
    out = jnp.dot(hg.astype(jnp.bfloat16), wg2_ref[...],
                  preferred_element_type=jnp.float32) + bg2_ref[...]

    # --- (F.normalize(feature), F.normalize(out)) --- lane-dense (2048 / 128) stores.
    featn_ref[...] = _l2_normalize(feat)
    outn_ref[...] = _l2_normalize(out)


def resnet50_forward(x_nchw, params):
    (wf, bf, wg1, bg1, wg2, bg2) = params
    B = x_nchw.shape[0]

    # Batch tile: 256 rows at real batch sizes; shrink (to a multiple of the bf16
    # sublane quantum) for tiny batches so we don't compute on padding.
    tm = BATCH_TILE if B >= BATCH_TILE else max(SUBLANE_BF16, _round_up(B, SUBLANE_BF16))
    Bp = _round_up(B, tm)
    grid = (Bp // tm,)

    # Flatten NCHW -> (B, C*H*W) bf16 MXU LHS; pad only the ragged remainder.
    x_flat = x_nchw.reshape(B, -1).astype(jnp.bfloat16)
    if Bp != B:
        x_flat = jnp.pad(x_flat, ((0, Bp - B), (0, 0)))

    # Weight / bias blocks use constant index_maps -> DMA'd once, VMEM-resident
    # across all batch tiles. x / outputs are tiled over the batch grid axis.
    const = lambda i: (0, 0)
    tile = lambda i: (i, 0)
    in_specs = [
        pl.BlockSpec((tm, IN_DIM), tile),          # x
        pl.BlockSpec((IN_DIM, FEAT_DIM), const),   # wf
        pl.BlockSpec((1, FEAT_DIM), const),        # bf
        pl.BlockSpec((FEAT_DIM, HID), const),      # wg1 (BN folded)
        pl.BlockSpec((1, HID), const),             # bg1 (BN folded)
        pl.BlockSpec((HID, PROJ_DIM), const),      # wg2
        pl.BlockSpec((1, PROJ_DIM), const),        # bg2
    ]
    out_specs = (
        pl.BlockSpec((tm, FEAT_DIM), tile),        # normalized feature
        pl.BlockSpec((tm, PROJ_DIM), tile),        # normalized projection
    )

    flops = 2 * Bp * (IN_DIM * FEAT_DIM + FEAT_DIM * HID + HID * PROJ_DIM)
    bytes_accessed = (
        Bp * IN_DIM * 2                                    # bf16 input
        + (wf.size + wg1.size + wg2.size) * 2              # bf16 weights (once)
        + (bf.size + bg1.size + bg2.size) * 4              # f32 biases
        + Bp * (FEAT_DIM + PROJ_DIM) * 4)                  # f32 outputs

    featn, outn = pl.pallas_call(
        resnet50_kernel,
        out_shape=(
            jax.ShapeDtypeStruct((Bp, FEAT_DIM), jnp.float32),
            jax.ShapeDtypeStruct((Bp, PROJ_DIM), jnp.float32),
        ),
        grid=grid,
        in_specs=in_specs,
        out_specs=out_specs,
        compiler_params=pltpu.CompilerParams(
            dimension_semantics=("parallel",),             # megacore split on v7x
            vmem_limit_bytes=32 * 1024 * 1024),            # fits v7x's 64 MiB VMEM
        cost_estimate=pl.CostEstimate(
            flops=flops, transcendentals=2 * Bp, bytes_accessed=bytes_accessed),
    )(x_flat, wf, bf, wg1, bg1, wg2, bg2)

    return featn[:B], outn[:B]


def make_params(key):
    ks = jax.random.split(key, 4)

    def lin(k, fan_in, fan_out, bias=True):
        kw, kb = jax.random.split(k)
        w = jax.random.normal(kw, (fan_in, fan_out), jnp.float32) / jnp.sqrt(fan_in)
        b = (jax.random.normal(kb, (1, fan_out), jnp.float32) * 0.01) if bias else None
        return w, b

    # Backbone stem stand-in (see TODO(synk) at top of file).
    wf, bf = lin(ks[0], IN_DIM, FEAT_DIM)
    # g head: Linear(2048,512,bias=False) -> BatchNorm1d(512) -> ReLU -> Linear(512,128)
    wg1, _ = lin(ks[1], FEAT_DIM, HID, bias=False)
    wg2, bg2 = lin(ks[2], HID, PROJ_DIM)

    # BatchNorm1d(512) eval-mode parameters / running stats.
    kg, kb2, km, kv = jax.random.split(ks[3], 4)
    gamma = 1.0 + 0.1 * jax.random.normal(kg, (1, HID), jnp.float32)
    beta = 0.1 * jax.random.normal(kb2, (1, HID), jnp.float32)
    mean = 0.1 * jax.random.normal(km, (1, HID), jnp.float32)
    var = jnp.abs(1.0 + 0.1 * jax.random.normal(kv, (1, HID), jnp.float32))
    bn_eps = 1e-5

    # Fold eval-mode BN into the first projection linear:
    #   y = (xW - mean) * gamma / sqrt(var+eps)  + beta  =  x W' + b'
    # TODO(synk): train-mode BatchNorm1d (batch statistics) is not representable in
    # this folded eval-mode form.
    scale = gamma * lax.rsqrt(var + bn_eps)
    wg1_eff = wg1 * scale
    bg1_eff = beta - mean * scale

    # Weights in bf16 (halves HBM traffic, MXU-native); biases stay f32.
    return (wf.astype(jnp.bfloat16), bf,
            wg1_eff.astype(jnp.bfloat16), bg1_eff,
            wg2.astype(jnp.bfloat16), bg2)


def reference_forward(x_nchw, params):
    # Pure-JAX reference with the identical dtype path (bf16 weights/LHS, f32 accum).
    (wf, bf, wg1, bg1, wg2, bg2) = params
    x = x_nchw.reshape(x_nchw.shape[0], -1).astype(jnp.bfloat16)
    feat = jnp.maximum(
        jnp.dot(x, wf, preferred_element_type=jnp.float32) + bf, 0.0)
    hg = jnp.maximum(
        jnp.dot(feat.astype(jnp.bfloat16), wg1, preferred_element_type=jnp.float32) + bg1,
        0.0)
    out = jnp.dot(hg.astype(jnp.bfloat16), wg2, preferred_element_type=jnp.float32) + bg2
    return _l2_normalize(feat), _l2_normalize(out)


if __name__ == "__main__":
    key = jax.random.PRNGKey(0)
    kx, kp = jax.random.split(key)

    # Small NCHW image batch consistent with the module.
    x = jax.random.normal(kx, (2, 4, 16, 16), jnp.float32)
    params = make_params(kp)

    feat_n, out_n = resnet50_forward(x, params)
    jax.block_until_ready((feat_n, out_n))

    rf, ro = reference_forward(x, params)
    assert feat_n.shape == (2, FEAT_DIM) and out_n.shape == (2, PROJ_DIM)
    assert jnp.allclose(feat_n, rf, atol=2e-2, rtol=2e-2)
    assert jnp.allclose(out_n, ro, atol=2e-2, rtol=2e-2)

    print("KERNEL_OK")
</pallas_src>

<mosaic_0001>
module attributes {stable_mosaic.version = 11 : i64} {
  func.func @resnet50_kernel(%arg0: i32, %arg1: memref<16x1024xbf16, #tpu.memory_space<vmem>>, %arg2: memref<1024x2048xbf16, #tpu.memory_space<vmem>>, %arg3: memref<1x2048xf32, #tpu.memory_space<vmem>>, %arg4: memref<2048x512xbf16, #tpu.memory_space<vmem>>, %arg5: memref<1x512xf32, #tpu.memory_space<vmem>>, %arg6: memref<512x128xbf16, #tpu.memory_space<vmem>>, %arg7: memref<1x128xf32, #tpu.memory_space<vmem>>, %arg8: memref<16x2048xf32, #tpu.memory_space<vmem>>, %arg9: memref<16x128xf32, #tpu.memory_space<vmem>>) attributes {dimension_semantics = [#tpu.dimension_semantics<parallel>], iteration_bounds = array<i64: 1>, scalar_prefetch = 0 : i64, scratch_operands = 0 : i64, tpu.core_type = #tpu.core_type<tc>, window_params = [{transform_indices = @transform_0, window_bounds = array<i64: 16, 1024>}, {pipeline_mode = #tpu.pipeline_mode<synchronous>, transform_indices = @transform_1, window_bounds = array<i64: 1024, 2048>}, {pipeline_mode = #tpu.pipeline_mode<synchronous>, transform_indices = @transform_2, window_bounds = array<i64: 1, 2048>}, {pipeline_mode = #tpu.pipeline_mode<synchronous>, transform_indices = @transform_3, window_bounds = array<i64: 2048, 512>}, {pipeline_mode = #tpu.pipeline_mode<synchronous>, transform_indices = @transform_4, window_bounds = array<i64: 1, 512>}, {pipeline_mode = #tpu.pipeline_mode<synchronous>, transform_indices = @transform_5, window_bounds = array<i64: 512, 128>}, {pipeline_mode = #tpu.pipeline_mode<synchronous>, transform_indices = @transform_6, window_bounds = array<i64: 1, 128>}, {transform_indices = @transform_7, window_bounds = array<i64: 16, 2048>}, {transform_indices = @transform_8, window_bounds = array<i64: 16, 128>}]} {
    %c0 = arith.constant 0 : index
    %c0_0 = arith.constant 0 : index
    %0 = vector.load %arg1[%c0, %c0_0] : memref<16x1024xbf16, #tpu.memory_space<vmem>>, vector<16x1024xbf16>
    %c0_1 = arith.constant 0 : index
    %c0_2 = arith.constant 0 : index
    %1 = vector.load %arg2[%c0_1, %c0_2] : memref<1024x2048xbf16, #tpu.memory_space<vmem>>, vector<1024x2048xbf16>
    %cst = arith.constant dense<0.000000e+00> : vector<16x2048xf32>
    %2 = tpu.matmul %0, %1, %cst {dimension_numbers = #tpu.dot_dimension_numbers<[1], [0], [0], [1], [0, 0, 1, 1], [], []>} : vector<16x1024xbf16>, vector<1024x2048xbf16>, vector<16x2048xf32> -> vector<16x2048xf32>
    %c0_3 = arith.constant 0 : index
    %c0_4 = arith.constant 0 : index
    %3 = vector.load %arg3[%c0_3, %c0_4] : memref<1x2048xf32, #tpu.memory_space<vmem>>, vector<1x2048xf32>
    %4 = vector.broadcast %3 : vector<1x2048xf32> to vector<16x2048xf32>
    %5 = arith.addf %2, %4 : vector<16x2048xf32>
    %cst_5 = arith.constant 0.000000e+00 : f32
    %6 = vector.broadcast %cst_5 : f32 to vector<16x2048xf32>
    %7 = arith.maximumf %5, %6 : vector<16x2048xf32>
    %8 = arith.truncf %7 : vector<16x2048xf32> to vector<16x2048xbf16>
    %c0_6 = arith.constant 0 : index
    %c0_7 = arith.constant 0 : index
    %9 = vector.load %arg4[%c0_6, %c0_7] : memref<2048x512xbf16, #tpu.memory_space<vmem>>, vector<2048x512xbf16>
    %cst_8 = arith.constant dense<0.000000e+00> : vector<16x512xf32>
    %10 = tpu.matmul %8, %9, %cst_8 {dimension_numbers = #tpu.dot_dimension_numbers<[1], [0], [0], [1], [0, 0, 1, 1], [], []>} : vector<16x2048xbf16>, vector<2048x512xbf16>, vector<16x512xf32> -> vector<16x512xf32>
    %c0_9 = arith.constant 0 : index
    %c0_10 = arith.constant 0 : index
    %11 = vector.load %arg5[%c0_9, %c0_10] : memref<1x512xf32, #tpu.memory_space<vmem>>, vector<1x512xf32>
    %12 = vector.broadcast %11 : vector<1x512xf32> to vector<16x512xf32>
    %13 = arith.addf %10, %12 : vector<16x512xf32>
    %cst_11 = arith.constant 0.000000e+00 : f32
    %14 = vector.broadcast %cst_11 : f32 to vector<16x512xf32>
    %15 = arith.maximumf %13, %14 : vector<16x512xf32>
    %16 = arith.truncf %15 : vector<16x512xf32> to vector<16x512xbf16>
    %c0_12 = arith.constant 0 : index
    %c0_13 = arith.constant 0 : index
    %17 = vector.load %arg6[%c0_12, %c0_13] : memref<512x128xbf16, #tpu.memory_space<vmem>>, vector<512x128xbf16>
    %cst_14 = arith.constant dense<0.000000e+00> : vector<16x128xf32>
    %18 = tpu.matmul %16, %17, %cst_14 {dimension_numbers = #tpu.dot_dimension_numbers<[1], [0], [0], [1], [0, 0, 1, 1], [], []>} : vector<16x512xbf16>, vector<512x128xbf16>, vector<16x128xf32> -> vector<16x128xf32>
    %c0_15 = arith.constant 0 : index
    %c0_16 = arith.constant 0 : index
    %19 = vector.load %arg7[%c0_15, %c0_16] : memref<1x128xf32, #tpu.memory_space<vmem>>, vector<1x128xf32>
    %20 = vector.broadcast %19 : vector<1x128xf32> to vector<16x128xf32>
    %21 = arith.addf %18, %20 : vector<16x128xf32>
    %22 = arith.mulf %7, %7 : vector<16x2048xf32>
    %cst_17 = arith.constant dense<0.000000e+00> : vector<16xf32>
    %23 = vector.multi_reduction <add>, %22, %cst_17 [1] : vector<16x2048xf32> to vector<16xf32>
    %24 = vector.shape_cast %23 : vector<16xf32> to vector<16x1xf32>
    %cst_18 = arith.constant 1.000000e-24 : f32
    %25 = vector.broadcast %cst_18 : f32 to vector<16x1xf32>
    %26 = arith.maximumf %24, %25 : vector<16x1xf32>
    %27 = math.rsqrt %26 : vector<16x1xf32>
    %28 = vector.broadcast %27 : vector<16x1xf32> to vector<16x2048xf32>
    %29 = arith.mulf %7, %28 : vector<16x2048xf32>
    %c0_19 = arith.constant 0 : index
    %c0_20 = arith.constant 0 : index
    %30 = vector.load %arg8[%c0_19, %c0_20] : memref<16x2048xf32, #tpu.memory_space<vmem>>, vector<16x2048xf32>
    tpu.vector_store %arg8[%c0_19, %c0_20], %29 {strides = array<i32>} : memref<16x2048xf32, #tpu.memory_space<vmem>>, vector<16x2048xf32>,
    %31 = arith.mulf %21, %21 : vector<16x128xf32>
    %cst_21 = arith.constant dense<0.000000e+00> : vector<16xf32>
    %32 = vector.multi_reduction <add>, %31, %cst_21 [1] : vector<16x128xf32> to vector<16xf32>
    %33 = vector.shape_cast %32 : vector<16xf32> to vector<16x1xf32>
    %cst_22 = arith.constant 1.000000e-24 : f32
    %34 = vector.broadcast %cst_22 : f32 to vector<16x1xf32>
    %35 = arith.maximumf %33, %34 : vector<16x1xf32>
    %36 = math.rsqrt %35 : vector<16x1xf32>
    %37 = vector.broadcast %36 : vector<16x1xf32> to vector<16x128xf32>
    %38 = arith.mulf %21, %37 : vector<16x128xf32>
    %c0_23 = arith.constant 0 : index
    %c0_24 = arith.constant 0 : index
    %39 = vector.load %arg9[%c0_23, %c0_24] : memref<16x128xf32, #tpu.memory_space<vmem>>, vector<16x128xf32>
    tpu.vector_store %arg9[%c0_23, %c0_24], %38 {strides = array<i32>} : memref<16x128xf32, #tpu.memory_space<vmem>>, vector<16x128xf32>,
    return
  }
  func.func @transform_0(%arg0: i32) -> (i32, i32) {
    %c0_i32 = arith.constant 0 : i32
    %c0_i32_0 = arith.constant 0 : i32
    return %arg0, %c0_i32 : i32, i32
  }
  func.func @transform_1(%arg0: i32) -> (i32, i32) {
    %c0_i32 = arith.constant 0 : i32
    %c0_i32_0 = arith.constant 0 : i32
    %c0_i32_1 = arith.constant 0 : i32
    return %c0_i32, %c0_i32_0 : i32, i32
  }
  func.func @transform_2(%arg0: i32) -> (i32, i32) {
    %c0_i32 = arith.constant 0 : i32
    %c0_i32_0 = arith.constant 0 : i32
    %c0_i32_1 = arith.constant 0 : i32
    return %c0_i32, %c0_i32_0 : i32, i32
  }
  func.func @transform_3(%arg0: i32) -> (i32, i32) {
    %c0_i32 = arith.constant 0 : i32
    %c0_i32_0 = arith.constant 0 : i32
    %c0_i32_1 = arith.constant 0 : i32
    return %c0_i32, %c0_i32_0 : i32, i32
  }
  func.func @transform_4(%arg0: i32) -> (i32, i32) {
    %c0_i32 = arith.constant 0 : i32
    %c0_i32_0 = arith.constant 0 : i32
    %c0_i32_1 = arith.constant 0 : i32
    return %c0_i32, %c0_i32_0 : i32, i32
  }
  func.func @transform_5(%arg0: i32) -> (i32, i32) {
    %c0_i32 = arith.constant 0 : i32
    %c0_i32_0 = arith.constant 0 : i32
    %c0_i32_1 = arith.constant 0 : i32
    return %c0_i32, %c0_i32_0 : i32, i32
  }
  func.func @transform_6(%arg0: i32) -> (i32, i32) {
    %c0_i32 = arith.constant 0 : i32
    %c0_i32_0 = arith.constant 0 : i32
    %c0_i32_1 = arith.constant 0 : i32
    return %c0_i32, %c0_i32_0 : i32, i32
  }
  func.func @transform_7(%arg0: i32) -> (i32, i32) {
    %c0_i32 = arith.constant 0 : i32
    %c0_i32_0 = arith.constant 0 : i32
    return %arg0, %c0_i32 : i32, i32
  }
  func.func @transform_8(%arg0: i32) -> (i32, i32) {
    %c0_i32 = arith.constant 0 : i32
    %c0_i32_0 = arith.constant 0 : i32
    return %arg0, %c0_i32 : i32, i32
  }
}

</mosaic_0001>

<bundles_post_ra>
// kernel: tpu_custom_call.1
= control target key start
LH: loop header
LB: loop body
LE: loop exit
PB: predicated region body
PF: predicated region fallthrough
CT: control target
= control target key end

     0   :  { %14 = vsyncpa [#allocation3], 0  ;;  %s15638_s0 = inlined_call_operand.hbm [shape: bf16[16,1024], index: 0, kind: input, shape index: {}]   ;;  %s15639_s1 = inlined_call_operand.hbm [shape: bf16[1024,2048], index: 1, kind: input, shape index: {}]   ;;  %s15640_s2 = inlined_call_operand.hbm [shape: f32[1,2048], index: 2, kind: input, shape index: {}]   ;;  %s15641_s3 = inlined_call_operand.hbm [shape: bf16[2048,512], index: 3, kind: input, shape index: {}]   ;;  %s15642_s4 = inlined_call_operand.hbm [shape: f32[1,512], index: 4, kind: input, shape index: {}]   ;;  %s15643_s5 = inlined_call_operand.hbm [shape: bf16[512,128], index: 5, kind: input, shape index: {}]   ;;  %s15644_s6 = inlined_call_operand.hbm [shape: f32[1,128], index: 6, kind: input, shape index: {}]   ;;  %s15645_s7 = inlined_call_operand.hbm [shape: f32[16,2048], index: 7, kind: output, shape index: {0}]   ;;  %s15646_s8 = inlined_call_operand.hbm [shape: f32[16,128], index: 8, kind: output, shape index: {1}]  }
   0x1   :  { %15 = vsyncpa [#allocation6], 0 }
   0x2   :  { %16 = vsyncpa [#allocation9], 0 }
   0x3   :  { %17 = vsyncpa [#allocation12], 0 }
   0x4   :  { %18 = vsyncpa [#allocation4], 0 }
   0x5   :  { %19 = vsyncpa [#allocation16], 0  ;;  %s14787_s27 = smov [#allocation5]  }
   0x6   :  { %s37_s28 = sshll.u32 %s14787_s27, 4  ;;  %s38_s28 = int_to_ptr.vmem [resolvable:$true] %s37_s28 }
   0x7   :  { %s14603_s29 = scalar_lea.vmem %s38_s28, 131072  ;;  %p14608_p1 = scmp.lt.s32.totalorder %s38_s28, %s38_s28 }
   0x8   :  { %p14604_p0 = scmp.ne.s32.totalorder %s38_s28, %s14603_s29  ;;  %p14609_p2 = scmp.lt.s32.totalorder %s14603_s29, %s14603_s29 }
   0xa   :  { %p14610_p3 = por %p14609_p2, %p14608_p1 }
   0xc   :  { %p14611_p4 = pnand %p14610_p3, %p14604_p0 }
   0xe   :  { %14614 = shalt.err (!%p14611_p4)
}
   0xf   :  { %s14788_s30 = smov 1024   ;;  %s14789_s9 = smov 64  }
  0x10   :  { %43 = dma.hbm_to_vmem [thread:$0]  %s15639_s1, 131072, %s38_s28, [#allocation6], %s14788_s30, %s14788_s30, %s14789_s9  }
  0x11   :  { %s14790_s12 = smov [#allocation8]  }
  0x12   :  { %s59_s13 = sshll.u32 %s14790_s12, 4  ;;  %s60_s13 = int_to_ptr.vmem [resolvable:$true] %s59_s13 }
  0x13   :  { %s14623_s14 = scalar_lea.vmem %s60_s13, 65536  ;;  %p14628_p6 = scmp.lt.s32.totalorder %s60_s13, %s60_s13 }
  0x14   :  { %p14624_p5 = scmp.ne.s32.totalorder %s60_s13, %s14623_s14  ;;  %p14629_p7 = scmp.lt.s32.totalorder %s14623_s14, %s14623_s14 }
  0x16   :  { %p14630_p8 = por %p14629_p7, %p14628_p6 }
  0x18   :  { %p14631_p9 = pnand %p14630_p8, %p14624_p5 }
  0x1a   :  { %14634 = shalt.err (!%p14631_p9)
}
  0x1b   :  { %s14791_s15 = smov 256   ;;  %s14792_s16 = smov 16  }
  0x1c   :  { %65 = dma.hbm_to_vmem [thread:$0]  %s15641_s3, 65536, %s60_s13, [#allocation9], %s14791_s15, %s14791_s15, %s14792_s16  }
  0x1d   :  { %s14793_s19 = smov [#allocation11]   ;;  %s14794_s1 = smov [#allocation2]  }
  0x1e   :  { %s81_s20 = sshll.u32 %s14793_s19, 4  ;;  %s25_s21 = sshll.u32 %s14794_s1, 4  ;;  %s82_s20 = int_to_ptr.vmem [resolvable:$true] %s81_s20  ;;  %s26_s21 = int_to_ptr.vmem [resolvable:$true] %s25_s21 }
  0x1f   :  { %s14643_s22 = scalar_lea.vmem %s82_s20, 4096  ;;  %p14648_p11 = scmp.lt.s32.totalorder %s82_s20, %s82_s20 }
  0x20   :  { %p14644_p10 = scmp.ne.s32.totalorder %s82_s20, %s14643_s22  ;;  %p14649_p12 = scmp.lt.s32.totalorder %s14643_s22, %s14643_s22 }
  0x22   :  { %p14650_p13 = por %p14649_p12, %p14648_p11 }
  0x24   :  { %p14651_p0 = pnand %p14650_p13, %p14644_p10 }
  0x26   :  { %14654 = shalt.err (!%p14651_p0)
}
  0x27   :  { %s14795_s23 = smov 4   ;;  %s14663_s3 = scalar_lea.vmem %s26_s21, 1024 }
  0x28   :  { %87 = dma.hbm_to_vmem [thread:$0]  %s15643_s5, 4096, %s82_s20, [#allocation12], %s14789_s9, %s14789_s9, %s14795_s23  }
  0x29   :  { %p14664_p1 = scmp.ne.s32.totalorder %s26_s21, %s14663_s3  ;;  %p14668_p2 = scmp.lt.s32.totalorder %s26_s21, %s26_s21 }
  0x2a   :  { %p14669_p3 = scmp.lt.s32.totalorder %s14663_s3, %s14663_s3 }
  0x2c   :  { %p14670_p4 = por %p14669_p3, %p14668_p2 }
  0x2e   :  { %p14671_p5 = pnand %p14670_p4, %p14664_p1 }
  0x30   :  { %14674 = shalt.err (!%p14671_p5)
}
  0x31   :  { %s14796_s26 = smov 512   ;;  %s14797_s27 = smov 32  }
  0x32   :  { %31 = dma.hbm_to_vmem [thread:$0]  %s15638_s0, 1024, %s26_s21, [#allocation3], %s14796_s26, %s14796_s26, %s14797_s27  }
  0x33   :  { %s14798_s30 = smov [#allocation7]   ;;  %s14799_s11 = smov [#allocation10]  }
  0x34   :  { %s50_s10 = sshll.u32 %s14798_s30, 4  ;;  %s72_s12 = sshll.u32 %s14799_s11, 4  ;;  %s51_s10 = int_to_ptr.vmem [resolvable:$true] %s50_s10  ;;  %s73_s12 = int_to_ptr.vmem [resolvable:$true] %s72_s12 }
  0x35   :  { %s14683_s5 = scalar_lea.vmem %s51_s10, 256  ;;  %p14688_p7 = scmp.lt.s32.totalorder %s51_s10, %s51_s10 }
  0x36   :  { %p14684_p6 = scmp.ne.s32.totalorder %s51_s10, %s14683_s5  ;;  %p14689_p8 = scmp.lt.s32.totalorder %s14683_s5, %s14683_s5 }
  0x38   :  { %p14690_p9 = por %p14689_p8, %p14688_p7 }
  0x3a   :  { %p14691_p10 = pnand %p14690_p9, %p14684_p6 }
  0x3c   :  { %14694 = shalt.err (!%p14691_p10)
}
  0x3d   :  { %53 = dma.hbm_to_vmem [thread:$0]  %s15640_s2, 256, %s51_s10, [#allocation6]  }
  0x3e   :  { %s14703_s14 = scalar_lea.vmem %s73_s12, 64  ;;  %p14708_p12 = scmp.lt.s32.totalorder %s73_s12, %s73_s12 }
  0x3f   :  { %p14704_p11 = scmp.ne.s32.totalorder %s73_s12, %s14703_s14  ;;  %p14709_p13 = scmp.lt.s32.totalorder %s14703_s14, %s14703_s14 }
  0x41   :  { %p14710_p0 = por %p14709_p13, %p14708_p12 }
  0x43   :  { %p14711_p1 = pnand %p14710_p0, %p14704_p11 }
  0x45   :  { %14714 = shalt.err (!%p14711_p1)
}
  0x46   :  { %75 = dma.hbm_to_vmem [thread:$0]  %s15642_s4, 64, %s73_s12, [#allocation9]  }
  0x47   :  { %s14800_s16 = smov [#allocation13]  }
  0x48   :  { %s94_s17 = sshll.u32 %s14800_s16, 4  ;;  %s95_s17 = int_to_ptr.vmem [resolvable:$true] %s94_s17 }
  0x49   :  { %s14723_s18 = scalar_lea.vmem %s95_s17, 16  ;;  %s14727_s19 = scalar_lea.vmem %s95_s17, 32 }
  0x4a   :  { %p14724_p2 = scmp.ne.s32.totalorder %s95_s17, %s14723_s18  ;;  %p14728_p3 = scmp.lt.s32.totalorder %s95_s17, %s95_s17 }
  0x4b   :  { %p14729_p4 = scmp.lt.s32.totalorder %s14727_s19, %s14723_s18 }
  0x4d   :  { %p14730_p5 = por %p14729_p4, %p14728_p3 }
  0x4f   :  { %p14731_p6 = pnand %p14730_p5, %p14724_p2 }
  0x51   :  { %14734 = shalt.err (!%p14731_p6)
}
  0x52   :  { %97 = dma.hbm_to_vmem [thread:$0]  %s15644_s6, 16, %s95_s17, [#allocation12]  }
  0x53   :  { %14775 = dma.done.wait [#allocation3], 1024  }
  0x54   :  { %14776 = vsyncadd [#allocation3], 4294966272 }
  0x55   :  { %14777 = dma.done.wait [#allocation6], 131328  }
  0x56   :  { %14778 = vsyncadd [#allocation6], 4294835968 }
  0x57   :  { %14779 = dma.done.wait [#allocation9], 65600  }
  0x58   :  { %14780 = vsyncadd [#allocation9], 4294901696 }
  0x59   :  { %14781 = dma.done.wait [#allocation12], 4112  }
  0x5a   :  { %14782 = vsyncadd [#allocation12], 4294963184  ;;  %v240_v0 = vld [vmem:[#allocation5 + $0x380] sm:$0xff]  ;;  %v14883_v59 = vld [vmem:[#allocation2 + $0x8] sm:$0xff]  ;;  %s14801_s4 = smov [#allocation14]  }
  0x5b   :  { %v248_v1 = vld [vmem:[#allocation5 + $0x3c0] sm:$0xff]  ;;  %v14885_v60 = vld [vmem:[#allocation2 + $0x28] sm:$0xff]  ;;  %s12112_s6 = sshll.u32 %s14801_s4, 4  ;;  %s12113_s6 = int_to_ptr.vmem [resolvable:$true] %s12112_s6 }
  0x5c   :  { %v496_v2 = vld [vmem:[#allocation5 + $0xb80] sm:$0xff]  ;;  %v12264_v3 = vcombine.high %v240_v0, %v248_v1  ;;  %v12263_v5 = vcombine.low %v240_v0, %v248_v1  ;;  %v14889_v63 = vcombine.high %v14883_v59, %v14885_v60  ;;  %s14735_s1 = scalar_lea.vmem %s12113_s6, 4096  ;;  %p14740_p8 = scmp.lt.s32.totalorder %s12113_s6, %s12113_s6 }
  0x5d   :  { %v504_v4 = vld [vmem:[#allocation5 + $0xbc0] sm:$0xff]  ;;  %p14736_p7 = scmp.ne.s32.totalorder %s12113_s6, %s14735_s1  ;;  %p14741_p9 = scmp.lt.s32.totalorder %s14735_s1, %s14735_s1 }
  0x5e   :  { %v224_v6 = vld [vmem:[#allocation5 + $0x300] sm:$0xff]  ;;  %v12520_v8 = vcombine.high %v496_v2, %v504_v4  ;;  %v12519_v9 = vcombine.low %v496_v2, %v504_v4  ;;  %6396 = vmatprep.subr.bf16.mxu0 %v12264_v3  ;;  %6471 = vmatprep.mubr.bf16.mxu1 %v14889_v63 }
  0x5f   :  { %v232_v7 = vld [vmem:[#allocation5 + $0x340] sm:$0xff]  ;;  %6397 = vmatpush1.bf16.msra.mxu0 %v12263_v5  ;;  %p14742_p10 = por %p14741_p9, %p14740_p8 }
  0x60   :  { %v12248_v10 = vcombine.high %v224_v6, %v232_v7  ;;  %v480_v11 = vld [vmem:[#allocation5 + $0xb00] sm:$0xff]  ;;  %6439 = vmatprep.subr.bf16.mxu1 %v12520_v8  ;;  %v12247_v18 = vcombine.low %v224_v6, %v232_v7 }
  0x61   :  { %v488_v12 = vld [vmem:[#allocation5 + $0xb40] sm:$0xff]  ;;  %6440 = vmatpush1.bf16.msra.mxu1 %v12519_v9  ;;  %p14743_p11 = pnand %p14742_p10, %p14736_p7 }
  0x62   :  { %v208_v13 = vld [vmem:[#allocation5 + $0x280] sm:$0xff]  ;;  %v12504_v14 = vcombine.high %v480_v11, %v488_v12  ;;  %6398 = vmatprep.subr.bf16.mxu0 %v12248_v10  ;;  %v12503_v19 = vcombine.low %v480_v11, %v488_v12 }
  0x63   :  { %v216_v15 = vld [vmem:[#allocation5 + $0x2c0] sm:$0xff]  ;;  %6399 = vmatpush1.bf16.msra.mxu0 %v12247_v18 }
  0x64   :  { %v464_v16 = vld [vmem:[#allocation5 + $0xa80] sm:$0xff]  ;;  %v12232_v20 = vcombine.high %v208_v13, %v216_v15  ;;  %6441 = vmatprep.subr.bf16.mxu1 %v12504_v14  ;;  %v12231_v26 = vcombine.low %v208_v13, %v216_v15 }
  0x65   :  { %v472_v17 = vld [vmem:[#allocation5 + $0xac0] sm:$0xff]  ;;  %6442 = vmatpush1.bf16.msra.mxu1 %v12503_v19 }
  0x66   :  { %v12488_v21 = vcombine.high %v464_v16, %v472_v17  ;;  %v192_v22 = vld [vmem:[#allocation5 + $0x200] sm:$0xff]  ;;  %6400 = vmatprep.subr.bf16.mxu0 %v12232_v20  ;;  %v12487_v27 = vcombine.low %v464_v16, %v472_v17 }
  0x67   :  { %v200_v23 = vld [vmem:[#allocation5 + $0x240] sm:$0xff]  ;;  %6401 = vmatpush1.bf16.msra.mxu0 %v12231_v26 }
  0x68   :  { %v448_v24 = vld [vmem:[#allocation5 + $0xa00] sm:$0xff]  ;;  %v12216_v28 = vcombine.high %v192_v22, %v200_v23  ;;  %6443 = vmatprep.subr.bf16.mxu1 %v12488_v21  ;;  %v12215_v34 = vcombine.low %v192_v22, %v200_v23 }
  0x69   :  { %v456_v25 = vld [vmem:[#allocation5 + $0xa40] sm:$0xff]  ;;  %6444 = vmatpush1.bf16.msra.mxu1 %v12487_v27 }
  0x6a   :  { %v12472_v29 = vcombine.high %v448_v24, %v456_v25  ;;  %v176_v30 = vld [vmem:[#allocation5 + $0x180] sm:$0xff]  ;;  %6402 = vmatprep.subr.bf16.mxu0 %v12216_v28  ;;  %v12471_v35 = vcombine.low %v448_v24, %v456_v25 }
  0x6b   :  { %v184_v31 = vld [vmem:[#allocation5 + $0x1c0] sm:$0xff]  ;;  %6403 = vmatpush1.bf16.msra.mxu0 %v12215_v34 }
  0x6c   :  { %v432_v32 = vld [vmem:[#allocation5 + $0x980] sm:$0xff]  ;;  %v12200_v36 = vcombine.high %v176_v30, %v184_v31  ;;  %6445 = vmatprep.subr.bf16.mxu1 %v12472_v29  ;;  %v12199_v42 = vcombine.low %v176_v30, %v184_v31 }
  0x6d   :  { %v440_v33 = vld [vmem:[#allocation5 + $0x9c0] sm:$0xff]  ;;  %6446 = vmatpush1.bf16.msra.mxu1 %v12471_v35 }
  0x6e   :  { %v12456_v37 = vcombine.high %v432_v32, %v440_v33  ;;  %v160_v38 = vld [vmem:[#allocation5 + $0x100] sm:$0xff]  ;;  %6404 = vmatprep.subr.bf16.mxu0 %v12200_v36  ;;  %v12455_v43 = vcombine.low %v432_v32, %v440_v33 }
  0x6f   :  { %v168_v39 = vld [vmem:[#allocation5 + $0x140] sm:$0xff]  ;;  %6405 = vmatpush1.bf16.msra.mxu0 %v12199_v42 }
  0x70   :  { %v416_v40 = vld [vmem:[#allocation5 + $0x900] sm:$0xff]  ;;  %v12184_v44 = vcombine.high %v160_v38, %v168_v39  ;;  %6447 = vmatprep.subr.bf16.mxu1 %v12456_v37  ;;  %v12183_v50 = vcombine.low %v160_v38, %v168_v39 }
  0x71   :  { %v424_v41 = vld [vmem:[#allocation5 + $0x940] sm:$0xff]  ;;  %6448 = vmatpush1.bf16.msra.mxu1 %v12455_v43 }
  0x72   :  { %v12440_v45 = vcombine.high %v416_v40, %v424_v41  ;;  %v144_v46 = vld [vmem:[#allocation5 + $0x80] sm:$0xff]  ;;  %6406 = vmatprep.subr.bf16.mxu0 %v12184_v44  ;;  %v12439_v51 = vcombine.low %v416_v40, %v424_v41 }
  0x73   :  { %v152_v47 = vld [vmem:[#allocation5 + $0xc0] sm:$0xff]  ;;  %6407 = vmatpush1.bf16.msra.mxu0 %v12183_v50 }
  0x74   :  { %v400_v48 = vld [vmem:[#allocation5 + $0x880] sm:$0xff]  ;;  %v12168_v52 = vcombine.high %v144_v46, %v152_v47  ;;  %6449 = vmatprep.subr.bf16.mxu1 %v12440_v45  ;;  %v12167_v0 = vcombine.low %v144_v46, %v152_v47 }
  0x75   :  { %v408_v49 = vld [vmem:[#allocation5 + $0x8c0] sm:$0xff]  ;;  %6450 = vmatpush1.bf16.msra.mxu1 %v12439_v51 }
  0x76   :  { %v128_v53 = vld [vmem:[#allocation5] sm:$0xff]  ;;  %v12424_v56 = vcombine.high %v400_v48, %v408_v49  ;;  %6408 = vmatprep.subr.bf16.mxu0 %v12168_v52  ;;  %v12423_v1 = vcombine.low %v400_v48, %v408_v49 }
  0x77   :  { %v14875_v54 = vld [vmem:[#allocation2] sm:$0xff]  ;;  %6409 = vmatpush1.bf16.msra.mxu0 %v12167_v0 }
  0x78   :  { %v14877_v55 = vld [vmem:[#allocation2 + $0x20] sm:$0xff]  ;;  %6451 = vmatprep.subr.bf16.mxu1 %v12424_v56 }
  0x79   :  { %v136_v57 = vld [vmem:[#allocation5 + $0x40] sm:$0xff]  ;;  %v14881_v58 = vcombine.high %v14875_v54, %v14877_v55  ;;  %6452 = vmatpush1.bf16.msra.mxu1 %v12423_v1 }
  0x7a   :  { %v384_v61 = vld [vmem:[#allocation5 + $0x800] sm:$0xff]  ;;  %v12152_v2 = vcombine.high %v128_v53, %v136_v57  ;;  %v12151_v8 = vcombine.low %v128_v53, %v136_v57 }
  0x7b   :  { %v392_v62 = vld [vmem:[#allocation5 + $0x840] sm:$0xff]  ;;  %6428 = vmatprep.mubr.bf16.mxu0 %v14881_v58 }
  0x7c   :  { %v12408_v3 = vcombine.high %v384_v61, %v392_v62  ;;  %v368_v4 = vld [vmem:[#allocation5 + $0x780] sm:$0xff]  ;;  %6410 = vmatprep.subr.bf16.mxu0 %v12152_v2  ;;  %v12407_v9 = vcombine.low %v384_v61, %v392_v62 }
  0x7d   :  { %v376_v5 = vld [vmem:[#allocation5 + $0x7c0] sm:$0xff]  ;;  %6411 = vmatpush1.bf16.msra.mxu0 %v12151_v8 }
  0x7e   :  { %v624_v6 = vld [vmem:[#allocation5 + $0xf80] sm:$0xff]  ;;  %v12392_v10 = vcombine.high %v368_v4, %v376_v5  ;;  %6453 = vmatprep.subr.bf16.mxu1 %v12408_v3  ;;  %v12391_v16 = vcombine.low %v368_v4, %v376_v5 }
  0x7f   :  { %v632_v7 = vld [vmem:[#allocation5 + $0xfc0] sm:$0xff]  ;;  %6454 = vmatpush1.bf16.msra.mxu1 %v12407_v9 }
  0x80   :  { %v12648_v11 = vcombine.high %v624_v6, %v632_v7  ;;  %v352_v12 = vld [vmem:[#allocation5 + $0x700] sm:$0xff]  ;;  %6412 = vmatprep.subr.bf16.mxu0 %v12392_v10  ;;  %v12647_v17 = vcombine.low %v624_v6, %v632_v7 }
  0x81   :  { %v360_v13 = vld [vmem:[#allocation5 + $0x740] sm:$0xff]  ;;  %6413 = vmatpush2.bf16.msra.mxu0 %v12391_v16 }
  0x82   :  { %v608_v14 = vld [vmem:[#allocation5 + $0xf00] sm:$0xff]  ;;  %v12376_v18 = vcombine.high %v352_v12, %v360_v13  ;;  %6455 = vmatprep.subr.bf16.mxu1 %v12648_v11  ;;  %v12375_v24 = vcombine.low %v352_v12, %v360_v13 }
  0x83   :  { %v616_v15 = vld [vmem:[#allocation5 + $0xf40] sm:$0xff]  ;;  %6456 = vmatpush2.bf16.msra.mxu1 %v12647_v17 }
  0x84   :  { %v12632_v19 = vcombine.high %v608_v14, %v616_v15  ;;  %v336_v20 = vld [vmem:[#allocation5 + $0x680] sm:$0xff]  ;;  %6414 = vmatprep.subr.bf16.mxu0 %v12376_v18  ;;  %v12631_v25 = vcombine.low %v608_v14, %v616_v15 }
  0x85   :  { %v344_v21 = vld [vmem:[#allocation5 + $0x6c0] sm:$0xff]  ;;  %6415 = vmatpush2.bf16.msra.mxu0 %v12375_v24  ;;  %v14899_v24 = vld [vmem:[#allocation2 + $0x30] sm:$0xff] }
  0x86   :  { %v592_v22 = vld [vmem:[#allocation5 + $0xe80] sm:$0xff]  ;;  %v12360_v26 = vcombine.high %v336_v20, %v344_v21  ;;  %6457 = vmatprep.subr.bf16.mxu1 %v12632_v19  ;;  %v12359_v32 = vcombine.low %v336_v20, %v344_v21  ;;  %v14895_v21 = vcombine.low %v14875_v54, %v14877_v55 }
  0x87   :  { %v600_v23 = vld [vmem:[#allocation5 + $0xec0] sm:$0xff]  ;;  %6458 = vmatpush2.bf16.msra.mxu1 %v12631_v25  ;;  %v14903_v25 = vcombine.low %v14883_v59, %v14885_v60 }
  0x88   :  { %v12616_v27 = vcombine.high %v592_v22, %v600_v23  ;;  %v320_v28 = vld [vmem:[#allocation5 + $0x600] sm:$0xff]  ;;  %6416 = vmatprep.subr.bf16.mxu0 %v12360_v26  ;;  %v12615_v33 = vcombine.low %v592_v22, %v600_v23  ;;  %v14897_v23 = vld [vmem:[#allocation2 + $0x10] sm:$0xff] }
  0x89   :  { %v328_v29 = vld [vmem:[#allocation5 + $0x640] sm:$0xff]  ;;  %6417 = vmatpush2.bf16.msra.mxu0 %v12359_v32  ;;  %v14911_v32 = vcombine.high %v14897_v23, %v14899_v24 }
  0x8a   :  { %v576_v30 = vld [vmem:[#allocation5 + $0xe00] sm:$0xff]  ;;  %v12344_v34 = vcombine.high %v320_v28, %v328_v29  ;;  %6459 = vmatprep.subr.bf16.mxu1 %v12616_v27  ;;  %v12343_v40 = vcombine.low %v320_v28, %v328_v29  ;;  %v14905_v27 = vld [vmem:[#allocation2 + $0x18] sm:$0xff] }
  0x8b   :  { %v584_v31 = vld [vmem:[#allocation5 + $0xe40] sm:$0xff]  ;;  %6460 = vmatpush2.bf16.msra.mxu1 %v12615_v33  ;;  %v14907_v28 = vld [vmem:[#allocation2 + $0x38] sm:$0xff] }
  0x8c   :  { %v12600_v35 = vcombine.high %v576_v30, %v584_v31  ;;  %v304_v36 = vld [vmem:[#allocation5 + $0x580] sm:$0xff]  ;;  %6418 = vmatprep.subr.bf16.mxu0 %v12344_v34  ;;  %v12599_v41 = vcombine.low %v576_v30, %v584_v31  ;;  %v14916_v33 = vcombine.high %v14905_v27, %v14907_v28 }
  0x8d   :  { %v312_v37 = vld [vmem:[#allocation5 + $0x5c0] sm:$0xff]  ;;  %6419 = vmatpush2.bf16.msra.mxu0 %v12343_v40 }
  0x8e   :  { %v560_v38 = vld [vmem:[#allocation5 + $0xd80] sm:$0xff]  ;;  %v12328_v42 = vcombine.high %v304_v36, %v312_v37  ;;  %6461 = vmatprep.subr.bf16.mxu1 %v12600_v35  ;;  %v12327_v48 = vcombine.low %v304_v36, %v312_v37 }
  0x8f   :  { %v568_v39 = vld [vmem:[#allocation5 + $0xdc0] sm:$0xff]  ;;  %6462 = vmatpush2.bf16.msra.mxu1 %v12599_v41 }
  0x90   :  { %v12584_v43 = vcombine.high %v560_v38, %v568_v39  ;;  %v288_v44 = vld [vmem:[#allocation5 + $0x500] sm:$0xff]  ;;  %6420 = vmatprep.subr.bf16.mxu0 %v12328_v42  ;;  %v12583_v49 = vcombine.low %v560_v38, %v568_v39 }
  0x91   :  { %v296_v45 = vld [vmem:[#allocation5 + $0x540] sm:$0xff]  ;;  %6421 = vmatpush2.bf16.msra.mxu0 %v12327_v48 }
  0x92   :  { %v544_v46 = vld [vmem:[#allocation5 + $0xd00] sm:$0xff]  ;;  %v12312_v50 = vcombine.high %v288_v44, %v296_v45  ;;  %6463 = vmatprep.subr.bf16.mxu1 %v12584_v43  ;;  %v12311_v61 = vcombine.low %v288_v44, %v296_v45 }
  0x93   :  { %v552_v47 = vld [vmem:[#allocation5 + $0xd40] sm:$0xff]  ;;  %6464 = vmatpush2.bf16.msra.mxu1 %v12583_v49 }
  0x94   :  { %v12568_v51 = vcombine.high %v544_v46, %v552_v47  ;;  %v272_v52 = vld [vmem:[#allocation5 + $0x480] sm:$0xff]  ;;  %6422 = vmatprep.subr.bf16.mxu0 %v12312_v50  ;;  %v12567_v62 = vcombine.low %v544_v46, %v552_v47 }
  0x95   :  { %v280_v53 = vld [vmem:[#allocation5 + $0x4c0] sm:$0xff]  ;;  %6423 = vmatpush2.bf16.msra.mxu0 %v12311_v61 }
  0x96   :  { %v528_v56 = vld [vmem:[#allocation5 + $0xc80] sm:$0xff]  ;;  %v12296_v0 = vcombine.high %v272_v52, %v280_v53  ;;  %6465 = vmatprep.subr.bf16.mxu1 %v12568_v51  ;;  %v12295_v6 = vcombine.low %v272_v52, %v280_v53 }
  0x97   :  { %v536_v57 = vld [vmem:[#allocation5 + $0xcc0] sm:$0xff]  ;;  %6466 = vmatpush2.bf16.msra.mxu1 %v12567_v62 }
  0x98   :  { %v12552_v1 = vcombine.high %v528_v56, %v536_v57  ;;  %v256_v2 = vld [vmem:[#allocation5 + $0x400] sm:$0xff]  ;;  %6424 = vmatprep.subr.bf16.mxu0 %v12296_v0  ;;  %v12551_v7 = vcombine.low %v528_v56, %v536_v57 }
  0x99   :  { %v264_v3 = vld [vmem:[#allocation5 + $0x440] sm:$0xff]  ;;  %6425 = vmatpush2.bf16.msra.mxu0 %v12295_v6 }
  0x9a   :  { %v512_v4 = vld [vmem:[#allocation5 + $0xc00] sm:$0xff]  ;;  %v12280_v8 = vcombine.high %v256_v2, %v264_v3  ;;  %6467 = vmatprep.subr.bf16.mxu1 %v12552_v1  ;;  %v12279_v14 = vcombine.low %v256_v2, %v264_v3 }
  0x9b   :  { %v520_v5 = vld [vmem:[#allocation5 + $0xc40] sm:$0xff]  ;;  %6468 = vmatpush2.bf16.msra.mxu1 %v12551_v7 }
  0x9c   :  { %v12536_v9 = vcombine.high %v512_v4, %v520_v5  ;;  %v752_v10 = vld [vmem:[#allocation5 + $0x1380] sm:$0xff]  ;;  %6426 = vmatprep.subr.bf16.mxu0 %v12280_v8  ;;  %v12535_v15 = vcombine.low %v512_v4, %v520_v5 }
  0x9d   :  { %v760_v11 = vld [vmem:[#allocation5 + $0x13c0] sm:$0xff]  ;;  %6427 = vmatpush2.bf16.msra.mxu0 %v12279_v14 }
  0x9e   :  { %v1008_v12 = vld [vmem:[#allocation5 + $0x1b80] sm:$0xff]  ;;  %v12776_v16 = vcombine.high %v752_v10, %v760_v11  ;;  %6469 = vmatprep.subr.bf16.mxu1 %v12536_v9  ;;  %v12775_v26 = vcombine.low %v752_v10, %v760_v11 }
  0x9f   :  { %v1016_v13 = vld [vmem:[#allocation5 + $0x1bc0] sm:$0xff]  ;;  %6470 = vmatpush2.bf16.msra.mxu1 %v12535_v15 }
  0xa0   :  { %v13032_v17 = vcombine.high %v1008_v12, %v1016_v13  ;;  %v736_v18 = vld [vmem:[#allocation5 + $0x1300] sm:$0xff]  ;;  %6482 = vmatprep.subr.bf16.mxu0 %v12776_v16  ;;  %v13031_v29 = vcombine.low %v1008_v12, %v1016_v13  ;;  %6429 = vmatmul.mubr.bf16.vlgmr.msra.gmra.mxu0 %v14895_v21 }
  0xa1   :  { %v744_v19 = vld [vmem:[#allocation5 + $0x1340] sm:$0xff]  ;;  %6483 = vmatpush1.bf16.msra.mxu0 %v12775_v26  ;;  %6514 = vmatprep.mubr.bf16.mxu0 %v14911_v32 }
  0xa2   :  { %v992_v20 = vld [vmem:[#allocation5 + $0x1b00] sm:$0xff]  ;;  %v12760_v54 = vcombine.high %v736_v18, %v744_v19  ;;  %6525 = vmatprep.subr.bf16.mxu1 %v13032_v17  ;;  %6472 = vmatmul.mubr.bf16.vlgmr.msra.gmra.mxu1 %v14903_v25  ;;  %v12759_v34 = vcombine.low %v736_v18, %v744_v19 }
  0xa3   :  { %v1000_v22 = vld [vmem:[#allocation5 + $0x1b40] sm:$0xff]  ;;  %6526 = vmatpush1.bf16.msra.mxu1 %v13031_v29  ;;  %6557 = vmatprep.mubr.bf16.mxu1 %v14916_v33 }
  0xa4   :  { %v13016_v55 = vcombine.high %v992_v20, %v1000_v22  ;;  %v720_v30 = vld [vmem:[#allocation5 + $0x1280] sm:$0xff]  ;;  %6484 = vmatprep.subr.bf16.mxu0 %v12760_v54  ;;  %v13015_v35 = vcombine.low %v992_v20, %v1000_v22 }
  0xa5   :  { %v728_v31 = vld [vmem:[#allocation5 + $0x12c0] sm:$0xff]  ;;  %6485 = vmatpush1.bf16.msra.mxu0 %v12759_v34 }
  0xa6   :  { %v976_v59 = vld [vmem:[#allocation5 + $0x1a80] sm:$0xff]  ;;  %v12744_v36 = vcombine.high %v720_v30, %v728_v31  ;;  %6527 = vmatprep.subr.bf16.mxu1 %v13016_v55  ;;  %v12743_v42 = vcombine.low %v720_v30, %v728_v31 }
  0xa7   :  { %v984_v60 = vld [vmem:[#allocation5 + $0x1ac0] sm:$0xff]  ;;  %6528 = vmatpush1.bf16.msra.mxu1 %v13015_v35 }
  0xa8   :  { %v704_v37 = vld [vmem:[#allocation5 + $0x1200] sm:$0xff]  ;;  %v13000_v40 = vcombine.high %v976_v59, %v984_v60  ;;  %6486 = vmatprep.subr.bf16.mxu0 %v12744_v36  ;;  %v12999_v43 = vcombine.low %v976_v59, %v984_v60 }
  0xa9   :  { %v712_v38 = vld [vmem:[#allocation5 + $0x1240] sm:$0xff]  ;;  %6487 = vmatpush1.bf16.msra.mxu0 %v12743_v42 }
  0xaa   :  { %v960_v39 = vld [vmem:[#allocation5 + $0x1a00] sm:$0xff]  ;;  %v12728_v44 = vcombine.high %v704_v37, %v712_v38  ;;  %6529 = vmatprep.subr.bf16.mxu1 %v13000_v40  ;;  %v12727_v50 = vcombine.low %v704_v37, %v712_v38 }
  0xab   :  { %v968_v41 = vld [vmem:[#allocation5 + $0x1a40] sm:$0xff]  ;;  %6530 = vmatpush1.bf16.msra.mxu1 %v12999_v43 }
  0xac   :  { %v688_v45 = vld [vmem:[#allocation5 + $0x1180] sm:$0xff]  ;;  %v12984_v48 = vcombine.high %v960_v39, %v968_v41  ;;  %6488 = vmatprep.subr.bf16.mxu0 %v12728_v44  ;;  %v12983_v51 = vcombine.low %v960_v39, %v968_v41 }
  0xad   :  { %v696_v46 = vld [vmem:[#allocation5 + $0x11c0] sm:$0xff]  ;;  %6489 = vmatpush1.bf16.msra.mxu0 %v12727_v50 }
  0xae   :  { %v944_v47 = vld [vmem:[#allocation5 + $0x1980] sm:$0xff]  ;;  %v12712_v52 = vcombine.high %v688_v45, %v696_v46  ;;  %6531 = vmatprep.subr.bf16.mxu1 %v12984_v48  ;;  %v12711_v0 = vcombine.low %v688_v45, %v696_v46 }
  0xaf   :  { %v952_v49 = vld [vmem:[#allocation5 + $0x19c0] sm:$0xff]  ;;  %6532 = vmatpush1.bf16.msra.mxu1 %v12983_v51 }
  0xb0   :  { %v672_v53 = vld [vmem:[#allocation5 + $0x1100] sm:$0xff]  ;;  %v12968_v61 = vcombine.high %v944_v47, %v952_v49  ;;  %6490 = vmatprep.subr.bf16.mxu0 %v12712_v52  ;;  %v12967_v1 = vcombine.low %v944_v47, %v952_v49 }
  0xb1   :  { %v680_v56 = vld [vmem:[#allocation5 + $0x1140] sm:$0xff]  ;;  %6491 = vmatpush1.bf16.msra.mxu0 %v12711_v0 }
  0xb2   :  { %v928_v57 = vld [vmem:[#allocation5 + $0x1900] sm:$0xff]  ;;  %v12696_v2 = vcombine.high %v672_v53, %v680_v56  ;;  %6533 = vmatprep.subr.bf16.mxu1 %v12968_v61  ;;  %v12695_v8 = vcombine.low %v672_v53, %v680_v56 }
  0xb3   :  { %v936_v62 = vld [vmem:[#allocation5 + $0x1940] sm:$0xff]  ;;  %6534 = vmatpush1.bf16.msra.mxu1 %v12967_v1 }
  0xb4   :  { %v656_v3 = vld [vmem:[#allocation5 + $0x1080] sm:$0xff]  ;;  %v12952_v6 = vcombine.high %v928_v57, %v936_v62  ;;  %6492 = vmatprep.subr.bf16.mxu0 %v12696_v2  ;;  %v12951_v9 = vcombine.low %v928_v57, %v936_v62 }
  0xb5   :  { %v664_v4 = vld [vmem:[#allocation5 + $0x10c0] sm:$0xff]  ;;  %6493 = vmatpush1.bf16.msra.mxu0 %v12695_v8 }
  0xb6   :  { %v912_v5 = vld [vmem:[#allocation5 + $0x1880] sm:$0xff]  ;;  %v12680_v10 = vcombine.high %v656_v3, %v664_v4  ;;  %6535 = vmatprep.subr.bf16.mxu1 %v12952_v6  ;;  %v12679_v16 = vcombine.low %v656_v3, %v664_v4 }
  0xb7   :  { %v920_v7 = vld [vmem:[#allocation5 + $0x18c0] sm:$0xff]  ;;  %6536 = vmatpush1.bf16.msra.mxu1 %v12951_v9 }
  0xb8   :  { %v640_v11 = vld [vmem:[#allocation5 + $0x1000] sm:$0xff]  ;;  %v12936_v14 = vcombine.high %v912_v5, %v920_v7  ;;  %6494 = vmatprep.subr.bf16.mxu0 %v12680_v10  ;;  %v12935_v17 = vcombine.low %v912_v5, %v920_v7 }
  0xb9   :  { %v648_v12 = vld [vmem:[#allocation5 + $0x1040] sm:$0xff]  ;;  %6495 = vmatpush1.bf16.msra.mxu0 %v12679_v16 }
  0xba   :  { %v896_v13 = vld [vmem:[#allocation5 + $0x1800] sm:$0xff]  ;;  %v12664_v18 = vcombine.high %v640_v11, %v648_v12  ;;  %6537 = vmatprep.subr.bf16.mxu1 %v12936_v14  ;;  %v12663_v54 = vcombine.low %v640_v11, %v648_v12 }
  0xbb   :  { %v904_v15 = vld [vmem:[#allocation5 + $0x1840] sm:$0xff]  ;;  %6538 = vmatpush1.bf16.msra.mxu1 %v12935_v17 }
  0xbc   :  { %v880_v19 = vld [vmem:[#allocation5 + $0x1780] sm:$0xff]  ;;  %v12920_v26 = vcombine.high %v896_v13, %v904_v15  ;;  %6496 = vmatprep.subr.bf16.mxu0 %v12664_v18  ;;  %v12919_v55 = vcombine.low %v896_v13, %v904_v15 }
  0xbd   :  { %v888_v20 = vld [vmem:[#allocation5 + $0x17c0] sm:$0xff]  ;;  %6497 = vmatpush1.bf16.msra.mxu0 %v12663_v54 }
  0xbe   :  { %v1136_v22 = vld [vmem:[#allocation5 + $0x1f80] sm:$0xff]  ;;  %v12904_v30 = vcombine.high %v880_v19, %v888_v20  ;;  %6539 = vmatprep.subr.bf16.mxu1 %v12920_v26  ;;  %v12903_v36 = vcombine.low %v880_v19, %v888_v20 }
  0xbf   :  { %v1144_v29 = vld [vmem:[#allocation5 + $0x1fc0] sm:$0xff]  ;;  %6540 = vmatpush1.bf16.msra.mxu1 %v12919_v55 }
  0xc0   :  { %v864_v31 = vld [vmem:[#allocation5 + $0x1700] sm:$0xff]  ;;  %v13160_v34 = vcombine.high %v1136_v22, %v1144_v29  ;;  %6498 = vmatprep.subr.bf16.mxu0 %v12904_v30  ;;  %v13159_v37 = vcombine.low %v1136_v22, %v1144_v29 }
  0xc1   :  { %v872_v59 = vld [vmem:[#allocation5 + $0x1740] sm:$0xff]  ;;  %6499 = vmatpush2.bf16.msra.mxu0 %v12903_v36 }
  0xc2   :  { %v1120_v60 = vld [vmem:[#allocation5 + $0x1f00] sm:$0xff]  ;;  %v12888_v38 = vcombine.high %v864_v31, %v872_v59  ;;  %6541 = vmatprep.subr.bf16.mxu1 %v13160_v34  ;;  %v12887_v44 = vcombine.low %v864_v31, %v872_v59  ;;  %v249_v34 = vld [vmem:[#allocation5 + $0x3c8] sm:$0xff] }
  0xc3   :  { %v1128_v35 = vld [vmem:[#allocation5 + $0x1f40] sm:$0xff]  ;;  %6542 = vmatpush2.bf16.msra.mxu1 %v13159_v37  ;;  %v505_v37 = vld [vmem:[#allocation5 + $0xbc8] sm:$0xff] }
  0xc4   :  { %v848_v39 = vld [vmem:[#allocation5 + $0x1680] sm:$0xff]  ;;  %v13144_v42 = vcombine.high %v1120_v60, %v1128_v35  ;;  %6500 = vmatprep.subr.bf16.mxu0 %v12888_v38  ;;  %v13143_v45 = vcombine.low %v1120_v60, %v1128_v35  ;;  %v241_v60 = vld [vmem:[#allocation5 + $0x388] sm:$0xff] }
  0xc5   :  { %v856_v40 = vld [vmem:[#allocation5 + $0x16c0] sm:$0xff]  ;;  %6501 = vmatpush2.bf16.msra.mxu0 %v12887_v44  ;;  %v497_v35 = vld [vmem:[#allocation5 + $0xb88] sm:$0xff] }
  0xc6   :  { %v1104_v41 = vld [vmem:[#allocation5 + $0x1e80] sm:$0xff]  ;;  %v12872_v46 = vcombine.high %v848_v39, %v856_v40  ;;  %6543 = vmatprep.subr.bf16.mxu1 %v13144_v42  ;;  %v12871_v52 = vcombine.low %v848_v39, %v856_v40  ;;  %v12266_v40 = vcombine.high %v241_v60, %v249_v34  ;;  %v233_v42 = vld [vmem:[#allocation5 + $0x348] sm:$0xff]  ;;  %v12522_v44 = vcombine.high %v497_v35, %v505_v37 }
  0xc7   :  { %v1112_v43 = vld [vmem:[#allocation5 + $0x1ec0] sm:$0xff]  ;;  %6544 = vmatpush2.bf16.msra.mxu1 %v13143_v45  ;;  %v489_v45 = vld [vmem:[#allocation5 + $0xb48] sm:$0xff] }
  0xc8   :  { %v832_v47 = vld [vmem:[#allocation5 + $0x1600] sm:$0xff]  ;;  %v13128_v50 = vcombine.high %v1104_v41, %v1112_v43  ;;  %6502 = vmatprep.subr.bf16.mxu0 %v12872_v46  ;;  %v13127_v53 = vcombine.low %v1104_v41, %v1112_v43  ;;  %v225_v41 = vld [vmem:[#allocation5 + $0x308] sm:$0xff]  ;;  %v14923_v46 = vcombine.low %v14897_v23, %v14899_v24 }
  0xc9   :  { %v840_v48 = vld [vmem:[#allocation5 + $0x1640] sm:$0xff]  ;;  %6503 = vmatpush2.bf16.msra.mxu0 %v12871_v52  ;;  %v481_v43 = vld [vmem:[#allocation5 + $0xb08] sm:$0xff]  ;;  %v12249_v23 = vcombine.low %v225_v41, %v233_v42 }
  0xca   :  { %v1088_v49 = vld [vmem:[#allocation5 + $0x1e00] sm:$0xff]  ;;  %v12856_v56 = vcombine.high %v832_v47, %v840_v48  ;;  %6545 = vmatprep.subr.bf16.mxu1 %v13128_v50  ;;  %v12855_v2 = vcombine.low %v832_v47, %v840_v48  ;;  %v14927_v47 = vcombine.low %v14905_v27, %v14907_v28  ;;  %v12265_v48 = vcombine.low %v241_v60, %v249_v34  ;;  %v217_v52 = vld [vmem:[#allocation5 + $0x2c8] sm:$0xff] }
  0xcb   :  { %v1096_v51 = vld [vmem:[#allocation5 + $0x1e40] sm:$0xff]  ;;  %6546 = vmatpush2.bf16.msra.mxu1 %v13127_v53  ;;  %v12250_v50 = vcombine.high %v225_v41, %v233_v42  ;;  %v12506_v53 = vcombine.high %v481_v43, %v489_v45  ;;  %v12505_v24 = vcombine.low %v481_v43, %v489_v45  ;;  %v193_v28 = vld [vmem:[#allocation5 + $0x208] sm:$0xff] }
  0xcc   :  { %v816_v57 = vld [vmem:[#allocation5 + $0x1580] sm:$0xff]  ;;  %v13112_v0 = vcombine.high %v1088_v49, %v1096_v51  ;;  %6504 = vmatprep.subr.bf16.mxu0 %v12856_v56  ;;  %v13111_v3 = vcombine.low %v1088_v49, %v1096_v51  ;;  %v12521_v49 = vcombine.low %v497_v35, %v505_v37  ;;  %v209_v51 = vld [vmem:[#allocation5 + $0x288] sm:$0xff] }
  0xcd   :  { %v824_v61 = vld [vmem:[#allocation5 + $0x15c0] sm:$0xff]  ;;  %6505 = vmatpush2.bf16.msra.mxu0 %v12855_v2  ;;  %v465_v56 = vld [vmem:[#allocation5 + $0xa88] sm:$0xff]  ;;  %v12234_v27 = vcombine.high %v209_v51, %v217_v52  ;;  %v12233_v2 = vcombine.low %v209_v51, %v217_v52 }
  0xce   :  { %v1072_v62 = vld [vmem:[#allocation5 + $0x1d80] sm:$0xff]  ;;  %v12840_v4 = vcombine.high %v816_v57, %v824_v61  ;;  %6547 = vmatprep.subr.bf16.mxu1 %v13112_v0  ;;  %v12839_v10 = vcombine.low %v816_v57, %v824_v61  ;;  %v473_v57 = vld [vmem:[#allocation5 + $0xac8] sm:$0xff] }
  0xcf   :  { %v1080_v1 = vld [vmem:[#allocation5 + $0x1dc0] sm:$0xff]  ;;  %6548 = vmatpush2.bf16.msra.mxu1 %v13111_v3  ;;  %v201_v61 = vld [vmem:[#allocation5 + $0x248] sm:$0xff]  ;;  %v12490_v0 = vcombine.high %v465_v56, %v473_v57  ;;  %v12489_v3 = vcombine.low %v465_v56, %v473_v57 }
  0xd0   :  { %v800_v5 = vld [vmem:[#allocation5 + $0x1500] sm:$0xff]  ;;  %v13096_v8 = vcombine.high %v1072_v62, %v1080_v1  ;;  %6506 = vmatprep.subr.bf16.mxu0 %v12840_v4  ;;  %v13095_v11 = vcombine.low %v1072_v62, %v1080_v1  ;;  %v449_v62 = vld [vmem:[#allocation5 + $0xa08] sm:$0xff]  ;;  %v12218_v4 = vcombine.high %v193_v28, %v201_v61 }
  0xd1   :  { %v808_v6 = vld [vmem:[#allocation5 + $0x1540] sm:$0xff]  ;;  %6507 = vmatpush2.bf16.msra.mxu0 %v12839_v10  ;;  %v457_v1 = vld [vmem:[#allocation5 + $0xa48] sm:$0xff]  ;;  %v12217_v10 = vcombine.low %v193_v28, %v201_v61 }
  0xd2   :  { %v1056_v7 = vld [vmem:[#allocation5 + $0x1d00] sm:$0xff]  ;;  %v12824_v12 = vcombine.high %v800_v5, %v808_v6  ;;  %6549 = vmatprep.subr.bf16.mxu1 %v13096_v8  ;;  %v12823_v18 = vcombine.low %v800_v5, %v808_v6  ;;  %v177_v5 = vld [vmem:[#allocation5 + $0x188] sm:$0xff]  ;;  %v12474_v8 = vcombine.high %v449_v62, %v457_v1 }
  0xd3   :  { %v1064_v9 = vld [vmem:[#allocation5 + $0x1d40] sm:$0xff]  ;;  %6550 = vmatpush2.bf16.msra.mxu1 %v13095_v11  ;;  %v185_v6 = vld [vmem:[#allocation5 + $0x1c8] sm:$0xff]  ;;  %v12473_v11 = vcombine.low %v449_v62, %v457_v1 }
  0xd4   :  { %v784_v13 = vld [vmem:[#allocation5 + $0x1480] sm:$0xff]  ;;  %v13080_v16 = vcombine.high %v1056_v7, %v1064_v9  ;;  %6508 = vmatprep.subr.bf16.mxu0 %v12824_v12  ;;  %v13079_v19 = vcombine.low %v1056_v7, %v1064_v9  ;;  %v433_v7 = vld [vmem:[#allocation5 + $0x988] sm:$0xff]  ;;  %v12202_v12 = vcombine.high %v177_v5, %v185_v6 }
  0xd5   :  { %v792_v14 = vld [vmem:[#allocation5 + $0x14c0] sm:$0xff]  ;;  %6509 = vmatpush2.bf16.msra.mxu0 %v12823_v18  ;;  %v441_v9 = vld [vmem:[#allocation5 + $0x9c8] sm:$0xff]  ;;  %v12201_v18 = vcombine.low %v177_v5, %v185_v6 }
  0xd6   :  { %v1040_v15 = vld [vmem:[#allocation5 + $0x1c80] sm:$0xff]  ;;  %v12808_v20 = vcombine.high %v784_v13, %v792_v14  ;;  %6551 = vmatprep.subr.bf16.mxu1 %v13080_v16  ;;  %v12807_v30 = vcombine.low %v784_v13, %v792_v14  ;;  %v161_v13 = vld [vmem:[#allocation5 + $0x108] sm:$0xff]  ;;  %v12458_v16 = vcombine.high %v433_v7, %v441_v9 }
  0xd7   :  { %v1048_v17 = vld [vmem:[#allocation5 + $0x1cc0] sm:$0xff]  ;;  %6552 = vmatpush2.bf16.msra.mxu1 %v13079_v19  ;;  %v169_v14 = vld [vmem:[#allocation5 + $0x148] sm:$0xff]  ;;  %v12457_v19 = vcombine.low %v433_v7, %v441_v9 }
  0xd8   :  { %v768_v22 = vld [vmem:[#allocation5 + $0x1400] sm:$0xff]  ;;  %v13064_v54 = vcombine.high %v1040_v15, %v1048_v17  ;;  %6510 = vmatprep.subr.bf16.mxu0 %v12808_v20  ;;  %v13063_v31 = vcombine.low %v1040_v15, %v1048_v17  ;;  %v417_v15 = vld [vmem:[#allocation5 + $0x908] sm:$0xff]  ;;  %v12186_v20 = vcombine.high %v161_v13, %v169_v14 }
  0xd9   :  { %v776_v26 = vld [vmem:[#allocation5 + $0x1440] sm:$0xff]  ;;  %6511 = vmatpush2.bf16.msra.mxu0 %v12807_v30  ;;  %v425_v17 = vld [vmem:[#allocation5 + $0x948] sm:$0xff]  ;;  %v12185_v30 = vcombine.low %v161_v13, %v169_v14 }
  0xda   :  { %v1024_v29 = vld [vmem:[#allocation5 + $0x1c00] sm:$0xff]  ;;  %v12792_v59 = vcombine.high %v768_v22, %v776_v26  ;;  %6553 = vmatprep.subr.bf16.mxu1 %v13064_v54  ;;  %v12791_v38 = vcombine.low %v768_v22, %v776_v26  ;;  %v145_v22 = vld [vmem:[#allocation5 + $0x88] sm:$0xff]  ;;  %v12442_v54 = vcombine.high %v417_v15, %v425_v17 }
  0xdb   :  { %v1032_v55 = vld [vmem:[#allocation5 + $0x1c40] sm:$0xff]  ;;  %6554 = vmatpush2.bf16.msra.mxu1 %v13063_v31  ;;  %v153_v26 = vld [vmem:[#allocation5 + $0xc8] sm:$0xff]  ;;  %v12441_v31 = vcombine.low %v417_v15, %v425_v17 }
  0xdc   :  { %v13048_v36 = vcombine.high %v1024_v29, %v1032_v55  ;;  %6512 = vmatprep.subr.bf16.mxu0 %v12792_v59  ;;  %v13047_v39 = vcombine.low %v1024_v29, %v1032_v55  ;;  %v401_v29 = vld [vmem:[#allocation5 + $0x888] sm:$0xff]  ;;  %v12170_v59 = vcombine.high %v145_v22, %v153_v26 }
  0xdd   :  { %6513 = vmatpush2.bf16.msra.mxu0 %v12791_v38  ;;  %v409_v55 = vld [vmem:[#allocation5 + $0x8c8] sm:$0xff]  ;;  %v12169_v38 = vcombine.low %v145_v22, %v153_v26 }
  0xde   :  { %6555 = vmatprep.subr.bf16.mxu1 %v13048_v36  ;;  %6568 = vmatprep.subr.bf16.mxu0 %v12266_v40  ;;  %v129_v60 = vld [vmem:[#allocation5 + $0x8] sm:$0xff]  ;;  %v12426_v36 = vcombine.high %v401_v29, %v409_v55 }
  0xdf   :  { %6556 = vmatpush2.bf16.msra.mxu1 %v13047_v39  ;;  %v137_v34 = vld [vmem:[#allocation5 + $0x48] sm:$0xff]  ;;  %v12425_v39 = vcombine.low %v401_v29, %v409_v55 }
  0xe0   :  { %6611 = vmatprep.subr.bf16.mxu1 %v12522_v44  ;;  %6515 = vmatmul.mubr.bf16.vlgmr.msra.gmra.mxu0 %v14923_v46  ;;  %v385_v35 = vld [vmem:[#allocation5 + $0x808] sm:$0xff]  ;;  %v12154_v40 = vcombine.high %v129_v60, %v137_v34 }
  0xe1   :  { %6569 = vmatpush1.bf16.msra.mxu0 %v12265_v48  ;;  %6600 = vmatprep.mubr.bf16.mxu0 %v14881_v58  ;;  %v393_v37 = vld [vmem:[#allocation5 + $0x848] sm:$0xff]  ;;  %v12153_v48 = vcombine.low %v129_v60, %v137_v34 }
  0xe2   :  { %6558 = vmatmul.mubr.bf16.vlgmr.msra.gmra.mxu1 %v14927_v47  ;;  %6570 = vmatprep.subr.bf16.mxu0 %v12250_v50  ;;  %v369_v41 = vld [vmem:[#allocation5 + $0x788] sm:$0xff]  ;;  %v12410_v44 = vcombine.high %v385_v35, %v393_v37 }
  0xe3   :  { %6612 = vmatpush1.bf16.msra.mxu1 %v12521_v49  ;;  %6643 = vmatprep.mubr.bf16.mxu1 %v14889_v63  ;;  %v377_v42 = vld [vmem:[#allocation5 + $0x7c8] sm:$0xff]  ;;  %v12409_v49 = vcombine.low %v385_v35, %v393_v37 }
  0xe4   :  { %6613 = vmatprep.subr.bf16.mxu1 %v12506_v53  ;;  %v625_v43 = vld [vmem:[#allocation5 + $0xf88] sm:$0xff]  ;;  %v12394_v50 = vcombine.high %v369_v41, %v377_v42 }
  0xe5   :  { %6571 = vmatpush1.bf16.msra.mxu0 %v12249_v23  ;;  %v633_v45 = vld [vmem:[#allocation5 + $0xfc8] sm:$0xff]  ;;  %v12393_v23 = vcombine.low %v369_v41, %v377_v42 }
  0xe6   :  { %6572 = vmatprep.subr.bf16.mxu0 %v12234_v27  ;;  %v353_v51 = vld [vmem:[#allocation5 + $0x708] sm:$0xff]  ;;  %v12650_v56 = vcombine.high %v625_v43, %v633_v45 }
  0xe7   :  { %6614 = vmatpush1.bf16.msra.mxu1 %v12505_v24  ;;  %v361_v52 = vld [vmem:[#allocation5 + $0x748] sm:$0xff]  ;;  %v12649_v24 = vcombine.low %v625_v43, %v633_v45 }
  0xe8   :  { %6615 = vmatprep.subr.bf16.mxu1 %v12490_v0  ;;  %v609_v53 = vld [vmem:[#allocation5 + $0xf08] sm:$0xff]  ;;  %v12378_v27 = vcombine.high %v353_v51, %v361_v52 }
  0xe9   :  { %6573 = vmatpush1.bf16.msra.mxu0 %v12233_v2  ;;  %v617_v57 = vld [vmem:[#allocation5 + $0xf48] sm:$0xff]  ;;  %v12377_v2 = vcombine.low %v353_v51, %v361_v52 }
  0xea   :  { %6574 = vmatprep.subr.bf16.mxu0 %v12218_v4  ;;  %v337_v28 = vld [vmem:[#allocation5 + $0x688] sm:$0xff]  ;;  %v12634_v0 = vcombine.high %v609_v53, %v617_v57 }
  0xeb   :  { %6616 = vmatpush1.bf16.msra.mxu1 %v12489_v3  ;;  %v345_v61 = vld [vmem:[#allocation5 + $0x6c8] sm:$0xff]  ;;  %v12633_v3 = vcombine.low %v609_v53, %v617_v57 }
  0xec   :  { %6617 = vmatprep.subr.bf16.mxu1 %v12474_v8  ;;  %v593_v62 = vld [vmem:[#allocation5 + $0xe88] sm:$0xff]  ;;  %v12362_v4 = vcombine.high %v337_v28, %v345_v61 }
  0xed   :  { %6575 = vmatpush1.bf16.msra.mxu0 %v12217_v10  ;;  %v601_v1 = vld [vmem:[#allocation5 + $0xec8] sm:$0xff]  ;;  %v12361_v10 = vcombine.low %v337_v28, %v345_v61 }
  0xee   :  { %6576 = vmatprep.subr.bf16.mxu0 %v12202_v12  ;;  %v321_v5 = vld [vmem:[#allocation5 + $0x608] sm:$0xff]  ;;  %v12618_v8 = vcombine.high %v593_v62, %v601_v1 }
  0xef   :  { %6618 = vmatpush1.bf16.msra.mxu1 %v12473_v11  ;;  %v329_v6 = vld [vmem:[#allocation5 + $0x648] sm:$0xff]  ;;  %v12617_v11 = vcombine.low %v593_v62, %v601_v1 }
  0xf0   :  { %6619 = vmatprep.subr.bf16.mxu1 %v12458_v16  ;;  %v577_v7 = vld [vmem:[#allocation5 + $0xe08] sm:$0xff]  ;;  %v12346_v12 = vcombine.high %v321_v5, %v329_v6 }
  0xf1   :  { %6577 = vmatpush1.bf16.msra.mxu0 %v12201_v18  ;;  %v585_v9 = vld [vmem:[#allocation5 + $0xe48] sm:$0xff]  ;;  %v12345_v18 = vcombine.low %v321_v5, %v329_v6 }
  0xf2   :  { %6578 = vmatprep.subr.bf16.mxu0 %v12186_v20  ;;  %v305_v13 = vld [vmem:[#allocation5 + $0x588] sm:$0xff]  ;;  %v12602_v16 = vcombine.high %v577_v7, %v585_v9 }
  0xf3   :  { %6620 = vmatpush1.bf16.msra.mxu1 %v12457_v19  ;;  %v313_v14 = vld [vmem:[#allocation5 + $0x5c8] sm:$0xff]  ;;  %v12601_v19 = vcombine.low %v577_v7, %v585_v9 }
  0xf4   :  { %6621 = vmatprep.subr.bf16.mxu1 %v12442_v54  ;;  %v561_v15 = vld [vmem:[#allocation5 + $0xd88] sm:$0xff]  ;;  %v12330_v20 = vcombine.high %v305_v13, %v313_v14 }
  0xf5   :  { %6579 = vmatpush1.bf16.msra.mxu0 %v12185_v30  ;;  %v569_v17 = vld [vmem:[#allocation5 + $0xdc8] sm:$0xff]  ;;  %v12329_v30 = vcombine.low %v305_v13, %v313_v14 }
  0xf6   :  { %6580 = vmatprep.subr.bf16.mxu0 %v12170_v59  ;;  %v289_v22 = vld [vmem:[#allocation5 + $0x508] sm:$0xff]  ;;  %v12586_v54 = vcombine.high %v561_v15, %v569_v17 }
  0xf7   :  { %6622 = vmatpush1.bf16.msra.mxu1 %v12441_v31  ;;  %v297_v26 = vld [vmem:[#allocation5 + $0x548] sm:$0xff]  ;;  %v12585_v31 = vcombine.low %v561_v15, %v569_v17 }
  0xf8   :  { %6623 = vmatprep.subr.bf16.mxu1 %v12426_v36  ;;  %v545_v29 = vld [vmem:[#allocation5 + $0xd08] sm:$0xff]  ;;  %v12314_v59 = vcombine.high %v289_v22, %v297_v26 }
  0xf9   :  { %6581 = vmatpush1.bf16.msra.mxu0 %v12169_v38  ;;  %v553_v55 = vld [vmem:[#allocation5 + $0xd48] sm:$0xff]  ;;  %v12313_v38 = vcombine.low %v289_v22, %v297_v26 }
  0xfa   :  { %6582 = vmatprep.subr.bf16.mxu0 %v12154_v40  ;;  %v273_v60 = vld [vmem:[#allocation5 + $0x488] sm:$0xff]  ;;  %v12570_v36 = vcombine.high %v545_v29, %v553_v55 }
  0xfb   :  { %6624 = vmatpush1.bf16.msra.mxu1 %v12425_v39  ;;  %v281_v34 = vld [vmem:[#allocation5 + $0x4c8] sm:$0xff]  ;;  %v12569_v39 = vcombine.low %v545_v29, %v553_v55 }
  0xfc   :  { %6625 = vmatprep.subr.bf16.mxu1 %v12410_v44  ;;  %v529_v35 = vld [vmem:[#allocation5 + $0xc88] sm:$0xff]  ;;  %v12298_v40 = vcombine.high %v273_v60, %v281_v34 }
  0xfd   :  { %6583 = vmatpush1.bf16.msra.mxu0 %v12153_v48  ;;  %v537_v37 = vld [vmem:[#allocation5 + $0xcc8] sm:$0xff]  ;;  %v12297_v48 = vcombine.low %v273_v60, %v281_v34 }
  0xfe   :  { %6584 = vmatprep.subr.bf16.mxu0 %v12394_v50  ;;  %v257_v41 = vld [vmem:[#allocation5 + $0x408] sm:$0xff]  ;;  %v12554_v44 = vcombine.high %v529_v35, %v537_v37 }
  0xff   :  { %6626 = vmatpush1.bf16.msra.mxu1 %v12409_v49  ;;  %v265_v42 = vld [vmem:[#allocation5 + $0x448] sm:$0xff]  ;;  %v12553_v49 = vcombine.low %v529_v35, %v537_v37 }
 0x100   :  { %6627 = vmatprep.subr.bf16.mxu1 %v12650_v56  ;;  %v513_v43 = vld [vmem:[#allocation5 + $0xc08] sm:$0xff]  ;;  %v12282_v50 = vcombine.high %v257_v41, %v265_v42 }
 0x101   :  { %6585 = vmatpush2.bf16.msra.mxu0 %v12393_v23  ;;  %v521_v45 = vld [vmem:[#allocation5 + $0xc48] sm:$0xff]  ;;  %v12281_v23 = vcombine.low %v257_v41, %v265_v42 }
 0x102   :  { %6586 = vmatprep.subr.bf16.mxu0 %v12378_v27  ;;  %v753_v51 = vld [vmem:[#allocation5 + $0x1388] sm:$0xff]  ;;  %v12538_v56 = vcombine.high %v513_v43, %v521_v45 }
 0x103   :  { %6628 = vmatpush2.bf16.msra.mxu1 %v12649_v24  ;;  %v761_v52 = vld [vmem:[#allocation5 + $0x13c8] sm:$0xff]  ;;  %v12537_v24 = vcombine.low %v513_v43, %v521_v45 }
 0x104   :  { %6629 = vmatprep.subr.bf16.mxu1 %v12634_v0  ;;  %v1009_v53 = vld [vmem:[#allocation5 + $0x1b88] sm:$0xff]  ;;  %v12778_v27 = vcombine.high %v753_v51, %v761_v52 }
 0x105   :  { %6587 = vmatpush2.bf16.msra.mxu0 %v12377_v2  ;;  %v1017_v57 = vld [vmem:[#allocation5 + $0x1bc8] sm:$0xff]  ;;  %v12777_v2 = vcombine.low %v753_v51, %v761_v52 }
 0x106   :  { %6588 = vmatprep.subr.bf16.mxu0 %v12362_v4  ;;  %v737_v28 = vld [vmem:[#allocation5 + $0x1308] sm:$0xff]  ;;  %v13034_v0 = vcombine.high %v1009_v53, %v1017_v57 }
 0x107   :  { %6630 = vmatpush2.bf16.msra.mxu1 %v12633_v3  ;;  %v745_v61 = vld [vmem:[#allocation5 + $0x1348] sm:$0xff]  ;;  %v13033_v3 = vcombine.low %v1009_v53, %v1017_v57 }
 0x108   :  { %6631 = vmatprep.subr.bf16.mxu1 %v12618_v8  ;;  %v993_v62 = vld [vmem:[#allocation5 + $0x1b08] sm:$0xff]  ;;  %v12762_v4 = vcombine.high %v737_v28, %v745_v61 }
 0x109   :  { %6589 = vmatpush2.bf16.msra.mxu0 %v12361_v10  ;;  %v1001_v1 = vld [vmem:[#allocation5 + $0x1b48] sm:$0xff]  ;;  %v12761_v10 = vcombine.low %v737_v28, %v745_v61 }
 0x10a   :  { %6590 = vmatprep.subr.bf16.mxu0 %v12346_v12  ;;  %v721_v5 = vld [vmem:[#allocation5 + $0x1288] sm:$0xff]  ;;  %v13018_v8 = vcombine.high %v993_v62, %v1001_v1 }
 0x10b   :  { %6632 = vmatpush2.bf16.msra.mxu1 %v12617_v11  ;;  %v729_v6 = vld [vmem:[#allocation5 + $0x12c8] sm:$0xff]  ;;  %v13017_v11 = vcombine.low %v993_v62, %v1001_v1 }
 0x10c   :  { %6633 = vmatprep.subr.bf16.mxu1 %v12602_v16  ;;  %v977_v7 = vld [vmem:[#allocation5 + $0x1a88] sm:$0xff]  ;;  %v12746_v12 = vcombine.high %v721_v5, %v729_v6 }
 0x10d   :  { %6591 = vmatpush2.bf16.msra.mxu0 %v12345_v18  ;;  %v985_v9 = vld [vmem:[#allocation5 + $0x1ac8] sm:$0xff]  ;;  %v12745_v18 = vcombine.low %v721_v5, %v729_v6 }
 0x10e   :  { %6592 = vmatprep.subr.bf16.mxu0 %v12330_v20  ;;  %v705_v13 = vld [vmem:[#allocation5 + $0x1208] sm:$0xff]  ;;  %v13002_v16 = vcombine.high %v977_v7, %v985_v9 }
 0x10f   :  { %6634 = vmatpush2.bf16.msra.mxu1 %v12601_v19  ;;  %v713_v14 = vld [vmem:[#allocation5 + $0x1248] sm:$0xff]  ;;  %v13001_v19 = vcombine.low %v977_v7, %v985_v9 }
 0x110   :  { %6635 = vmatprep.subr.bf16.mxu1 %v12586_v54  ;;  %v961_v15 = vld [vmem:[#allocation5 + $0x1a08] sm:$0xff]  ;;  %v12730_v20 = vcombine.high %v705_v13, %v713_v14 }
 0x111   :  { %6593 = vmatpush2.bf16.msra.mxu0 %v12329_v30  ;;  %v969_v17 = vld [vmem:[#allocation5 + $0x1a48] sm:$0xff]  ;;  %v12729_v30 = vcombine.low %v705_v13, %v713_v14 }
 0x112   :  { %6594 = vmatprep.subr.bf16.mxu0 %v12314_v59  ;;  %v689_v22 = vld [vmem:[#allocation5 + $0x1188] sm:$0xff]  ;;  %v12986_v54 = vcombine.high %v961_v15, %v969_v17 }
 0x113   :  { %6636 = vmatpush2.bf16.msra.mxu1 %v12585_v31  ;;  %v697_v26 = vld [vmem:[#allocation5 + $0x11c8] sm:$0xff]  ;;  %v12985_v31 = vcombine.low %v961_v15, %v969_v17 }
 0x114   :  { %6637 = vmatprep.subr.bf16.mxu1 %v12570_v36  ;;  %v945_v29 = vld [vmem:[#allocation5 + $0x1988] sm:$0xff]  ;;  %v12714_v59 = vcombine.high %v689_v22, %v697_v26 }
 0x115   :  { %6595 = vmatpush2.bf16.msra.mxu0 %v12313_v38  ;;  %v953_v55 = vld [vmem:[#allocation5 + $0x19c8] sm:$0xff]  ;;  %v12713_v38 = vcombine.low %v689_v22, %v697_v26 }
 0x116   :  { %6596 = vmatprep.subr.bf16.mxu0 %v12298_v40  ;;  %v673_v60 = vld [vmem:[#allocation5 + $0x1108] sm:$0xff]  ;;  %v12970_v36 = vcombine.high %v945_v29, %v953_v55 }
 0x117   :  { %6638 = vmatpush2.bf16.msra.mxu1 %v12569_v39  ;;  %v681_v34 = vld [vmem:[#allocation5 + $0x1148] sm:$0xff]  ;;  %v12969_v39 = vcombine.low %v945_v29, %v953_v55 }
 0x118   :  { %6639 = vmatprep.subr.bf16.mxu1 %v12554_v44  ;;  %v929_v35 = vld [vmem:[#allocation5 + $0x1908] sm:$0xff]  ;;  %v12698_v40 = vcombine.high %v673_v60, %v681_v34 }
 0x119   :  { %6597 = vmatpush2.bf16.msra.mxu0 %v12297_v48  ;;  %v937_v37 = vld [vmem:[#allocation5 + $0x1948] sm:$0xff]  ;;  %v12697_v48 = vcombine.low %v673_v60, %v681_v34 }
 0x11a   :  { %6598 = vmatprep.subr.bf16.mxu0 %v12282_v50  ;;  %v657_v41 = vld [vmem:[#allocation5 + $0x1088] sm:$0xff]  ;;  %v12954_v44 = vcombine.high %v929_v35, %v937_v37 }
 0x11b   :  { %6640 = vmatpush2.bf16.msra.mxu1 %v12553_v49  ;;  %v665_v42 = vld [vmem:[#allocation5 + $0x10c8] sm:$0xff]  ;;  %v12953_v49 = vcombine.low %v929_v35, %v937_v37 }
 0x11c   :  { %6641 = vmatprep.subr.bf16.mxu1 %v12538_v56  ;;  %v913_v43 = vld [vmem:[#allocation5 + $0x1888] sm:$0xff]  ;;  %v12682_v50 = vcombine.high %v657_v41, %v665_v42 }
 0x11d   :  { %6599 = vmatpush2.bf16.msra.mxu0 %v12281_v23  ;;  %v921_v45 = vld [vmem:[#allocation5 + $0x18c8] sm:$0xff]  ;;  %v12681_v23 = vcombine.low %v657_v41, %v665_v42 }
 0x11e   :  { %6654 = vmatprep.subr.bf16.mxu0 %v12778_v27  ;;  %v641_v51 = vld [vmem:[#allocation5 + $0x1008] sm:$0xff]  ;;  %v12938_v56 = vcombine.high %v913_v43, %v921_v45 }
 0x11f   :  { %6642 = vmatpush2.bf16.msra.mxu1 %v12537_v24  ;;  %v649_v52 = vld [vmem:[#allocation5 + $0x1048] sm:$0xff]  ;;  %v12937_v24 = vcombine.low %v913_v43, %v921_v45 }
 0x120   :  { %6697 = vmatprep.subr.bf16.mxu1 %v13034_v0  ;;  %6601 = vmatmul.mubr.bf16.vlgmr.msra.gmra.mxu0 %v14895_v21  ;;  %v897_v53 = vld [vmem:[#allocation5 + $0x1808] sm:$0xff]  ;;  %v12666_v27 = vcombine.high %v641_v51, %v649_v52 }
 0x121   :  { %6655 = vmatpush1.bf16.msra.mxu0 %v12777_v2  ;;  %6686 = vmatprep.mubr.bf16.mxu0 %v14911_v32  ;;  %v905_v57 = vld [vmem:[#allocation5 + $0x1848] sm:$0xff]  ;;  %v12665_v2 = vcombine.low %v641_v51, %v649_v52 }
 0x122   :  { %6644 = vmatmul.mubr.bf16.vlgmr.msra.gmra.mxu1 %v14903_v25  ;;  %6656 = vmatprep.subr.bf16.mxu0 %v12762_v4  ;;  %v881_v28 = vld [vmem:[#allocation5 + $0x1788] sm:$0xff]  ;;  %v12922_v0 = vcombine.high %v897_v53, %v905_v57 }
 0x123   :  { %6698 = vmatpush1.bf16.msra.mxu1 %v13033_v3  ;;  %6729 = vmatprep.mubr.bf16.mxu1 %v14916_v33  ;;  %v889_v61 = vld [vmem:[#allocation5 + $0x17c8] sm:$0xff]  ;;  %v12921_v3 = vcombine.low %v897_v53, %v905_v57 }
 0x124   :  { %6699 = vmatprep.subr.bf16.mxu1 %v13018_v8  ;;  %v1137_v62 = vld [vmem:[#allocation5 + $0x1f88] sm:$0xff]  ;;  %v12906_v4 = vcombine.high %v881_v28, %v889_v61 }
 0x125   :  { %6657 = vmatpush1.bf16.msra.mxu0 %v12761_v10  ;;  %v1145_v1 = vld [vmem:[#allocation5 + $0x1fc8] sm:$0xff]  ;;  %v12905_v10 = vcombine.low %v881_v28, %v889_v61 }
 0x126   :  { %6658 = vmatprep.subr.bf16.mxu0 %v12746_v12  ;;  %v865_v5 = vld [vmem:[#allocation5 + $0x1708] sm:$0xff]  ;;  %v13162_v8 = vcombine.high %v1137_v62, %v1145_v1 }
 0x127   :  { %6700 = vmatpush1.bf16.msra.mxu1 %v13017_v11  ;;  %v873_v6 = vld [vmem:[#allocation5 + $0x1748] sm:$0xff]  ;;  %v13161_v11 = vcombine.low %v1137_v62, %v1145_v1 }
 0x128   :  { %6701 = vmatprep.subr.bf16.mxu1 %v13002_v16  ;;  %v1121_v7 = vld [vmem:[#allocation5 + $0x1f08] sm:$0xff]  ;;  %v12890_v12 = vcombine.high %v865_v5, %v873_v6 }
 0x129   :  { %6659 = vmatpush1.bf16.msra.mxu0 %v12745_v18  ;;  %v1129_v9 = vld [vmem:[#allocation5 + $0x1f48] sm:$0xff]  ;;  %v12889_v18 = vcombine.low %v865_v5, %v873_v6 }
 0x12a   :  { %6660 = vmatprep.subr.bf16.mxu0 %v12730_v20  ;;  %v849_v13 = vld [vmem:[#allocation5 + $0x1688] sm:$0xff]  ;;  %v13146_v16 = vcombine.high %v1121_v7, %v1129_v9 }
 0x12b   :  { %6702 = vmatpush1.bf16.msra.mxu1 %v13001_v19  ;;  %v857_v14 = vld [vmem:[#allocation5 + $0x16c8] sm:$0xff]  ;;  %v13145_v19 = vcombine.low %v1121_v7, %v1129_v9  ;;  %v242_v7 = vld [vmem:[#allocation5 + $0x390] sm:$0xff] }
 0x12c   :  { %6703 = vmatprep.subr.bf16.mxu1 %v12986_v54  ;;  %v1105_v15 = vld [vmem:[#allocation5 + $0x1e88] sm:$0xff]  ;;  %v12874_v20 = vcombine.high %v849_v13, %v857_v14  ;;  %v498_v9 = vld [vmem:[#allocation5 + $0xb90] sm:$0xff] }
 0x12d   :  { %6661 = vmatpush1.bf16.msra.mxu0 %v12729_v30  ;;  %v1113_v17 = vld [vmem:[#allocation5 + $0x1ec8] sm:$0xff]  ;;  %v12873_v30 = vcombine.low %v849_v13, %v857_v14 }
 0x12e   :  { %6662 = vmatprep.subr.bf16.mxu0 %v12714_v59  ;;  %v833_v22 = vld [vmem:[#allocation5 + $0x1608] sm:$0xff]  ;;  %v13130_v54 = vcombine.high %v1105_v15, %v1113_v17 }
 0x12f   :  { %6704 = vmatpush1.bf16.msra.mxu1 %v12985_v31  ;;  %v841_v26 = vld [vmem:[#allocation5 + $0x1648] sm:$0xff]  ;;  %v13129_v31 = vcombine.low %v1105_v15, %v1113_v17  ;;  %v226_v17 = vld [vmem:[#allocation5 + $0x310] sm:$0xff] }
 0x130   :  { %6705 = vmatprep.subr.bf16.mxu1 %v12970_v36  ;;  %v1089_v29 = vld [vmem:[#allocation5 + $0x1e08] sm:$0xff]  ;;  %v12858_v59 = vcombine.high %v833_v22, %v841_v26 }
 0x131   :  { %6663 = vmatpush1.bf16.msra.mxu0 %v12713_v38  ;;  %v1097_v55 = vld [vmem:[#allocation5 + $0x1e48] sm:$0xff]  ;;  %v12857_v38 = vcombine.low %v833_v22, %v841_v26  ;;  %v490_v22 = vld [vmem:[#allocation5 + $0xb50] sm:$0xff] }
 0x132   :  { %6664 = vmatprep.subr.bf16.mxu0 %v12698_v40  ;;  %v817_v60 = vld [vmem:[#allocation5 + $0x1588] sm:$0xff]  ;;  %v13114_v36 = vcombine.high %v1089_v29, %v1097_v55 }
 0x133   :  { %6706 = vmatpush1.bf16.msra.mxu1 %v12969_v39  ;;  %v825_v34 = vld [vmem:[#allocation5 + $0x15c8] sm:$0xff]  ;;  %v13113_v39 = vcombine.low %v1089_v29, %v1097_v55 }
 0x134   :  { %6707 = vmatprep.subr.bf16.mxu1 %v12954_v44  ;;  %v1073_v35 = vld [vmem:[#allocation5 + $0x1d88] sm:$0xff]  ;;  %v12842_v40 = vcombine.high %v817_v60, %v825_v34 }
 0x135   :  { %6665 = vmatpush1.bf16.msra.mxu0 %v12697_v48  ;;  %v1081_v37 = vld [vmem:[#allocation5 + $0x1dc8] sm:$0xff]  ;;  %v12841_v48 = vcombine.low %v817_v60, %v825_v34  ;;  %v474_v34 = vld [vmem:[#allocation5 + $0xad0] sm:$0xff] }
 0x136   :  { %6666 = vmatprep.subr.bf16.mxu0 %v12682_v50  ;;  %v801_v41 = vld [vmem:[#allocation5 + $0x1508] sm:$0xff]  ;;  %v13098_v44 = vcombine.high %v1073_v35, %v1081_v37 }
 0x137   :  { %6708 = vmatpush1.bf16.msra.mxu1 %v12953_v49  ;;  %v809_v42 = vld [vmem:[#allocation5 + $0x1548] sm:$0xff]  ;;  %v13097_v49 = vcombine.low %v1073_v35, %v1081_v37 }
 0x138   :  { %6709 = vmatprep.subr.bf16.mxu1 %v12938_v56  ;;  %v1057_v43 = vld [vmem:[#allocation5 + $0x1d08] sm:$0xff]  ;;  %v12826_v50 = vcombine.high %v801_v41, %v809_v42 }
 0x139   :  { %6667 = vmatpush1.bf16.msra.mxu0 %v12681_v23  ;;  %v1065_v45 = vld [vmem:[#allocation5 + $0x1d48] sm:$0xff]  ;;  %v12825_v23 = vcombine.low %v801_v41, %v809_v42  ;;  %v194_v42 = vld [vmem:[#allocation5 + $0x210] sm:$0xff] }
 0x13a   :  { %6668 = vmatprep.subr.bf16.mxu0 %v12666_v27  ;;  %v785_v51 = vld [vmem:[#allocation5 + $0x1488] sm:$0xff]  ;;  %v13082_v56 = vcombine.high %v1057_v43, %v1065_v45  ;;  %v13081_v27 = vcombine.low %v1057_v43, %v1065_v45  ;;  %v202_v43 = vld [vmem:[#allocation5 + $0x250] sm:$0xff] }
 0x13b   :  { %6710 = vmatpush1.bf16.msra.mxu1 %v12937_v24  ;;  %v793_v52 = vld [vmem:[#allocation5 + $0x14c8] sm:$0xff]  ;;  %v1156_v24 = vlaneseq }
 0x13c   :  { %6711 = vmatprep.subr.bf16.mxu1 %v12922_v0  ;;  %v1041_v53 = vld [vmem:[#allocation5 + $0x1c88] sm:$0xff]  ;;  %v12810_v28 = vcombine.high %v785_v51, %v793_v52 }
 0x13d   :  { %6669 = vmatpush1.bf16.msra.mxu0 %v12665_v2  ;;  %v1049_v57 = vld [vmem:[#allocation5 + $0x1cc8] sm:$0xff] }
 0x13e   :  { %6670 = vmatprep.subr.bf16.mxu0 %v12906_v4  ;;  %v769_v61 = vld [vmem:[#allocation5 + $0x1408] sm:$0xff]  ;;  %v13066_v1 = vcombine.high %v1041_v53, %v1049_v57  ;;  %v14937_v4 = vshrl.u32 %v1156_v24, 7  ;;  %v13065_v5 = vcombine.low %v1041_v53, %v1049_v57  ;;  %v178_v24 = vld [vmem:[#allocation5 + $0x190] sm:$0xff] }
 0x13f   :  { %6712 = vmatpush1.bf16.msra.mxu1 %v12921_v3  ;;  %v777_v62 = vld [vmem:[#allocation5 + $0x1448] sm:$0xff]  ;;  %v12809_v3 = vcombine.low %v785_v51, %v793_v52 }
 0x140   :  { %6713 = vmatprep.subr.bf16.mxu1 %v13162_v8  ;;  %v1025_v0 = vld [vmem:[#allocation5 + $0x1c08] sm:$0xff]  ;;  %v12794_v6 = vcombine.high %v769_v61, %v777_v62  ;;  %v250_v8 = vld [vmem:[#allocation5 + $0x3d0] sm:$0xff]  ;;  %v12793_v13 = vcombine.low %v769_v61, %v777_v62  ;;  %v14940_v14 = vsub.s32 0, %v14937_v4 }
 0x141   :  { %6671 = vmatpush2.bf16.msra.mxu0 %v12905_v10  ;;  %v1033_v2 = vld [vmem:[#allocation5 + $0x1c48] sm:$0xff]  ;;  %v12267_v29 = vcombine.low %v242_v7, %v250_v8 }
 0x142   :  { %6672 = vmatprep.subr.bf16.mxu0 %v12890_v12  ;;  %v13050_v10 = vcombine.high %v1025_v0, %v1033_v2  ;;  %v1152_v12 = vld [vmem:[#allocation7] sm:$0xff]  ;;  %15665 = vst [vmem:[#allocation23_spill] sm:$0xff] %v14940_v14  ;;  %v13049_v15 = vcombine.low %v1025_v0, %v1033_v2  ;;  %v442_v0 = vld [vmem:[#allocation5 + $0x9d0] sm:$0xff] }
 0x143   :  { %6714 = vmatpush2.bf16.msra.mxu1 %v13161_v11  ;;  %v506_v11 = vld [vmem:[#allocation5 + $0xbd0] sm:$0xff]  ;;  %v1159_v26 = vrot.slane %v1152_v12, %v14940_v14 }
 0x144   :  { %6715 = vmatprep.subr.bf16.mxu1 %v13146_v16  ;;  %v12268_v16 = vcombine.high %v242_v7, %v250_v8  ;;  %v418_v7 = vld [vmem:[#allocation5 + $0x910] sm:$0xff] }
 0x145   :  { %6673 = vmatpush2.bf16.msra.mxu0 %v12889_v18  ;;  %v234_v18 = vld [vmem:[#allocation5 + $0x350] sm:$0xff] }
 0x146   :  { %6674 = vmatprep.subr.bf16.mxu0 %v12874_v20  ;;  %v12524_v20 = vcombine.high %v498_v9, %v506_v11  ;;  %v12252_v55 = vcombine.high %v226_v17, %v234_v18 }
 0x147   :  { %6716 = vmatpush2.bf16.msra.mxu1 %v13145_v19  ;;  %v482_v19 = vld [vmem:[#allocation5 + $0xb10] sm:$0xff] }
 0x148   :  { %6717 = vmatprep.subr.bf16.mxu1 %v13130_v54  ;;  %v12523_v54 = vcombine.low %v498_v9, %v506_v11  ;;  %v12508_v60 = vcombine.high %v482_v19, %v490_v22  ;;  %v426_v9 = vld [vmem:[#allocation5 + $0x950] sm:$0xff] }
 0x149   :  { %6675 = vmatpush2.bf16.msra.mxu0 %v12873_v30  ;;  %v210_v30 = vld [vmem:[#allocation5 + $0x290] sm:$0xff] }
 0x14a   :  { %6676 = vmatprep.subr.bf16.mxu0 %v12858_v59  ;;  %v466_v59 = vld [vmem:[#allocation5 + $0xa90] sm:$0xff] }
 0x14b   :  { %6718 = vmatpush2.bf16.msra.mxu1 %v13129_v31  ;;  %v218_v31 = vld [vmem:[#allocation5 + $0x2d0] sm:$0xff]  ;;  %v12491_v57 = vcombine.low %v466_v59, %v474_v34 }
 0x14c   :  { %6719 = vmatprep.subr.bf16.mxu1 %v13114_v36  ;;  %v12236_v41 = vcombine.high %v210_v30, %v218_v31  ;;  %v12235_v53 = vcombine.low %v210_v30, %v218_v31  ;;  %v394_v30 = vld [vmem:[#allocation5 + $0x850] sm:$0xff] }
 0x14d   :  { %6677 = vmatpush2.bf16.msra.mxu0 %v12857_v38  ;;  %v12251_v38 = vcombine.low %v226_v17, %v234_v18  ;;  %v12444_v17 = vcombine.high %v418_v7, %v426_v9  ;;  %v410_v18 = vld [vmem:[#allocation5 + $0x8d0] sm:$0xff] }
 0x14e   :  { %6678 = vmatprep.subr.bf16.mxu0 %v12842_v40  ;;  %v12507_v40 = vcombine.low %v482_v19, %v490_v22 }
 0x14f   :  { %6720 = vmatpush2.bf16.msra.mxu1 %v13113_v39 }
 0x150   :  { %6721 = vmatprep.subr.bf16.mxu1 %v13098_v44  ;;  %v450_v44 = vld [vmem:[#allocation5 + $0xa10] sm:$0xff] }
 0x151   :  { %6679 = vmatpush2.bf16.msra.mxu0 %v12841_v48 }
 0x152   :  { %6680 = vmatprep.subr.bf16.mxu0 %v12826_v50  ;;  %v458_v50 = vld [vmem:[#allocation5 + $0xa50] sm:$0xff] }
 0x153   :  { %6722 = vmatpush2.bf16.msra.mxu1 %v13097_v49  ;;  %v12492_v49 = vcombine.high %v466_v59, %v474_v34  ;;  %v12476_v62 = vcombine.high %v450_v44, %v458_v50  ;;  %v12475_v2 = vcombine.low %v450_v44, %v458_v50  ;;  %v370_v34 = vld [vmem:[#allocation5 + $0x790] sm:$0xff] }
 0x154   :  { %6723 = vmatprep.subr.bf16.mxu1 %v13082_v56  ;;  %v362_v44 = vld [vmem:[#allocation5 + $0x750] sm:$0xff] }
 0x155   :  { %6681 = vmatpush2.bf16.msra.mxu0 %v12825_v23  ;;  %v12220_v23 = vcombine.high %v194_v42, %v202_v43 }
 0x156   :  { %6682 = vmatprep.subr.bf16.mxu0 %v12810_v28  ;;  %v434_v28 = vld [vmem:[#allocation5 + $0x990] sm:$0xff] }
 0x157   :  { %6724 = vmatpush2.bf16.msra.mxu1 %v13081_v27  ;;  %v186_v27 = vld [vmem:[#allocation5 + $0x1d0] sm:$0xff]  ;;  %v12460_v8 = vcombine.high %v434_v28, %v442_v0  ;;  %v12459_v11 = vcombine.low %v434_v28, %v442_v0 }
 0x158   :  { %6725 = vmatprep.subr.bf16.mxu1 %v13066_v1  ;;  %v12219_v1 = vcombine.low %v194_v42, %v202_v43  ;;  %v354_v43 = vld [vmem:[#allocation5 + $0x710] sm:$0xff] }
 0x159   :  { %6683 = vmatpush2.bf16.msra.mxu0 %v12809_v3  ;;  %v12204_v3 = vcombine.high %v178_v24, %v186_v27  ;;  %v602_v28 = vld [vmem:[#allocation5 + $0xed0] sm:$0xff] }
 0x15a   :  { %6684 = vmatprep.subr.bf16.mxu0 %v12794_v6  ;;  %v170_v6 = vld [vmem:[#allocation5 + $0x150] sm:$0xff] }
 0x15b   :  { %6726 = vmatpush2.bf16.msra.mxu1 %v13065_v5  ;;  %v162_v5 = vld [vmem:[#allocation5 + $0x110] sm:$0xff] }
 0x15c   :  { %6727 = vmatprep.subr.bf16.mxu1 %v13050_v10  ;;  %v12203_v10 = vcombine.low %v178_v24, %v186_v27  ;;  %v12188_v12 = vcombine.high %v162_v5, %v170_v6  ;;  %v12187_v19 = vcombine.low %v162_v5, %v170_v6  ;;  %v594_v24 = vld [vmem:[#allocation5 + $0xe90] sm:$0xff] }
 0x15d   :  { %6685 = vmatpush2.bf16.msra.mxu0 %v12793_v13  ;;  %v146_v13 = vld [vmem:[#allocation5 + $0x90] sm:$0xff]  ;;  %v12620_v6 = vcombine.high %v594_v24, %v602_v28 }
 0x15e   :  { %6740 = vmatprep.subr.bf16.mxu0 %v12268_v16  ;;  %v402_v16 = vld [vmem:[#allocation5 + $0x890] sm:$0xff] }
 0x15f   :  { %6728 = vmatpush2.bf16.msra.mxu1 %v13049_v15  ;;  %v154_v15 = vld [vmem:[#allocation5 + $0xd0] sm:$0xff]  ;;  %v12427_v59 = vcombine.low %v402_v16, %v410_v18 }
 0x160   :  { %6783 = vmatprep.subr.bf16.mxu1 %v12524_v20  ;;  %v6430_v35 = vpop.f32.mrf.mxu0  ;;  %6687 = vmatmul.mubr.bf16.vlgmr.msra.gmra.mxu0 %v14923_v46  ;;  %v12443_v20 = vcombine.low %v418_v7, %v426_v9  ;;  %v12172_v22 = vcombine.high %v146_v13, %v154_v15  ;;  %v12171_v31 = vcombine.low %v146_v13, %v154_v15  ;;  %v578_v5 = vld [vmem:[#allocation5 + $0xe10] sm:$0xff] }
 0x161   :  { %v6431_v36 = vadd.f32 %v6430_v35, %v1159_v26  ;;  %6741 = vmatpush1.bf16.msra.mxu0 %v12267_v29  ;;  %6772 = vmatprep.mubr.bf16.mxu0 %v14881_v58  ;;  %v138_v29 = vld [vmem:[#allocation5 + $0x50] sm:$0xff]  ;;  %v12619_v9 = vcombine.low %v594_v24, %v602_v28 }
 0x162   :  { %v6473_v37 = vpop.f32.mrf.mxu1  ;;  %6730 = vmatmul.mubr.bf16.vlgmr.msra.gmra.mxu1 %v14927_v47  ;;  %v14945_v39 = vpop.f32.mrf.mxu0  ;;  %6742 = vmatprep.subr.bf16.mxu0 %v12252_v55  ;;  %v12428_v55 = vcombine.high %v402_v16, %v410_v18  ;;  %v378_v35 = vld [vmem:[#allocation5 + $0x7d0] sm:$0xff] }
 0x163   :  { %6784 = vmatpush1.bf16.msra.mxu1 %v12523_v54  ;;  %v14947_v45 = vadd.f32 %v6473_v37, %v6431_v36  ;;  %6815 = vmatprep.mubr.bf16.mxu1 %v14889_v63  ;;  %v386_v54 = vld [vmem:[#allocation5 + $0x810] sm:$0xff]  ;;  %v12396_v42 = vcombine.high %v370_v34, %v378_v35 }
 0x164   :  { %v14949_v48 = vpop.f32.mrf.mxu1  ;;  %6785 = vmatprep.subr.bf16.mxu1 %v12508_v60  ;;  %v6434_v51 = vpop.f32.mrf.mxu0  ;;  %v626_v36 = vld [vmem:[#allocation5 + $0xf90] sm:$0xff]  ;;  %v12412_v37 = vcombine.high %v386_v54, %v394_v30 }
 0x165   :  { %v6435_v52 = vadd.f32 %v6434_v51, %v1159_v26  ;;  %6743 = vmatpush1.bf16.msra.mxu0 %v12251_v38  ;;  %v130_v26 = vld [vmem:[#allocation5 + $0x10] sm:$0xff] }
 0x166   :  { %v6477_v56 = vpop.f32.mrf.mxu1  ;;  %6744 = vmatprep.subr.bf16.mxu0 %v12236_v41  ;;  %v12156_v60 = vcombine.high %v130_v26, %v138_v29  ;;  %v634_v38 = vld [vmem:[#allocation5 + $0xfd0] sm:$0xff]  ;;  %v12411_v41 = vcombine.low %v386_v54, %v394_v30 }
 0x167   :  { %6786 = vmatpush1.bf16.msra.mxu1 %v12507_v40  ;;  %v14953_v61 = vadd.f32 %v6477_v56, %v6435_v52  ;;  %v12155_v40 = vcombine.low %v130_v26, %v138_v29  ;;  %v12652_v50 = vcombine.high %v626_v36, %v634_v38  ;;  %v618_v51 = vld [vmem:[#allocation5 + $0xf50] sm:$0xff]  ;;  %v12395_v52 = vcombine.low %v370_v34, %v378_v35 }
 0x168   :  { %6787 = vmatprep.subr.bf16.mxu1 %v12492_v49  ;;  %v610_v49 = vld [vmem:[#allocation5 + $0xf10] sm:$0xff]  ;;  %v12380_v56 = vcombine.high %v354_v43, %v362_v44 }
 0x169   :  { %6745 = vmatpush1.bf16.msra.mxu0 %v12235_v53  ;;  %v12651_v53 = vcombine.low %v626_v36, %v634_v38  ;;  %v12636_v27 = vcombine.high %v610_v49, %v618_v51  ;;  %v12635_v0 = vcombine.low %v610_v49, %v618_v51  ;;  %v586_v7 = vld [vmem:[#allocation5 + $0xe50] sm:$0xff] }
 0x16a   :  { %6746 = vmatprep.subr.bf16.mxu0 %v12220_v23  ;;  %v346_v23 = vld [vmem:[#allocation5 + $0x6d0] sm:$0xff]  ;;  %v12604_v15 = vcombine.high %v578_v5, %v586_v7  ;;  %v12603_v18 = vcombine.low %v578_v5, %v586_v7  ;;  %v14955_v7 = vpop.f32.mrf.mxu0 }
 0x16b   :  { %6788 = vmatpush1.bf16.msra.mxu1 %v12491_v57  ;;  %v338_v57 = vld [vmem:[#allocation5 + $0x690] sm:$0xff] }
 0x16c   :  { %6789 = vmatprep.subr.bf16.mxu1 %v12476_v62  ;;  %v12379_v62 = vcombine.low %v354_v43, %v362_v44  ;;  %v562_v13 = vld [vmem:[#allocation5 + $0xd90] sm:$0xff] }
 0x16d   :  { %6747 = vmatpush1.bf16.msra.mxu0 %v12219_v1  ;;  %v12364_v1 = vcombine.high %v338_v57, %v346_v23  ;;  %v570_v16 = vld [vmem:[#allocation5 + $0xdd0] sm:$0xff] }
 0x16e   :  { %6748 = vmatprep.subr.bf16.mxu0 %v12204_v3  ;;  %v330_v3 = vld [vmem:[#allocation5 + $0x650] sm:$0xff]  ;;  %v12588_v29 = vcombine.high %v562_v13, %v570_v16  ;;  %v12587_v30 = vcombine.low %v562_v13, %v570_v16  ;;  %v14957_v13 = vpop.f32.mrf.mxu1 }
 0x16f   :  { %6790 = vmatpush1.bf16.msra.mxu1 %v12475_v2  ;;  %v322_v2 = vld [vmem:[#allocation5 + $0x610] sm:$0xff] }
 0x170   :  { %6791 = vmatprep.subr.bf16.mxu1 %v12460_v8  ;;  %v12363_v8 = vcombine.low %v338_v57, %v346_v23  ;;  %v546_v26 = vld [vmem:[#allocation5 + $0xd10] sm:$0xff] }
 0x171   :  { %6749 = vmatpush1.bf16.msra.mxu0 %v12203_v10  ;;  %v12348_v10 = vcombine.high %v322_v2, %v330_v3  ;;  %v554_v54 = vld [vmem:[#allocation5 + $0xd50] sm:$0xff] }
 0x172   :  { %6750 = vmatprep.subr.bf16.mxu0 %v12188_v12  ;;  %v314_v12 = vld [vmem:[#allocation5 + $0x5d0] sm:$0xff]  ;;  %v12572_v35 = vcombine.high %v546_v26, %v554_v54  ;;  %v12571_v38 = vcombine.low %v546_v26, %v554_v54 }
 0x173   :  { %6792 = vmatpush1.bf16.msra.mxu1 %v12459_v11  ;;  %v306_v11 = vld [vmem:[#allocation5 + $0x590] sm:$0xff] }
 0x174   :  { %6793 = vmatprep.subr.bf16.mxu1 %v12444_v17  ;;  %v12347_v17 = vcombine.low %v322_v2, %v330_v3  ;;  %v530_v34 = vld [vmem:[#allocation5 + $0xc90] sm:$0xff] }
 0x175   :  { %6751 = vmatpush1.bf16.msra.mxu0 %v12187_v19  ;;  %v12332_v19 = vcombine.high %v306_v11, %v314_v12  ;;  %v538_v36 = vld [vmem:[#allocation5 + $0xcd0] sm:$0xff] }
 0x176   :  { %6752 = vmatprep.subr.bf16.mxu0 %v12172_v22  ;;  %v298_v22 = vld [vmem:[#allocation5 + $0x550] sm:$0xff]  ;;  %v12556_v44 = vcombine.high %v530_v34, %v538_v36  ;;  %v12555_v51 = vcombine.low %v530_v34, %v538_v36 }
 0x177   :  { %6794 = vmatpush1.bf16.msra.mxu1 %v12443_v20  ;;  %v290_v20 = vld [vmem:[#allocation5 + $0x510] sm:$0xff] }
 0x178   :  { %6795 = vmatprep.subr.bf16.mxu1 %v12428_v55  ;;  %v12331_v55 = vcombine.low %v306_v11, %v314_v12  ;;  %v514_v43 = vld [vmem:[#allocation5 + $0xc10] sm:$0xff] }
 0x179   :  { %6753 = vmatpush1.bf16.msra.mxu0 %v12171_v31  ;;  %v12316_v31 = vcombine.high %v290_v20, %v298_v22  ;;  %v522_v49 = vld [vmem:[#allocation5 + $0xc50] sm:$0xff] }
 0x17a   :  { %6754 = vmatprep.subr.bf16.mxu0 %v12156_v60  ;;  %v282_v60 = vld [vmem:[#allocation5 + $0x4d0] sm:$0xff]  ;;  %v12540_v23 = vcombine.high %v514_v43, %v522_v49  ;;  %v12539_v28 = vcombine.low %v514_v43, %v522_v49 }
 0x17b   :  { %6796 = vmatpush1.bf16.msra.mxu1 %v12427_v59  ;;  %v274_v59 = vld [vmem:[#allocation5 + $0x490] sm:$0xff] }
 0x17c   :  { %6797 = vmatprep.subr.bf16.mxu1 %v12412_v37  ;;  %v12315_v37 = vcombine.low %v290_v20, %v298_v22  ;;  %v1010_v57 = vld [vmem:[#allocation5 + $0x1b90] sm:$0xff] }
 0x17d   :  { %6755 = vmatpush1.bf16.msra.mxu0 %v12155_v40  ;;  %v12300_v40 = vcombine.high %v274_v59, %v282_v60  ;;  %v1018_v24 = vld [vmem:[#allocation5 + $0x1bd0] sm:$0xff] }
 0x17e   :  { %6756 = vmatprep.subr.bf16.mxu0 %v12396_v42  ;;  %v266_v42 = vld [vmem:[#allocation5 + $0x450] sm:$0xff]  ;;  %v13036_v3 = vcombine.high %v1010_v57, %v1018_v24 }
 0x17f   :  { %6798 = vmatpush1.bf16.msra.mxu1 %v12411_v41  ;;  %v258_v41 = vld [vmem:[#allocation5 + $0x410] sm:$0xff] }
 0x180   :  { %6799 = vmatprep.subr.bf16.mxu1 %v12652_v50  ;;  %v12299_v50 = vcombine.low %v274_v59, %v282_v60  ;;  %v994_v2 = vld [vmem:[#allocation5 + $0x1b10] sm:$0xff] }
 0x181   :  { %6757 = vmatpush2.bf16.msra.mxu0 %v12395_v52  ;;  %v12284_v52 = vcombine.high %v258_v41, %v266_v42  ;;  %v1002_v5 = vld [vmem:[#allocation5 + $0x1b50] sm:$0xff] }
 0x182   :  { %6758 = vmatprep.subr.bf16.mxu0 %v12380_v56  ;;  %v762_v56 = vld [vmem:[#allocation5 + $0x13d0] sm:$0xff]  ;;  %v13019_v26 = vcombine.low %v994_v2, %v1002_v5 }
 0x183   :  { %6800 = vmatpush2.bf16.msra.mxu1 %v12651_v53  ;;  %v754_v53 = vld [vmem:[#allocation5 + $0x1390] sm:$0xff] }
 0x184   :  { %6801 = vmatprep.subr.bf16.mxu1 %v12636_v27  ;;  %v12283_v27 = vcombine.low %v258_v41, %v266_v42  ;;  %v730_v11 = vld [vmem:[#allocation5 + $0x12d0] sm:$0xff] }
 0x185   :  { %6759 = vmatpush2.bf16.msra.mxu0 %v12379_v62  ;;  %v12780_v62 = vcombine.high %v754_v53, %v762_v56  ;;  %v978_v12 = vld [vmem:[#allocation5 + $0x1a90] sm:$0xff] }
 0x186   :  { %6760 = vmatprep.subr.bf16.mxu0 %v12364_v1  ;;  %v746_v1 = vld [vmem:[#allocation5 + $0x1350] sm:$0xff] }
 0x187   :  { %6802 = vmatpush2.bf16.msra.mxu1 %v12635_v0  ;;  %v738_v0 = vld [vmem:[#allocation5 + $0x1310] sm:$0xff] }
 0x188   :  { %6803 = vmatprep.subr.bf16.mxu1 %v12620_v6  ;;  %v12779_v6 = vcombine.low %v754_v53, %v762_v56  ;;  %v986_v16 = vld [vmem:[#allocation5 + $0x1ad0] sm:$0xff]  ;;  %v12763_v20 = vcombine.low %v738_v0, %v746_v1 }
 0x189   :  { %6761 = vmatpush2.bf16.msra.mxu0 %v12363_v8  ;;  %v13035_v8 = vcombine.low %v1010_v57, %v1018_v24  ;;  %v706_v54 = vld [vmem:[#allocation5 + $0x1210] sm:$0xff] }
 0x18a   :  { %6762 = vmatprep.subr.bf16.mxu0 %v12348_v10  ;;  %v722_v10 = vld [vmem:[#allocation5 + $0x1290] sm:$0xff] }
 0x18b   :  { %6804 = vmatpush2.bf16.msra.mxu1 %v12619_v9  ;;  %v12764_v9 = vcombine.high %v738_v0, %v746_v1  ;;  %v970_v60 = vld [vmem:[#allocation5 + $0x1a50] sm:$0xff]  ;;  %v12747_v36 = vcombine.low %v722_v10, %v730_v11 }
 0x18c   :  { %6805 = vmatprep.subr.bf16.mxu1 %v12604_v15  ;;  %v13020_v15 = vcombine.high %v994_v2, %v1002_v5  ;;  %v690_v41 = vld [vmem:[#allocation5 + $0x1190] sm:$0xff] }
 0x18d   :  { %6763 = vmatpush2.bf16.msra.mxu0 %v12347_v17  ;;  %v698_v42 = vld [vmem:[#allocation5 + $0x11d0] sm:$0xff] }
 0x18e   :  { %6764 = vmatprep.subr.bf16.mxu0 %v12332_v19  ;;  %v946_v43 = vld [vmem:[#allocation5 + $0x1990] sm:$0xff] }
 0x18f   :  { %6806 = vmatpush2.bf16.msra.mxu1 %v12603_v18  ;;  %v674_v53 = vld [vmem:[#allocation5 + $0x1110] sm:$0xff] }
 0x190   :  { %6807 = vmatprep.subr.bf16.mxu1 %v12588_v29  ;;  %v12748_v29 = vcombine.high %v722_v10, %v730_v11  ;;  %v682_v56 = vld [vmem:[#allocation5 + $0x1150] sm:$0xff] }
 0x191   :  { %6765 = vmatpush2.bf16.msra.mxu0 %v12331_v55  ;;  %v714_v55 = vld [vmem:[#allocation5 + $0x1250] sm:$0xff] }
 0x192   :  { %6766 = vmatprep.subr.bf16.mxu0 %v12316_v31  ;;  %v930_v57 = vld [vmem:[#allocation5 + $0x1910] sm:$0xff] }
 0x193   :  { %6808 = vmatpush2.bf16.msra.mxu1 %v12587_v30  ;;  %v962_v30 = vld [vmem:[#allocation5 + $0x1a10] sm:$0xff] }
 0x194   :  { %6809 = vmatprep.subr.bf16.mxu1 %v12572_v35  ;;  %v12988_v49 = vcombine.high %v962_v30, %v970_v60  ;;  %v938_v24 = vld [vmem:[#allocation5 + $0x1950] sm:$0xff] }
 0x195   :  { %6767 = vmatpush2.bf16.msra.mxu0 %v12315_v37  ;;  %v658_v0 = vld [vmem:[#allocation5 + $0x1090] sm:$0xff] }
 0x196   :  { %6768 = vmatprep.subr.bf16.mxu0 %v12300_v40  ;;  %v12732_v40 = vcombine.high %v706_v54, %v714_v55  ;;  %v666_v1 = vld [vmem:[#allocation5 + $0x10d0] sm:$0xff] }
 0x197   :  { %6810 = vmatpush2.bf16.msra.mxu1 %v12571_v38  ;;  %v13003_v38 = vcombine.low %v978_v12, %v986_v16  ;;  %v914_v2 = vld [vmem:[#allocation5 + $0x1890] sm:$0xff] }
 0x198   :  { %6811 = vmatprep.subr.bf16.mxu1 %v12556_v44  ;;  %v922_v5 = vld [vmem:[#allocation5 + $0x18d0] sm:$0xff] }
 0x199   :  { %6769 = vmatpush2.bf16.msra.mxu0 %v12299_v50  ;;  %v954_v50 = vld [vmem:[#allocation5 + $0x19d0] sm:$0xff] }
 0x19a   :  { %6770 = vmatprep.subr.bf16.mxu0 %v12284_v52  ;;  %v12716_v52 = vcombine.high %v690_v41, %v698_v42  ;;  %v642_v10 = vld [vmem:[#allocation5 + $0x1010] sm:$0xff] }
 0x19b   :  { %6812 = vmatpush2.bf16.msra.mxu1 %v12555_v51  ;;  %v12731_v51 = vcombine.low %v706_v54, %v714_v55  ;;  %v650_v11 = vld [vmem:[#allocation5 + $0x1050] sm:$0xff] }
 0x19c   :  { %6813 = vmatprep.subr.bf16.mxu1 %v12540_v23  ;;  %v12972_v23 = vcombine.high %v946_v43, %v954_v50  ;;  %v1146_v55 = vld [vmem:[#allocation5 + $0x1fd0] sm:$0xff] }
 0x19d   :  { %6771 = vmatpush2.bf16.msra.mxu0 %v12283_v27  ;;  %v12715_v27 = vcombine.low %v690_v41, %v698_v42 }
 0x19e   :  { %6826 = vmatprep.subr.bf16.mxu0 %v12780_v62  ;;  %v12700_v62 = vcombine.high %v674_v53, %v682_v56 }
 0x19f   :  { %6814 = vmatpush2.bf16.msra.mxu1 %v12539_v28  ;;  %v12971_v28 = vcombine.low %v946_v43, %v954_v50  ;;  %v850_v43 = vld [vmem:[#allocation5 + $0x1690] sm:$0xff] }
 0x1a0   :  { %6869 = vmatprep.subr.bf16.mxu1 %v13036_v3  ;;  %v6516_v17 = vpop.f32.mrf.mxu0  ;;  %6773 = vmatmul.mubr.bf16.vlgmr.msra.gmra.mxu0 %v14895_v21  ;;  %v12956_v3 = vcombine.high %v930_v57, %v938_v24  ;;  %v1106_v50 = vld [vmem:[#allocation5 + $0x1e90] sm:$0xff] }
 0x1a1   :  { %v6517_v18 = vadd.f32 %v6516_v17, %v14947_v45  ;;  %6827 = vmatpush1.bf16.msra.mxu0 %v12779_v6  ;;  %v13004_v45 = vcombine.high %v978_v12, %v986_v16  ;;  %6858 = vmatprep.mubr.bf16.mxu0 %v14911_v32  ;;  %v12699_v6 = vcombine.low %v674_v53, %v682_v56  ;;  %v898_v12 = vld [vmem:[#allocation5 + $0x1810] sm:$0xff] }
 0x1a2   :  { %v6559_v19 = vpop.f32.mrf.mxu1  ;;  %6816 = vmatmul.mubr.bf16.vlgmr.msra.gmra.mxu1 %v14903_v25  ;;  %v14962_v22 = vpop.f32.mrf.mxu0  ;;  %6828 = vmatprep.subr.bf16.mxu0 %v12764_v9  ;;  %v12684_v9 = vcombine.high %v658_v0, %v666_v1  ;;  %v906_v16 = vld [vmem:[#allocation5 + $0x1850] sm:$0xff]  ;;  %v12683_v17 = vcombine.low %v658_v0, %v666_v1 }
 0x1a3   :  { %6870 = vmatpush1.bf16.msra.mxu1 %v13035_v8  ;;  %v14964_v31 = vadd.f32 %v6559_v19, %v6517_v18  ;;  %6901 = vmatprep.mubr.bf16.mxu1 %v14916_v33  ;;  %v12955_v8 = vcombine.low %v930_v57, %v938_v24  ;;  %v12939_v18 = vcombine.low %v914_v2, %v922_v5  ;;  %v842_v24 = vld [vmem:[#allocation5 + $0x1650] sm:$0xff] }
 0x1a4   :  { %v14966_v59 = vpop.f32.mrf.mxu1  ;;  %6871 = vmatprep.subr.bf16.mxu1 %v13020_v15  ;;  %v6520_v34 = vpop.f32.mrf.mxu0  ;;  %v12940_v15 = vcombine.high %v914_v2, %v922_v5  ;;  %v12668_v19 = vcombine.high %v642_v10, %v650_v11  ;;  %v12924_v54 = vcombine.high %v898_v12, %v906_v16  ;;  %v826_v5 = vld [vmem:[#allocation5 + $0x15d0] sm:$0xff] }
 0x1a5   :  { %15666 = vst [vmem:[#allocation24_spill] sm:$0xff] %v14964_v31  ;;  %v6521_v35 = vadd.f32 %v6520_v34, %v14953_v61  ;;  %6829 = vmatpush1.bf16.msra.mxu0 %v12763_v20  ;;  %v12987_v61 = vcombine.low %v962_v30, %v970_v60  ;;  %v882_v20 = vld [vmem:[#allocation5 + $0x1790] sm:$0xff]  ;;  %v12667_v30 = vcombine.low %v642_v10, %v650_v11  ;;  %v437_v31 = vld [vmem:[#allocation5 + $0x9a8] sm:$0xff] }
 0x1a6   :  { %v6563_v37 = vpop.f32.mrf.mxu1  ;;  %6830 = vmatprep.subr.bf16.mxu0 %v12748_v29  ;;  %v1138_v29 = vld [vmem:[#allocation5 + $0x1f90] sm:$0xff] }
 0x1a7   :  { %6872 = vmatpush1.bf16.msra.mxu1 %v13019_v26  ;;  %v14971_v44 = vadd.f32 %v6563_v37, %v6521_v35  ;;  %v890_v26 = vld [vmem:[#allocation5 + $0x17d0] sm:$0xff]  ;;  %v13164_v37 = vcombine.high %v1138_v29, %v1146_v55  ;;  %v13163_v41 = vcombine.low %v1138_v29, %v1146_v55 }
 0x1a8   :  { %6873 = vmatprep.subr.bf16.mxu1 %v13004_v45  ;;  %v12923_v45 = vcombine.low %v898_v12, %v906_v16  ;;  %v12908_v60 = vcombine.high %v882_v20, %v890_v26  ;;  %v866_v34 = vld [vmem:[#allocation5 + $0x1710] sm:$0xff] }
 0x1a9   :  { %15667 = vst [vmem:[#allocation25_spill] sm:$0xff] %v14971_v44  ;;  %6831 = vmatpush1.bf16.msra.mxu0 %v12747_v36  ;;  %v874_v35 = vld [vmem:[#allocation5 + $0x1750] sm:$0xff]  ;;  %v717_v44 = vld [vmem:[#allocation5 + $0x1268] sm:$0xff] }
 0x1aa   :  { %6832 = vmatprep.subr.bf16.mxu0 %v12732_v40  ;;  %v1122_v36 = vld [vmem:[#allocation5 + $0x1f10] sm:$0xff]  ;;  %v12907_v40 = vcombine.low %v882_v20, %v890_v26  ;;  %v12892_v42 = vcombine.high %v866_v34, %v874_v35 }
 0x1ab   :  { %6874 = vmatpush1.bf16.msra.mxu1 %v13003_v38  ;;  %v1130_v38 = vld [vmem:[#allocation5 + $0x1f50] sm:$0xff] }
 0x1ac   :  { %6875 = vmatprep.subr.bf16.mxu1 %v12988_v49  ;;  %v858_v49 = vld [vmem:[#allocation5 + $0x16d0] sm:$0xff]  ;;  %v13147_v53 = vcombine.low %v1122_v36, %v1130_v38 }
 0x1ad   :  { %6833 = vmatpush1.bf16.msra.mxu0 %v12731_v51  ;;  %v13148_v51 = vcombine.high %v1122_v36, %v1130_v38  ;;  %v12876_v56 = vcombine.high %v850_v43, %v858_v49  ;;  %v810_v16 = vld [vmem:[#allocation5 + $0x1550] sm:$0xff] }
 0x1ae   :  { %6834 = vmatprep.subr.bf16.mxu0 %v12716_v52  ;;  %v12891_v52 = vcombine.low %v866_v34, %v874_v35  ;;  %v794_v55 = vld [vmem:[#allocation5 + $0x14d0] sm:$0xff] }
 0x1af   :  { %6876 = vmatpush1.bf16.msra.mxu1 %v12987_v61  ;;  %v1114_v61 = vld [vmem:[#allocation5 + $0x1ed0] sm:$0xff] }
 0x1b0   :  { %6877 = vmatprep.subr.bf16.mxu1 %v12972_v23  ;;  %v13132_v57 = vcombine.high %v1106_v50, %v1114_v61  ;;  %v834_v23 = vld [vmem:[#allocation5 + $0x1610] sm:$0xff]  ;;  %v13131_v0 = vcombine.low %v1106_v50, %v1114_v61  ;;  %v251_v61 = vld [vmem:[#allocation5 + $0x3d8] sm:$0xff] }
 0x1b1   :  { %6835 = vmatpush1.bf16.msra.mxu0 %v12715_v27  ;;  %v1090_v27 = vld [vmem:[#allocation5 + $0x1e10] sm:$0xff]  ;;  %v12860_v1 = vcombine.high %v834_v23, %v842_v24 }
 0x1b2   :  { %6836 = vmatprep.subr.bf16.mxu0 %v12700_v62  ;;  %v12875_v62 = vcombine.low %v850_v43, %v858_v49  ;;  %v778_v38 = vld [vmem:[#allocation5 + $0x1450] sm:$0xff] }
 0x1b3   :  { %6878 = vmatpush1.bf16.msra.mxu1 %v12971_v28  ;;  %v1098_v28 = vld [vmem:[#allocation5 + $0x1e50] sm:$0xff] }
 0x1b4   :  { %6879 = vmatprep.subr.bf16.mxu1 %v12956_v3  ;;  %v13116_v2 = vcombine.high %v1090_v27, %v1098_v28  ;;  %v818_v3 = vld [vmem:[#allocation5 + $0x1590] sm:$0xff]  ;;  %v13115_v10 = vcombine.low %v1090_v27, %v1098_v28  ;;  %v227_v28 = vld [vmem:[#allocation5 + $0x318] sm:$0xff] }
 0x1b5   :  { %6837 = vmatpush1.bf16.msra.mxu0 %v12699_v6  ;;  %v1074_v6 = vld [vmem:[#allocation5 + $0x1d90] sm:$0xff]  ;;  %v12844_v11 = vcombine.high %v818_v3, %v826_v5 }
 0x1b6   :  { %6838 = vmatprep.subr.bf16.mxu0 %v12684_v9  ;;  %v12859_v9 = vcombine.low %v834_v23, %v842_v24 }
 0x1b7   :  { %6880 = vmatpush1.bf16.msra.mxu1 %v12955_v8  ;;  %v1082_v8 = vld [vmem:[#allocation5 + $0x1dd0] sm:$0xff] }
 0x1b8   :  { %6881 = vmatprep.subr.bf16.mxu1 %v12940_v15  ;;  %v13100_v12 = vcombine.high %v1074_v6, %v1082_v8  ;;  %v802_v15 = vld [vmem:[#allocation5 + $0x1510] sm:$0xff]  ;;  %v13099_v20 = vcombine.low %v1074_v6, %v1082_v8  ;;  %v14980_v6 = vpop.f32.mrf.mxu0 }
 0x1b9   :  { %6839 = vmatpush1.bf16.msra.mxu0 %v12683_v17  ;;  %v1058_v17 = vld [vmem:[#allocation5 + $0x1d10] sm:$0xff]  ;;  %v12828_v26 = vcombine.high %v802_v15, %v810_v16 }
 0x1ba   :  { %6840 = vmatprep.subr.bf16.mxu0 %v12668_v19  ;;  %v12843_v19 = vcombine.low %v818_v3, %v826_v5 }
 0x1bb   :  { %6882 = vmatpush1.bf16.msra.mxu1 %v12939_v18  ;;  %v1066_v18 = vld [vmem:[#allocation5 + $0x1d50] sm:$0xff] }
 0x1bc   :  { %6883 = vmatprep.subr.bf16.mxu1 %v12924_v54  ;;  %v13084_v29 = vcombine.high %v1058_v17, %v1066_v18  ;;  %v786_v54 = vld [vmem:[#allocation5 + $0x1490] sm:$0xff]  ;;  %v13083_v34 = vcombine.low %v1058_v17, %v1066_v18  ;;  %v467_v17 = vld [vmem:[#allocation5 + $0xa98] sm:$0xff] }
 0x1bd   :  { %6841 = vmatpush1.bf16.msra.mxu0 %v12667_v30  ;;  %v1042_v30 = vld [vmem:[#allocation5 + $0x1c90] sm:$0xff]  ;;  %v12812_v35 = vcombine.high %v786_v54, %v794_v55  ;;  %v475_v18 = vld [vmem:[#allocation5 + $0xad8] sm:$0xff] }
 0x1be   :  { %6842 = vmatprep.subr.bf16.mxu0 %v12908_v60  ;;  %v12827_v60 = vcombine.low %v802_v15, %v810_v16  ;;  %v219_v15 = vld [vmem:[#allocation5 + $0x2d8] sm:$0xff] }
 0x1bf   :  { %6884 = vmatpush1.bf16.msra.mxu1 %v12923_v45  ;;  %v1050_v45 = vld [vmem:[#allocation5 + $0x1cd0] sm:$0xff] }
 0x1c0   :  { %6885 = vmatprep.subr.bf16.mxu1 %v13164_v37  ;;  %v13068_v36 = vcombine.high %v1042_v30, %v1050_v45  ;;  %v770_v37 = vld [vmem:[#allocation5 + $0x1410] sm:$0xff]  ;;  %v13067_v43 = vcombine.low %v1042_v30, %v1050_v45 }
 0x1c1   :  { %6843 = vmatpush2.bf16.msra.mxu0 %v12907_v40  ;;  %v1026_v40 = vld [vmem:[#allocation5 + $0x1c10] sm:$0xff]  ;;  %v12796_v49 = vcombine.high %v770_v37, %v778_v38 }
 0x1c2   :  { %6844 = vmatprep.subr.bf16.mxu0 %v12892_v42  ;;  %v12811_v42 = vcombine.low %v786_v54, %v794_v55 }
 0x1c3   :  { %6886 = vmatpush2.bf16.msra.mxu1 %v13163_v41  ;;  %v1034_v41 = vld [vmem:[#allocation5 + $0x1c50] sm:$0xff] }
 0x1c4   :  { %6887 = vmatprep.subr.bf16.mxu1 %v13148_v51  ;;  %v13052_v50 = vcombine.high %v1026_v40, %v1034_v41  ;;  %v243_v51 = vld [vmem:[#allocation5 + $0x398] sm:$0xff]  ;;  %v13051_v23 = vcombine.low %v1026_v40, %v1034_v41 }
 0x1c5   :  { %6845 = vmatpush2.bf16.msra.mxu0 %v12891_v52  ;;  %v499_v52 = vld [vmem:[#allocation5 + $0xb98] sm:$0xff]  ;;  %v12270_v24 = vcombine.high %v243_v51, %v251_v61  ;;  %v12269_v5 = vcombine.low %v243_v51, %v251_v61 }
 0x1c6   :  { %6846 = vmatprep.subr.bf16.mxu0 %v12876_v56  ;;  %v12795_v56 = vcombine.low %v770_v37, %v778_v38  ;;  %v451_v37 = vld [vmem:[#allocation5 + $0xa18] sm:$0xff] }
 0x1c7   :  { %6888 = vmatpush2.bf16.msra.mxu1 %v13147_v53  ;;  %v507_v53 = vld [vmem:[#allocation5 + $0xbd8] sm:$0xff] }
 0x1c8   :  { %6889 = vmatprep.subr.bf16.mxu1 %v13132_v57  ;;  %v14974_v57 = vsub.s32 2, %v14937_v4  ;;  %v12526_v27 = vcombine.high %v499_v52, %v507_v53  ;;  %v12525_v8 = vcombine.low %v499_v52, %v507_v53  ;;  %v459_v38 = vld [vmem:[#allocation5 + $0xa58] sm:$0xff] }
 0x1c9   :  { %6847 = vmatpush2.bf16.msra.mxu0 %v12875_v62  ;;  %v235_v62 = vld [vmem:[#allocation5 + $0x358] sm:$0xff]  ;;  %v12478_v51 = vcombine.high %v451_v37, %v459_v38 }
 0x1ca   :  { %6848 = vmatprep.subr.bf16.mxu0 %v12860_v1  ;;  %15668 = vst [vmem:[#allocation26_spill] sm:$0xff] %v14974_v57  ;;  %v491_v1 = vld [vmem:[#allocation5 + $0xb58] sm:$0xff] }
 0x1cb   :  { %6890 = vmatpush2.bf16.msra.mxu1 %v13131_v0  ;;  %v483_v0 = vld [vmem:[#allocation5 + $0xb18] sm:$0xff] }
 0x1cc   :  { %6891 = vmatprep.subr.bf16.mxu1 %v13116_v2  ;;  %v14976_v2 = vld [vmem:[#allocation7] sm:$0xff]  ;;  %v12509_v54 = vcombine.low %v483_v0, %v491_v1  ;;  %v179_v61 = vld [vmem:[#allocation5 + $0x198] sm:$0xff] }
 0x1cd   :  { %6849 = vmatpush2.bf16.msra.mxu0 %v12859_v9  ;;  %v1167_v3 = vrot.slane %v14976_v2, %v14974_v57  ;;  %v12254_v9 = vcombine.high %v227_v28, %v235_v62  ;;  %v187_v52 = vld [vmem:[#allocation5 + $0x1d8] sm:$0xff] }
 0x1ce   :  { %6850 = vmatprep.subr.bf16.mxu0 %v12844_v11  ;;  %v12510_v11 = vcombine.high %v483_v0, %v491_v1  ;;  %v435_v53 = vld [vmem:[#allocation5 + $0x998] sm:$0xff] }
 0x1cf   :  { %6892 = vmatpush2.bf16.msra.mxu1 %v13115_v10  ;;  %v14982_v10 = vpop.f32.mrf.mxu1  ;;  %v171_v0 = vld [vmem:[#allocation5 + $0x158] sm:$0xff] }
 0x1d0   :  { %6893 = vmatprep.subr.bf16.mxu1 %v13100_v12  ;;  %v211_v12 = vld [vmem:[#allocation5 + $0x298] sm:$0xff] }
 0x1d1   :  { %6851 = vmatpush2.bf16.msra.mxu0 %v12843_v19  ;;  %v12238_v55 = vcombine.high %v211_v12, %v219_v15  ;;  %v12237_v41 = vcombine.low %v211_v12, %v219_v15  ;;  %v419_v1 = vld [vmem:[#allocation5 + $0x918] sm:$0xff] }
 0x1d2   :  { %6852 = vmatprep.subr.bf16.mxu0 %v12828_v26  ;;  %v12253_v26 = vcombine.low %v227_v28, %v235_v62  ;;  %v163_v62 = vld [vmem:[#allocation5 + $0x118] sm:$0xff] }
 0x1d3   :  { %6894 = vmatpush2.bf16.msra.mxu1 %v13099_v20  ;;  %v147_v12 = vld [vmem:[#allocation5 + $0x98] sm:$0xff] }
 0x1d4   :  { %6895 = vmatprep.subr.bf16.mxu1 %v13084_v29  ;;  %v155_v15 = vld [vmem:[#allocation5 + $0xd8] sm:$0xff] }
 0x1d5   :  { %6853 = vmatpush2.bf16.msra.mxu0 %v12827_v60  ;;  %v12494_v60 = vcombine.high %v467_v17, %v475_v18 }
 0x1d6   :  { %6854 = vmatprep.subr.bf16.mxu0 %v12812_v35  ;;  %v203_v35 = vld [vmem:[#allocation5 + $0x258] sm:$0xff] }
 0x1d7   :  { %6896 = vmatpush2.bf16.msra.mxu1 %v13083_v34  ;;  %v195_v34 = vld [vmem:[#allocation5 + $0x218] sm:$0xff] }
 0x1d8   :  { %6897 = vmatprep.subr.bf16.mxu1 %v13068_v36 }
 0x1d9   :  { %6855 = vmatpush2.bf16.msra.mxu0 %v12811_v42 }
 0x1da   :  { %6856 = vmatprep.subr.bf16.mxu0 %v12796_v49  ;;  %v12222_v49 = vcombine.high %v195_v34, %v203_v35 }
 0x1db   :  { %6898 = vmatpush2.bf16.msra.mxu1 %v13067_v43  ;;  %v12493_v43 = vcombine.low %v467_v17, %v475_v18  ;;  %v411_v17 = vld [vmem:[#allocation5 + $0x8d8] sm:$0xff]  ;;  %v12189_v18 = vcombine.low %v163_v62, %v171_v0 }
 0x1dc   :  { %6899 = vmatprep.subr.bf16.mxu1 %v13052_v50 }
 0x1dd   :  { %6857 = vmatpush2.bf16.msra.mxu0 %v12795_v56  ;;  %v443_v56 = vld [vmem:[#allocation5 + $0x9d8] sm:$0xff] }
 0x1de   :  { %6912 = vmatprep.subr.bf16.mxu0 %v12270_v24  ;;  %v12477_v24 = vcombine.low %v451_v37, %v459_v38  ;;  %v12462_v28 = vcombine.high %v435_v53, %v443_v56 }
 0x1df   :  { %6900 = vmatpush2.bf16.msra.mxu1 %v13051_v23  ;;  %v12221_v23 = vcombine.low %v195_v34, %v203_v35  ;;  %v395_v34 = vld [vmem:[#allocation5 + $0x858] sm:$0xff]  ;;  %v12173_v35 = vcombine.low %v147_v12, %v155_v15 }
 0x1e0   :  { %6955 = vmatprep.subr.bf16.mxu1 %v12526_v27  ;;  %v6602_v16 = vpop.f32.mrf.mxu0  ;;  %6859 = vmatmul.mubr.bf16.vlgmr.msra.gmra.mxu0 %v14923_v46  ;;  %v12206_v27 = vcombine.high %v179_v61, %v187_v52 }
 0x1e1   :  { %v6603_v19 = vadd.f32 %v6602_v16, %v1167_v3  ;;  %6913 = vmatpush1.bf16.msra.mxu0 %v12269_v5  ;;  %6944 = vmatprep.mubr.bf16.mxu0 %v14881_v58  ;;  %v12205_v5 = vcombine.low %v179_v61, %v187_v52  ;;  %v403_v16 = vld [vmem:[#allocation5 + $0x898] sm:$0xff] }
 0x1e2   :  { %v6645_v20 = vpop.f32.mrf.mxu1  ;;  %6902 = vmatmul.mubr.bf16.vlgmr.msra.gmra.mxu1 %v14927_v47  ;;  %v14986_v29 = vpop.f32.mrf.mxu0  ;;  %6914 = vmatprep.subr.bf16.mxu0 %v12254_v9  ;;  %v12190_v9 = vcombine.high %v163_v62, %v171_v0 }
 0x1e3   :  { %6956 = vmatpush1.bf16.msra.mxu1 %v12525_v8  ;;  %v14988_v30 = vadd.f32 %v6645_v20, %v6603_v19  ;;  %6987 = vmatprep.mubr.bf16.mxu1 %v14889_v63  ;;  %v12461_v8 = vcombine.low %v435_v53, %v443_v56  ;;  %v12174_v20 = vcombine.high %v147_v12, %v155_v15  ;;  %v355_v53 = vld [vmem:[#allocation5 + $0x718] sm:$0xff] }
 0x1e4   :  { %v14990_v45 = vpop.f32.mrf.mxu1  ;;  %6957 = vmatprep.subr.bf16.mxu1 %v12510_v11  ;;  %v6606_v36 = vpop.f32.mrf.mxu0  ;;  %v363_v56 = vld [vmem:[#allocation5 + $0x758] sm:$0xff] }
 0x1e5   :  { %v6607_v40 = vadd.f32 %v6606_v36, %v1167_v3  ;;  %6915 = vmatpush1.bf16.msra.mxu0 %v12253_v26  ;;  %v427_v3 = vld [vmem:[#allocation5 + $0x958] sm:$0xff]  ;;  %v12430_v26 = vcombine.high %v403_v16, %v411_v17  ;;  %v12429_v36 = vcombine.low %v403_v16, %v411_v17  ;;  %v12382_v62 = vcombine.high %v355_v53, %v363_v56 }
 0x1e6   :  { %v6649_v42 = vpop.f32.mrf.mxu1  ;;  %6916 = vmatprep.subr.bf16.mxu0 %v12238_v55  ;;  %v12446_v11 = vcombine.high %v419_v1, %v427_v3  ;;  %v12445_v19 = vcombine.low %v419_v1, %v427_v3  ;;  %v139_v55 = vld [vmem:[#allocation5 + $0x58] sm:$0xff] }
 0x1e7   :  { %6958 = vmatpush1.bf16.msra.mxu1 %v12509_v54  ;;  %v14994_v50 = vadd.f32 %v6649_v42, %v6607_v40  ;;  %v131_v54 = vld [vmem:[#allocation5 + $0x18] sm:$0xff] }
 0x1e8   :  { %6959 = vmatprep.subr.bf16.mxu1 %v12494_v60  ;;  %v387_v60 = vld [vmem:[#allocation5 + $0x818] sm:$0xff]  ;;  %v12158_v37 = vcombine.high %v131_v54, %v139_v55 }
 0x1e9   :  { %6917 = vmatpush1.bf16.msra.mxu0 %v12237_v41  ;;  %v12414_v38 = vcombine.high %v387_v60, %v395_v34  ;;  %v371_v40 = vld [vmem:[#allocation5 + $0x798] sm:$0xff] }
 0x1ea   :  { %6918 = vmatprep.subr.bf16.mxu0 %v12222_v49  ;;  %v379_v41 = vld [vmem:[#allocation5 + $0x7d8] sm:$0xff]  ;;  %v12157_v49 = vcombine.low %v131_v54, %v139_v55 }
 0x1eb   :  { %6960 = vmatpush1.bf16.msra.mxu1 %v12493_v43  ;;  %v627_v42 = vld [vmem:[#allocation5 + $0xf98] sm:$0xff]  ;;  %v12398_v61 = vcombine.high %v371_v40, %v379_v41 }
 0x1ec   :  { %6961 = vmatprep.subr.bf16.mxu1 %v12478_v51  ;;  %v635_v43 = vld [vmem:[#allocation5 + $0xfd8] sm:$0xff]  ;;  %v12413_v51 = vcombine.low %v387_v60, %v395_v34 }
 0x1ed   :  { %6919 = vmatpush1.bf16.msra.mxu0 %v12221_v23  ;;  %v12654_v52 = vcombine.high %v627_v42, %v635_v43  ;;  %v611_v23 = vld [vmem:[#allocation5 + $0xf18] sm:$0xff] }
 0x1ee   :  { %6920 = vmatprep.subr.bf16.mxu0 %v12206_v27  ;;  %v12397_v27 = vcombine.low %v371_v40, %v379_v41  ;;  %v339_v1 = vld [vmem:[#allocation5 + $0x698] sm:$0xff] }
 0x1ef   :  { %6962 = vmatpush1.bf16.msra.mxu1 %v12477_v24  ;;  %v619_v24 = vld [vmem:[#allocation5 + $0xf58] sm:$0xff] }
 0x1f0   :  { %6963 = vmatprep.subr.bf16.mxu1 %v12462_v28  ;;  %v12653_v28 = vcombine.low %v627_v42, %v635_v43  ;;  %v12638_v0 = vcombine.high %v611_v23, %v619_v24  ;;  %v347_v3 = vld [vmem:[#allocation5 + $0x6d8] sm:$0xff] }
 0x1f1   :  { %6921 = vmatpush1.bf16.msra.mxu0 %v12205_v5  ;;  %v595_v5 = vld [vmem:[#allocation5 + $0xe98] sm:$0xff]  ;;  %v12366_v12 = vcombine.high %v339_v1, %v347_v3 }
 0x1f2   :  { %6922 = vmatprep.subr.bf16.mxu0 %v12190_v9  ;;  %v12381_v9 = vcombine.low %v355_v53, %v363_v56  ;;  %v323_v16 = vld [vmem:[#allocation5 + $0x618] sm:$0xff] }
 0x1f3   :  { %6964 = vmatpush1.bf16.msra.mxu1 %v12461_v8  ;;  %v603_v8 = vld [vmem:[#allocation5 + $0xed8] sm:$0xff] }
 0x1f4   :  { %6965 = vmatprep.subr.bf16.mxu1 %v12446_v11  ;;  %v12637_v11 = vcombine.low %v611_v23, %v619_v24  ;;  %v12622_v15 = vcombine.high %v595_v5, %v603_v8  ;;  %v331_v17 = vld [vmem:[#allocation5 + $0x658] sm:$0xff] }
 0x1f5   :  { %6923 = vmatpush1.bf16.msra.mxu0 %v12189_v18  ;;  %v579_v18 = vld [vmem:[#allocation5 + $0xe18] sm:$0xff]  ;;  %v12350_v54 = vcombine.high %v323_v16, %v331_v17 }
 0x1f6   :  { %6924 = vmatprep.subr.bf16.mxu0 %v12174_v20  ;;  %v12365_v20 = vcombine.low %v339_v1, %v347_v3  ;;  %v307_v60 = vld [vmem:[#allocation5 + $0x598] sm:$0xff] }
 0x1f7   :  { %6966 = vmatpush1.bf16.msra.mxu1 %v12445_v19  ;;  %v587_v19 = vld [vmem:[#allocation5 + $0xe58] sm:$0xff] }
 0x1f8   :  { %6967 = vmatprep.subr.bf16.mxu1 %v12430_v26  ;;  %v12621_v26 = vcombine.low %v595_v5, %v603_v8  ;;  %v12606_v55 = vcombine.high %v579_v18, %v587_v19  ;;  %v315_v34 = vld [vmem:[#allocation5 + $0x5d8] sm:$0xff] }
 0x1f9   :  { %6925 = vmatpush1.bf16.msra.mxu0 %v12173_v35  ;;  %v563_v35 = vld [vmem:[#allocation5 + $0xd98] sm:$0xff]  ;;  %v12334_v40 = vcombine.high %v307_v60, %v315_v34 }
 0x1fa   :  { %6926 = vmatprep.subr.bf16.mxu0 %v12158_v37  ;;  %v12349_v37 = vcombine.low %v323_v16, %v331_v17  ;;  %v291_v42 = vld [vmem:[#allocation5 + $0x518] sm:$0xff] }
 0x1fb   :  { %6968 = vmatpush1.bf16.msra.mxu1 %v12429_v36  ;;  %v571_v36 = vld [vmem:[#allocation5 + $0xdd8] sm:$0xff] }
 0x1fc   :  { %6969 = vmatprep.subr.bf16.mxu1 %v12414_v38  ;;  %v12605_v38 = vcombine.low %v579_v18, %v587_v19  ;;  %v12590_v41 = vcombine.high %v563_v35, %v571_v36  ;;  %v299_v43 = vld [vmem:[#allocation5 + $0x558] sm:$0xff] }
 0x1fd   :  { %6927 = vmatpush1.bf16.msra.mxu0 %v12157_v49  ;;  %v547_v49 = vld [vmem:[#allocation5 + $0xd18] sm:$0xff]  ;;  %v12318_v53 = vcombine.high %v291_v42, %v299_v43 }
 0x1fe   :  { %6928 = vmatprep.subr.bf16.mxu0 %v12398_v61  ;;  %v12333_v61 = vcombine.low %v307_v60, %v315_v34  ;;  %v275_v23 = vld [vmem:[#allocation5 + $0x498] sm:$0xff] }
 0x1ff   :  { %6970 = vmatpush1.bf16.msra.mxu1 %v12413_v51  ;;  %v555_v51 = vld [vmem:[#allocation5 + $0xd58] sm:$0xff] }
 0x200   :  { %6971 = vmatprep.subr.bf16.mxu1 %v12654_v52  ;;  %v12589_v52 = vcombine.low %v563_v35, %v571_v36  ;;  %v12574_v56 = vcombine.high %v547_v49, %v555_v51  ;;  %v283_v24 = vld [vmem:[#allocation5 + $0x4d8] sm:$0xff] }
 0x201   :  { %6929 = vmatpush2.bf16.msra.mxu0 %v12397_v27  ;;  %v531_v27 = vld [vmem:[#allocation5 + $0xc98] sm:$0xff]  ;;  %v12302_v1 = vcombine.high %v275_v23, %v283_v24 }
 0x202   :  { %6930 = vmatprep.subr.bf16.mxu0 %v12382_v62  ;;  %v12317_v62 = vcombine.low %v291_v42, %v299_v43  ;;  %v259_v5 = vld [vmem:[#allocation5 + $0x418] sm:$0xff] }
 0x203   :  { %6972 = vmatpush2.bf16.msra.mxu1 %v12653_v28  ;;  %v539_v28 = vld [vmem:[#allocation5 + $0xcd8] sm:$0xff] }
 0x204   :  { %6973 = vmatprep.subr.bf16.mxu1 %v12638_v0  ;;  %v12573_v0 = vcombine.low %v547_v49, %v555_v51  ;;  %v12558_v3 = vcombine.high %v531_v27, %v539_v28  ;;  %v267_v8 = vld [vmem:[#allocation5 + $0x458] sm:$0xff]  ;;  %v14998_v49 = vpop.f32.mrf.mxu1 }
 0x205   :  { %6931 = vmatpush2.bf16.msra.mxu0 %v12381_v9  ;;  %v515_v9 = vld [vmem:[#allocation5 + $0xc18] sm:$0xff]  ;;  %v12286_v16 = vcombine.high %v259_v5, %v267_v8 }
 0x206   :  { %6932 = vmatprep.subr.bf16.mxu0 %v12366_v12  ;;  %v12301_v12 = vcombine.low %v275_v23, %v283_v24  ;;  %v755_v18 = vld [vmem:[#allocation5 + $0x1398] sm:$0xff] }
 0x207   :  { %6974 = vmatpush2.bf16.msra.mxu1 %v12637_v11  ;;  %v523_v11 = vld [vmem:[#allocation5 + $0xc58] sm:$0xff] }
 0x208   :  { %6975 = vmatprep.subr.bf16.mxu1 %v12622_v15  ;;  %v12557_v15 = vcombine.low %v531_v27, %v539_v28  ;;  %v12542_v17 = vcombine.high %v515_v9, %v523_v11  ;;  %v763_v19 = vld [vmem:[#allocation5 + $0x13d8] sm:$0xff] }
 0x209   :  { %6933 = vmatpush2.bf16.msra.mxu0 %v12365_v20  ;;  %v1011_v20 = vld [vmem:[#allocation5 + $0x1b98] sm:$0xff]  ;;  %v12782_v60 = vcombine.high %v755_v18, %v763_v19 }
 0x20a   :  { %6934 = vmatprep.subr.bf16.mxu0 %v12350_v54  ;;  %v12285_v54 = vcombine.low %v259_v5, %v267_v8  ;;  %v739_v35 = vld [vmem:[#allocation5 + $0x1318] sm:$0xff] }
 0x20b   :  { %6976 = vmatpush2.bf16.msra.mxu1 %v12621_v26  ;;  %v1019_v26 = vld [vmem:[#allocation5 + $0x1bd8] sm:$0xff] }
 0x20c   :  { %6977 = vmatprep.subr.bf16.mxu1 %v12606_v55  ;;  %v12541_v55 = vcombine.low %v515_v9, %v523_v11  ;;  %v13038_v34 = vcombine.high %v1011_v20, %v1019_v26  ;;  %v747_v36 = vld [vmem:[#allocation5 + $0x1358] sm:$0xff]  ;;  %v13037_v42 = vcombine.low %v1011_v20, %v1019_v26 }
 0x20d   :  { %6935 = vmatpush2.bf16.msra.mxu0 %v12349_v37  ;;  %v995_v37 = vld [vmem:[#allocation5 + $0x1b18] sm:$0xff]  ;;  %v12766_v43 = vcombine.high %v739_v35, %v747_v36  ;;  %v12765_v28 = vcombine.low %v739_v35, %v747_v36 }
 0x20e   :  { %6936 = vmatprep.subr.bf16.mxu0 %v12334_v40  ;;  %v12781_v40 = vcombine.low %v755_v18, %v763_v19  ;;  %v987_v23 = vld [vmem:[#allocation5 + $0x1ad8] sm:$0xff] }
 0x20f   :  { %6978 = vmatpush2.bf16.msra.mxu1 %v12605_v38  ;;  %v1003_v38 = vld [vmem:[#allocation5 + $0x1b58] sm:$0xff] }
 0x210   :  { %6979 = vmatprep.subr.bf16.mxu1 %v12590_v41  ;;  %v14996_v41 = vpop.f32.mrf.mxu0  ;;  %v13022_v51 = vcombine.high %v995_v37, %v1003_v38  ;;  %v707_v9 = vld [vmem:[#allocation5 + $0x1218] sm:$0xff] }
 0x211   :  { %6937 = vmatpush2.bf16.msra.mxu0 %v12333_v61  ;;  %v723_v61 = vld [vmem:[#allocation5 + $0x1298] sm:$0xff] }
 0x212   :  { %6938 = vmatprep.subr.bf16.mxu0 %v12318_v53  ;;  %v715_v11 = vld [vmem:[#allocation5 + $0x1258] sm:$0xff] }
 0x213   :  { %6980 = vmatpush2.bf16.msra.mxu1 %v12589_v52  ;;  %v731_v52 = vld [vmem:[#allocation5 + $0x12d8] sm:$0xff]  ;;  %v12734_v20 = vcombine.high %v707_v9, %v715_v11  ;;  %v12733_v36 = vcombine.low %v707_v9, %v715_v11 }
 0x214   :  { %6981 = vmatprep.subr.bf16.mxu1 %v12574_v56  ;;  %v979_v56 = vld [vmem:[#allocation5 + $0x1a98] sm:$0xff] }
 0x215   :  { %6939 = vmatpush2.bf16.msra.mxu0 %v12317_v62  ;;  %v13006_v8 = vcombine.high %v979_v56, %v987_v23  ;;  %v13005_v19 = vcombine.low %v979_v56, %v987_v23  ;;  %v955_v35 = vld [vmem:[#allocation5 + $0x19d8] sm:$0xff] }
 0x216   :  { %6940 = vmatprep.subr.bf16.mxu0 %v12302_v1  ;;  %v12750_v1 = vcombine.high %v723_v61, %v731_v52  ;;  %v659_v23 = vld [vmem:[#allocation5 + $0x1098] sm:$0xff] }
 0x217   :  { %6982 = vmatpush2.bf16.msra.mxu1 %v12573_v0  ;;  %v13021_v0 = vcombine.low %v995_v37, %v1003_v38  ;;  %v643_v11 = vld [vmem:[#allocation5 + $0x1018] sm:$0xff] }
 0x218   :  { %6983 = vmatprep.subr.bf16.mxu1 %v12558_v3 }
 0x219   :  { %6941 = vmatpush2.bf16.msra.mxu0 %v12301_v12  ;;  %v963_v12 = vld [vmem:[#allocation5 + $0x1a18] sm:$0xff] }
 0x21a   :  { %6942 = vmatprep.subr.bf16.mxu0 %v12286_v16 }
 0x21b   :  { %6984 = vmatpush2.bf16.msra.mxu1 %v12557_v15  ;;  %v971_v15 = vld [vmem:[#allocation5 + $0x1a58] sm:$0xff] }
 0x21c   :  { %6985 = vmatprep.subr.bf16.mxu1 %v12542_v17  ;;  %v12749_v17 = vcombine.low %v723_v61, %v731_v52 }
 0x21d   :  { %6943 = vmatpush2.bf16.msra.mxu0 %v12285_v54  ;;  %v12990_v54 = vcombine.high %v963_v12, %v971_v15 }
 0x21e   :  { %6998 = vmatprep.subr.bf16.mxu0 %v12782_v60  ;;  %v699_v60 = vld [vmem:[#allocation5 + $0x11d8] sm:$0xff] }
 0x21f   :  { %6986 = vmatpush2.bf16.msra.mxu1 %v12541_v55  ;;  %v691_v55 = vld [vmem:[#allocation5 + $0x1198] sm:$0xff] }
 0x220   :  { %7041 = vmatprep.subr.bf16.mxu1 %v13038_v34  ;;  %v6688_v53 = vpop.f32.mrf.mxu0  ;;  %6945 = vmatmul.mubr.bf16.vlgmr.msra.gmra.mxu0 %v14895_v21  ;;  %v947_v34 = vld [vmem:[#allocation5 + $0x1998] sm:$0xff]  ;;  %v12718_v37 = vcombine.high %v691_v55, %v699_v60  ;;  %v12717_v61 = vcombine.low %v691_v55, %v699_v60 }
 0x221   :  { %v6689_v24 = vadd.f32 %v6688_v53, %v14988_v30  ;;  %6999 = vmatpush1.bf16.msra.mxu0 %v12781_v40  ;;  %7030 = vmatprep.mubr.bf16.mxu0 %v14911_v32  ;;  %v12974_v38 = vcombine.high %v947_v34, %v955_v35  ;;  %v675_v40 = vld [vmem:[#allocation5 + $0x1118] sm:$0xff]  ;;  %v12973_v52 = vcombine.low %v947_v34, %v955_v35 }
 0x222   :  { %v6731_v27 = vpop.f32.mrf.mxu1  ;;  %6988 = vmatmul.mubr.bf16.vlgmr.msra.gmra.mxu1 %v14903_v25  ;;  %v15003_v62 = vpop.f32.mrf.mxu0  ;;  %7000 = vmatprep.subr.bf16.mxu0 %v12766_v43  ;;  %v931_v43 = vld [vmem:[#allocation5 + $0x1918] sm:$0xff] }
 0x223   :  { %7042 = vmatpush1.bf16.msra.mxu1 %v13037_v42  ;;  %v15005_v3 = vadd.f32 %v6731_v27, %v6689_v24  ;;  %7073 = vmatprep.mubr.bf16.mxu1 %v14916_v33  ;;  %v683_v42 = vld [vmem:[#allocation5 + $0x1158] sm:$0xff] }
 0x224   :  { %v15007_v5 = vpop.f32.mrf.mxu1  ;;  %7043 = vmatprep.subr.bf16.mxu1 %v13022_v51  ;;  %v6692_v30 = vpop.f32.mrf.mxu0  ;;  %v939_v51 = vld [vmem:[#allocation5 + $0x1958] sm:$0xff]  ;;  %v12702_v53 = vcombine.high %v675_v40, %v683_v42 }
 0x225   :  { %15669 = vst [vmem:[#allocation27_spill] sm:$0xff] %v15005_v3  ;;  %v6693_v16 = vadd.f32 %v6692_v30, %v14994_v50  ;;  %7001 = vmatpush1.bf16.msra.mxu0 %v12765_v28  ;;  %v12989_v50 = vcombine.low %v963_v12, %v971_v15  ;;  %v12958_v56 = vcombine.high %v931_v43, %v939_v51  ;;  %v667_v24 = vld [vmem:[#allocation5 + $0x10d8] sm:$0xff]  ;;  %v453_v3 = vld [vmem:[#allocation5 + $0xa28] sm:$0xff] }
 0x226   :  { %v6735_v18 = vpop.f32.mrf.mxu1  ;;  %7002 = vmatprep.subr.bf16.mxu0 %v12750_v1  ;;  %v915_v27 = vld [vmem:[#allocation5 + $0x1898] sm:$0xff]  ;;  %v12957_v1 = vcombine.low %v931_v43, %v939_v51 }
 0x227   :  { %7044 = vmatpush1.bf16.msra.mxu1 %v13021_v0  ;;  %v15012_v26 = vadd.f32 %v6735_v18, %v6693_v16  ;;  %v923_v28 = vld [vmem:[#allocation5 + $0x18d8] sm:$0xff]  ;;  %v12701_v0 = vcombine.low %v675_v40, %v683_v42  ;;  %v12685_v16 = vcombine.low %v659_v23, %v667_v24 }
 0x228   :  { %7045 = vmatprep.subr.bf16.mxu1 %v13006_v8  ;;  %v12686_v8 = vcombine.high %v659_v23, %v667_v24  ;;  %v12942_v9 = vcombine.high %v915_v27, %v923_v28  ;;  %v651_v30 = vld [vmem:[#allocation5 + $0x1058] sm:$0xff] }
 0x229   :  { %15670 = vst [vmem:[#allocation28_spill] sm:$0xff] %v15012_v26  ;;  %7003 = vmatpush1.bf16.msra.mxu0 %v12749_v17  ;;  %v899_v12 = vld [vmem:[#allocation5 + $0x1818] sm:$0xff]  ;;  %v12941_v17 = vcombine.low %v915_v27, %v923_v28  ;;  %v12670_v18 = vcombine.high %v643_v11, %v651_v30  ;;  %v12669_v34 = vcombine.low %v643_v11, %v651_v30  ;;  %v445_v26 = vld [vmem:[#allocation5 + $0x9e8] sm:$0xff] }
 0x22a   :  { %7004 = vmatprep.subr.bf16.mxu0 %v12734_v20  ;;  %v907_v15 = vld [vmem:[#allocation5 + $0x1858] sm:$0xff] }
 0x22b   :  { %7046 = vmatpush1.bf16.msra.mxu1 %v13005_v19  ;;  %v12926_v19 = vcombine.high %v899_v12, %v907_v15  ;;  %v883_v20 = vld [vmem:[#allocation5 + $0x1798] sm:$0xff]  ;;  %v12925_v35 = vcombine.low %v899_v12, %v907_v15 }
 0x22c   :  { %7047 = vmatprep.subr.bf16.mxu1 %v12990_v54  ;;  %v891_v54 = vld [vmem:[#allocation5 + $0x17d8] sm:$0xff] }
 0x22d   :  { %7005 = vmatpush1.bf16.msra.mxu0 %v12733_v36  ;;  %v1139_v55 = vld [vmem:[#allocation5 + $0x1f98] sm:$0xff]  ;;  %v12910_v36 = vcombine.high %v883_v20, %v891_v54  ;;  %v12909_v43 = vcombine.low %v883_v20, %v891_v54 }
 0x22e   :  { %7006 = vmatprep.subr.bf16.mxu0 %v12718_v37  ;;  %v1147_v60 = vld [vmem:[#allocation5 + $0x1fd8] sm:$0xff] }
 0x22f   :  { %7048 = vmatpush1.bf16.msra.mxu1 %v12989_v50  ;;  %v13166_v50 = vcombine.high %v1139_v55, %v1147_v60  ;;  %v867_v37 = vld [vmem:[#allocation5 + $0x1718] sm:$0xff]  ;;  %v13165_v51 = vcombine.low %v1139_v55, %v1147_v60 }
 0x230   :  { %7049 = vmatprep.subr.bf16.mxu1 %v12974_v38  ;;  %v875_v38 = vld [vmem:[#allocation5 + $0x1758] sm:$0xff] }
 0x231   :  { %7007 = vmatpush1.bf16.msra.mxu0 %v12717_v61  ;;  %v1123_v40 = vld [vmem:[#allocation5 + $0x1f18] sm:$0xff]  ;;  %v12894_v61 = vcombine.high %v867_v37, %v875_v38  ;;  %v12893_v27 = vcombine.low %v867_v37, %v875_v38 }
 0x232   :  { %7008 = vmatprep.subr.bf16.mxu0 %v12702_v53  ;;  %v1131_v42 = vld [vmem:[#allocation5 + $0x1f58] sm:$0xff] }
 0x233   :  { %7050 = vmatpush1.bf16.msra.mxu1 %v12973_v52  ;;  %v13150_v52 = vcombine.high %v1123_v40, %v1131_v42  ;;  %v851_v53 = vld [vmem:[#allocation5 + $0x1698] sm:$0xff]  ;;  %v13149_v28 = vcombine.low %v1123_v40, %v1131_v42 }
 0x234   :  { %7051 = vmatprep.subr.bf16.mxu1 %v12958_v56  ;;  %v859_v56 = vld [vmem:[#allocation5 + $0x16d8] sm:$0xff] }
 0x235   :  { %7009 = vmatpush1.bf16.msra.mxu0 %v12701_v0  ;;  %v1107_v23 = vld [vmem:[#allocation5 + $0x1e98] sm:$0xff]  ;;  %v12878_v0 = vcombine.high %v851_v53, %v859_v56  ;;  %v12877_v12 = vcombine.low %v851_v53, %v859_v56 }
 0x236   :  { %7010 = vmatprep.subr.bf16.mxu0 %v12686_v8  ;;  %v1115_v24 = vld [vmem:[#allocation5 + $0x1ed8] sm:$0xff] }
 0x237   :  { %7052 = vmatpush1.bf16.msra.mxu1 %v12957_v1  ;;  %v13134_v1 = vcombine.high %v1107_v23, %v1115_v24  ;;  %v835_v8 = vld [vmem:[#allocation5 + $0x1618] sm:$0xff]  ;;  %v13133_v15 = vcombine.low %v1107_v23, %v1115_v24 }
 0x238   :  { %7053 = vmatprep.subr.bf16.mxu1 %v12942_v9  ;;  %v843_v9 = vld [vmem:[#allocation5 + $0x1658] sm:$0xff] }
 0x239   :  { %7011 = vmatpush1.bf16.msra.mxu0 %v12685_v16  ;;  %v1091_v11 = vld [vmem:[#allocation5 + $0x1e18] sm:$0xff]  ;;  %v12862_v16 = vcombine.high %v835_v8, %v843_v9  ;;  %v12861_v55 = vcombine.low %v835_v8, %v843_v9 }
 0x23a   :  { %7012 = vmatprep.subr.bf16.mxu0 %v12670_v18  ;;  %v1099_v30 = vld [vmem:[#allocation5 + $0x1e58] sm:$0xff] }
 0x23b   :  { %7054 = vmatpush1.bf16.msra.mxu1 %v12941_v17  ;;  %v13118_v17 = vcombine.high %v1091_v11, %v1099_v30  ;;  %v819_v18 = vld [vmem:[#allocation5 + $0x1598] sm:$0xff]  ;;  %v13117_v60 = vcombine.low %v1091_v11, %v1099_v30 }
 0x23c   :  { %7055 = vmatprep.subr.bf16.mxu1 %v12926_v19  ;;  %v827_v19 = vld [vmem:[#allocation5 + $0x15d8] sm:$0xff] }
 0x23d   :  { %7013 = vmatpush1.bf16.msra.mxu0 %v12669_v34  ;;  %v1075_v20 = vld [vmem:[#allocation5 + $0x1d98] sm:$0xff]  ;;  %v12846_v34 = vcombine.high %v819_v18, %v827_v19  ;;  %v12845_v40 = vcombine.low %v819_v18, %v827_v19  ;;  %v500_v18 = vld [vmem:[#allocation5 + $0xba0] sm:$0xff] }
 0x23e   :  { %7014 = vmatprep.subr.bf16.mxu0 %v12910_v36  ;;  %v1083_v54 = vld [vmem:[#allocation5 + $0x1dd8] sm:$0xff]  ;;  %v508_v19 = vld [vmem:[#allocation5 + $0xbe0] sm:$0xff] }
 0x23f   :  { %7056 = vmatpush1.bf16.msra.mxu1 %v12925_v35  ;;  %v13102_v35 = vcombine.high %v1075_v20, %v1083_v54  ;;  %v803_v36 = vld [vmem:[#allocation5 + $0x1518] sm:$0xff]  ;;  %v13101_v42 = vcombine.low %v1075_v20, %v1083_v54  ;;  %v15647_v54 = vsub.s32 4, %v14937_v4 }
 0x240   :  { %7057 = vmatprep.subr.bf16.mxu1 %v13166_v50  ;;  %v811_v50 = vld [vmem:[#allocation5 + $0x1558] sm:$0xff] }
 0x241   :  { %7015 = vmatpush2.bf16.msra.mxu0 %v12909_v43  ;;  %v1059_v37 = vld [vmem:[#allocation5 + $0x1d18] sm:$0xff]  ;;  %v12830_v43 = vcombine.high %v803_v36, %v811_v50  ;;  %v12829_v23 = vcombine.low %v803_v36, %v811_v50  ;;  %v236_v36 = vld [vmem:[#allocation5 + $0x360] sm:$0xff] }
 0x242   :  { %7016 = vmatprep.subr.bf16.mxu0 %v12894_v61  ;;  %v1067_v38 = vld [vmem:[#allocation5 + $0x1d58] sm:$0xff]  ;;  %v484_v50 = vld [vmem:[#allocation5 + $0xb20] sm:$0xff] }
 0x243   :  { %7058 = vmatpush2.bf16.msra.mxu1 %v13165_v51  ;;  %v13086_v51 = vcombine.high %v1059_v37, %v1067_v38  ;;  %v787_v61 = vld [vmem:[#allocation5 + $0x1498] sm:$0xff]  ;;  %v13085_v24 = vcombine.low %v1059_v37, %v1067_v38  ;;  %v492_v37 = vld [vmem:[#allocation5 + $0xb60] sm:$0xff]  ;;  %v1175_v38 = vrot.slane %v14976_v2, %v15647_v54 }
 0x244   :  { %7059 = vmatprep.subr.bf16.mxu1 %v13150_v52  ;;  %v795_v52 = vld [vmem:[#allocation5 + $0x14d8] sm:$0xff] }
 0x245   :  { %7017 = vmatpush2.bf16.msra.mxu0 %v12893_v27  ;;  %v1043_v53 = vld [vmem:[#allocation5 + $0x1c98] sm:$0xff]  ;;  %v12814_v27 = vcombine.high %v787_v61, %v795_v52  ;;  %v12813_v11 = vcombine.low %v787_v61, %v795_v52  ;;  %v15020_v61 = vpop.f32.mrf.mxu1  ;;  %v12512_v52 = vcombine.high %v484_v50, %v492_v37 }
 0x246   :  { %7018 = vmatprep.subr.bf16.mxu0 %v12878_v0  ;;  %v1051_v56 = vld [vmem:[#allocation5 + $0x1cd8] sm:$0xff] }
 0x247   :  { %7060 = vmatpush2.bf16.msra.mxu1 %v13149_v28  ;;  %v13070_v28 = vcombine.high %v1043_v53, %v1051_v56  ;;  %v771_v0 = vld [vmem:[#allocation5 + $0x1418] sm:$0xff]  ;;  %v13069_v30 = vcombine.low %v1043_v53, %v1051_v56  ;;  %v212_v53 = vld [vmem:[#allocation5 + $0x2a0] sm:$0xff] }
 0x248   :  { %7061 = vmatprep.subr.bf16.mxu1 %v13134_v1  ;;  %v779_v1 = vld [vmem:[#allocation5 + $0x1458] sm:$0xff]  ;;  %v220_v56 = vld [vmem:[#allocation5 + $0x2e0] sm:$0xff] }
 0x249   :  { %7019 = vmatpush2.bf16.msra.mxu0 %v12877_v12  ;;  %v1027_v8 = vld [vmem:[#allocation5 + $0x1c18] sm:$0xff]  ;;  %v12798_v12 = vcombine.high %v771_v0, %v779_v1  ;;  %v12797_v20 = vcombine.low %v771_v0, %v779_v1 }
 0x24a   :  { %7020 = vmatprep.subr.bf16.mxu0 %v12862_v16  ;;  %v1035_v9 = vld [vmem:[#allocation5 + $0x1c58] sm:$0xff]  ;;  %v244_v16 = vld [vmem:[#allocation5 + $0x3a0] sm:$0xff] }
 0x24b   :  { %7062 = vmatpush2.bf16.msra.mxu1 %v13133_v15  ;;  %v13054_v15 = vcombine.high %v1027_v8, %v1035_v9 }
 0x24c   :  { %7063 = vmatprep.subr.bf16.mxu1 %v13118_v17  ;;  %v252_v17 = vld [vmem:[#allocation5 + $0x3e0] sm:$0xff] }
 0x24d   :  { %7021 = vmatpush2.bf16.msra.mxu0 %v12861_v55  ;;  %v13053_v55 = vcombine.low %v1027_v8, %v1035_v9  ;;  %v12511_v8 = vcombine.low %v484_v50, %v492_v37  ;;  %v12240_v9 = vcombine.high %v212_v53, %v220_v56  ;;  %v180_v37 = vld [vmem:[#allocation5 + $0x1a0] sm:$0xff] }
 0x24e   :  { %7022 = vmatprep.subr.bf16.mxu0 %v12846_v34  ;;  %v12528_v34 = vcombine.high %v500_v18, %v508_v19 }
 0x24f   :  { %7064 = vmatpush2.bf16.msra.mxu1 %v13117_v60  ;;  %v12272_v60 = vcombine.high %v244_v16, %v252_v17 }
 0x250   :  { %7065 = vmatprep.subr.bf16.mxu1 %v13102_v35  ;;  %v228_v35 = vld [vmem:[#allocation5 + $0x320] sm:$0xff] }
 0x251   :  { %7023 = vmatpush2.bf16.msra.mxu0 %v12845_v40  ;;  %v12271_v40 = vcombine.low %v244_v16, %v252_v17  ;;  %v12255_v0 = vcombine.low %v228_v35, %v236_v36  ;;  %v204_v16 = vld [vmem:[#allocation5 + $0x260] sm:$0xff] }
 0x252   :  { %7024 = vmatprep.subr.bf16.mxu0 %v12830_v43  ;;  %v12527_v43 = vcombine.low %v500_v18, %v508_v19  ;;  %v452_v18 = vld [vmem:[#allocation5 + $0xa20] sm:$0xff] }
 0x253   :  { %7066 = vmatpush2.bf16.msra.mxu1 %v13101_v42  ;;  %v15018_v42 = vpop.f32.mrf.mxu0  ;;  %v460_v19 = vld [vmem:[#allocation5 + $0xa60] sm:$0xff] }
 0x254   :  { %7067 = vmatprep.subr.bf16.mxu1 %v13086_v51  ;;  %v12256_v51 = vcombine.high %v228_v35, %v236_v36  ;;  %v12480_v50 = vcombine.high %v452_v18, %v460_v19 }
 0x255   :  { %7025 = vmatpush2.bf16.msra.mxu0 %v12829_v23 }
 0x256   :  { %7026 = vmatprep.subr.bf16.mxu0 %v12814_v27  ;;  %v476_v27 = vld [vmem:[#allocation5 + $0xae0] sm:$0xff] }
 0x257   :  { %7068 = vmatpush2.bf16.msra.mxu1 %v13085_v24  ;;  %v468_v24 = vld [vmem:[#allocation5 + $0xaa0] sm:$0xff] }
 0x258   :  { %7069 = vmatprep.subr.bf16.mxu1 %v13070_v28 }
 0x259   :  { %7027 = vmatpush2.bf16.msra.mxu0 %v12813_v11 }
 0x25a   :  { %7028 = vmatprep.subr.bf16.mxu0 %v12798_v12  ;;  %v12496_v12 = vcombine.high %v468_v24, %v476_v27 }
 0x25b   :  { %7070 = vmatpush2.bf16.msra.mxu1 %v13069_v30 }
 0x25c   :  { %7071 = vmatprep.subr.bf16.mxu1 %v13054_v15  ;;  %v196_v15 = vld [vmem:[#allocation5 + $0x220] sm:$0xff] }
 0x25d   :  { %7029 = vmatpush2.bf16.msra.mxu0 %v12797_v20  ;;  %v12224_v35 = vcombine.high %v196_v15, %v204_v16 }
 0x25e   :  { %7084 = vmatprep.subr.bf16.mxu0 %v12272_v60 }
 0x25f   :  { %7072 = vmatpush2.bf16.msra.mxu1 %v13053_v55  ;;  %v12239_v55 = vcombine.low %v212_v53, %v220_v56  ;;  %v164_v56 = vld [vmem:[#allocation5 + $0x120] sm:$0xff] }
 0x260   :  { %7127 = vmatprep.subr.bf16.mxu1 %v12528_v34  ;;  %v6774_v23 = vpop.f32.mrf.mxu0  ;;  %7031 = vmatmul.mubr.bf16.vlgmr.msra.gmra.mxu0 %v14923_v46  ;;  %v12495_v34 = vcombine.low %v468_v24, %v476_v27  ;;  %v420_v24 = vld [vmem:[#allocation5 + $0x920] sm:$0xff] }
 0x261   :  { %v6775_v28 = vadd.f32 %v6774_v23, %v1175_v38  ;;  %7085 = vmatpush1.bf16.msra.mxu0 %v12271_v40  ;;  %7116 = vmatprep.mubr.bf16.mxu0 %v14881_v58  ;;  %v188_v40 = vld [vmem:[#allocation5 + $0x1e0] sm:$0xff] }
 0x262   :  { %v6817_v2 = vpop.f32.mrf.mxu1  ;;  %7074 = vmatmul.mubr.bf16.vlgmr.msra.gmra.mxu1 %v14927_v47  ;;  %v15024_v1 = vpop.f32.mrf.mxu0  ;;  %7086 = vmatprep.subr.bf16.mxu0 %v12256_v51  ;;  %v444_v51 = vld [vmem:[#allocation5 + $0x9e0] sm:$0xff]  ;;  %v12208_v23 = vcombine.high %v180_v37, %v188_v40 }
 0x263   :  { %7128 = vmatpush1.bf16.msra.mxu1 %v12527_v43  ;;  %v15026_v11 = vadd.f32 %v6817_v2, %v6775_v28  ;;  %7159 = vmatprep.mubr.bf16.mxu1 %v14889_v63  ;;  %v436_v43 = vld [vmem:[#allocation5 + $0x9a0] sm:$0xff]  ;;  %v12207_v2 = vcombine.low %v180_v37, %v188_v40 }
 0x264   :  { %v15028_v30 = vpop.f32.mrf.mxu1  ;;  %7129 = vmatprep.subr.bf16.mxu1 %v12512_v52  ;;  %v6778_v17 = vpop.f32.mrf.mxu0  ;;  %v12223_v52 = vcombine.low %v196_v15, %v204_v16  ;;  %v12464_v53 = vcombine.high %v436_v43, %v444_v51  ;;  %v172_v28 = vld [vmem:[#allocation5 + $0x160] sm:$0xff] }
 0x265   :  { %v6779_v20 = vadd.f32 %v6778_v17, %v1175_v38  ;;  %7087 = vmatpush1.bf16.msra.mxu0 %v12255_v0  ;;  %v12479_v38 = vcombine.low %v452_v18, %v460_v19  ;;  %v428_v27 = vld [vmem:[#allocation5 + $0x960] sm:$0xff]  ;;  %v12463_v0 = vcombine.low %v436_v43, %v444_v51  ;;  %v12191_v18 = vcombine.low %v164_v56, %v172_v28 }
 0x266   :  { %v6821_v60 = vpop.f32.mrf.mxu1  ;;  %7088 = vmatprep.subr.bf16.mxu0 %v12240_v9  ;;  %v12448_v9 = vcombine.high %v420_v24, %v428_v27  ;;  %v156_v15 = vld [vmem:[#allocation5 + $0xe0] sm:$0xff]  ;;  %v12447_v19 = vcombine.low %v420_v24, %v428_v27 }
 0x267   :  { %7130 = vmatpush1.bf16.msra.mxu1 %v12511_v8  ;;  %v15032_v36 = vadd.f32 %v6821_v60, %v6779_v20  ;;  %v12192_v8 = vcombine.high %v164_v56, %v172_v28  ;;  %v404_v16 = vld [vmem:[#allocation5 + $0x8a0] sm:$0xff] }
 0x268   :  { %7131 = vmatprep.subr.bf16.mxu1 %v12496_v12  ;;  %v148_v12 = vld [vmem:[#allocation5 + $0xa0] sm:$0xff] }
 0x269   :  { %7089 = vmatpush1.bf16.msra.mxu0 %v12239_v55  ;;  %v412_v17 = vld [vmem:[#allocation5 + $0x8e0] sm:$0xff]  ;;  %v12176_v20 = vcombine.high %v148_v12, %v156_v15  ;;  %v12175_v37 = vcombine.low %v148_v12, %v156_v15 }
 0x26a   :  { %7090 = vmatprep.subr.bf16.mxu0 %v12224_v35  ;;  %v12432_v55 = vcombine.high %v404_v16, %v412_v17  ;;  %v132_v60 = vld [vmem:[#allocation5 + $0x20] sm:$0xff]  ;;  %v12431_v40 = vcombine.low %v404_v16, %v412_v17 }
 0x26b   :  { %7132 = vmatpush1.bf16.msra.mxu1 %v12495_v34  ;;  %v140_v34 = vld [vmem:[#allocation5 + $0x60] sm:$0xff] }
 0x26c   :  { %7133 = vmatprep.subr.bf16.mxu1 %v12480_v50  ;;  %v388_v35 = vld [vmem:[#allocation5 + $0x820] sm:$0xff]  ;;  %v12160_v43 = vcombine.high %v132_v60, %v140_v34  ;;  %v12159_v56 = vcombine.low %v132_v60, %v140_v34 }
 0x26d   :  { %7091 = vmatpush1.bf16.msra.mxu0 %v12223_v52  ;;  %v396_v50 = vld [vmem:[#allocation5 + $0x860] sm:$0xff] }
 0x26e   :  { %7092 = vmatprep.subr.bf16.mxu0 %v12208_v23  ;;  %v12416_v51 = vcombine.high %v388_v35, %v396_v50  ;;  %v372_v52 = vld [vmem:[#allocation5 + $0x7a0] sm:$0xff]  ;;  %v12415_v28 = vcombine.low %v388_v35, %v396_v50 }
 0x26f   :  { %7134 = vmatpush1.bf16.msra.mxu1 %v12479_v38  ;;  %v380_v38 = vld [vmem:[#allocation5 + $0x7e0] sm:$0xff] }
 0x270   :  { %7135 = vmatprep.subr.bf16.mxu1 %v12464_v53  ;;  %v628_v23 = vld [vmem:[#allocation5 + $0xfa0] sm:$0xff]  ;;  %v12400_v24 = vcombine.high %v372_v52, %v380_v38  ;;  %v12399_v12 = vcombine.low %v372_v52, %v380_v38 }
 0x271   :  { %7093 = vmatpush1.bf16.msra.mxu0 %v12207_v2  ;;  %v636_v53 = vld [vmem:[#allocation5 + $0xfe0] sm:$0xff] }
 0x272   :  { %7094 = vmatprep.subr.bf16.mxu0 %v12192_v8  ;;  %v12656_v27 = vcombine.high %v628_v23, %v636_v53  ;;  %v356_v2 = vld [vmem:[#allocation5 + $0x720] sm:$0xff]  ;;  %v12655_v15 = vcombine.low %v628_v23, %v636_v53 }
 0x273   :  { %7136 = vmatpush1.bf16.msra.mxu1 %v12463_v0  ;;  %v364_v0 = vld [vmem:[#allocation5 + $0x760] sm:$0xff] }
 0x274   :  { %7137 = vmatprep.subr.bf16.mxu1 %v12448_v9  ;;  %v612_v8 = vld [vmem:[#allocation5 + $0xf20] sm:$0xff]  ;;  %v12384_v16 = vcombine.high %v356_v2, %v364_v0  ;;  %v12383_v60 = vcombine.low %v356_v2, %v364_v0 }
 0x275   :  { %7095 = vmatpush1.bf16.msra.mxu0 %v12191_v18  ;;  %v620_v9 = vld [vmem:[#allocation5 + $0xf60] sm:$0xff] }
 0x276   :  { %7096 = vmatprep.subr.bf16.mxu0 %v12176_v20  ;;  %v12640_v17 = vcombine.high %v612_v8, %v620_v9  ;;  %v340_v18 = vld [vmem:[#allocation5 + $0x6a0] sm:$0xff]  ;;  %v12639_v34 = vcombine.low %v612_v8, %v620_v9 }
 0x277   :  { %7138 = vmatpush1.bf16.msra.mxu1 %v12447_v19  ;;  %v348_v19 = vld [vmem:[#allocation5 + $0x6e0] sm:$0xff] }
 0x278   :  { %7139 = vmatprep.subr.bf16.mxu1 %v12432_v55  ;;  %v596_v20 = vld [vmem:[#allocation5 + $0xea0] sm:$0xff]  ;;  %v12368_v35 = vcombine.high %v340_v18, %v348_v19  ;;  %v12367_v52 = vcombine.low %v340_v18, %v348_v19 }
 0x279   :  { %7097 = vmatpush1.bf16.msra.mxu0 %v12175_v37  ;;  %v604_v55 = vld [vmem:[#allocation5 + $0xee0] sm:$0xff] }
 0x27a   :  { %7098 = vmatprep.subr.bf16.mxu0 %v12160_v43  ;;  %v12624_v50 = vcombine.high %v596_v20, %v604_v55  ;;  %v324_v37 = vld [vmem:[#allocation5 + $0x620] sm:$0xff]  ;;  %v12623_v38 = vcombine.low %v596_v20, %v604_v55 }
 0x27b   :  { %7140 = vmatpush1.bf16.msra.mxu1 %v12431_v40  ;;  %v332_v40 = vld [vmem:[#allocation5 + $0x660] sm:$0xff] }
 0x27c   :  { %7141 = vmatprep.subr.bf16.mxu1 %v12416_v51  ;;  %v580_v43 = vld [vmem:[#allocation5 + $0xe20] sm:$0xff]  ;;  %v12352_v23 = vcombine.high %v324_v37, %v332_v40  ;;  %v12351_v2 = vcombine.low %v324_v37, %v332_v40 }
 0x27d   :  { %7099 = vmatpush1.bf16.msra.mxu0 %v12159_v56  ;;  %v588_v51 = vld [vmem:[#allocation5 + $0xe60] sm:$0xff] }
 0x27e   :  { %7100 = vmatprep.subr.bf16.mxu0 %v12400_v24  ;;  %v12608_v53 = vcombine.high %v580_v43, %v588_v51  ;;  %v308_v56 = vld [vmem:[#allocation5 + $0x5a0] sm:$0xff]  ;;  %v12607_v0 = vcombine.low %v580_v43, %v588_v51 }
 0x27f   :  { %7142 = vmatpush1.bf16.msra.mxu1 %v12415_v28  ;;  %v316_v28 = vld [vmem:[#allocation5 + $0x5e0] sm:$0xff] }
 0x280   :  { %7143 = vmatprep.subr.bf16.mxu1 %v12656_v27  ;;  %v564_v24 = vld [vmem:[#allocation5 + $0xda0] sm:$0xff]  ;;  %v12336_v8 = vcombine.high %v308_v56, %v316_v28  ;;  %v12335_v18 = vcombine.low %v308_v56, %v316_v28 }
 0x281   :  { %7101 = vmatpush2.bf16.msra.mxu0 %v12399_v12  ;;  %v572_v27 = vld [vmem:[#allocation5 + $0xde0] sm:$0xff] }
 0x282   :  { %7102 = vmatprep.subr.bf16.mxu0 %v12384_v16  ;;  %v12592_v9 = vcombine.high %v564_v24, %v572_v27  ;;  %v292_v12 = vld [vmem:[#allocation5 + $0x520] sm:$0xff]  ;;  %v12591_v19 = vcombine.low %v564_v24, %v572_v27 }
 0x283   :  { %7144 = vmatpush2.bf16.msra.mxu1 %v12655_v15  ;;  %v300_v15 = vld [vmem:[#allocation5 + $0x560] sm:$0xff] }
 0x284   :  { %7145 = vmatprep.subr.bf16.mxu1 %v12640_v17  ;;  %v548_v16 = vld [vmem:[#allocation5 + $0xd20] sm:$0xff]  ;;  %v12320_v20 = vcombine.high %v292_v12, %v300_v15  ;;  %v12319_v37 = vcombine.low %v292_v12, %v300_v15 }
 0x285   :  { %7103 = vmatpush2.bf16.msra.mxu0 %v12383_v60  ;;  %v556_v17 = vld [vmem:[#allocation5 + $0xd60] sm:$0xff] }
 0x286   :  { %7104 = vmatprep.subr.bf16.mxu0 %v12368_v35  ;;  %v12576_v55 = vcombine.high %v548_v16, %v556_v17  ;;  %v276_v60 = vld [vmem:[#allocation5 + $0x4a0] sm:$0xff]  ;;  %v12575_v40 = vcombine.low %v548_v16, %v556_v17 }
 0x287   :  { %7146 = vmatpush2.bf16.msra.mxu1 %v12639_v34  ;;  %v284_v34 = vld [vmem:[#allocation5 + $0x4e0] sm:$0xff] }
 0x288   :  { %7147 = vmatprep.subr.bf16.mxu1 %v12624_v50  ;;  %v532_v35 = vld [vmem:[#allocation5 + $0xca0] sm:$0xff]  ;;  %v12304_v43 = vcombine.high %v276_v60, %v284_v34  ;;  %v12303_v56 = vcombine.low %v276_v60, %v284_v34  ;;  %v15034_v34 = vpop.f32.mrf.mxu0 }
 0x289   :  { %7105 = vmatpush2.bf16.msra.mxu0 %v12367_v52  ;;  %v540_v50 = vld [vmem:[#allocation5 + $0xce0] sm:$0xff] }
 0x28a   :  { %7106 = vmatprep.subr.bf16.mxu0 %v12352_v23  ;;  %v12560_v51 = vcombine.high %v532_v35, %v540_v50  ;;  %v260_v52 = vld [vmem:[#allocation5 + $0x420] sm:$0xff]  ;;  %v12559_v28 = vcombine.low %v532_v35, %v540_v50 }
 0x28b   :  { %7148 = vmatpush2.bf16.msra.mxu1 %v12623_v38  ;;  %v268_v38 = vld [vmem:[#allocation5 + $0x460] sm:$0xff] }
 0x28c   :  { %7149 = vmatprep.subr.bf16.mxu1 %v12608_v53  ;;  %v516_v23 = vld [vmem:[#allocation5 + $0xc20] sm:$0xff]  ;;  %v12288_v24 = vcombine.high %v260_v52, %v268_v38  ;;  %v12287_v12 = vcombine.low %v260_v52, %v268_v38 }
 0x28d   :  { %7107 = vmatpush2.bf16.msra.mxu0 %v12351_v2  ;;  %v524_v53 = vld [vmem:[#allocation5 + $0xc60] sm:$0xff] }
 0x28e   :  { %7108 = vmatprep.subr.bf16.mxu0 %v12336_v8  ;;  %v12544_v27 = vcombine.high %v516_v23, %v524_v53  ;;  %v756_v2 = vld [vmem:[#allocation5 + $0x13a0] sm:$0xff]  ;;  %v12543_v15 = vcombine.low %v516_v23, %v524_v53 }
 0x28f   :  { %7150 = vmatpush2.bf16.msra.mxu1 %v12607_v0  ;;  %v764_v0 = vld [vmem:[#allocation5 + $0x13e0] sm:$0xff] }
 0x290   :  { %7151 = vmatprep.subr.bf16.mxu1 %v12592_v9  ;;  %v1012_v8 = vld [vmem:[#allocation5 + $0x1ba0] sm:$0xff]  ;;  %v12784_v16 = vcombine.high %v756_v2, %v764_v0  ;;  %v12783_v60 = vcombine.low %v756_v2, %v764_v0 }
 0x291   :  { %7109 = vmatpush2.bf16.msra.mxu0 %v12335_v18  ;;  %v1020_v9 = vld [vmem:[#allocation5 + $0x1be0] sm:$0xff] }
 0x292   :  { %7110 = vmatprep.subr.bf16.mxu0 %v12320_v20  ;;  %v13040_v17 = vcombine.high %v1012_v8, %v1020_v9  ;;  %v740_v18 = vld [vmem:[#allocation5 + $0x1320] sm:$0xff]  ;;  %v13039_v35 = vcombine.low %v1012_v8, %v1020_v9 }
 0x293   :  { %7152 = vmatpush2.bf16.msra.mxu1 %v12591_v19  ;;  %v748_v19 = vld [vmem:[#allocation5 + $0x1360] sm:$0xff] }
 0x294   :  { %7153 = vmatprep.subr.bf16.mxu1 %v12576_v55  ;;  %v996_v20 = vld [vmem:[#allocation5 + $0x1b20] sm:$0xff]  ;;  %v12768_v50 = vcombine.high %v740_v18, %v748_v19 }
 0x295   :  { %7111 = vmatpush2.bf16.msra.mxu0 %v12319_v37  ;;  %v1004_v55 = vld [vmem:[#allocation5 + $0x1b60] sm:$0xff]  ;;  %v15036_v37 = vpop.f32.mrf.mxu1 }
 0x296   :  { %7112 = vmatprep.subr.bf16.mxu0 %v12304_v43  ;;  %v724_v43 = vld [vmem:[#allocation5 + $0x12a0] sm:$0xff] }
 0x297   :  { %7154 = vmatpush2.bf16.msra.mxu1 %v12575_v40  ;;  %v13024_v40 = vcombine.high %v996_v20, %v1004_v55  ;;  %v980_v38 = vld [vmem:[#allocation5 + $0x1aa0] sm:$0xff] }
 0x298   :  { %7155 = vmatprep.subr.bf16.mxu1 %v12560_v51  ;;  %v732_v51 = vld [vmem:[#allocation5 + $0x12e0] sm:$0xff] }
 0x299   :  { %7113 = vmatpush2.bf16.msra.mxu0 %v12303_v56  ;;  %v988_v23 = vld [vmem:[#allocation5 + $0x1ae0] sm:$0xff]  ;;  %v12752_v2 = vcombine.high %v724_v43, %v732_v51 }
 0x29a   :  { %7114 = vmatprep.subr.bf16.mxu0 %v12288_v24  ;;  %v13008_v9 = vcombine.high %v980_v38, %v988_v23 }
 0x29b   :  { %7156 = vmatpush2.bf16.msra.mxu1 %v12559_v28  ;;  %v12767_v28 = vcombine.low %v740_v18, %v748_v19  ;;  %v12751_v19 = vcombine.low %v724_v43, %v732_v51  ;;  %v676_v51 = vld [vmem:[#allocation5 + $0x1120] sm:$0xff] }
 0x29c   :  { %7157 = vmatprep.subr.bf16.mxu1 %v12544_v27  ;;  %v13023_v27 = vcombine.low %v996_v20, %v1004_v55  ;;  %v13007_v55 = vcombine.low %v980_v38, %v988_v23  ;;  %v932_v38 = vld [vmem:[#allocation5 + $0x1920] sm:$0xff] }
 0x29d   :  { %7115 = vmatpush2.bf16.msra.mxu0 %v12287_v12  ;;  %v708_v12 = vld [vmem:[#allocation5 + $0x1220] sm:$0xff] }
 0x29e   :  { %7170 = vmatprep.subr.bf16.mxu0 %v12784_v16  ;;  %v964_v16 = vld [vmem:[#allocation5 + $0x1a20] sm:$0xff] }
 0x29f   :  { %7158 = vmatpush2.bf16.msra.mxu1 %v12543_v15  ;;  %v716_v15 = vld [vmem:[#allocation5 + $0x1260] sm:$0xff] }
 0x2a0   :  { %7213 = vmatprep.subr.bf16.mxu1 %v13040_v17  ;;  %v6860_v52 = vpop.f32.mrf.mxu0  ;;  %7117 = vmatmul.mubr.bf16.vlgmr.msra.gmra.mxu0 %v14895_v21  ;;  %v972_v17 = vld [vmem:[#allocation5 + $0x1a60] sm:$0xff]  ;;  %v12735_v54 = vcombine.low %v708_v12, %v716_v15 }
 0x2a1   :  { %v6861_v53 = vadd.f32 %v6860_v52, %v15026_v11  ;;  %7171 = vmatpush1.bf16.msra.mxu0 %v12783_v60  ;;  %7202 = vmatprep.mubr.bf16.mxu0 %v14911_v32  ;;  %v12736_v60 = vcombine.high %v708_v12, %v716_v15  ;;  %v700_v52 = vld [vmem:[#allocation5 + $0x11e0] sm:$0xff] }
 0x2a2   :  { %v6903_v56 = vpop.f32.mrf.mxu1  ;;  %7160 = vmatmul.mubr.bf16.vlgmr.msra.gmra.mxu1 %v14903_v25  ;;  %v15041_v24 = vpop.f32.mrf.mxu0  ;;  %7172 = vmatprep.subr.bf16.mxu0 %v12768_v50  ;;  %v12992_v50 = vcombine.high %v964_v16, %v972_v17  ;;  %v940_v23 = vld [vmem:[#allocation5 + $0x1960] sm:$0xff] }
 0x2a3   :  { %7214 = vmatpush1.bf16.msra.mxu1 %v13039_v35  ;;  %15671 = vst [vmem:[#allocation29_spill] sm:$0xff] %v15041_v24  ;;  %v15043_v0 = vadd.f32 %v6903_v56, %v6861_v53  ;;  %7245 = vmatprep.mubr.bf16.mxu1 %v14916_v33  ;;  %v948_v53 = vld [vmem:[#allocation5 + $0x19a0] sm:$0xff] }
 0x2a4   :  { %v15045_v8 = vpop.f32.mrf.mxu1  ;;  %7215 = vmatprep.subr.bf16.mxu1 %v13024_v40  ;;  %v6864_v11 = vpop.f32.mrf.mxu0  ;;  %v692_v40 = vld [vmem:[#allocation5 + $0x11a0] sm:$0xff] }
 0x2a5   :  { %15672 = vst [vmem:[#allocation30_spill] sm:$0xff] %v15043_v0  ;;  %15673 = vst [vmem:[#allocation31_spill] sm:$0xff] %v15045_v8  ;;  %v6865_v18 = vadd.f32 %v6864_v11, %v15032_v36  ;;  %7173 = vmatpush1.bf16.msra.mxu0 %v12767_v28  ;;  %v956_v56 = vld [vmem:[#allocation5 + $0x19e0] sm:$0xff]  ;;  %v12991_v36 = vcombine.low %v964_v16, %v972_v17  ;;  %v12720_v28 = vcombine.high %v692_v40, %v700_v52 }
 0x2a6   :  { %v6907_v20 = vpop.f32.mrf.mxu1  ;;  %7174 = vmatprep.subr.bf16.mxu0 %v12752_v2  ;;  %v12976_v43 = vcombine.high %v948_v53, %v956_v56  ;;  %v12719_v2 = vcombine.low %v692_v40, %v700_v52  ;;  %v668_v12 = vld [vmem:[#allocation5 + $0x10e0] sm:$0xff]  ;;  %v12959_v17 = vcombine.low %v932_v38, %v940_v23 }
 0x2a7   :  { %7216 = vmatpush1.bf16.msra.mxu1 %v13023_v27  ;;  %v15050_v35 = vadd.f32 %v6907_v20, %v6865_v18  ;;  %v684_v27 = vld [vmem:[#allocation5 + $0x1160] sm:$0xff]  ;;  %v12960_v18 = vcombine.high %v932_v38, %v940_v23 }
 0x2a8   :  { %7217 = vmatprep.subr.bf16.mxu1 %v13008_v9  ;;  %v12975_v9 = vcombine.low %v948_v53, %v956_v56  ;;  %v12704_v11 = vcombine.high %v676_v51, %v684_v27  ;;  %v916_v15 = vld [vmem:[#allocation5 + $0x18a0] sm:$0xff]  ;;  %v12703_v16 = vcombine.low %v676_v51, %v684_v27 }
 0x2a9   :  { %15674 = vst [vmem:[#allocation32_spill] sm:$0xff] %v15050_v35  ;;  %7175 = vmatpush1.bf16.msra.mxu0 %v12751_v19  ;;  %v660_v19 = vld [vmem:[#allocation5 + $0x10a0] sm:$0xff]  ;;  %v205_v35 = vld [vmem:[#allocation5 + $0x268] sm:$0xff] }
 0x2aa   :  { %7176 = vmatprep.subr.bf16.mxu0 %v12736_v60  ;;  %v924_v20 = vld [vmem:[#allocation5 + $0x18e0] sm:$0xff]  ;;  %v12687_v53 = vcombine.low %v660_v19, %v668_v12 }
 0x2ab   :  { %7218 = vmatpush1.bf16.msra.mxu1 %v13007_v55  ;;  %v12688_v55 = vcombine.high %v660_v19, %v668_v12  ;;  %v12944_v60 = vcombine.high %v916_v15, %v924_v20  ;;  %v900_v40 = vld [vmem:[#allocation5 + $0x1820] sm:$0xff]  ;;  %v12943_v56 = vcombine.low %v916_v15, %v924_v20 }
 0x2ac   :  { %7219 = vmatprep.subr.bf16.mxu1 %v12992_v50  ;;  %v652_v50 = vld [vmem:[#allocation5 + $0x1060] sm:$0xff] }
 0x2ad   :  { %7177 = vmatpush1.bf16.msra.mxu0 %v12735_v54  ;;  %v644_v54 = vld [vmem:[#allocation5 + $0x1020] sm:$0xff] }
 0x2ae   :  { %7178 = vmatprep.subr.bf16.mxu0 %v12720_v28  ;;  %v908_v52 = vld [vmem:[#allocation5 + $0x1860] sm:$0xff]  ;;  %v12671_v38 = vcombine.low %v644_v54, %v652_v50 }
 0x2af   :  { %7220 = vmatpush1.bf16.msra.mxu1 %v12991_v36  ;;  %v12672_v36 = vcombine.high %v644_v54, %v652_v50  ;;  %v12928_v28 = vcombine.high %v900_v40, %v908_v52  ;;  %v892_v51 = vld [vmem:[#allocation5 + $0x17e0] sm:$0xff]  ;;  %v12927_v23 = vcombine.low %v900_v40, %v908_v52 }
 0x2b0   :  { %7221 = vmatprep.subr.bf16.mxu1 %v12976_v43  ;;  %v884_v43 = vld [vmem:[#allocation5 + $0x17a0] sm:$0xff] }
 0x2b1   :  { %7179 = vmatpush1.bf16.msra.mxu0 %v12719_v2  ;;  %v1140_v27 = vld [vmem:[#allocation5 + $0x1fa0] sm:$0xff]  ;;  %v12911_v15 = vcombine.low %v884_v43, %v892_v51 }
 0x2b2   :  { %7180 = vmatprep.subr.bf16.mxu0 %v12704_v11  ;;  %v1148_v2 = vld [vmem:[#allocation5 + $0x1fe0] sm:$0xff] }
 0x2b3   :  { %7222 = vmatpush1.bf16.msra.mxu1 %v12975_v9  ;;  %v12912_v9 = vcombine.high %v884_v43, %v892_v51  ;;  %v13168_v11 = vcombine.high %v1140_v27, %v1148_v2  ;;  %v876_v19 = vld [vmem:[#allocation5 + $0x1760] sm:$0xff]  ;;  %v13167_v20 = vcombine.low %v1140_v27, %v1148_v2 }
 0x2b4   :  { %7223 = vmatprep.subr.bf16.mxu1 %v12960_v18  ;;  %v868_v18 = vld [vmem:[#allocation5 + $0x1720] sm:$0xff] }
 0x2b5   :  { %7181 = vmatpush1.bf16.msra.mxu0 %v12703_v16  ;;  %v1124_v12 = vld [vmem:[#allocation5 + $0x1f20] sm:$0xff]  ;;  %v12895_v40 = vcombine.low %v868_v18, %v876_v19 }
 0x2b6   :  { %7182 = vmatprep.subr.bf16.mxu0 %v12688_v55  ;;  %v1132_v16 = vld [vmem:[#allocation5 + $0x1f60] sm:$0xff] }
 0x2b7   :  { %7224 = vmatpush1.bf16.msra.mxu1 %v12959_v17  ;;  %v12896_v17 = vcombine.high %v868_v18, %v876_v19  ;;  %v13152_v55 = vcombine.high %v1124_v12, %v1132_v16  ;;  %v860_v54 = vld [vmem:[#allocation5 + $0x16e0] sm:$0xff]  ;;  %v13151_v52 = vcombine.low %v1124_v12, %v1132_v16 }
 0x2b8   :  { %7225 = vmatprep.subr.bf16.mxu1 %v12944_v60  ;;  %v852_v60 = vld [vmem:[#allocation5 + $0x16a0] sm:$0xff] }
 0x2b9   :  { %7183 = vmatpush1.bf16.msra.mxu0 %v12687_v53  ;;  %v1108_v50 = vld [vmem:[#allocation5 + $0x1ea0] sm:$0xff]  ;;  %v12879_v27 = vcombine.low %v852_v60, %v860_v54 }
 0x2ba   :  { %7184 = vmatprep.subr.bf16.mxu0 %v12672_v36  ;;  %v1116_v53 = vld [vmem:[#allocation5 + $0x1ee0] sm:$0xff] }
 0x2bb   :  { %7226 = vmatpush1.bf16.msra.mxu1 %v12943_v56  ;;  %v12880_v56 = vcombine.high %v852_v60, %v860_v54  ;;  %v13136_v36 = vcombine.high %v1108_v50, %v1116_v53  ;;  %v844_v43 = vld [vmem:[#allocation5 + $0x1660] sm:$0xff]  ;;  %v13135_v2 = vcombine.low %v1108_v50, %v1116_v53 }
 0x2bc   :  { %7227 = vmatprep.subr.bf16.mxu1 %v12928_v28  ;;  %v836_v28 = vld [vmem:[#allocation5 + $0x1620] sm:$0xff] }
 0x2bd   :  { %7185 = vmatpush1.bf16.msra.mxu0 %v12671_v38  ;;  %v1092_v51 = vld [vmem:[#allocation5 + $0x1e20] sm:$0xff]  ;;  %v12863_v12 = vcombine.low %v836_v28, %v844_v43 }
 0x2be   :  { %7186 = vmatprep.subr.bf16.mxu0 %v12912_v9  ;;  %v1100_v38 = vld [vmem:[#allocation5 + $0x1e60] sm:$0xff] }
 0x2bf   :  { %7228 = vmatpush1.bf16.msra.mxu1 %v12927_v23  ;;  %v12864_v23 = vcombine.high %v836_v28, %v844_v43  ;;  %v13120_v9 = vcombine.high %v1092_v51, %v1100_v38  ;;  %v828_v18 = vld [vmem:[#allocation5 + $0x15e0] sm:$0xff]  ;;  %v13119_v16 = vcombine.low %v1092_v51, %v1100_v38 }
 0x2c0   :  { %7229 = vmatprep.subr.bf16.mxu1 %v13168_v11  ;;  %v820_v11 = vld [vmem:[#allocation5 + $0x15a0] sm:$0xff] }
 0x2c1   :  { %7187 = vmatpush2.bf16.msra.mxu0 %v12911_v15  ;;  %v1076_v19 = vld [vmem:[#allocation5 + $0x1da0] sm:$0xff]  ;;  %v12847_v50 = vcombine.low %v820_v11, %v828_v18 }
 0x2c2   :  { %7188 = vmatprep.subr.bf16.mxu0 %v12896_v17  ;;  %v1084_v15 = vld [vmem:[#allocation5 + $0x1de0] sm:$0xff] }
 0x2c3   :  { %7230 = vmatpush2.bf16.msra.mxu1 %v13167_v20  ;;  %v12848_v20 = vcombine.high %v820_v11, %v828_v18  ;;  %v13104_v17 = vcombine.high %v1076_v19, %v1084_v15  ;;  %v812_v60 = vld [vmem:[#allocation5 + $0x1560] sm:$0xff]  ;;  %v13103_v53 = vcombine.low %v1076_v19, %v1084_v15 }
 0x2c4   :  { %7231 = vmatprep.subr.bf16.mxu1 %v13152_v55  ;;  %v804_v55 = vld [vmem:[#allocation5 + $0x1520] sm:$0xff] }
 0x2c5   :  { %7189 = vmatpush2.bf16.msra.mxu0 %v12895_v40  ;;  %v1060_v54 = vld [vmem:[#allocation5 + $0x1d20] sm:$0xff]  ;;  %v12831_v51 = vcombine.low %v804_v55, %v812_v60 }
 0x2c6   :  { %7190 = vmatprep.subr.bf16.mxu0 %v12880_v56  ;;  %v1068_v40 = vld [vmem:[#allocation5 + $0x1d60] sm:$0xff] }
 0x2c7   :  { %7232 = vmatpush2.bf16.msra.mxu1 %v13151_v52  ;;  %v12832_v52 = vcombine.high %v804_v55, %v812_v60  ;;  %v13088_v56 = vcombine.high %v1060_v54, %v1068_v40  ;;  %v796_v28 = vld [vmem:[#allocation5 + $0x14e0] sm:$0xff]  ;;  %v13087_v38 = vcombine.low %v1060_v54, %v1068_v40  ;;  %v253_v55 = vld [vmem:[#allocation5 + $0x3e8] sm:$0xff]  ;;  %v15648_v40 = vsub.s32 6, %v14937_v4 }
 0x2c8   :  { %7233 = vmatprep.subr.bf16.mxu1 %v13136_v36  ;;  %v788_v36 = vld [vmem:[#allocation5 + $0x14a0] sm:$0xff]  ;;  %v501_v60 = vld [vmem:[#allocation5 + $0xba8] sm:$0xff] }
 0x2c9   :  { %7191 = vmatpush2.bf16.msra.mxu0 %v12879_v27  ;;  %v1044_v43 = vld [vmem:[#allocation5 + $0x1ca0] sm:$0xff]  ;;  %v12815_v19 = vcombine.low %v788_v36, %v796_v28 }
 0x2ca   :  { %7192 = vmatprep.subr.bf16.mxu0 %v12864_v23  ;;  %v1052_v27 = vld [vmem:[#allocation5 + $0x1ce0] sm:$0xff] }
 0x2cb   :  { %7234 = vmatpush2.bf16.msra.mxu1 %v13135_v2  ;;  %v12816_v2 = vcombine.high %v788_v36, %v796_v28  ;;  %v13072_v23 = vcombine.high %v1044_v43, %v1052_v27  ;;  %v780_v11 = vld [vmem:[#allocation5 + $0x1460] sm:$0xff]  ;;  %v13071_v15 = vcombine.low %v1044_v43, %v1052_v27  ;;  %v229_v36 = vld [vmem:[#allocation5 + $0x328] sm:$0xff] }
 0x2cc   :  { %7235 = vmatprep.subr.bf16.mxu1 %v13120_v9  ;;  %v772_v9 = vld [vmem:[#allocation5 + $0x1420] sm:$0xff]  ;;  %v237_v28 = vld [vmem:[#allocation5 + $0x368] sm:$0xff] }
 0x2cd   :  { %7193 = vmatpush2.bf16.msra.mxu0 %v12863_v12  ;;  %v1028_v18 = vld [vmem:[#allocation5 + $0x1c20] sm:$0xff]  ;;  %v12799_v54 = vcombine.low %v772_v9, %v780_v11  ;;  %v485_v43 = vld [vmem:[#allocation5 + $0xb28] sm:$0xff] }
 0x2ce   :  { %7194 = vmatprep.subr.bf16.mxu0 %v12848_v20  ;;  %v1036_v12 = vld [vmem:[#allocation5 + $0x1c60] sm:$0xff]  ;;  %v493_v27 = vld [vmem:[#allocation5 + $0xb68] sm:$0xff] }
 0x2cf   :  { %7236 = vmatpush2.bf16.msra.mxu1 %v13119_v16  ;;  %v12800_v16 = vcombine.high %v772_v9, %v780_v11  ;;  %v13056_v20 = vcombine.high %v1028_v18, %v1036_v12  ;;  %v12258_v11 = vcombine.high %v229_v36, %v237_v28 }
 0x2d0   :  { %7237 = vmatprep.subr.bf16.mxu1 %v13104_v17  ;;  %v245_v17 = vld [vmem:[#allocation5 + $0x3a8] sm:$0xff] }
 0x2d1   :  { %7195 = vmatpush2.bf16.msra.mxu0 %v12847_v50  ;;  %v509_v50 = vld [vmem:[#allocation5 + $0xbe8] sm:$0xff] }
 0x2d2   :  { %7196 = vmatprep.subr.bf16.mxu0 %v12832_v52  ;;  %v12274_v52 = vcombine.high %v245_v17, %v253_v55  ;;  %v12529_v9 = vcombine.low %v501_v60, %v509_v50 }
 0x2d3   :  { %7238 = vmatpush2.bf16.msra.mxu1 %v13103_v53  ;;  %v13055_v53 = vcombine.low %v1028_v18, %v1036_v12  ;;  %v15057_v18 = vpop.f32.mrf.mxu1  ;;  %v12514_v12 = vcombine.high %v485_v43, %v493_v27 }
 0x2d4   :  { %7239 = vmatprep.subr.bf16.mxu1 %v13088_v56  ;;  %v12530_v56 = vcombine.high %v501_v60, %v509_v50  ;;  %15675 = vst [vmem:[#allocation33_spill] sm:$0xff] %v15057_v18  ;;  %v12513_v60 = vcombine.low %v485_v43, %v493_v27 }
 0x2d5   :  { %7197 = vmatpush2.bf16.msra.mxu0 %v12831_v51  ;;  %v14592_v51 = vld [vmem:[#allocation7] sm:$0xff] }
 0x2d6   :  { %7198 = vmatprep.subr.bf16.mxu0 %v12816_v2  ;;  %v12273_v2 = vcombine.low %v245_v17, %v253_v55  ;;  %v12257_v17 = vcombine.low %v229_v36, %v237_v28 }
 0x2d7   :  { %7240 = vmatpush2.bf16.msra.mxu1 %v13087_v38  ;;  %v1183_v38 = vrot.slane %v14592_v51, %v15648_v40  ;;  %v197_v40 = vld [vmem:[#allocation5 + $0x228] sm:$0xff] }
 0x2d8   :  { %7241 = vmatprep.subr.bf16.mxu1 %v13072_v23  ;;  %v15055_v23 = vpop.f32.mrf.mxu0  ;;  %v12226_v27 = vcombine.high %v197_v40, %v205_v35  ;;  %v12225_v8 = vcombine.low %v197_v40, %v205_v35  ;;  %v157_v35 = vld [vmem:[#allocation5 + $0xe8] sm:$0xff] }
 0x2d9   :  { %7199 = vmatpush2.bf16.msra.mxu0 %v12815_v19  ;;  %v213_v19 = vld [vmem:[#allocation5 + $0x2a8] sm:$0xff] }
 0x2da   :  { %7200 = vmatprep.subr.bf16.mxu0 %v12800_v16  ;;  %v405_v40 = vld [vmem:[#allocation5 + $0x8a8] sm:$0xff] }
 0x2db   :  { %7242 = vmatpush2.bf16.msra.mxu1 %v13071_v15  ;;  %v221_v15 = vld [vmem:[#allocation5 + $0x2e8] sm:$0xff] }
 0x2dc   :  { %7243 = vmatprep.subr.bf16.mxu1 %v13056_v20  ;;  %v469_v20 = vld [vmem:[#allocation5 + $0xaa8] sm:$0xff]  ;;  %v12242_v50 = vcombine.high %v213_v19, %v221_v15  ;;  %v12241_v28 = vcombine.low %v213_v19, %v221_v15  ;;  %v12466_v19 = vcombine.high %v437_v31, %v445_v26 }
 0x2dd   :  { %7201 = vmatpush2.bf16.msra.mxu0 %v12799_v54  ;;  %v477_v54 = vld [vmem:[#allocation5 + $0xae8] sm:$0xff] }
 0x2de   :  { %7256 = vmatprep.subr.bf16.mxu0 %v12274_v52  ;;  %v165_v15 = vld [vmem:[#allocation5 + $0x128] sm:$0xff] }
 0x2df   :  { %7244 = vmatpush2.bf16.msra.mxu1 %v13055_v53 }
 0x2e0   :  { %7299 = vmatprep.subr.bf16.mxu1 %v12530_v56  ;;  %v6946_v16 = vpop.f32.mrf.mxu0  ;;  %7203 = vmatmul.mubr.bf16.vlgmr.msra.gmra.mxu0 %v14923_v46  ;;  %v12498_v56 = vcombine.high %v469_v20, %v477_v54 }
 0x2e1   :  { %v6947_v0 = vadd.f32 %v6946_v16, %v1183_v38  ;;  %7257 = vmatpush1.bf16.msra.mxu0 %v12273_v2  ;;  %7288 = vmatprep.mubr.bf16.mxu0 %v14881_v58  ;;  %v461_v2 = vld [vmem:[#allocation5 + $0xa68] sm:$0xff] }
 0x2e2   :  { %v6989_v51 = vpop.f32.mrf.mxu1  ;;  %7246 = vmatmul.mubr.bf16.vlgmr.msra.gmra.mxu1 %v14927_v47  ;;  %v15061_v55 = vpop.f32.mrf.mxu0  ;;  %7258 = vmatprep.subr.bf16.mxu0 %v12258_v11  ;;  %v12482_v11 = vcombine.high %v453_v3, %v461_v2 }
 0x2e3   :  { %7300 = vmatpush1.bf16.msra.mxu1 %v12529_v9  ;;  %v15063_v53 = vadd.f32 %v6989_v51, %v6947_v0  ;;  %7331 = vmatprep.mubr.bf16.mxu1 %v14889_v63  ;;  %v12497_v0 = vcombine.low %v469_v20, %v477_v54  ;;  %v189_v51 = vld [vmem:[#allocation5 + $0x1e8] sm:$0xff] }
 0x2e4   :  { %v15065_v52 = vpop.f32.mrf.mxu1  ;;  %7301 = vmatprep.subr.bf16.mxu1 %v12514_v12  ;;  %v6950_v16 = vpop.f32.mrf.mxu0  ;;  %v181_v12 = vld [vmem:[#allocation5 + $0x1a8] sm:$0xff] }
 0x2e5   :  { %v6951_v36 = vadd.f32 %v6950_v16, %v1183_v38  ;;  %7259 = vmatpush1.bf16.msra.mxu0 %v12257_v17  ;;  %v12481_v38 = vcombine.low %v453_v3, %v461_v2  ;;  %v12210_v17 = vcombine.high %v181_v12, %v189_v51  ;;  %v421_v20 = vld [vmem:[#allocation5 + $0x928] sm:$0xff] }
 0x2e6   :  { %v6993_v43 = vpop.f32.mrf.mxu1  ;;  %7260 = vmatprep.subr.bf16.mxu0 %v12242_v50  ;;  %v429_v54 = vld [vmem:[#allocation5 + $0x968] sm:$0xff]  ;;  %v12209_v50 = vcombine.low %v181_v12, %v189_v51 }
 0x2e7   :  { %7302 = vmatpush1.bf16.msra.mxu1 %v12513_v60  ;;  %v15069_v9 = vadd.f32 %v6993_v43, %v6951_v36  ;;  %v173_v60 = vld [vmem:[#allocation5 + $0x168] sm:$0xff]  ;;  %v12450_v36 = vcombine.high %v421_v20, %v429_v54  ;;  %v12449_v2 = vcombine.low %v421_v20, %v429_v54 }
 0x2e8   :  { %7303 = vmatprep.subr.bf16.mxu1 %v12498_v56  ;;  %v12465_v56 = vcombine.low %v437_v31, %v445_v26  ;;  %v12194_v16 = vcombine.high %v165_v15, %v173_v60  ;;  %v413_v43 = vld [vmem:[#allocation5 + $0x8e8] sm:$0xff]  ;;  %v12193_v3 = vcombine.low %v165_v15, %v173_v60 }
 0x2e9   :  { %7261 = vmatpush1.bf16.msra.mxu0 %v12241_v28  ;;  %v149_v28 = vld [vmem:[#allocation5 + $0xa8] sm:$0xff]  ;;  %v12433_v26 = vcombine.low %v405_v40, %v413_v43 }
 0x2ea   :  { %7262 = vmatprep.subr.bf16.mxu0 %v12226_v27  ;;  %v12434_v27 = vcombine.high %v405_v40, %v413_v43  ;;  %v389_v12 = vld [vmem:[#allocation5 + $0x828] sm:$0xff]  ;;  %v12177_v31 = vcombine.low %v149_v28, %v157_v35 }
 0x2eb   :  { %7304 = vmatpush1.bf16.msra.mxu1 %v12497_v0  ;;  %v12178_v0 = vcombine.high %v149_v28, %v157_v35  ;;  %v397_v51 = vld [vmem:[#allocation5 + $0x868] sm:$0xff] }
 0x2ec   :  { %7305 = vmatprep.subr.bf16.mxu1 %v12482_v11  ;;  %v141_v11 = vld [vmem:[#allocation5 + $0x68] sm:$0xff]  ;;  %v12417_v54 = vcombine.low %v389_v12, %v397_v51 }
 0x2ed   :  { %7263 = vmatpush1.bf16.msra.mxu0 %v12225_v8  ;;  %v133_v8 = vld [vmem:[#allocation5 + $0x28] sm:$0xff] }
 0x2ee   :  { %7264 = vmatprep.subr.bf16.mxu0 %v12210_v17  ;;  %v12418_v17 = vcombine.high %v389_v12, %v397_v51  ;;  %v381_v15 = vld [vmem:[#allocation5 + $0x7e8] sm:$0xff]  ;;  %v12161_v20 = vcombine.low %v133_v8, %v141_v11 }
 0x2ef   :  { %7306 = vmatpush1.bf16.msra.mxu1 %v12481_v38  ;;  %v12162_v38 = vcombine.high %v133_v8, %v141_v11  ;;  %v629_v60 = vld [vmem:[#allocation5 + $0xfa8] sm:$0xff] }
 0x2f0   :  { %7307 = vmatprep.subr.bf16.mxu1 %v12466_v19  ;;  %v373_v19 = vld [vmem:[#allocation5 + $0x7a8] sm:$0xff] }
 0x2f1   :  { %7265 = vmatpush1.bf16.msra.mxu0 %v12209_v50  ;;  %v637_v50 = vld [vmem:[#allocation5 + $0xfe8] sm:$0xff]  ;;  %v12401_v40 = vcombine.low %v373_v19, %v381_v15 }
 0x2f2   :  { %7266 = vmatprep.subr.bf16.mxu0 %v12194_v16  ;;  %v12658_v16 = vcombine.high %v629_v60, %v637_v50  ;;  %v365_v28 = vld [vmem:[#allocation5 + $0x768] sm:$0xff]  ;;  %v12657_v43 = vcombine.low %v629_v60, %v637_v50 }
 0x2f3   :  { %7308 = vmatpush1.bf16.msra.mxu1 %v12465_v56  ;;  %v12402_v56 = vcombine.high %v373_v19, %v381_v15  ;;  %v613_v35 = vld [vmem:[#allocation5 + $0xf28] sm:$0xff] }
 0x2f4   :  { %7309 = vmatprep.subr.bf16.mxu1 %v12450_v36  ;;  %v357_v36 = vld [vmem:[#allocation5 + $0x728] sm:$0xff] }
 0x2f5   :  { %7267 = vmatpush1.bf16.msra.mxu0 %v12193_v3  ;;  %v621_v3 = vld [vmem:[#allocation5 + $0xf68] sm:$0xff]  ;;  %v12385_v12 = vcombine.low %v357_v36, %v365_v28 }
 0x2f6   :  { %7268 = vmatprep.subr.bf16.mxu0 %v12178_v0  ;;  %v12642_v0 = vcombine.high %v613_v35, %v621_v3  ;;  %v349_v8 = vld [vmem:[#allocation5 + $0x6e8] sm:$0xff]  ;;  %v12641_v51 = vcombine.low %v613_v35, %v621_v3 }
 0x2f7   :  { %7310 = vmatpush1.bf16.msra.mxu1 %v12449_v2  ;;  %v12386_v2 = vcombine.high %v357_v36, %v365_v28  ;;  %v597_v11 = vld [vmem:[#allocation5 + $0xea8] sm:$0xff] }
 0x2f8   :  { %7311 = vmatprep.subr.bf16.mxu1 %v12434_v27  ;;  %v341_v27 = vld [vmem:[#allocation5 + $0x6a8] sm:$0xff] }
 0x2f9   :  { %7269 = vmatpush1.bf16.msra.mxu0 %v12177_v31  ;;  %v605_v31 = vld [vmem:[#allocation5 + $0xee8] sm:$0xff]  ;;  %v12369_v60 = vcombine.low %v341_v27, %v349_v8 }
 0x2fa   :  { %7270 = vmatprep.subr.bf16.mxu0 %v12162_v38  ;;  %v12626_v38 = vcombine.high %v597_v11, %v605_v31  ;;  %v333_v19 = vld [vmem:[#allocation5 + $0x668] sm:$0xff]  ;;  %v12625_v50 = vcombine.low %v597_v11, %v605_v31 }
 0x2fb   :  { %7312 = vmatpush1.bf16.msra.mxu1 %v12433_v26  ;;  %v12370_v26 = vcombine.high %v341_v27, %v349_v8  ;;  %v581_v15 = vld [vmem:[#allocation5 + $0xe28] sm:$0xff] }
 0x2fc   :  { %7313 = vmatprep.subr.bf16.mxu1 %v12418_v17  ;;  %v325_v17 = vld [vmem:[#allocation5 + $0x628] sm:$0xff] }
 0x2fd   :  { %7271 = vmatpush1.bf16.msra.mxu0 %v12161_v20  ;;  %v589_v20 = vld [vmem:[#allocation5 + $0xe68] sm:$0xff]  ;;  %v12353_v35 = vcombine.low %v325_v17, %v333_v19 }
 0x2fe   :  { %7272 = vmatprep.subr.bf16.mxu0 %v12402_v56  ;;  %v12610_v56 = vcombine.high %v581_v15, %v589_v20  ;;  %v317_v36 = vld [vmem:[#allocation5 + $0x5e8] sm:$0xff]  ;;  %v12609_v3 = vcombine.low %v581_v15, %v589_v20 }
 0x2ff   :  { %7314 = vmatpush1.bf16.msra.mxu1 %v12417_v54  ;;  %v12354_v54 = vcombine.high %v325_v17, %v333_v19  ;;  %v565_v28 = vld [vmem:[#allocation5 + $0xda8] sm:$0xff] }
 0x300   :  { %7315 = vmatprep.subr.bf16.mxu1 %v12658_v16  ;;  %v309_v16 = vld [vmem:[#allocation5 + $0x5a8] sm:$0xff] }
 0x301   :  { %7273 = vmatpush2.bf16.msra.mxu0 %v12401_v40  ;;  %v573_v40 = vld [vmem:[#allocation5 + $0xde8] sm:$0xff]  ;;  %v12337_v11 = vcombine.low %v309_v16, %v317_v36 }
 0x302   :  { %7274 = vmatprep.subr.bf16.mxu0 %v12386_v2  ;;  %v12594_v2 = vcombine.high %v565_v28, %v573_v40  ;;  %v301_v27 = vld [vmem:[#allocation5 + $0x568] sm:$0xff]  ;;  %v12593_v31 = vcombine.low %v565_v28, %v573_v40 }
 0x303   :  { %7316 = vmatpush2.bf16.msra.mxu1 %v12657_v43  ;;  %v12338_v43 = vcombine.high %v309_v16, %v317_v36  ;;  %v549_v8 = vld [vmem:[#allocation5 + $0xd28] sm:$0xff] }
 0x304   :  { %7317 = vmatprep.subr.bf16.mxu1 %v12642_v0  ;;  %v293_v0 = vld [vmem:[#allocation5 + $0x528] sm:$0xff] }
 0x305   :  { %7275 = vmatpush2.bf16.msra.mxu0 %v12385_v12  ;;  %v557_v12 = vld [vmem:[#allocation5 + $0xd68] sm:$0xff]  ;;  %v12321_v15 = vcombine.low %v293_v0, %v301_v27 }
 0x306   :  { %7276 = vmatprep.subr.bf16.mxu0 %v12370_v26  ;;  %v12578_v26 = vcombine.high %v549_v8, %v557_v12  ;;  %v285_v17 = vld [vmem:[#allocation5 + $0x4e8] sm:$0xff]  ;;  %v12577_v20 = vcombine.low %v549_v8, %v557_v12 }
 0x307   :  { %7318 = vmatpush2.bf16.msra.mxu1 %v12641_v51  ;;  %v12322_v51 = vcombine.high %v293_v0, %v301_v27  ;;  %v533_v19 = vld [vmem:[#allocation5 + $0xca8] sm:$0xff] }
 0x308   :  { %7319 = vmatprep.subr.bf16.mxu1 %v12626_v38  ;;  %v277_v38 = vld [vmem:[#allocation5 + $0x4a8] sm:$0xff] }
 0x309   :  { %7277 = vmatpush2.bf16.msra.mxu0 %v12369_v60  ;;  %v541_v60 = vld [vmem:[#allocation5 + $0xce8] sm:$0xff]  ;;  %v12305_v28 = vcombine.low %v277_v38, %v285_v17 }
 0x30a   :  { %7278 = vmatprep.subr.bf16.mxu0 %v12354_v54  ;;  %v12562_v54 = vcombine.high %v533_v19, %v541_v60  ;;  %v269_v16 = vld [vmem:[#allocation5 + $0x468] sm:$0xff]  ;;  %v12561_v40 = vcombine.low %v533_v19, %v541_v60  ;;  %v15071_v60 = vpop.f32.mrf.mxu0 }
 0x30b   :  { %7320 = vmatpush2.bf16.msra.mxu1 %v12625_v50  ;;  %v12306_v50 = vcombine.high %v277_v38, %v285_v17  ;;  %v517_v36 = vld [vmem:[#allocation5 + $0xc28] sm:$0xff] }
 0x30c   :  { %7321 = vmatprep.subr.bf16.mxu1 %v12610_v56  ;;  %v261_v56 = vld [vmem:[#allocation5 + $0x428] sm:$0xff] }
 0x30d   :  { %7279 = vmatpush2.bf16.msra.mxu0 %v12353_v35  ;;  %v525_v35 = vld [vmem:[#allocation5 + $0xc68] sm:$0xff]  ;;  %v12289_v8 = vcombine.low %v261_v56, %v269_v16 }
 0x30e   :  { %7280 = vmatprep.subr.bf16.mxu0 %v12338_v43  ;;  %v12546_v43 = vcombine.high %v517_v36, %v525_v35  ;;  %v765_v0 = vld [vmem:[#allocation5 + $0x13e8] sm:$0xff]  ;;  %v12545_v12 = vcombine.low %v517_v36, %v525_v35 }
 0x30f   :  { %7322 = vmatpush2.bf16.msra.mxu1 %v12609_v3  ;;  %v12290_v3 = vcombine.high %v261_v56, %v269_v16  ;;  %v1013_v27 = vld [vmem:[#allocation5 + $0x1ba8] sm:$0xff] }
 0x310   :  { %7323 = vmatprep.subr.bf16.mxu1 %v12594_v2  ;;  %v757_v2 = vld [vmem:[#allocation5 + $0x13a8] sm:$0xff] }
 0x311   :  { %7281 = vmatpush2.bf16.msra.mxu0 %v12337_v11  ;;  %v1021_v11 = vld [vmem:[#allocation5 + $0x1be8] sm:$0xff]  ;;  %v12785_v19 = vcombine.low %v757_v2, %v765_v0 }
 0x312   :  { %7282 = vmatprep.subr.bf16.mxu0 %v12322_v51  ;;  %v13042_v51 = vcombine.high %v1013_v27, %v1021_v11  ;;  %v749_v38 = vld [vmem:[#allocation5 + $0x1368] sm:$0xff] }
 0x313   :  { %7324 = vmatpush2.bf16.msra.mxu1 %v12593_v31  ;;  %v12786_v31 = vcombine.high %v757_v2, %v765_v0  ;;  %v997_v17 = vld [vmem:[#allocation5 + $0x1b28] sm:$0xff] }
 0x314   :  { %7325 = vmatprep.subr.bf16.mxu1 %v12578_v26  ;;  %v741_v26 = vld [vmem:[#allocation5 + $0x1328] sm:$0xff] }
 0x315   :  { %7283 = vmatpush2.bf16.msra.mxu0 %v12321_v15  ;;  %v1005_v15 = vld [vmem:[#allocation5 + $0x1b68] sm:$0xff]  ;;  %v12769_v2 = vcombine.low %v741_v26, %v749_v38 }
 0x316   :  { %7284 = vmatprep.subr.bf16.mxu0 %v12306_v50  ;;  %v12770_v50 = vcombine.high %v741_v26, %v749_v38  ;;  %v13026_v56 = vcombine.high %v997_v17, %v1005_v15  ;;  %v725_v16 = vld [vmem:[#allocation5 + $0x12a8] sm:$0xff] }
 0x317   :  { %7326 = vmatpush2.bf16.msra.mxu1 %v12577_v20  ;;  %v13041_v20 = vcombine.low %v1013_v27, %v1021_v11  ;;  %v733_v36 = vld [vmem:[#allocation5 + $0x12e8] sm:$0xff]  ;;  %v13025_v27 = vcombine.low %v997_v17, %v1005_v15 }
 0x318   :  { %7327 = vmatprep.subr.bf16.mxu1 %v12562_v54  ;;  %v15073_v54 = vpop.f32.mrf.mxu1  ;;  %v12754_v11 = vcombine.high %v725_v16, %v733_v36  ;;  %v12753_v38 = vcombine.low %v725_v16, %v733_v36  ;;  %v677_v36 = vld [vmem:[#allocation5 + $0x1128] sm:$0xff] }
 0x319   :  { %7285 = vmatpush2.bf16.msra.mxu0 %v12305_v28  ;;  %v981_v28 = vld [vmem:[#allocation5 + $0x1aa8] sm:$0xff] }
 0x31a   :  { %7286 = vmatprep.subr.bf16.mxu0 %v12290_v3 }
 0x31b   :  { %7328 = vmatpush2.bf16.msra.mxu1 %v12561_v40  ;;  %v989_v40 = vld [vmem:[#allocation5 + $0x1ae8] sm:$0xff] }
 0x31c   :  { %7329 = vmatprep.subr.bf16.mxu1 %v12546_v43  ;;  %v13009_v15 = vcombine.low %v981_v28, %v989_v40 }
 0x31d   :  { %7287 = vmatpush2.bf16.msra.mxu0 %v12289_v8 }
 0x31e   :  { %7342 = vmatprep.subr.bf16.mxu0 %v12786_v31  ;;  %v13010_v31 = vcombine.high %v981_v28, %v989_v40  ;;  %v933_v28 = vld [vmem:[#allocation5 + $0x1928] sm:$0xff] }
 0x31f   :  { %7330 = vmatpush2.bf16.msra.mxu1 %v12545_v12  ;;  %v941_v40 = vld [vmem:[#allocation5 + $0x1968] sm:$0xff] }
 0x320   :  { %7385 = vmatprep.subr.bf16.mxu1 %v13042_v51  ;;  %v7032_v35 = vpop.f32.mrf.mxu0  ;;  %7289 = vmatmul.mubr.bf16.vlgmr.msra.gmra.mxu0 %v14895_v21  ;;  %v709_v51 = vld [vmem:[#allocation5 + $0x1228] sm:$0xff] }
 0x321   :  { %v7033_v3 = vadd.f32 %v7032_v35, %v15063_v53  ;;  %7343 = vmatpush1.bf16.msra.mxu0 %v12785_v19  ;;  %7374 = vmatprep.mubr.bf16.mxu0 %v14911_v32  ;;  %v965_v35 = vld [vmem:[#allocation5 + $0x1a28] sm:$0xff]  ;;  %v12737_v18 = vcombine.low %v709_v51, %v717_v44 }
 0x322   :  { %v7075_v43 = vpop.f32.mrf.mxu1  ;;  %7332 = vmatmul.mubr.bf16.vlgmr.msra.gmra.mxu1 %v14903_v25  ;;  %v15078_v0 = vpop.f32.mrf.mxu0  ;;  %7344 = vmatprep.subr.bf16.mxu0 %v12770_v50  ;;  %v973_v19 = vld [vmem:[#allocation5 + $0x1a68] sm:$0xff] }
 0x323   :  { %7386 = vmatpush1.bf16.msra.mxu1 %v13041_v20  ;;  %15676 = vst [vmem:[#allocation34_spill] sm:$0xff] %v15078_v0  ;;  %v15080_v8 = vadd.f32 %v7075_v43, %v7033_v3  ;;  %7417 = vmatprep.mubr.bf16.mxu1 %v14916_v33  ;;  %v12738_v20 = vcombine.high %v709_v51, %v717_v44  ;;  %v693_v3 = vld [vmem:[#allocation5 + $0x11a8] sm:$0xff]  ;;  %v454_v0 = vld [vmem:[#allocation5 + $0xa30] sm:$0xff] }
 0x324   :  { %v15082_v12 = vpop.f32.mrf.mxu1  ;;  %7387 = vmatprep.subr.bf16.mxu1 %v13026_v56  ;;  %v7036_v53 = vpop.f32.mrf.mxu0  ;;  %v12994_v56 = vcombine.high %v965_v35, %v973_v19  ;;  %v701_v43 = vld [vmem:[#allocation5 + $0x11e8] sm:$0xff] }
 0x325   :  { %15677 = vst [vmem:[#allocation35_spill] sm:$0xff] %v15080_v8  ;;  %15678 = vst [vmem:[#allocation36_spill] sm:$0xff] %v15082_v12  ;;  %v7037_v26 = vadd.f32 %v7036_v53, %v15069_v9  ;;  %7345 = vmatpush1.bf16.msra.mxu0 %v12769_v2  ;;  %v949_v8 = vld [vmem:[#allocation5 + $0x19a8] sm:$0xff]  ;;  %v12993_v9 = vcombine.low %v965_v35, %v973_v19  ;;  %v12722_v2 = vcombine.high %v693_v3, %v701_v43 }
 0x326   :  { %v7079_v17 = vpop.f32.mrf.mxu1  ;;  %7346 = vmatprep.subr.bf16.mxu0 %v12754_v11  ;;  %v957_v12 = vld [vmem:[#allocation5 + $0x19e8] sm:$0xff]  ;;  %v12721_v11 = vcombine.low %v693_v3, %v701_v43  ;;  %v12961_v19 = vcombine.low %v933_v28, %v941_v40 }
 0x327   :  { %7388 = vmatpush1.bf16.msra.mxu1 %v13025_v27  ;;  %v15087_v50 = vadd.f32 %v7079_v17, %v7037_v26  ;;  %v12978_v16 = vcombine.high %v949_v8, %v957_v12  ;;  %v685_v27 = vld [vmem:[#allocation5 + $0x1168] sm:$0xff]  ;;  %v12962_v26 = vcombine.high %v933_v28, %v941_v40 }
 0x328   :  { %7389 = vmatprep.subr.bf16.mxu1 %v13010_v31  ;;  %v12977_v31 = vcombine.low %v949_v8, %v957_v12  ;;  %v12706_v53 = vcombine.high %v677_v36, %v685_v27  ;;  %v669_v44 = vld [vmem:[#allocation5 + $0x10e8] sm:$0xff]  ;;  %v12705_v35 = vcombine.low %v677_v36, %v685_v27 }
 0x329   :  { %15679 = vst [vmem:[#allocation37_spill] sm:$0xff] %v15087_v50  ;;  %7347 = vmatpush1.bf16.msra.mxu0 %v12753_v38  ;;  %v661_v38 = vld [vmem:[#allocation5 + $0x10a8] sm:$0xff]  ;;  %v198_v50 = vld [vmem:[#allocation5 + $0x230] sm:$0xff] }
 0x32a   :  { %7348 = vmatprep.subr.bf16.mxu0 %v12738_v20  ;;  %v917_v51 = vld [vmem:[#allocation5 + $0x18a8] sm:$0xff]  ;;  %v12689_v8 = vcombine.low %v661_v38, %v669_v44 }
 0x32b   :  { %7390 = vmatpush1.bf16.msra.mxu1 %v13009_v15  ;;  %v925_v17 = vld [vmem:[#allocation5 + $0x18e8] sm:$0xff]  ;;  %v12690_v15 = vcombine.high %v661_v38, %v669_v44 }
 0x32c   :  { %7391 = vmatprep.subr.bf16.mxu1 %v12994_v56  ;;  %v12946_v20 = vcombine.high %v917_v51, %v925_v17  ;;  %v653_v56 = vld [vmem:[#allocation5 + $0x1068] sm:$0xff]  ;;  %v12945_v12 = vcombine.low %v917_v51, %v925_v17 }
 0x32d   :  { %7349 = vmatpush1.bf16.msra.mxu0 %v12737_v18  ;;  %v645_v18 = vld [vmem:[#allocation5 + $0x1028] sm:$0xff] }
 0x32e   :  { %7350 = vmatprep.subr.bf16.mxu0 %v12722_v2  ;;  %v901_v3 = vld [vmem:[#allocation5 + $0x1828] sm:$0xff]  ;;  %v12673_v28 = vcombine.low %v645_v18, %v653_v56 }
 0x32f   :  { %7392 = vmatpush1.bf16.msra.mxu1 %v12993_v9  ;;  %v909_v43 = vld [vmem:[#allocation5 + $0x1868] sm:$0xff]  ;;  %v12674_v9 = vcombine.high %v645_v18, %v653_v56 }
 0x330   :  { %7393 = vmatprep.subr.bf16.mxu1 %v12978_v16  ;;  %v12930_v2 = vcombine.high %v901_v3, %v909_v43  ;;  %v885_v16 = vld [vmem:[#allocation5 + $0x17a8] sm:$0xff]  ;;  %v12929_v40 = vcombine.low %v901_v3, %v909_v43 }
 0x331   :  { %7351 = vmatpush1.bf16.msra.mxu0 %v12721_v11  ;;  %v893_v36 = vld [vmem:[#allocation5 + $0x17e8] sm:$0xff] }
 0x332   :  { %7352 = vmatprep.subr.bf16.mxu0 %v12706_v53  ;;  %v1141_v27 = vld [vmem:[#allocation5 + $0x1fa8] sm:$0xff]  ;;  %v12913_v51 = vcombine.low %v885_v16, %v893_v36 }
 0x333   :  { %7394 = vmatpush1.bf16.msra.mxu1 %v12977_v31  ;;  %v1149_v11 = vld [vmem:[#allocation5 + $0x1fe8] sm:$0xff]  ;;  %v12914_v31 = vcombine.high %v885_v16, %v893_v36 }
 0x334   :  { %7395 = vmatprep.subr.bf16.mxu1 %v12962_v26  ;;  %v13170_v53 = vcombine.high %v1141_v27, %v1149_v11  ;;  %v869_v26 = vld [vmem:[#allocation5 + $0x1728] sm:$0xff]  ;;  %v13169_v17 = vcombine.low %v1141_v27, %v1149_v11 }
 0x335   :  { %7353 = vmatpush1.bf16.msra.mxu0 %v12705_v35  ;;  %v877_v38 = vld [vmem:[#allocation5 + $0x1768] sm:$0xff] }
 0x336   :  { %7354 = vmatprep.subr.bf16.mxu0 %v12690_v15  ;;  %v1125_v44 = vld [vmem:[#allocation5 + $0x1f28] sm:$0xff]  ;;  %v12897_v3 = vcombine.low %v869_v26, %v877_v38 }
 0x337   :  { %7396 = vmatpush1.bf16.msra.mxu1 %v12961_v19  ;;  %v1133_v35 = vld [vmem:[#allocation5 + $0x1f68] sm:$0xff]  ;;  %v12898_v19 = vcombine.high %v869_v26, %v877_v38 }
 0x338   :  { %7397 = vmatprep.subr.bf16.mxu1 %v12946_v20  ;;  %v13154_v15 = vcombine.high %v1125_v44, %v1133_v35  ;;  %v853_v20 = vld [vmem:[#allocation5 + $0x16a8] sm:$0xff]  ;;  %v13153_v43 = vcombine.low %v1125_v44, %v1133_v35 }
 0x339   :  { %7355 = vmatpush1.bf16.msra.mxu0 %v12689_v8  ;;  %v861_v18 = vld [vmem:[#allocation5 + $0x16e8] sm:$0xff] }
 0x33a   :  { %7356 = vmatprep.subr.bf16.mxu0 %v12674_v9  ;;  %v1109_v56 = vld [vmem:[#allocation5 + $0x1ea8] sm:$0xff]  ;;  %v12881_v27 = vcombine.low %v853_v20, %v861_v18 }
 0x33b   :  { %7398 = vmatpush1.bf16.msra.mxu1 %v12945_v12  ;;  %v1117_v8 = vld [vmem:[#allocation5 + $0x1ee8] sm:$0xff]  ;;  %v12882_v12 = vcombine.high %v853_v20, %v861_v18 }
 0x33c   :  { %7399 = vmatprep.subr.bf16.mxu1 %v12930_v2  ;;  %v13138_v9 = vcombine.high %v1109_v56, %v1117_v8  ;;  %v837_v2 = vld [vmem:[#allocation5 + $0x1628] sm:$0xff]  ;;  %v13137_v11 = vcombine.low %v1109_v56, %v1117_v8 }
 0x33d   :  { %7357 = vmatpush1.bf16.msra.mxu0 %v12673_v28  ;;  %v845_v16 = vld [vmem:[#allocation5 + $0x1668] sm:$0xff] }
 0x33e   :  { %7358 = vmatprep.subr.bf16.mxu0 %v12914_v31  ;;  %v1093_v36 = vld [vmem:[#allocation5 + $0x1e28] sm:$0xff]  ;;  %v12865_v44 = vcombine.low %v837_v2, %v845_v16 }
 0x33f   :  { %7400 = vmatpush1.bf16.msra.mxu1 %v12929_v40  ;;  %v1101_v28 = vld [vmem:[#allocation5 + $0x1e68] sm:$0xff]  ;;  %v12866_v40 = vcombine.high %v837_v2, %v845_v16 }
 0x340   :  { %7401 = vmatprep.subr.bf16.mxu1 %v13170_v53  ;;  %v13122_v31 = vcombine.high %v1093_v36, %v1101_v28  ;;  %v821_v53 = vld [vmem:[#allocation5 + $0x15a8] sm:$0xff]  ;;  %v13121_v35 = vcombine.low %v1093_v36, %v1101_v28 }
 0x341   :  { %7359 = vmatpush2.bf16.msra.mxu0 %v12913_v51  ;;  %v829_v26 = vld [vmem:[#allocation5 + $0x15e8] sm:$0xff] }
 0x342   :  { %7360 = vmatprep.subr.bf16.mxu0 %v12898_v19  ;;  %v1077_v38 = vld [vmem:[#allocation5 + $0x1da8] sm:$0xff]  ;;  %v12849_v56 = vcombine.low %v821_v53, %v829_v26 }
 0x343   :  { %7402 = vmatpush2.bf16.msra.mxu1 %v13169_v17  ;;  %v1085_v51 = vld [vmem:[#allocation5 + $0x1de8] sm:$0xff]  ;;  %v12850_v17 = vcombine.high %v821_v53, %v829_v26 }
 0x344   :  { %7403 = vmatprep.subr.bf16.mxu1 %v13154_v15  ;;  %v13106_v19 = vcombine.high %v1077_v38, %v1085_v51  ;;  %v805_v15 = vld [vmem:[#allocation5 + $0x1528] sm:$0xff]  ;;  %v13105_v8 = vcombine.low %v1077_v38, %v1085_v51 }
 0x345   :  { %7361 = vmatpush2.bf16.msra.mxu0 %v12897_v3  ;;  %v813_v20 = vld [vmem:[#allocation5 + $0x1568] sm:$0xff] }
 0x346   :  { %7362 = vmatprep.subr.bf16.mxu0 %v12882_v12  ;;  %v1061_v18 = vld [vmem:[#allocation5 + $0x1d28] sm:$0xff]  ;;  %v12833_v36 = vcombine.low %v805_v15, %v813_v20 }
 0x347   :  { %7404 = vmatpush2.bf16.msra.mxu1 %v13153_v43  ;;  %v1069_v3 = vld [vmem:[#allocation5 + $0x1d68] sm:$0xff]  ;;  %v12834_v43 = vcombine.high %v805_v15, %v813_v20  ;;  %v254_v15 = vld [vmem:[#allocation5 + $0x3f0] sm:$0xff] }
 0x348   :  { %7405 = vmatprep.subr.bf16.mxu1 %v13138_v9  ;;  %v13090_v12 = vcombine.high %v1061_v18, %v1069_v3  ;;  %v789_v9 = vld [vmem:[#allocation5 + $0x14a8] sm:$0xff]  ;;  %v13089_v28 = vcombine.low %v1061_v18, %v1069_v3  ;;  %v502_v20 = vld [vmem:[#allocation5 + $0xbb0] sm:$0xff] }
 0x349   :  { %7363 = vmatpush2.bf16.msra.mxu0 %v12881_v27  ;;  %v797_v2 = vld [vmem:[#allocation5 + $0x14e8] sm:$0xff] }
 0x34a   :  { %7364 = vmatprep.subr.bf16.mxu0 %v12866_v40  ;;  %v1045_v16 = vld [vmem:[#allocation5 + $0x1ca8] sm:$0xff]  ;;  %v12817_v38 = vcombine.low %v789_v9, %v797_v2 }
 0x34b   :  { %7406 = vmatpush2.bf16.msra.mxu1 %v13137_v11  ;;  %v1053_v27 = vld [vmem:[#allocation5 + $0x1ce8] sm:$0xff]  ;;  %v12818_v11 = vcombine.high %v789_v9, %v797_v2  ;;  %v230_v9 = vld [vmem:[#allocation5 + $0x330] sm:$0xff] }
 0x34c   :  { %7407 = vmatprep.subr.bf16.mxu1 %v13122_v31  ;;  %v13074_v40 = vcombine.high %v1045_v16, %v1053_v27  ;;  %v773_v31 = vld [vmem:[#allocation5 + $0x1428] sm:$0xff]  ;;  %v13073_v51 = vcombine.low %v1045_v16, %v1053_v27  ;;  %v238_v2 = vld [vmem:[#allocation5 + $0x370] sm:$0xff] }
 0x34d   :  { %7365 = vmatpush2.bf16.msra.mxu0 %v12865_v44  ;;  %v781_v53 = vld [vmem:[#allocation5 + $0x1468] sm:$0xff]  ;;  %v486_v16 = vld [vmem:[#allocation5 + $0xb30] sm:$0xff] }
 0x34e   :  { %7366 = vmatprep.subr.bf16.mxu0 %v12850_v17  ;;  %v1029_v26 = vld [vmem:[#allocation5 + $0x1c28] sm:$0xff]  ;;  %v12801_v18 = vcombine.low %v773_v31, %v781_v53  ;;  %v494_v27 = vld [vmem:[#allocation5 + $0xb70] sm:$0xff] }
 0x34f   :  { %7408 = vmatpush2.bf16.msra.mxu1 %v13121_v35  ;;  %v1037_v44 = vld [vmem:[#allocation5 + $0x1c68] sm:$0xff]  ;;  %v12802_v35 = vcombine.high %v773_v31, %v781_v53  ;;  %v12260_v31 = vcombine.high %v230_v9, %v238_v2  ;;  %v15095_v53 = vpop.f32.mrf.mxu1 }
 0x350   :  { %7409 = vmatprep.subr.bf16.mxu1 %v13106_v19  ;;  %v13058_v17 = vcombine.high %v1029_v26, %v1037_v44  ;;  %v246_v19 = vld [vmem:[#allocation5 + $0x3b0] sm:$0xff]  ;;  %v13057_v3 = vcombine.low %v1029_v26, %v1037_v44  ;;  %15680 = vst [vmem:[#allocation38_spill] sm:$0xff] %v15095_v53  ;;  %v12516_v26 = vcombine.high %v486_v16, %v494_v27 }
 0x351   :  { %7367 = vmatpush2.bf16.msra.mxu0 %v12849_v56  ;;  %v510_v56 = vld [vmem:[#allocation5 + $0xbf0] sm:$0xff] }
 0x352   :  { %7368 = vmatprep.subr.bf16.mxu0 %v12834_v43  ;;  %v12276_v43 = vcombine.high %v246_v19, %v254_v15  ;;  %v214_v44 = vld [vmem:[#allocation5 + $0x2b0] sm:$0xff] }
 0x353   :  { %7410 = vmatpush2.bf16.msra.mxu1 %v13105_v8  ;;  %v15089_v8 = vld [vmem:[#allocation7 + $0x8] sm:$0xff]  ;;  %v206_v53 = vld [vmem:[#allocation5 + $0x270] sm:$0xff] }
 0x354   :  { %7411 = vmatprep.subr.bf16.mxu1 %v13090_v12  ;;  %v12532_v12 = vcombine.high %v502_v20, %v510_v56  ;;  %v12227_v24 = vcombine.low %v198_v50, %v206_v53 }
 0x355   :  { %7369 = vmatpush2.bf16.msra.mxu0 %v12833_v36  ;;  %v1191_v36 = vrot.slane %v15089_v8, %v14940_v14 }
 0x356   :  { %7370 = vmatprep.subr.bf16.mxu0 %v12818_v11  ;;  %v15093_v11 = vpop.f32.mrf.mxu0 }
 0x357   :  { %7412 = vmatpush2.bf16.msra.mxu1 %v13089_v28  ;;  %v12275_v28 = vcombine.low %v246_v19, %v254_v15  ;;  %v12259_v19 = vcombine.low %v230_v9, %v238_v2 }
 0x358   :  { %7413 = vmatprep.subr.bf16.mxu1 %v13074_v40  ;;  %v12531_v40 = vcombine.low %v502_v20, %v510_v56  ;;  %v12515_v20 = vcombine.low %v486_v16, %v494_v27  ;;  %v12228_v27 = vcombine.high %v198_v50, %v206_v53  ;;  %v158_v50 = vld [vmem:[#allocation5 + $0xf0] sm:$0xff] }
 0x359   :  { %7371 = vmatpush2.bf16.msra.mxu0 %v12817_v38  ;;  %v222_v38 = vld [vmem:[#allocation5 + $0x2f0] sm:$0xff] }
 0x35a   :  { %7372 = vmatprep.subr.bf16.mxu0 %v12802_v35  ;;  %v470_v35 = vld [vmem:[#allocation5 + $0xab0] sm:$0xff]  ;;  %v12244_v56 = vcombine.high %v214_v44, %v222_v38  ;;  %v12243_v2 = vcombine.low %v214_v44, %v222_v38 }
 0x35b   :  { %7414 = vmatpush2.bf16.msra.mxu1 %v13073_v51  ;;  %v166_v38 = vld [vmem:[#allocation5 + $0x130] sm:$0xff] }
 0x35c   :  { %7415 = vmatprep.subr.bf16.mxu1 %v13058_v17  ;;  %v478_v17 = vld [vmem:[#allocation5 + $0xaf0] sm:$0xff] }
 0x35d   :  { %7373 = vmatpush2.bf16.msra.mxu0 %v12801_v18  ;;  %v406_v53 = vld [vmem:[#allocation5 + $0x8b0] sm:$0xff] }
 0x35e   :  { %7428 = vmatprep.subr.bf16.mxu0 %v12276_v43 }
 0x35f   :  { %7416 = vmatpush2.bf16.msra.mxu1 %v13057_v3 }
 0x360   :  { %7471 = vmatprep.subr.bf16.mxu1 %v12532_v12  ;;  %v7118_v51 = vpop.f32.mrf.mxu0  ;;  %7375 = vmatmul.mubr.bf16.vlgmr.msra.gmra.mxu0 %v14923_v46  ;;  %v12500_v12 = vcombine.high %v470_v35, %v478_v17 }
 0x361   :  { %v7119_v18 = vadd.f32 %v7118_v51, %v1191_v36  ;;  %7429 = vmatpush1.bf16.msra.mxu0 %v12275_v28  ;;  %7460 = vmatprep.mubr.bf16.mxu0 %v14881_v58  ;;  %v462_v28 = vld [vmem:[#allocation5 + $0xa70] sm:$0xff] }
 0x362   :  { %v7161_v14 = vpop.f32.mrf.mxu1  ;;  %7418 = vmatmul.mubr.bf16.vlgmr.msra.gmra.mxu1 %v14927_v47  ;;  %v15099_v15 = vpop.f32.mrf.mxu0  ;;  %7430 = vmatprep.subr.bf16.mxu0 %v12260_v31  ;;  %v12484_v31 = vcombine.high %v454_v0, %v462_v28 }
 0x363   :  { %7472 = vmatpush1.bf16.msra.mxu1 %v12531_v40  ;;  %15681 = vst [vmem:[#allocation39_spill] sm:$0xff] %v15099_v15  ;;  %v15101_v3 = vadd.f32 %v7161_v14, %v7119_v18  ;;  %7503 = vmatprep.mubr.bf16.mxu1 %v14889_v63  ;;  %v12499_v14 = vcombine.low %v470_v35, %v478_v17  ;;  %v190_v18 = vld [vmem:[#allocation5 + $0x1f0] sm:$0xff] }
 0x364   :  { %v15103_v43 = vpop.f32.mrf.mxu1  ;;  %7473 = vmatprep.subr.bf16.mxu1 %v12516_v26  ;;  %v7122_v51 = vpop.f32.mrf.mxu0  ;;  %v182_v26 = vld [vmem:[#allocation5 + $0x1b0] sm:$0xff] }
 0x365   :  { %15682 = vst [vmem:[#allocation40_spill] sm:$0xff] %v15103_v43  ;;  %v7123_v9 = vadd.f32 %v7122_v51, %v1191_v36  ;;  %7431 = vmatpush1.bf16.msra.mxu0 %v12259_v19  ;;  %v438_v43 = vld [vmem:[#allocation5 + $0x9b0] sm:$0xff]  ;;  %v12483_v36 = vcombine.low %v454_v0, %v462_v28  ;;  %v12212_v19 = vcombine.high %v182_v26, %v190_v18 }
 0x366   :  { %v7165_v16 = vpop.f32.mrf.mxu1  ;;  %7432 = vmatprep.subr.bf16.mxu0 %v12244_v56  ;;  %v446_v15 = vld [vmem:[#allocation5 + $0x9f0] sm:$0xff]  ;;  %v12211_v56 = vcombine.low %v182_v26, %v190_v18 }
 0x367   :  { %7474 = vmatpush1.bf16.msra.mxu1 %v12515_v20  ;;  %v15107_v40 = vadd.f32 %v7165_v16, %v7123_v9  ;;  %v12468_v44 = vcombine.high %v438_v43, %v446_v15  ;;  %v174_v20 = vld [vmem:[#allocation5 + $0x170] sm:$0xff] }
 0x368   :  { %7475 = vmatprep.subr.bf16.mxu1 %v12500_v12  ;;  %v422_v35 = vld [vmem:[#allocation5 + $0x930] sm:$0xff]  ;;  %v12467_v12 = vcombine.low %v438_v43, %v446_v15  ;;  %v12196_v51 = vcombine.high %v166_v38, %v174_v20  ;;  %v12195_v0 = vcombine.low %v166_v38, %v174_v20 }
 0x369   :  { %7433 = vmatpush1.bf16.msra.mxu0 %v12243_v2  ;;  %v430_v17 = vld [vmem:[#allocation5 + $0x970] sm:$0xff] }
 0x36a   :  { %7434 = vmatprep.subr.bf16.mxu0 %v12228_v27  ;;  %v12452_v9 = vcombine.high %v422_v35, %v430_v17  ;;  %v150_v2 = vld [vmem:[#allocation5 + $0xb0] sm:$0xff]  ;;  %v12451_v28 = vcombine.low %v422_v35, %v430_v17 }
 0x36b   :  { %7476 = vmatpush1.bf16.msra.mxu1 %v12499_v14  ;;  %v414_v16 = vld [vmem:[#allocation5 + $0x8f0] sm:$0xff]  ;;  %v12180_v14 = vcombine.high %v150_v2, %v158_v50  ;;  %v12179_v15 = vcombine.low %v150_v2, %v158_v50 }
 0x36c   :  { %7477 = vmatprep.subr.bf16.mxu1 %v12484_v31  ;;  %v12436_v27 = vcombine.high %v406_v53, %v414_v16  ;;  %v142_v31 = vld [vmem:[#allocation5 + $0x70] sm:$0xff]  ;;  %v12435_v43 = vcombine.low %v406_v53, %v414_v16 }
 0x36d   :  { %7435 = vmatpush1.bf16.msra.mxu0 %v12227_v24  ;;  %v134_v24 = vld [vmem:[#allocation5 + $0x30] sm:$0xff] }
 0x36e   :  { %7436 = vmatprep.subr.bf16.mxu0 %v12212_v19  ;;  %v390_v26 = vld [vmem:[#allocation5 + $0x830] sm:$0xff]  ;;  %v12163_v35 = vcombine.low %v134_v24, %v142_v31 }
 0x36f   :  { %7478 = vmatpush1.bf16.msra.mxu1 %v12483_v36  ;;  %v398_v18 = vld [vmem:[#allocation5 + $0x870] sm:$0xff]  ;;  %v12164_v36 = vcombine.high %v134_v24, %v142_v31 }
 0x370   :  { %7479 = vmatprep.subr.bf16.mxu1 %v12468_v44  ;;  %v12420_v19 = vcombine.high %v390_v26, %v398_v18  ;;  %v374_v44 = vld [vmem:[#allocation5 + $0x7b0] sm:$0xff]  ;;  %v12419_v17 = vcombine.low %v390_v26, %v398_v18 }
 0x371   :  { %7437 = vmatpush1.bf16.msra.mxu0 %v12211_v56  ;;  %v382_v38 = vld [vmem:[#allocation5 + $0x7f0] sm:$0xff] }
 0x372   :  { %7438 = vmatprep.subr.bf16.mxu0 %v12196_v51  ;;  %v630_v20 = vld [vmem:[#allocation5 + $0xfb0] sm:$0xff]  ;;  %v12403_v53 = vcombine.low %v374_v44, %v382_v38 }
 0x373   :  { %7480 = vmatpush1.bf16.msra.mxu1 %v12467_v12  ;;  %v638_v56 = vld [vmem:[#allocation5 + $0xff0] sm:$0xff]  ;;  %v12404_v12 = vcombine.high %v374_v44, %v382_v38 }
 0x374   :  { %7481 = vmatprep.subr.bf16.mxu1 %v12452_v9  ;;  %v12660_v51 = vcombine.high %v630_v20, %v638_v56  ;;  %v358_v9 = vld [vmem:[#allocation5 + $0x730] sm:$0xff]  ;;  %v12659_v16 = vcombine.low %v630_v20, %v638_v56 }
 0x375   :  { %7439 = vmatpush1.bf16.msra.mxu0 %v12195_v0  ;;  %v366_v2 = vld [vmem:[#allocation5 + $0x770] sm:$0xff] }
 0x376   :  { %7440 = vmatprep.subr.bf16.mxu0 %v12180_v14  ;;  %v614_v50 = vld [vmem:[#allocation5 + $0xf30] sm:$0xff]  ;;  %v12387_v26 = vcombine.low %v358_v9, %v366_v2 }
 0x377   :  { %7482 = vmatpush1.bf16.msra.mxu1 %v12451_v28  ;;  %v622_v0 = vld [vmem:[#allocation5 + $0xf70] sm:$0xff]  ;;  %v12388_v28 = vcombine.high %v358_v9, %v366_v2 }
 0x378   :  { %7483 = vmatprep.subr.bf16.mxu1 %v12436_v27  ;;  %v12644_v14 = vcombine.high %v614_v50, %v622_v0  ;;  %v342_v27 = vld [vmem:[#allocation5 + $0x6b0] sm:$0xff]  ;;  %v12643_v18 = vcombine.low %v614_v50, %v622_v0 }
 0x379   :  { %7441 = vmatpush1.bf16.msra.mxu0 %v12179_v15  ;;  %v350_v24 = vld [vmem:[#allocation5 + $0x6f0] sm:$0xff] }
 0x37a   :  { %7442 = vmatprep.subr.bf16.mxu0 %v12164_v36  ;;  %v598_v31 = vld [vmem:[#allocation5 + $0xeb0] sm:$0xff]  ;;  %v12371_v20 = vcombine.low %v342_v27, %v350_v24 }
 0x37b   :  { %7484 = vmatpush1.bf16.msra.mxu1 %v12435_v43  ;;  %v606_v15 = vld [vmem:[#allocation5 + $0xef0] sm:$0xff]  ;;  %v12372_v43 = vcombine.high %v342_v27, %v350_v24 }
 0x37c   :  { %7485 = vmatprep.subr.bf16.mxu1 %v12420_v19  ;;  %v12628_v36 = vcombine.high %v598_v31, %v606_v15  ;;  %v326_v19 = vld [vmem:[#allocation5 + $0x630] sm:$0xff]  ;;  %v12627_v56 = vcombine.low %v598_v31, %v606_v15 }
 0x37d   :  { %7443 = vmatpush1.bf16.msra.mxu0 %v12163_v35  ;;  %v334_v44 = vld [vmem:[#allocation5 + $0x670] sm:$0xff] }
 0x37e   :  { %7444 = vmatprep.subr.bf16.mxu0 %v12404_v12  ;;  %v582_v38 = vld [vmem:[#allocation5 + $0xe30] sm:$0xff]  ;;  %v12355_v50 = vcombine.low %v326_v19, %v334_v44 }
 0x37f   :  { %7486 = vmatpush1.bf16.msra.mxu1 %v12419_v17  ;;  %v590_v35 = vld [vmem:[#allocation5 + $0xe70] sm:$0xff]  ;;  %v12356_v17 = vcombine.high %v326_v19, %v334_v44 }
 0x380   :  { %7487 = vmatprep.subr.bf16.mxu1 %v12660_v51  ;;  %v12612_v12 = vcombine.high %v582_v38, %v590_v35  ;;  %v310_v51 = vld [vmem:[#allocation5 + $0x5b0] sm:$0xff]  ;;  %v12611_v0 = vcombine.low %v582_v38, %v590_v35 }
 0x381   :  { %7445 = vmatpush2.bf16.msra.mxu0 %v12403_v53  ;;  %v318_v9 = vld [vmem:[#allocation5 + $0x5f0] sm:$0xff] }
 0x382   :  { %7446 = vmatprep.subr.bf16.mxu0 %v12388_v28  ;;  %v566_v2 = vld [vmem:[#allocation5 + $0xdb0] sm:$0xff]  ;;  %v12339_v31 = vcombine.low %v310_v51, %v318_v9 }
 0x383   :  { %7488 = vmatpush2.bf16.msra.mxu1 %v12659_v16  ;;  %v574_v53 = vld [vmem:[#allocation5 + $0xdf0] sm:$0xff]  ;;  %v12340_v16 = vcombine.high %v310_v51, %v318_v9 }
 0x384   :  { %7489 = vmatprep.subr.bf16.mxu1 %v12644_v14  ;;  %v12596_v28 = vcombine.high %v566_v2, %v574_v53  ;;  %v294_v14 = vld [vmem:[#allocation5 + $0x530] sm:$0xff]  ;;  %v12595_v15 = vcombine.low %v566_v2, %v574_v53 }
 0x385   :  { %7447 = vmatpush2.bf16.msra.mxu0 %v12387_v26  ;;  %v302_v27 = vld [vmem:[#allocation5 + $0x570] sm:$0xff] }
 0x386   :  { %7448 = vmatprep.subr.bf16.mxu0 %v12372_v43  ;;  %v550_v24 = vld [vmem:[#allocation5 + $0xd30] sm:$0xff]  ;;  %v12323_v38 = vcombine.low %v294_v14, %v302_v27 }
 0x387   :  { %7490 = vmatpush2.bf16.msra.mxu1 %v12643_v18  ;;  %v558_v26 = vld [vmem:[#allocation5 + $0xd70] sm:$0xff]  ;;  %v12324_v18 = vcombine.high %v294_v14, %v302_v27 }
 0x388   :  { %7491 = vmatprep.subr.bf16.mxu1 %v12628_v36  ;;  %v12580_v43 = vcombine.high %v550_v24, %v558_v26  ;;  %v278_v36 = vld [vmem:[#allocation5 + $0x4b0] sm:$0xff]  ;;  %v12579_v35 = vcombine.low %v550_v24, %v558_v26 }
 0x389   :  { %7449 = vmatpush2.bf16.msra.mxu0 %v12371_v20  ;;  %v286_v19 = vld [vmem:[#allocation5 + $0x4f0] sm:$0xff] }
 0x38a   :  { %7450 = vmatprep.subr.bf16.mxu0 %v12356_v17  ;;  %v534_v44 = vld [vmem:[#allocation5 + $0xcb0] sm:$0xff]  ;;  %v12307_v2 = vcombine.low %v278_v36, %v286_v19 }
 0x38b   :  { %7492 = vmatpush2.bf16.msra.mxu1 %v12627_v56  ;;  %v542_v20 = vld [vmem:[#allocation5 + $0xcf0] sm:$0xff]  ;;  %v12308_v56 = vcombine.high %v278_v36, %v286_v19 }
 0x38c   :  { %7493 = vmatprep.subr.bf16.mxu1 %v12612_v12  ;;  %v12564_v17 = vcombine.high %v534_v44, %v542_v20  ;;  %v262_v12 = vld [vmem:[#allocation5 + $0x430] sm:$0xff]  ;;  %v12563_v53 = vcombine.low %v534_v44, %v542_v20  ;;  %v15109_v20 = vpop.f32.mrf.mxu0 }
 0x38d   :  { %7451 = vmatpush2.bf16.msra.mxu0 %v12355_v50  ;;  %v270_v51 = vld [vmem:[#allocation5 + $0x470] sm:$0xff] }
 0x38e   :  { %7452 = vmatprep.subr.bf16.mxu0 %v12340_v16  ;;  %v518_v9 = vld [vmem:[#allocation5 + $0xc30] sm:$0xff]  ;;  %v12291_v24 = vcombine.low %v262_v12, %v270_v51 }
 0x38f   :  { %7494 = vmatpush2.bf16.msra.mxu1 %v12611_v0  ;;  %v526_v50 = vld [vmem:[#allocation5 + $0xc70] sm:$0xff]  ;;  %v12292_v0 = vcombine.high %v262_v12, %v270_v51 }
 0x390   :  { %7495 = vmatprep.subr.bf16.mxu1 %v12596_v28  ;;  %v12548_v16 = vcombine.high %v518_v9, %v526_v50  ;;  %v758_v28 = vld [vmem:[#allocation5 + $0x13b0] sm:$0xff]  ;;  %v12547_v26 = vcombine.low %v518_v9, %v526_v50 }
 0x391   :  { %7453 = vmatpush2.bf16.msra.mxu0 %v12339_v31  ;;  %v766_v14 = vld [vmem:[#allocation5 + $0x13f0] sm:$0xff] }
 0x392   :  { %7454 = vmatprep.subr.bf16.mxu0 %v12324_v18  ;;  %v1014_v27 = vld [vmem:[#allocation5 + $0x1bb0] sm:$0xff]  ;;  %v12787_v44 = vcombine.low %v758_v28, %v766_v14 }
 0x393   :  { %7496 = vmatpush2.bf16.msra.mxu1 %v12595_v15  ;;  %v1022_v31 = vld [vmem:[#allocation5 + $0x1bf0] sm:$0xff]  ;;  %v12788_v15 = vcombine.high %v758_v28, %v766_v14 }
 0x394   :  { %7497 = vmatprep.subr.bf16.mxu1 %v12580_v43  ;;  %v13044_v18 = vcombine.high %v1014_v27, %v1022_v31  ;;  %v742_v43 = vld [vmem:[#allocation5 + $0x1330] sm:$0xff] }
 0x395   :  { %7455 = vmatpush2.bf16.msra.mxu0 %v12323_v38  ;;  %v750_v36 = vld [vmem:[#allocation5 + $0x1370] sm:$0xff] }
 0x396   :  { %7456 = vmatprep.subr.bf16.mxu0 %v12308_v56  ;;  %v998_v19 = vld [vmem:[#allocation5 + $0x1b30] sm:$0xff]  ;;  %v12772_v56 = vcombine.high %v742_v43, %v750_v36  ;;  %v12771_v28 = vcombine.low %v742_v43, %v750_v36 }
 0x397   :  { %7498 = vmatpush2.bf16.msra.mxu1 %v12579_v35  ;;  %v1006_v38 = vld [vmem:[#allocation5 + $0x1b70] sm:$0xff]  ;;  %v13043_v35 = vcombine.low %v1014_v27, %v1022_v31 }
 0x398   :  { %7499 = vmatprep.subr.bf16.mxu1 %v12564_v17  ;;  %v15111_v17 = vpop.f32.mrf.mxu1  ;;  %v13028_v12 = vcombine.high %v998_v19, %v1006_v38  ;;  %v726_v51 = vld [vmem:[#allocation5 + $0x12b0] sm:$0xff]  ;;  %v13027_v27 = vcombine.low %v998_v19, %v1006_v38 }
 0x399   :  { %7457 = vmatpush2.bf16.msra.mxu0 %v12307_v2  ;;  %15683 = vst [vmem:[#allocation41_spill] sm:$0xff] %v15111_v17  ;;  %v734_v9 = vld [vmem:[#allocation5 + $0x12f0] sm:$0xff] }
 0x39a   :  { %7458 = vmatprep.subr.bf16.mxu0 %v12292_v0  ;;  %v982_v2 = vld [vmem:[#allocation5 + $0x1ab0] sm:$0xff]  ;;  %v12756_v31 = vcombine.high %v726_v51, %v734_v9  ;;  %v12755_v36 = vcombine.low %v726_v51, %v734_v9 }
 0x39b   :  { %7500 = vmatpush2.bf16.msra.mxu1 %v12563_v53  ;;  %v990_v53 = vld [vmem:[#allocation5 + $0x1af0] sm:$0xff] }
 0x39c   :  { %7501 = vmatprep.subr.bf16.mxu1 %v12548_v16  ;;  %v718_v17 = vld [vmem:[#allocation5 + $0x1270] sm:$0xff]  ;;  %v13011_v38 = vcombine.low %v982_v2, %v990_v53 }
 0x39d   :  { %7459 = vmatpush2.bf16.msra.mxu0 %v12291_v24  ;;  %v678_v9 = vld [vmem:[#allocation5 + $0x1130] sm:$0xff] }
 0x39e   :  { %7514 = vmatprep.subr.bf16.mxu0 %v12788_v15  ;;  %v13012_v15 = vcombine.high %v982_v2, %v990_v53  ;;  %v934_v2 = vld [vmem:[#allocation5 + $0x1930] sm:$0xff] }
 0x39f   :  { %7502 = vmatpush2.bf16.msra.mxu1 %v12547_v26  ;;  %v942_v53 = vld [vmem:[#allocation5 + $0x1970] sm:$0xff] }
 0x3a0   :  { %7557 = vmatprep.subr.bf16.mxu1 %v13044_v18  ;;  %v7204_v50 = vpop.f32.mrf.mxu0  ;;  %7461 = vmatmul.mubr.bf16.vlgmr.msra.gmra.mxu0 %v14895_v21  ;;  %v710_v18 = vld [vmem:[#allocation5 + $0x1230] sm:$0xff] }
 0x3a1   :  { %v7205_v0 = vadd.f32 %v7204_v50, %v15101_v3  ;;  %7515 = vmatpush1.bf16.msra.mxu0 %v12787_v44  ;;  %7546 = vmatprep.mubr.bf16.mxu0 %v14911_v32  ;;  %v966_v50 = vld [vmem:[#allocation5 + $0x1a30] sm:$0xff] }
 0x3a2   :  { %v7247_v16 = vpop.f32.mrf.mxu1  ;;  %7504 = vmatmul.mubr.bf16.vlgmr.msra.gmra.mxu1 %v14903_v25  ;;  %v15116_v14 = vpop.f32.mrf.mxu0  ;;  %7516 = vmatprep.subr.bf16.mxu0 %v12772_v56  ;;  %v974_v44 = vld [vmem:[#allocation5 + $0x1a70] sm:$0xff] }
 0x3a3   :  { %7558 = vmatpush1.bf16.msra.mxu1 %v13043_v35  ;;  %15684 = vst [vmem:[#allocation42_spill] sm:$0xff] %v15116_v14  ;;  %v15118_v24 = vadd.f32 %v7247_v16, %v7205_v0  ;;  %7589 = vmatprep.mubr.bf16.mxu1 %v14916_v33  ;;  %v12740_v35 = vcombine.high %v710_v18, %v718_v17  ;;  %v694_v0 = vld [vmem:[#allocation5 + $0x11b0] sm:$0xff] }
 0x3a4   :  { %v15120_v26 = vpop.f32.mrf.mxu1  ;;  %7559 = vmatprep.subr.bf16.mxu1 %v13028_v12  ;;  %v7208_v3 = vpop.f32.mrf.mxu0  ;;  %v12996_v12 = vcombine.high %v966_v50, %v974_v44  ;;  %v702_v16 = vld [vmem:[#allocation5 + $0x11f0] sm:$0xff]  ;;  %v12739_v14 = vcombine.low %v710_v18, %v718_v17 }
 0x3a5   :  { %15685 = vst [vmem:[#allocation43_spill] sm:$0xff] %v15118_v24  ;;  %15686 = vst [vmem:[#allocation44_spill] sm:$0xff] %v15120_v26  ;;  %v7209_v43 = vadd.f32 %v7208_v3, %v15107_v40  ;;  %7517 = vmatpush1.bf16.msra.mxu0 %v12771_v28  ;;  %v950_v24 = vld [vmem:[#allocation5 + $0x19b0] sm:$0xff]  ;;  %v12995_v40 = vcombine.low %v966_v50, %v974_v44  ;;  %v12724_v28 = vcombine.high %v694_v0, %v702_v16 }
 0x3a6   :  { %v7251_v19 = vpop.f32.mrf.mxu1  ;;  %7518 = vmatprep.subr.bf16.mxu0 %v12756_v31  ;;  %v958_v26 = vld [vmem:[#allocation5 + $0x19f0] sm:$0xff]  ;;  %v12723_v31 = vcombine.low %v694_v0, %v702_v16  ;;  %v12963_v44 = vcombine.low %v934_v2, %v942_v53 }
 0x3a7   :  { %7560 = vmatpush1.bf16.msra.mxu1 %v13027_v27  ;;  %v15125_v56 = vadd.f32 %v7251_v19, %v7209_v43  ;;  %v12980_v51 = vcombine.high %v950_v24, %v958_v26  ;;  %v686_v27 = vld [vmem:[#allocation5 + $0x1170] sm:$0xff]  ;;  %v12964_v43 = vcombine.high %v934_v2, %v942_v53 }
 0x3a8   :  { %7561 = vmatprep.subr.bf16.mxu1 %v13012_v15  ;;  %v12979_v15 = vcombine.low %v950_v24, %v958_v26  ;;  %v12708_v3 = vcombine.high %v678_v9, %v686_v27  ;;  %v670_v17 = vld [vmem:[#allocation5 + $0x10f0] sm:$0xff]  ;;  %v12707_v50 = vcombine.low %v678_v9, %v686_v27 }
 0x3a9   :  { %15687 = vst [vmem:[#allocation45_spill] sm:$0xff] %v15125_v56  ;;  %7519 = vmatpush1.bf16.msra.mxu0 %v12755_v36  ;;  %v662_v36 = vld [vmem:[#allocation5 + $0x10b0] sm:$0xff]  ;;  %v455_v56 = vld [vmem:[#allocation5 + $0xa38] sm:$0xff] }
 0x3aa   :  { %7520 = vmatprep.subr.bf16.mxu0 %v12740_v35  ;;  %v918_v18 = vld [vmem:[#allocation5 + $0x18b0] sm:$0xff]  ;;  %v12691_v24 = vcombine.low %v662_v36, %v670_v17 }
 0x3ab   :  { %7562 = vmatpush1.bf16.msra.mxu1 %v13011_v38  ;;  %v926_v19 = vld [vmem:[#allocation5 + $0x18f0] sm:$0xff]  ;;  %v12692_v38 = vcombine.high %v662_v36, %v670_v17 }
 0x3ac   :  { %7563 = vmatprep.subr.bf16.mxu1 %v12996_v12  ;;  %v12948_v35 = vcombine.high %v918_v18, %v926_v19  ;;  %v654_v12 = vld [vmem:[#allocation5 + $0x1070] sm:$0xff]  ;;  %v12947_v26 = vcombine.low %v918_v18, %v926_v19 }
 0x3ad   :  { %7521 = vmatpush1.bf16.msra.mxu0 %v12739_v14  ;;  %v646_v14 = vld [vmem:[#allocation5 + $0x1030] sm:$0xff] }
 0x3ae   :  { %7522 = vmatprep.subr.bf16.mxu0 %v12724_v28  ;;  %v902_v0 = vld [vmem:[#allocation5 + $0x1830] sm:$0xff]  ;;  %v12675_v2 = vcombine.low %v646_v14, %v654_v12 }
 0x3af   :  { %7564 = vmatpush1.bf16.msra.mxu1 %v12995_v40  ;;  %v910_v16 = vld [vmem:[#allocation5 + $0x1870] sm:$0xff]  ;;  %v12676_v40 = vcombine.high %v646_v14, %v654_v12 }
 0x3b0   :  { %7565 = vmatprep.subr.bf16.mxu1 %v12980_v51  ;;  %v12932_v28 = vcombine.high %v902_v0, %v910_v16  ;;  %v886_v51 = vld [vmem:[#allocation5 + $0x17b0] sm:$0xff]  ;;  %v12931_v53 = vcombine.low %v902_v0, %v910_v16 }
 0x3b1   :  { %7523 = vmatpush1.bf16.msra.mxu0 %v12723_v31  ;;  %v894_v9 = vld [vmem:[#allocation5 + $0x17f0] sm:$0xff] }
 0x3b2   :  { %7524 = vmatprep.subr.bf16.mxu0 %v12708_v3  ;;  %v1142_v27 = vld [vmem:[#allocation5 + $0x1fb0] sm:$0xff]  ;;  %v12915_v18 = vcombine.low %v886_v51, %v894_v9 }
 0x3b3   :  { %7566 = vmatpush1.bf16.msra.mxu1 %v12979_v15  ;;  %v1150_v31 = vld [vmem:[#allocation5 + $0x1ff0] sm:$0xff]  ;;  %v12916_v15 = vcombine.high %v886_v51, %v894_v9 }
 0x3b4   :  { %7567 = vmatprep.subr.bf16.mxu1 %v12964_v43  ;;  %v13172_v3 = vcombine.high %v1142_v27, %v1150_v31  ;;  %v870_v43 = vld [vmem:[#allocation5 + $0x1730] sm:$0xff]  ;;  %v13171_v19 = vcombine.low %v1142_v27, %v1150_v31 }
 0x3b5   :  { %7525 = vmatpush1.bf16.msra.mxu0 %v12707_v50  ;;  %v878_v36 = vld [vmem:[#allocation5 + $0x1770] sm:$0xff] }
 0x3b6   :  { %7526 = vmatprep.subr.bf16.mxu0 %v12692_v38  ;;  %v1126_v17 = vld [vmem:[#allocation5 + $0x1f30] sm:$0xff]  ;;  %v12899_v0 = vcombine.low %v870_v43, %v878_v36 }
 0x3b7   :  { %7568 = vmatpush1.bf16.msra.mxu1 %v12963_v44  ;;  %v1134_v50 = vld [vmem:[#allocation5 + $0x1f70] sm:$0xff]  ;;  %v12900_v44 = vcombine.high %v870_v43, %v878_v36 }
 0x3b8   :  { %7569 = vmatprep.subr.bf16.mxu1 %v12948_v35  ;;  %v13156_v38 = vcombine.high %v1126_v17, %v1134_v50  ;;  %v854_v35 = vld [vmem:[#allocation5 + $0x16b0] sm:$0xff]  ;;  %v13155_v16 = vcombine.low %v1126_v17, %v1134_v50 }
 0x3b9   :  { %7527 = vmatpush1.bf16.msra.mxu0 %v12691_v24  ;;  %v862_v14 = vld [vmem:[#allocation5 + $0x16f0] sm:$0xff] }
 0x3ba   :  { %7528 = vmatprep.subr.bf16.mxu0 %v12676_v40  ;;  %v1110_v12 = vld [vmem:[#allocation5 + $0x1eb0] sm:$0xff]  ;;  %v12883_v27 = vcombine.low %v854_v35, %v862_v14 }
 0x3bb   :  { %7570 = vmatpush1.bf16.msra.mxu1 %v12947_v26  ;;  %v1118_v24 = vld [vmem:[#allocation5 + $0x1ef0] sm:$0xff]  ;;  %v12884_v26 = vcombine.high %v854_v35, %v862_v14 }
 0x3bc   :  { %7571 = vmatprep.subr.bf16.mxu1 %v12932_v28  ;;  %v13140_v40 = vcombine.high %v1110_v12, %v1118_v24  ;;  %v838_v28 = vld [vmem:[#allocation5 + $0x1630] sm:$0xff]  ;;  %v13139_v31 = vcombine.low %v1110_v12, %v1118_v24 }
 0x3bd   :  { %7529 = vmatpush1.bf16.msra.mxu0 %v12675_v2  ;;  %v846_v51 = vld [vmem:[#allocation5 + $0x1670] sm:$0xff] }
 0x3be   :  { %7530 = vmatprep.subr.bf16.mxu0 %v12916_v15  ;;  %v1094_v9 = vld [vmem:[#allocation5 + $0x1e30] sm:$0xff]  ;;  %v12867_v17 = vcombine.low %v838_v28, %v846_v51 }
 0x3bf   :  { %7572 = vmatpush1.bf16.msra.mxu1 %v12931_v53  ;;  %v1102_v2 = vld [vmem:[#allocation5 + $0x1e70] sm:$0xff]  ;;  %v12868_v53 = vcombine.high %v838_v28, %v846_v51 }
 0x3c0   :  { %7573 = vmatprep.subr.bf16.mxu1 %v13172_v3  ;;  %v13124_v15 = vcombine.high %v1094_v9, %v1102_v2  ;;  %v822_v3 = vld [vmem:[#allocation5 + $0x15b0] sm:$0xff]  ;;  %v13123_v50 = vcombine.low %v1094_v9, %v1102_v2 }
 0x3c1   :  { %7531 = vmatpush2.bf16.msra.mxu0 %v12915_v18  ;;  %v830_v43 = vld [vmem:[#allocation5 + $0x15f0] sm:$0xff] }
 0x3c2   :  { %7532 = vmatprep.subr.bf16.mxu0 %v12900_v44  ;;  %v1078_v36 = vld [vmem:[#allocation5 + $0x1db0] sm:$0xff]  ;;  %v12851_v12 = vcombine.low %v822_v3, %v830_v43 }
 0x3c3   :  { %7574 = vmatpush2.bf16.msra.mxu1 %v13171_v19  ;;  %v1086_v18 = vld [vmem:[#allocation5 + $0x1df0] sm:$0xff]  ;;  %v12852_v19 = vcombine.high %v822_v3, %v830_v43 }
 0x3c4   :  { %7575 = vmatprep.subr.bf16.mxu1 %v13156_v38  ;;  %v13108_v44 = vcombine.high %v1078_v36, %v1086_v18  ;;  %v806_v38 = vld [vmem:[#allocation5 + $0x1530] sm:$0xff]  ;;  %v13107_v24 = vcombine.low %v1078_v36, %v1086_v18 }
 0x3c5   :  { %7533 = vmatpush2.bf16.msra.mxu0 %v12899_v0  ;;  %v814_v35 = vld [vmem:[#allocation5 + $0x1570] sm:$0xff] }
 0x3c6   :  { %7534 = vmatprep.subr.bf16.mxu0 %v12884_v26  ;;  %v1062_v14 = vld [vmem:[#allocation5 + $0x1d30] sm:$0xff]  ;;  %v12835_v9 = vcombine.low %v806_v38, %v814_v35 }
 0x3c7   :  { %7576 = vmatpush2.bf16.msra.mxu1 %v13155_v16  ;;  %v1070_v0 = vld [vmem:[#allocation5 + $0x1d70] sm:$0xff]  ;;  %v12836_v16 = vcombine.high %v806_v38, %v814_v35  ;;  %v255_v38 = vld [vmem:[#allocation5 + $0x3f8] sm:$0xff] }
 0x3c8   :  { %7577 = vmatprep.subr.bf16.mxu1 %v13140_v40  ;;  %v13092_v26 = vcombine.high %v1062_v14, %v1070_v0  ;;  %v790_v40 = vld [vmem:[#allocation5 + $0x14b0] sm:$0xff]  ;;  %v13091_v2 = vcombine.low %v1062_v14, %v1070_v0  ;;  %v503_v35 = vld [vmem:[#allocation5 + $0xbb8] sm:$0xff] }
 0x3c9   :  { %7535 = vmatpush2.bf16.msra.mxu0 %v12883_v27  ;;  %v798_v28 = vld [vmem:[#allocation5 + $0x14f0] sm:$0xff] }
 0x3ca   :  { %7536 = vmatprep.subr.bf16.mxu0 %v12868_v53  ;;  %v1046_v51 = vld [vmem:[#allocation5 + $0x1cb0] sm:$0xff]  ;;  %v12819_v36 = vcombine.low %v790_v40, %v798_v28 }
 0x3cb   :  { %7578 = vmatpush2.bf16.msra.mxu1 %v13139_v31  ;;  %v1054_v27 = vld [vmem:[#allocation5 + $0x1cf0] sm:$0xff]  ;;  %v12820_v31 = vcombine.high %v790_v40, %v798_v28  ;;  %v239_v40 = vld [vmem:[#allocation5 + $0x378] sm:$0xff] }
 0x3cc   :  { %7579 = vmatprep.subr.bf16.mxu1 %v13124_v15  ;;  %v13076_v53 = vcombine.high %v1046_v51, %v1054_v27  ;;  %v774_v15 = vld [vmem:[#allocation5 + $0x1430] sm:$0xff]  ;;  %v13075_v18 = vcombine.low %v1046_v51, %v1054_v27  ;;  %v487_v28 = vld [vmem:[#allocation5 + $0xb38] sm:$0xff]  ;;  %v1199_v51 = vrot.slane %v15089_v8, %v14974_v57 }
 0x3cd   :  { %7537 = vmatpush2.bf16.msra.mxu0 %v12867_v17  ;;  %v782_v3 = vld [vmem:[#allocation5 + $0x1470] sm:$0xff]  ;;  %v207_v57 = vld [vmem:[#allocation5 + $0x278] sm:$0xff] }
 0x3ce   :  { %7538 = vmatprep.subr.bf16.mxu0 %v12852_v19  ;;  %v1030_v43 = vld [vmem:[#allocation5 + $0x1c30] sm:$0xff]  ;;  %v12803_v14 = vcombine.low %v774_v15, %v782_v3 }
 0x3cf   :  { %7580 = vmatpush2.bf16.msra.mxu1 %v13123_v50  ;;  %v1038_v17 = vld [vmem:[#allocation5 + $0x1c70] sm:$0xff]  ;;  %v12804_v50 = vcombine.high %v774_v15, %v782_v3  ;;  %v15131_v15 = vpop.f32.mrf.mxu1 }
 0x3d0   :  { %7581 = vmatprep.subr.bf16.mxu1 %v13108_v44  ;;  %v13060_v19 = vcombine.high %v1030_v43, %v1038_v17  ;;  %v247_v44 = vld [vmem:[#allocation5 + $0x3b8] sm:$0xff]  ;;  %v13059_v0 = vcombine.low %v1030_v43, %v1038_v17  ;;  %15688 = vst [vmem:[#allocation46_spill] sm:$0xff] %v15131_v15 }
 0x3d1   :  { %7539 = vmatpush2.bf16.msra.mxu0 %v12851_v12  ;;  %v511_v12 = vld [vmem:[#allocation5 + $0xbf8] sm:$0xff]  ;;  %v12277_v27 = vcombine.low %v247_v44, %v255_v38 }
 0x3d2   :  { %7540 = vmatprep.subr.bf16.mxu0 %v12836_v16  ;;  %v12534_v16 = vcombine.high %v503_v35, %v511_v12  ;;  %v215_v43 = vld [vmem:[#allocation5 + $0x2b8] sm:$0xff] }
 0x3d3   :  { %7582 = vmatpush2.bf16.msra.mxu1 %v13107_v24  ;;  %v12278_v24 = vcombine.high %v247_v44, %v255_v38  ;;  %v223_v17 = vld [vmem:[#allocation5 + $0x2f8] sm:$0xff] }
 0x3d4   :  { %7583 = vmatprep.subr.bf16.mxu1 %v13092_v26  ;;  %v231_v26 = vld [vmem:[#allocation5 + $0x338] sm:$0xff] }
 0x3d5   :  { %7541 = vmatpush2.bf16.msra.mxu0 %v12835_v9  ;;  %v495_v9 = vld [vmem:[#allocation5 + $0xb78] sm:$0xff]  ;;  %v12261_v44 = vcombine.low %v231_v26, %v239_v40 }
 0x3d6   :  { %7542 = vmatprep.subr.bf16.mxu0 %v12820_v31  ;;  %v12533_v31 = vcombine.low %v503_v35, %v511_v12  ;;  %v12518_v3 = vcombine.high %v487_v28, %v495_v9  ;;  %v12517_v35 = vcombine.low %v487_v28, %v495_v9  ;;  %v12246_v12 = vcombine.high %v215_v43, %v223_v17  ;;  %v447_v15 = vld [vmem:[#allocation5 + $0x9f8] sm:$0xff] }
 0x3d7   :  { %7584 = vmatpush2.bf16.msra.mxu1 %v13091_v2  ;;  %v15129_v2 = vpop.f32.mrf.mxu0 }
 0x3d8   :  { %7585 = vmatprep.subr.bf16.mxu1 %v13076_v53  ;;  %v12262_v53 = vcombine.high %v231_v26, %v239_v40  ;;  %v12245_v40 = vcombine.low %v215_v43, %v223_v17  ;;  %v167_v17 = vld [vmem:[#allocation5 + $0x138] sm:$0xff] }
 0x3d9   :  { %7543 = vmatpush2.bf16.msra.mxu0 %v12819_v36 }
 0x3da   :  { %7544 = vmatprep.subr.bf16.mxu0 %v12804_v50  ;;  %v479_v50 = vld [vmem:[#allocation5 + $0xaf8] sm:$0xff] }
 0x3db   :  { %7586 = vmatpush2.bf16.msra.mxu1 %v13075_v18  ;;  %v471_v18 = vld [vmem:[#allocation5 + $0xab8] sm:$0xff] }
 0x3dc   :  { %7587 = vmatprep.subr.bf16.mxu1 %v13060_v19  ;;  %v12501_v9 = vcombine.low %v471_v18, %v479_v50 }
 0x3dd   :  { %7545 = vmatpush2.bf16.msra.mxu0 %v12803_v14 }
 0x3de   :  { %7600 = vmatprep.subr.bf16.mxu0 %v12278_v24  ;;  %v12502_v24 = vcombine.high %v471_v18, %v479_v50  ;;  %v423_v18 = vld [vmem:[#allocation5 + $0x938] sm:$0xff] }
 0x3df   :  { %7588 = vmatpush2.bf16.msra.mxu1 %v13059_v0  ;;  %v431_v50 = vld [vmem:[#allocation5 + $0x978] sm:$0xff] }
 0x3e0   :  { %7643 = vmatprep.subr.bf16.mxu1 %v12534_v16  ;;  %v7290_v36 = vpop.f32.mrf.mxu0  ;;  %7547 = vmatmul.mubr.bf16.vlgmr.msra.gmra.mxu0 %v14923_v46  ;;  %v199_v16 = vld [vmem:[#allocation5 + $0x238] sm:$0xff] }
 0x3e1   :  { %v7291_v19 = vadd.f32 %v7290_v36, %v1199_v51  ;;  %7601 = vmatpush1.bf16.msra.mxu0 %v12277_v27  ;;  %7632 = vmatprep.mubr.bf16.mxu0 %v14881_v58  ;;  %v463_v27 = vld [vmem:[#allocation5 + $0xa78] sm:$0xff] }
 0x3e2   :  { %v7333_v8 = vpop.f32.mrf.mxu1  ;;  %7590 = vmatmul.mubr.bf16.vlgmr.msra.gmra.mxu1 %v14927_v47  ;;  %v15135_v38 = vpop.f32.mrf.mxu0  ;;  %7602 = vmatprep.subr.bf16.mxu0 %v12262_v53  ;;  %v439_v58 = vld [vmem:[#allocation5 + $0x9b8] sm:$0xff] }
 0x3e3   :  { %7644 = vmatpush1.bf16.msra.mxu1 %v12533_v31  ;;  %v15137_v14 = vadd.f32 %v7333_v8, %v7291_v19  ;;  %7675 = vmatprep.mubr.bf16.mxu1 %v14889_v63  ;;  %v12230_v31 = vcombine.high %v199_v16, %v207_v57  ;;  %v183_v19 = vld [vmem:[#allocation5 + $0x1b8] sm:$0xff]  ;;  %v12485_v63 = vcombine.low %v455_v56, %v463_v27 }
 0x3e4   :  { %v15139_v0 = vpop.f32.mrf.mxu1  ;;  %7645 = vmatprep.subr.bf16.mxu1 %v12518_v3  ;;  %v7294_v36 = vpop.f32.mrf.mxu0  ;;  %v12486_v3 = vcombine.high %v455_v56, %v463_v27  ;;  %v191_v8 = vld [vmem:[#allocation5 + $0x1f8] sm:$0xff]  ;;  %v12470_v43 = vcombine.high %v439_v58, %v447_v15  ;;  %v12453_v27 = vcombine.low %v423_v18, %v431_v50 }
 0x3e5   :  { %15689 = vst [vmem:[#allocation47_spill] sm:$0xff] %v15139_v0  ;;  %v7295_v26 = vadd.f32 %v7294_v36, %v1199_v51  ;;  %7603 = vmatpush1.bf16.msra.mxu0 %v12261_v44  ;;  %v12229_v0 = vcombine.low %v199_v16, %v207_v57  ;;  %v12214_v51 = vcombine.high %v183_v19, %v191_v8  ;;  %v175_v44 = vld [vmem:[#allocation5 + $0x178] sm:$0xff] }
 0x3e6   :  { %v7337_v28 = vpop.f32.mrf.mxu1  ;;  %7604 = vmatprep.subr.bf16.mxu0 %v12246_v12  ;;  %v12469_v12 = vcombine.low %v439_v58, %v447_v15  ;;  %v12454_v36 = vcombine.high %v423_v18, %v431_v50  ;;  %v159_v57 = vld [vmem:[#allocation5 + $0xf8] sm:$0xff]  ;;  %v12197_v56 = vcombine.low %v167_v17, %v175_v44 }
 0x3e7   :  { %7646 = vmatpush1.bf16.msra.mxu1 %v12517_v35  ;;  %v15143_v53 = vadd.f32 %v7337_v28, %v7295_v26  ;;  %v12213_v35 = vcombine.low %v183_v19, %v191_v8  ;;  %v151_v26 = vld [vmem:[#allocation5 + $0xb8] sm:$0xff] }
 0x3e8   :  { %7647 = vmatprep.subr.bf16.mxu1 %v12502_v24  ;;  %v12198_v24 = vcombine.high %v167_v17, %v175_v44  ;;  %v407_v16 = vld [vmem:[#allocation5 + $0x8b8] sm:$0xff]  ;;  %v12182_v28 = vcombine.high %v151_v26, %v159_v57  ;;  %v12181_v15 = vcombine.low %v151_v26, %v159_v57 }
 0x3e9   :  { %7605 = vmatpush1.bf16.msra.mxu0 %v12245_v40  ;;  %v415_v40 = vld [vmem:[#allocation5 + $0x8f8] sm:$0xff] }
 0x3ea   :  { %7606 = vmatprep.subr.bf16.mxu0 %v12230_v31  ;;  %v143_v31 = vld [vmem:[#allocation5 + $0x78] sm:$0xff]  ;;  %v12437_v8 = vcombine.low %v407_v16, %v415_v40 }
 0x3eb   :  { %7648 = vmatpush1.bf16.msra.mxu1 %v12501_v9  ;;  %v12438_v9 = vcombine.high %v407_v16, %v415_v40  ;;  %v399_v19 = vld [vmem:[#allocation5 + $0x878] sm:$0xff] }
 0x3ec   :  { %7649 = vmatprep.subr.bf16.mxu1 %v12486_v3  ;;  %v391_v3 = vld [vmem:[#allocation5 + $0x838] sm:$0xff] }
 0x3ed   :  { %7607 = vmatpush1.bf16.msra.mxu0 %v12229_v0  ;;  %v135_v0 = vld [vmem:[#allocation5 + $0x38] sm:$0xff]  ;;  %v12421_v50 = vcombine.low %v391_v3, %v399_v19 }
 0x3ee   :  { %7608 = vmatprep.subr.bf16.mxu0 %v12214_v51  ;;  %v12166_v58 = vcombine.high %v135_v0, %v143_v31  ;;  %v375_v51 = vld [vmem:[#allocation5 + $0x7b8] sm:$0xff]  ;;  %v12165_v18 = vcombine.low %v135_v0, %v143_v31 }
 0x3ef   :  { %7650 = vmatpush1.bf16.msra.mxu1 %v12485_v63  ;;  %v12422_v63 = vcombine.high %v391_v3, %v399_v19  ;;  %v631_v17 = vld [vmem:[#allocation5 + $0xfb8] sm:$0xff] }
 0x3f0   :  { %7651 = vmatprep.subr.bf16.mxu1 %v12470_v43  ;;  %v383_v43 = vld [vmem:[#allocation5 + $0x7f8] sm:$0xff] }
 0x3f1   :  { %7609 = vmatpush1.bf16.msra.mxu0 %v12213_v35  ;;  %v639_v44 = vld [vmem:[#allocation5 + $0xff8] sm:$0xff]  ;;  %v12406_v35 = vcombine.high %v375_v51, %v383_v43  ;;  %v12405_v16 = vcombine.low %v375_v51, %v383_v43 }
 0x3f2   :  { %7610 = vmatprep.subr.bf16.mxu0 %v12198_v24  ;;  %v359_v24 = vld [vmem:[#allocation5 + $0x738] sm:$0xff]  ;;  %v12661_v40 = vcombine.low %v631_v17, %v639_v44 }
 0x3f3   :  { %7652 = vmatpush1.bf16.msra.mxu1 %v12469_v12  ;;  %v12662_v12 = vcombine.high %v631_v17, %v639_v44  ;;  %v615_v26 = vld [vmem:[#allocation5 + $0xf38] sm:$0xff] }
 0x3f4   :  { %7653 = vmatprep.subr.bf16.mxu1 %v12454_v36  ;;  %v367_v36 = vld [vmem:[#allocation5 + $0x778] sm:$0xff] }
 0x3f5   :  { %7611 = vmatpush1.bf16.msra.mxu0 %v12197_v56  ;;  %v623_v57 = vld [vmem:[#allocation5 + $0xf78] sm:$0xff]  ;;  %v12390_v56 = vcombine.high %v359_v24, %v367_v36  ;;  %v12389_v3 = vcombine.low %v359_v24, %v367_v36 }
 0x3f6   :  { %7612 = vmatprep.subr.bf16.mxu0 %v12182_v28  ;;  %v343_v28 = vld [vmem:[#allocation5 + $0x6b8] sm:$0xff]  ;;  %v12645_v19 = vcombine.low %v615_v26, %v623_v57 }
 0x3f7   :  { %7654 = vmatpush1.bf16.msra.mxu1 %v12453_v27  ;;  %v12646_v27 = vcombine.high %v615_v26, %v623_v57  ;;  %v599_v0 = vld [vmem:[#allocation5 + $0xeb8] sm:$0xff] }
 0x3f8   :  { %7655 = vmatprep.subr.bf16.mxu1 %v12438_v9  ;;  %v351_v9 = vld [vmem:[#allocation5 + $0x6f8] sm:$0xff] }
 0x3f9   :  { %7613 = vmatpush1.bf16.msra.mxu0 %v12181_v15  ;;  %v607_v31 = vld [vmem:[#allocation5 + $0xef8] sm:$0xff]  ;;  %v12374_v15 = vcombine.high %v343_v28, %v351_v9  ;;  %v12373_v17 = vcombine.low %v343_v28, %v351_v9 }
 0x3fa   :  { %7614 = vmatprep.subr.bf16.mxu0 %v12166_v58  ;;  %v327_v58 = vld [vmem:[#allocation5 + $0x638] sm:$0xff]  ;;  %v12629_v44 = vcombine.low %v599_v0, %v607_v31 }
 0x3fb   :  { %7656 = vmatpush1.bf16.msra.mxu1 %v12437_v8  ;;  %v12630_v8 = vcombine.high %v599_v0, %v607_v31  ;;  %v583_v51 = vld [vmem:[#allocation5 + $0xe38] sm:$0xff] }
 0x3fc   :  { %7657 = vmatprep.subr.bf16.mxu1 %v12422_v63  ;;  %v335_v63 = vld [vmem:[#allocation5 + $0x678] sm:$0xff] }
 0x3fd   :  { %7615 = vmatpush1.bf16.msra.mxu0 %v12165_v18  ;;  %v591_v43 = vld [vmem:[#allocation5 + $0xe78] sm:$0xff]  ;;  %v12358_v18 = vcombine.high %v327_v58, %v335_v63  ;;  %v12357_v26 = vcombine.low %v327_v58, %v335_v63 }
 0x3fe   :  { %7616 = vmatprep.subr.bf16.mxu0 %v12406_v35  ;;  %v311_v35 = vld [vmem:[#allocation5 + $0x5b8] sm:$0xff]  ;;  %v12613_v57 = vcombine.low %v583_v51, %v591_v43 }
 0x3ff   :  { %7658 = vmatpush1.bf16.msra.mxu1 %v12421_v50  ;;  %v12614_v50 = vcombine.high %v583_v51, %v591_v43  ;;  %v567_v24 = vld [vmem:[#allocation5 + $0xdb8] sm:$0xff] }
 0x400   :  { %7659 = vmatprep.subr.bf16.mxu1 %v12662_v12  ;;  %v319_v12 = vld [vmem:[#allocation5 + $0x5f8] sm:$0xff] }
 0x401   :  { %7617 = vmatpush2.bf16.msra.mxu0 %v12405_v16  ;;  %v575_v36 = vld [vmem:[#allocation5 + $0xdf8] sm:$0xff]  ;;  %v12342_v16 = vcombine.high %v311_v35, %v319_v12  ;;  %v12341_v0 = vcombine.low %v311_v35, %v319_v12 }
 0x402   :  { %7618 = vmatprep.subr.bf16.mxu0 %v12390_v56  ;;  %v295_v56 = vld [vmem:[#allocation5 + $0x538] sm:$0xff]  ;;  %v12597_v31 = vcombine.low %v567_v24, %v575_v36 }
 0x403   :  { %7660 = vmatpush2.bf16.msra.mxu1 %v12661_v40  ;;  %v12598_v40 = vcombine.high %v567_v24, %v575_v36  ;;  %v551_v28 = vld [vmem:[#allocation5 + $0xd38] sm:$0xff] }
 0x404   :  { %7661 = vmatprep.subr.bf16.mxu1 %v12646_v27  ;;  %v303_v27 = vld [vmem:[#allocation5 + $0x578] sm:$0xff] }
 0x405   :  { %7619 = vmatpush2.bf16.msra.mxu0 %v12389_v3  ;;  %v559_v9 = vld [vmem:[#allocation5 + $0xd78] sm:$0xff]  ;;  %v12326_v3 = vcombine.high %v295_v56, %v303_v27  ;;  %v12325_v51 = vcombine.low %v295_v56, %v303_v27 }
 0x406   :  { %7620 = vmatprep.subr.bf16.mxu0 %v12374_v15  ;;  %v279_v15 = vld [vmem:[#allocation5 + $0x4b8] sm:$0xff]  ;;  %v12581_v43 = vcombine.low %v551_v28, %v559_v9 }
 0x407   :  { %7662 = vmatpush2.bf16.msra.mxu1 %v12645_v19  ;;  %v12582_v19 = vcombine.high %v551_v28, %v559_v9  ;;  %v535_v58 = vld [vmem:[#allocation5 + $0xcb8] sm:$0xff] }
 0x408   :  { %7663 = vmatprep.subr.bf16.mxu1 %v12630_v8  ;;  %v287_v8 = vld [vmem:[#allocation5 + $0x4f8] sm:$0xff] }
 0x409   :  { %7621 = vmatpush2.bf16.msra.mxu0 %v12373_v17  ;;  %v543_v63 = vld [vmem:[#allocation5 + $0xcf8] sm:$0xff]  ;;  %v12310_v17 = vcombine.high %v279_v15, %v287_v8  ;;  %v12309_v24 = vcombine.low %v279_v15, %v287_v8 }
 0x40a   :  { %7622 = vmatprep.subr.bf16.mxu0 %v12358_v18  ;;  %v263_v18 = vld [vmem:[#allocation5 + $0x438] sm:$0xff]  ;;  %v12565_v36 = vcombine.low %v535_v58, %v543_v63 }
 0x40b   :  { %7664 = vmatpush2.bf16.msra.mxu1 %v12629_v44  ;;  %v12566_v44 = vcombine.high %v535_v58, %v543_v63  ;;  %v519_v35 = vld [vmem:[#allocation5 + $0xc38] sm:$0xff]  ;;  %v15145_v63 = vpop.f32.mrf.mxu0 }
 0x40c   :  { %7665 = vmatprep.subr.bf16.mxu1 %v12614_v50  ;;  %v271_v50 = vld [vmem:[#allocation5 + $0x478] sm:$0xff] }
 0x40d   :  { %7623 = vmatpush2.bf16.msra.mxu0 %v12357_v26  ;;  %v527_v12 = vld [vmem:[#allocation5 + $0xc78] sm:$0xff]  ;;  %v12294_v26 = vcombine.high %v263_v18, %v271_v50  ;;  %v12293_v28 = vcombine.low %v263_v18, %v271_v50 }
 0x40e   :  { %7624 = vmatprep.subr.bf16.mxu0 %v12342_v16  ;;  %v759_v16 = vld [vmem:[#allocation5 + $0x13b8] sm:$0xff]  ;;  %v12549_v9 = vcombine.low %v519_v35, %v527_v12 }
 0x40f   :  { %7666 = vmatpush2.bf16.msra.mxu1 %v12613_v57  ;;  %v12550_v57 = vcombine.high %v519_v35, %v527_v12  ;;  %v1015_v56 = vld [vmem:[#allocation5 + $0x1bb8] sm:$0xff] }
 0x410   :  { %7667 = vmatprep.subr.bf16.mxu1 %v12598_v40  ;;  %v767_v40 = vld [vmem:[#allocation5 + $0x13f8] sm:$0xff] }
 0x411   :  { %7625 = vmatpush2.bf16.msra.mxu0 %v12341_v0  ;;  %v1023_v27 = vld [vmem:[#allocation5 + $0x1bf8] sm:$0xff]  ;;  %v12790_v0 = vcombine.high %v759_v16, %v767_v40  ;;  %v12789_v58 = vcombine.low %v759_v16, %v767_v40 }
 0x412   :  { %7626 = vmatprep.subr.bf16.mxu0 %v12326_v3  ;;  %v743_v3 = vld [vmem:[#allocation5 + $0x1338] sm:$0xff] }
 0x413   :  { %7668 = vmatpush2.bf16.msra.mxu1 %v12597_v31  ;;  %v13046_v31 = vcombine.high %v1015_v56, %v1023_v27  ;;  %v999_v15 = vld [vmem:[#allocation5 + $0x1b38] sm:$0xff] }
 0x414   :  { %7669 = vmatprep.subr.bf16.mxu1 %v12582_v19  ;;  %v751_v19 = vld [vmem:[#allocation5 + $0x1378] sm:$0xff] }
 0x415   :  { %7627 = vmatpush2.bf16.msra.mxu0 %v12325_v51  ;;  %v1007_v8 = vld [vmem:[#allocation5 + $0x1b78] sm:$0xff]  ;;  %v13045_v51 = vcombine.low %v1015_v56, %v1023_v27 }
 0x416   :  { %7628 = vmatprep.subr.bf16.mxu0 %v12310_v17  ;;  %v15147_v17 = vpop.f32.mrf.mxu1  ;;  %v727_v18 = vld [vmem:[#allocation5 + $0x12b8] sm:$0xff]  ;;  %v13029_v40 = vcombine.low %v999_v15, %v1007_v8 }
 0x417   :  { %7670 = vmatpush2.bf16.msra.mxu1 %v12581_v43  ;;  %v12774_v43 = vcombine.high %v743_v3, %v751_v19  ;;  %v735_v50 = vld [vmem:[#allocation5 + $0x12f8] sm:$0xff] }
 0x418   :  { %7671 = vmatprep.subr.bf16.mxu1 %v12566_v44  ;;  %v13030_v44 = vcombine.high %v999_v15, %v1007_v8  ;;  %v983_v12 = vld [vmem:[#allocation5 + $0x1ab8] sm:$0xff]  ;;  %v12758_v56 = vcombine.high %v727_v18, %v735_v50 }
 0x419   :  { %7629 = vmatpush2.bf16.msra.mxu0 %v12309_v24  ;;  %v991_v24 = vld [vmem:[#allocation5 + $0x1af8] sm:$0xff] }
 0x41a   :  { %7630 = vmatprep.subr.bf16.mxu0 %v12294_v26  ;;  %v13013_v8 = vcombine.low %v983_v12, %v991_v24 }
 0x41b   :  { %7672 = vmatpush2.bf16.msra.mxu1 %v12565_v36 }
 0x41c   :  { %7673 = vmatprep.subr.bf16.mxu1 %v12550_v57  ;;  %v12773_v57 = vcombine.low %v743_v3, %v751_v19  ;;  %v12757_v19 = vcombine.low %v727_v18, %v735_v50  ;;  %v679_v50 = vld [vmem:[#allocation5 + $0x1138] sm:$0xff] }
 0x41d   :  { %7631 = vmatpush2.bf16.msra.mxu0 %v12293_v28 }
 0x41e   :  { %7686 = vmatprep.subr.bf16.mxu0 %v12790_v0  ;;  %v719_v0 = vld [vmem:[#allocation5 + $0x1278] sm:$0xff] }
 0x41f   :  { %7674 = vmatpush2.bf16.msra.mxu1 %v12549_v9  ;;  %v711_v9 = vld [vmem:[#allocation5 + $0x1238] sm:$0xff] }
 0x420   :  { %7729 = vmatprep.subr.bf16.mxu1 %v13046_v31  ;;  %v7376_v35 = vpop.f32.mrf.mxu0  ;;  %7633 = vmatmul.mubr.bf16.vlgmr.msra.gmra.mxu0 %v14895_v21  ;;  %v13014_v21 = vcombine.high %v983_v12, %v991_v24  ;;  %v975_v31 = vld [vmem:[#allocation5 + $0x1a78] sm:$0xff] }
 0x421   :  { %v7377_v36 = vadd.f32 %v7376_v35, %v15137_v14  ;;  %7687 = vmatpush1.bf16.msra.mxu0 %v12789_v58  ;;  %7718 = vmatprep.mubr.bf16.mxu0 %v14911_v32  ;;  %v12742_v58 = vcombine.high %v711_v9, %v719_v0  ;;  %v703_v32 = vld [vmem:[#allocation5 + $0x11f8] sm:$0xff] }
 0x422   :  { %v7419_v26 = vpop.f32.mrf.mxu1  ;;  %7676 = vmatmul.mubr.bf16.vlgmr.msra.gmra.mxu1 %v14903_v25  ;;  %v15152_v16 = vpop.f32.mrf.mxu0  ;;  %7688 = vmatprep.subr.bf16.mxu0 %v12774_v43  ;;  %v967_v25 = vld [vmem:[#allocation5 + $0x1a38] sm:$0xff] }
 0x423   :  { %7730 = vmatpush1.bf16.msra.mxu1 %v13045_v51  ;;  %v15154_v27 = vadd.f32 %v7419_v26, %v7377_v36  ;;  %7761 = vmatprep.mubr.bf16.mxu1 %v14916_v33  ;;  %v12998_v43 = vcombine.high %v967_v25, %v975_v31  ;;  %v951_v35 = vld [vmem:[#allocation5 + $0x19b8] sm:$0xff]  ;;  %v12741_v26 = vcombine.low %v711_v9, %v719_v0 }
 0x424   :  { %v15156_v28 = vpop.f32.mrf.mxu1  ;;  %7731 = vmatprep.subr.bf16.mxu1 %v13030_v44  ;;  %v7380_v14 = vpop.f32.mrf.mxu0  ;;  %v695_v44 = vld [vmem:[#allocation5 + $0x11b8] sm:$0xff]  ;;  %v12997_v33 = vcombine.low %v967_v25, %v975_v31 }
 0x425   :  { %15690 = vst [vmem:[#allocation48_spill] sm:$0xff] %v15154_v27  ;;  %15691 = vst [vmem:[#allocation49_spill] sm:$0xff] %v15156_v28  ;;  %v7381_v3 = vadd.f32 %v7380_v14, %v15143_v53  ;;  %7689 = vmatpush1.bf16.msra.mxu0 %v12773_v57  ;;  %v959_v36 = vld [vmem:[#allocation5 + $0x19f8] sm:$0xff]  ;;  %v12726_v53 = vcombine.high %v695_v44, %v703_v32 }
 0x426   :  { %v7423_v15 = vpop.f32.mrf.mxu1  ;;  %7690 = vmatprep.subr.bf16.mxu0 %v12758_v56  ;;  %v12982_v18 = vcombine.high %v951_v35, %v959_v36  ;;  %v687_v57 = vld [vmem:[#allocation5 + $0x1178] sm:$0xff]  ;;  %v12981_v56 = vcombine.low %v951_v35, %v959_v36 }
 0x427   :  { %7732 = vmatpush1.bf16.msra.mxu1 %v13029_v40  ;;  %v15161_v51 = vadd.f32 %v7423_v15, %v7381_v3  ;;  %v935_v12 = vld [vmem:[#allocation5 + $0x1938] sm:$0xff]  ;;  %v12725_v40 = vcombine.low %v695_v44, %v703_v32  ;;  %v12709_v25 = vcombine.low %v679_v50, %v687_v57 }
 0x428   :  { %7733 = vmatprep.subr.bf16.mxu1 %v13014_v21  ;;  %v943_v24 = vld [vmem:[#allocation5 + $0x1978] sm:$0xff]  ;;  %v12710_v21 = vcombine.high %v679_v50, %v687_v57 }
 0x429   :  { %15692 = vst [vmem:[#allocation50_spill] sm:$0xff] %v15161_v51  ;;  %7691 = vmatpush1.bf16.msra.mxu0 %v12757_v19  ;;  %v12966_v14 = vcombine.high %v935_v12, %v943_v24  ;;  %v663_v3 = vld [vmem:[#allocation5 + $0x10b8] sm:$0xff]  ;;  %v12965_v31 = vcombine.low %v935_v12, %v943_v24 }
 0x42a   :  { %7692 = vmatprep.subr.bf16.mxu0 %v12742_v58  ;;  %v671_v9 = vld [vmem:[#allocation5 + $0x10f8] sm:$0xff] }
 0x42b   :  { %7734 = vmatpush1.bf16.msra.mxu1 %v13013_v8  ;;  %v919_v0 = vld [vmem:[#allocation5 + $0x18b8] sm:$0xff]  ;;  %v12694_v15 = vcombine.high %v663_v3, %v671_v9  ;;  %v12693_v35 = vcombine.low %v663_v3, %v671_v9 }
 0x42c   :  { %7735 = vmatprep.subr.bf16.mxu1 %v12998_v43  ;;  %v927_v19 = vld [vmem:[#allocation5 + $0x18f8] sm:$0xff] }
 0x42d   :  { %7693 = vmatpush1.bf16.msra.mxu0 %v12741_v26  ;;  %v12950_v8 = vcombine.high %v919_v0, %v927_v19  ;;  %v647_v58 = vld [vmem:[#allocation5 + $0x1038] sm:$0xff]  ;;  %v12949_v36 = vcombine.low %v919_v0, %v927_v19 }
 0x42e   :  { %7694 = vmatprep.subr.bf16.mxu0 %v12726_v53  ;;  %v655_v43 = vld [vmem:[#allocation5 + $0x1078] sm:$0xff] }
 0x42f   :  { %7736 = vmatpush1.bf16.msra.mxu1 %v12997_v33  ;;  %v903_v44 = vld [vmem:[#allocation5 + $0x1838] sm:$0xff]  ;;  %v12678_v26 = vcombine.high %v647_v58, %v655_v43  ;;  %v12677_v12 = vcombine.low %v647_v58, %v655_v43 }
 0x430   :  { %7737 = vmatprep.subr.bf16.mxu1 %v12982_v18  ;;  %v911_v32 = vld [vmem:[#allocation5 + $0x1878] sm:$0xff] }
 0x431   :  { %7695 = vmatpush1.bf16.msra.mxu0 %v12725_v40  ;;  %v12934_v33 = vcombine.high %v903_v44, %v911_v32  ;;  %v887_v53 = vld [vmem:[#allocation5 + $0x17b8] sm:$0xff]  ;;  %v12933_v24 = vcombine.low %v903_v44, %v911_v32 }
 0x432   :  { %7696 = vmatprep.subr.bf16.mxu0 %v12710_v21  ;;  %v895_v18 = vld [vmem:[#allocation5 + $0x17f8] sm:$0xff] }
 0x433   :  { %7738 = vmatpush1.bf16.msra.mxu1 %v12981_v56  ;;  %v1143_v50 = vld [vmem:[#allocation5 + $0x1fb8] sm:$0xff]  ;;  %v12918_v40 = vcombine.high %v887_v53, %v895_v18  ;;  %v12917_v0 = vcombine.low %v887_v53, %v895_v18 }
 0x434   :  { %7739 = vmatprep.subr.bf16.mxu1 %v12966_v14  ;;  %v1151_v57 = vld [vmem:[#allocation5 + $0x1ff8] sm:$0xff] }
 0x435   :  { %7697 = vmatpush1.bf16.msra.mxu0 %v12709_v25  ;;  %v13174_v56 = vcombine.high %v1143_v50, %v1151_v57  ;;  %v871_v21 = vld [vmem:[#allocation5 + $0x1738] sm:$0xff]  ;;  %v13173_v19 = vcombine.low %v1143_v50, %v1151_v57 }
 0x436   :  { %7698 = vmatprep.subr.bf16.mxu0 %v12694_v15  ;;  %v879_v14 = vld [vmem:[#allocation5 + $0x1778] sm:$0xff] }
 0x437   :  { %7740 = vmatpush1.bf16.msra.mxu1 %v12965_v31  ;;  %v1127_v3 = vld [vmem:[#allocation5 + $0x1f38] sm:$0xff]  ;;  %v12902_v25 = vcombine.high %v871_v21, %v879_v14  ;;  %v12901_v44 = vcombine.low %v871_v21, %v879_v14  ;;  %v15164_v21 = vsub.s32 1, %v14937_v4 }
 0x438   :  { %7741 = vmatprep.subr.bf16.mxu1 %v12950_v8  ;;  %v1135_v9 = vld [vmem:[#allocation5 + $0x1f78] sm:$0xff] }
 0x439   :  { %7699 = vmatpush1.bf16.msra.mxu0 %v12693_v35  ;;  %v13158_v31 = vcombine.high %v1127_v3, %v1135_v9  ;;  %v855_v15 = vld [vmem:[#allocation5 + $0x16b8] sm:$0xff]  ;;  %v13157_v32 = vcombine.low %v1127_v3, %v1135_v9  ;;  %15693 = vst [vmem:[#allocation51_spill] sm:$0xff] %v15164_v21  ;;  %v15167_v9 = vsub.s32 3, %v14937_v4 }
 0x43a   :  { %7700 = vmatprep.subr.bf16.mxu0 %v12678_v26  ;;  %v863_v8 = vld [vmem:[#allocation5 + $0x16f8] sm:$0xff] }
 0x43b   :  { %7742 = vmatpush1.bf16.msra.mxu1 %v12949_v36  ;;  %v1111_v58 = vld [vmem:[#allocation5 + $0x1eb8] sm:$0xff]  ;;  %v12886_v35 = vcombine.high %v855_v15, %v863_v8  ;;  %v12885_v50 = vcombine.low %v855_v15, %v863_v8  ;;  %15694 = vst [vmem:[#allocation52_spill] sm:$0xff] %v15167_v9 }
 0x43c   :  { %7743 = vmatprep.subr.bf16.mxu1 %v12934_v33  ;;  %v1119_v43 = vld [vmem:[#allocation5 + $0x1ef8] sm:$0xff] }
 0x43d   :  { %7701 = vmatpush1.bf16.msra.mxu0 %v12677_v12  ;;  %v13142_v36 = vcombine.high %v1111_v58, %v1119_v43  ;;  %v839_v26 = vld [vmem:[#allocation5 + $0x1638] sm:$0xff]  ;;  %v13141_v57 = vcombine.low %v1111_v58, %v1119_v43  ;;  %v15169_v58 = vld [vmem:[#allocation7] sm:$0xff] }
 0x43e   :  { %7702 = vmatprep.subr.bf16.mxu0 %v12918_v40  ;;  %v847_v33 = vld [vmem:[#allocation5 + $0x1678] sm:$0xff]  ;;  %v1163_v43 = vrot.slane %v15169_v58, %v15164_v21 }
 0x43f   :  { %7744 = vmatpush1.bf16.msra.mxu1 %v12933_v24  ;;  %v1095_v53 = vld [vmem:[#allocation5 + $0x1e38] sm:$0xff]  ;;  %v12870_v12 = vcombine.high %v839_v26, %v847_v33 }
 0x440   :  { %7745 = vmatprep.subr.bf16.mxu1 %v13174_v56  ;;  %v1103_v18 = vld [vmem:[#allocation5 + $0x1e78] sm:$0xff] }
 0x441   :  { %7703 = vmatpush2.bf16.msra.mxu0 %v12917_v0  ;;  %v13126_v24 = vcombine.high %v1095_v53, %v1103_v18  ;;  %v823_v40 = vld [vmem:[#allocation5 + $0x15b8] sm:$0xff]  ;;  %v12869_v0 = vcombine.low %v839_v26, %v847_v33  ;;  %v6437_v26 = vadd.f32 %v14955_v7, %v1163_v43 }
 0x442   :  { %7704 = vmatprep.subr.bf16.mxu0 %v12902_v25  ;;  %v831_v56 = vld [vmem:[#allocation5 + $0x15f8] sm:$0xff] }
 0x443   :  { %7746 = vmatpush2.bf16.msra.mxu1 %v13173_v19  ;;  %v1079_v14 = vld [vmem:[#allocation5 + $0x1db8] sm:$0xff]  ;;  %v13125_v19 = vcombine.low %v1095_v53, %v1103_v18  ;;  %v12854_v25 = vcombine.high %v823_v40, %v831_v56  ;;  %v6480_v7 = vadd.f32 %v14957_v13, %v6437_v26 }
 0x444   :  { %7747 = vmatprep.subr.bf16.mxu1 %v13158_v31  ;;  %v1087_v3 = vld [vmem:[#allocation5 + $0x1df8] sm:$0xff] }
 0x445   :  { %7705 = vmatpush2.bf16.msra.mxu0 %v12901_v44  ;;  %v13110_v31 = vcombine.high %v1079_v14, %v1087_v3  ;;  %v807_v15 = vld [vmem:[#allocation5 + $0x1538] sm:$0xff]  ;;  %v13109_v33 = vcombine.low %v1079_v14, %v1087_v3 }
 0x446   :  { %7706 = vmatprep.subr.bf16.mxu0 %v12886_v35  ;;  %v815_v8 = vld [vmem:[#allocation5 + $0x1578] sm:$0xff]  ;;  %v1171_v35 = vrot.slane %v15169_v58, %v15167_v9 }
 0x447   :  { %7748 = vmatpush2.bf16.msra.mxu1 %v13157_v32  ;;  %v1063_v44 = vld [vmem:[#allocation5 + $0x1d38] sm:$0xff]  ;;  %v12838_v53 = vcombine.high %v807_v15, %v815_v8 }
 0x448   :  { %7749 = vmatprep.subr.bf16.mxu1 %v13142_v36  ;;  %v1071_v32 = vld [vmem:[#allocation5 + $0x1d78] sm:$0xff]  ;;  %v12853_v36 = vcombine.low %v823_v40, %v831_v56  ;;  %v6609_v18 = vadd.f32 %v14996_v41, %v1171_v35  ;;  %v6605_v28 = vadd.f32 %v14986_v29, %v1171_v35  ;;  %v12837_v40 = vcombine.low %v807_v15, %v815_v8 }
 0x449   :  { %7707 = vmatpush2.bf16.msra.mxu0 %v12885_v50  ;;  %v13094_v50 = vcombine.high %v1063_v44, %v1071_v32  ;;  %v1047_v51 = vld [vmem:[#allocation5 + $0x1cb8] sm:$0xff]  ;;  %v13093_v56 = vcombine.low %v1063_v44, %v1071_v32 }
 0x44a   :  { %7708 = vmatprep.subr.bf16.mxu0 %v12870_v12  ;;  %v799_v12 = vld [vmem:[#allocation5 + $0x14f8] sm:$0xff]  ;;  %v6652_v41 = vadd.f32 %v14998_v49, %v6609_v18  ;;  %v6648_v15 = vadd.f32 %v14990_v45, %v6605_v28 }
 0x44b   :  { %7750 = vmatpush2.bf16.msra.mxu1 %v13141_v57  ;;  %v791_v57 = vld [vmem:[#allocation5 + $0x14b8] sm:$0xff] }
 0x44c   :  { %7751 = vmatprep.subr.bf16.mxu1 %v13126_v24  ;;  %v6433_v24 = vadd.f32 %v14945_v39, %v1163_v43  ;;  %v1055_v27 = vld [vmem:[#allocation5 + $0x1cf8] sm:$0xff]  ;;  %v12822_v14 = vcombine.high %v791_v57, %v799_v12  ;;  %v6695_v13 = vadd.f32 %v15018_v42, %v6652_v41  ;;  %v12821_v8 = vcombine.low %v791_v57, %v799_v12  ;;  %v13792_v57 = vld [vmem:[#allocation8 + $0x2c0] ss:$16 sps:$4 sm:$0xff]   ;;  %v13797_v12 = vld [vmem:[#allocation8 + $0xa4] ss:$16 sps:$4 sm:$0xff]  }
 0x44d   :  { %7709 = vmatpush2.bf16.msra.mxu0 %v12869_v0  ;;  %v13078_v3 = vcombine.high %v1047_v51, %v1055_v27  ;;  %v775_v0 = vld [vmem:[#allocation5 + $0x1438] sm:$0xff]  ;;  %v13077_v49 = vcombine.low %v1047_v51, %v1055_v27  ;;  %v6691_v32 = vadd.f32 %v15003_v62, %v6648_v15  ;;  %v13788_v27 = vld [vmem:[#allocation8 + $0x2e4] ss:$16 sps:$4 sm:$0xff]  }
 0x44e   :  { %7710 = vmatprep.subr.bf16.mxu0 %v12854_v25  ;;  %v6476_v39 = vadd.f32 %v14949_v48, %v6433_v24  ;;  %v6523_v25 = vadd.f32 %v14980_v6, %v6480_v7  ;;  %v1039_v29 = vld [vmem:[#allocation5 + $0x1c78] sm:$0xff]  ;;  %v6738_v35 = vadd.f32 %v15020_v61, %v6695_v13  ;;  %v13786_v61 = vld [vmem:[#allocation8 + $0x2e0] ss:$16 sps:$4 sm:$0xff]   ;;  %v13806_v7 = vld [vmem:[#allocation8 + $0x284] ss:$16 sps:$4 sm:$0xff]  }
 0x44f   :  { %7752 = vmatpush2.bf16.msra.mxu1 %v13125_v19  ;;  %v783_v19 = vld [vmem:[#allocation5 + $0x1478] sm:$0xff]  ;;  %v13795_v24 = vld [vmem:[#allocation8 + $0xa0] ss:$16 sps:$4 sm:$0xff]   ;;  %v13809_v41 = vld [vmem:[#allocation8 + $0x64] ss:$16 sps:$4 sm:$0xff]  }
 0x450   :  { %7753 = vmatprep.subr.bf16.mxu1 %v13110_v31  ;;  %v1031_v31 = vld [vmem:[#allocation5 + $0x1c38] sm:$0xff]  ;;  %v6519_v43 = vadd.f32 %v14962_v22, %v6476_v39  ;;  %v12806_v44 = vcombine.high %v775_v0, %v783_v19  ;;  %v6566_v6 = vadd.f32 %v14982_v10, %v6523_v25  ;;  %v12805_v45 = vcombine.low %v775_v0, %v783_v19  ;;  %v13785_v22 = vld [vmem:[#allocation8 + $0xe4] ss:$16 sps:$4 sm:$0xff]   ;;  %v13783_v10 = vld [vmem:[#allocation8 + $0xe0] ss:$16 sps:$4 sm:$0xff]  }
 0x451   :  { %7711 = vmatpush2.bf16.msra.mxu0 %v12853_v36  ;;  %v13062_v48 = vcombine.high %v1031_v31, %v1039_v29  ;;  %v13061_v28 = vcombine.low %v1031_v31, %v1039_v29  ;;  %v6734_v36 = vadd.f32 %v15007_v5, %v6691_v32  ;;  %v15193_v62 = vmax.f32 %v6738_v35, 0.0  ;;  %v13807_v0 = vld [vmem:[#allocation8 + $0x60] ss:$16 sps:$4 sm:$0xff]   ;;  %v13815_v39 = vld [vmem:[#allocation8 + $0x44] ss:$16 sps:$4 sm:$0xff]  }
 0x452   :  { %7712 = vmatprep.subr.bf16.mxu0 %v12838_v53  ;;  %v6562_v42 = vadd.f32 %v14966_v59, %v6519_v43  ;;  %v15191_v51 = vmax.f32 %v6566_v6, 0.0  ;;  %v13794_v53 = vld [vmem:[#allocation8 + $0x2c4] ss:$16 sps:$4 sm:$0xff]   ;;  %v13810_v19 = vld [vmem:[#allocation8 + $0x260] ss:$16 sps:$4 sm:$0xff]  }
 0x453   :  { %7754 = vmatpush2.bf16.msra.mxu1 %v13109_v33  ;;  %v15197_v59 = vmax.f32 %v6734_v36, 0.0  ;;  %v13791_v33 = vld [vmem:[#allocation8 + $0xc4] ss:$16 sps:$4 sm:$0xff]   ;;  %v13813_v31 = vld [vmem:[#allocation8 + $0x40] ss:$16 sps:$4 sm:$0xff]  }
 0x454   :  { %7755 = vmatprep.subr.bf16.mxu1 %v13094_v50  ;;  %v15195_v26 = vmax.f32 %v6562_v42, 0.0  ;;  %v13789_v50 = vld [vmem:[#allocation8 + $0xc0] ss:$16 sps:$4 sm:$0xff]   ;;  %v13818_v25 = vld [vmem:[#allocation8 + $0x244] ss:$16 sps:$4 sm:$0xff]  }
 0x455   :  { %7713 = vmatpush2.bf16.msra.mxu0 %v12837_v40  ;;  %v15207_v18 = vpack.c.bf16 %v15193_v62, %v15197_v59  ;;  %v13803_v40 = vld [vmem:[#allocation8 + $0x84] ss:$16 sps:$4 sm:$0xff]   ;;  %v13816_v29 = vld [vmem:[#allocation8 + $0x240] ss:$16 sps:$4 sm:$0xff]  }
 0x456   :  { %7714 = vmatprep.subr.bf16.mxu0 %v12822_v14  ;;  %v15202_v5 = vpack.c.bf16 %v15191_v51, %v15195_v26  ;;  %v13804_v14 = vld [vmem:[#allocation8 + $0x280] ss:$16 sps:$4 sm:$0xff]   ;;  %v13821_v15 = vld [vmem:[#allocation8 + $0x24] ss:$16 sps:$4 sm:$0xff]  }
 0x457   :  { %7756 = vmatpush2.bf16.msra.mxu1 %v13093_v56  ;;  %v13801_v56 = vld [vmem:[#allocation8 + $0x80] ss:$16 sps:$4 sm:$0xff]   ;;  %v13824_v13 = vld [vmem:[#allocation8 + $0x224] ss:$16 sps:$4 sm:$0xff]  }
 0x458   :  { %7757 = vmatprep.subr.bf16.mxu1 %v13078_v3  ;;  %v13812_v3 = vld [vmem:[#allocation8 + $0x264] ss:$16 sps:$4 sm:$0xff]   ;;  %v13822_v43 = vld [vmem:[#allocation8 + $0x220] ss:$16 sps:$4 sm:$0xff]  }
 0x459   :  { %7715 = vmatpush2.bf16.msra.mxu0 %v12821_v8  ;;  %v13819_v8 = vld [vmem:[#allocation8 + $0x20] ss:$16 sps:$4 sm:$0xff]   ;;  %v13833_v6 = vld [vmem:[#allocation8 + $0x1e4] ss:$16 sps:$4 sm:$0xff]  }
 0x45a   :  { %7716 = vmatprep.subr.bf16.mxu0 %v12806_v44  ;;  %v13830_v44 = vld [vmem:[#allocation8 + $0x204] ss:$16 sps:$4 sm:$0xff]   ;;  %v13825_v32 = vld [vmem:[#allocation8] ss:$16 sps:$4 sm:$0xff]  }
 0x45b   :  { %7758 = vmatpush2.bf16.msra.mxu1 %v13077_v49  ;;  %v13827_v49 = vld [vmem:[#allocation8 + $0x4] ss:$16 sps:$4 sm:$0xff]   ;;  %v13834_v42 = vld [vmem:[#allocation8 + $0x3e0] ss:$16 sps:$4 sm:$0xff]  }
 0x45c   :  { %7759 = vmatprep.subr.bf16.mxu1 %v13062_v48  ;;  %v13828_v48 = vld [vmem:[#allocation8 + $0x200] ss:$16 sps:$4 sm:$0xff]   ;;  %v13836_v35 = vld [vmem:[#allocation8 + $0x3e4] ss:$16 sps:$4 sm:$0xff]  }
 0x45d   :  { %7717 = vmatpush2.bf16.msra.mxu0 %v12805_v45  ;;  %v13831_v45 = vld [vmem:[#allocation8 + $0x1e0] ss:$16 sps:$4 sm:$0xff]  }
 0x45e   :  { %10914 = vmatprep.subr.bf16.mxu0 %v13785_v22  ;;  %v13842_v22 = vld [vmem:[#allocation8 + $0x3c4] ss:$16 sps:$4 sm:$0xff]   ;;  %v13837_v36 = vld [vmem:[#allocation8 + $0x1c0] ss:$16 sps:$4 sm:$0xff]  }
 0x45f   :  { %7760 = vmatpush2.bf16.msra.mxu1 %v13061_v28  ;;  %v13839_v28 = vld [vmem:[#allocation8 + $0x1c4] ss:$16 sps:$4 sm:$0xff]  }
 0x460   :  { %10957 = vmatprep.subr.bf16.mxu1 %v13788_v27  ;;  %7719 = vmatmul.mubr.bf16.vlgmr.msra.gmra.mxu0 %v14923_v46  ;;  %v13800_v46 = vld [vmem:[#allocation8 + $0x2a4] ss:$16 sps:$4 sm:$0xff]   ;;  %v13840_v27 = vld [vmem:[#allocation8 + $0x3c0] ss:$16 sps:$4 sm:$0xff]  }
 0x461   :  { %10915 = vmatpush1.bf16.msra.mxu0 %v13783_v10  ;;  %10946 = vmatprep.mubr.bf16.mxu0 %v15202_v5  ;;  %v13845_v10 = vld [vmem:[#allocation8 + $0x1a4] ss:$16 sps:$4 sm:$0xff]  }
 0x462   :  { %7762 = vmatmul.mubr.bf16.vlgmr.msra.gmra.mxu1 %v14927_v47  ;;  %10916 = vmatprep.subr.bf16.mxu0 %v13791_v33  ;;  %v13798_v47 = vld [vmem:[#allocation8 + $0x2a0] ss:$16 sps:$4 sm:$0xff]  }
 0x463   :  { %10958 = vmatpush1.bf16.msra.mxu1 %v13786_v61  ;;  %10989 = vmatprep.mubr.bf16.mxu1 %v15207_v18  ;;  %v13848_v61 = vld [vmem:[#allocation8 + $0x3a4] ss:$16 sps:$4 sm:$0xff]   ;;  %v13843_v33 = vld [vmem:[#allocation8 + $0x1a0] ss:$16 sps:$4 sm:$0xff]  }
 0x464   :  { %10959 = vmatprep.subr.bf16.mxu1 %v13794_v53  ;;  %v13846_v53 = vld [vmem:[#allocation8 + $0x3a0] ss:$16 sps:$4 sm:$0xff]  }
 0x465   :  { %10917 = vmatpush1.bf16.msra.mxu0 %v13789_v50  ;;  %v13851_v50 = vld [vmem:[#allocation8 + $0x184] ss:$16 sps:$4 sm:$0xff]  }
 0x466   :  { %10918 = vmatprep.subr.bf16.mxu0 %v13797_v12  ;;  %v15652_v12 = vsub.s32 5, %v14937_v4 }
 0x467   :  { %10960 = vmatpush1.bf16.msra.mxu1 %v13792_v57  ;;  %v13854_v57 = vld [vmem:[#allocation8 + $0x384] ss:$16 sps:$4 sm:$0xff]  }
 0x468   :  { %10961 = vmatprep.subr.bf16.mxu1 %v13800_v46  ;;  %v15651_v46 = vsub.s32 7, %v14937_v4 }
 0x469   :  { %10919 = vmatpush1.bf16.msra.mxu0 %v13795_v24  ;;  %v13849_v24 = vld [vmem:[#allocation8 + $0x180] ss:$16 sps:$4 sm:$0xff]  }
 0x46a   :  { %10920 = vmatprep.subr.bf16.mxu0 %v13803_v40  ;;  %v13857_v40 = vld [vmem:[#allocation8 + $0x164] ss:$16 sps:$4 sm:$0xff]  }
 0x46b   :  { %10962 = vmatpush1.bf16.msra.mxu1 %v13798_v47  ;;  %v13852_v47 = vld [vmem:[#allocation8 + $0x380] ss:$16 sps:$4 sm:$0xff]  }
 0x46c   :  { %10963 = vmatprep.subr.bf16.mxu1 %v13806_v7  ;;  %v13860_v7 = vld [vmem:[#allocation8 + $0x364] ss:$16 sps:$4 sm:$0xff]  }
 0x46d   :  { %10921 = vmatpush1.bf16.msra.mxu0 %v13801_v56  ;;  %v1179_v56 = vrot.slane %v15169_v58, %v15652_v12 }
 0x46e   :  { %10922 = vmatprep.subr.bf16.mxu0 %v13809_v41  ;;  %v13855_v41 = vld [vmem:[#allocation8 + $0x160] ss:$16 sps:$4 sm:$0xff]  }
 0x46f   :  { %10964 = vmatpush1.bf16.msra.mxu1 %v13804_v14  ;;  %v1187_v14 = vrot.slane %v15169_v58, %v15651_v46 }
 0x470   :  { %10965 = vmatprep.subr.bf16.mxu1 %v13812_v3  ;;  %v6781_v3 = vadd.f32 %v15034_v34, %v1179_v56  ;;  %v13869_v34 = vld [vmem:[#allocation8 + $0x124] ss:$16 sps:$4 sm:$0xff]  }
 0x471   :  { %10923 = vmatpush1.bf16.msra.mxu0 %v13807_v0  ;;  %v13858_v0 = vld [vmem:[#allocation8 + $0x360] ss:$16 sps:$4 sm:$0xff]  }
 0x472   :  { %10924 = vmatprep.subr.bf16.mxu0 %v13815_v39  ;;  %v6953_v39 = vadd.f32 %v15071_v60, %v1187_v14  ;;  %v6824_v58 = vadd.f32 %v15036_v37, %v6781_v3  ;;  %v13879_v3 = vld [vmem:[#allocation8 + $0x4e0] ss:$16 sps:$4 sm:$0xff]  }
 0x473   :  { %10966 = vmatpush1.bf16.msra.mxu1 %v13810_v19  ;;  %v13863_v19 = vld [vmem:[#allocation8 + $0x144] ss:$16 sps:$4 sm:$0xff]  }
 0x474   :  { %10967 = vmatprep.subr.bf16.mxu1 %v13818_v25  ;;  %v13866_v25 = vld [vmem:[#allocation8 + $0x344] ss:$16 sps:$4 sm:$0xff]  }
 0x475   :  { %10925 = vmatpush1.bf16.msra.mxu0 %v13813_v31  ;;  %v6777_v31 = vadd.f32 %v15024_v1, %v1179_v56  ;;  %v15705_v56 = vld [vmem:[#allocation27_spill] sm:$0xff] }
 0x476   :  { %10926 = vmatprep.subr.bf16.mxu0 %v13821_v15  ;;  %v13861_v15 = vld [vmem:[#allocation8 + $0x140] ss:$16 sps:$4 sm:$0xff]  }
 0x477   :  { %10968 = vmatpush1.bf16.msra.mxu1 %v13816_v29  ;;  %v6949_v29 = vadd.f32 %v15061_v55, %v1187_v14  ;;  %v6820_v60 = vadd.f32 %v15028_v30, %v6777_v31  ;;  %v15247_v14 = vmax.f32 %v15705_v56, 0.0  ;;  %v13935_v56 = vld [vmem:[#allocation8 + $0x5c4] ss:$16 sps:$4 sm:$0xff]  }
 0x478   :  { %10969 = vmatprep.subr.bf16.mxu1 %v13824_v13  ;;  %v13864_v13 = vld [vmem:[#allocation8 + $0x340] ss:$16 sps:$4 sm:$0xff]  }
 0x479   :  { %10927 = vmatpush1.bf16.msra.mxu0 %v13819_v8  ;;  %v6996_v8 = vadd.f32 %v15073_v54, %v6953_v39  ;;  %v6992_v1 = vadd.f32 %v15065_v52, %v6949_v29  ;;  %v13873_v52 = vld [vmem:[#allocation8 + $0x100] ss:$16 sps:$4 sm:$0xff]   ;;  %v13887_v29 = vld [vmem:[#allocation8 + $0x4c4] ss:$16 sps:$4 sm:$0xff]  }
 0x47a   :  { %10928 = vmatprep.subr.bf16.mxu0 %v13827_v49  ;;  %v6867_v49 = vadd.f32 %v15055_v23, %v6824_v58  ;;  %v13882_v39 = vld [vmem:[#allocation8 + $0x6e0] ss:$16 sps:$4 sm:$0xff]   ;;  %v13890_v58 = vld [vmem:[#allocation8 + $0x6c4] ss:$16 sps:$4 sm:$0xff]  }
 0x47b   :  { %10970 = vmatpush1.bf16.msra.mxu1 %v13822_v43  ;;  %v13872_v43 = vld [vmem:[#allocation8 + $0x324] ss:$16 sps:$4 sm:$0xff]   ;;  %v7039_v55 = vadd.f32 %v15093_v11, %v6996_v8  ;;  %v13888_v8 = vld [vmem:[#allocation8 + $0x6c0] ss:$16 sps:$4 sm:$0xff]  }
 0x47c   :  { %10971 = vmatprep.subr.bf16.mxu1 %v13830_v44  ;;  %v13867_v44 = vld [vmem:[#allocation8 + $0x120] ss:$16 sps:$4 sm:$0xff]  }
 0x47d   :  { %10929 = vmatpush1.bf16.msra.mxu0 %v13825_v32  ;;  %v15695_v32 = vld [vmem:[#allocation29_spill] sm:$0xff] }
 0x47e   :  { %10930 = vmatprep.subr.bf16.mxu0 %v13833_v6  ;;  %v6863_v37 = vadd.f32 %v15695_v32, %v6820_v60  ;;  %v13875_v6 = vld [vmem:[#allocation8 + $0x104] ss:$16 sps:$4 sm:$0xff]   ;;  %v13897_v32 = vld [vmem:[#allocation8 + $0x480] ss:$16 sps:$4 sm:$0xff]  }
 0x47f   :  { %10972 = vmatpush1.bf16.msra.mxu1 %v13828_v48  ;;  %v13870_v48 = vld [vmem:[#allocation8 + $0x320] ss:$16 sps:$4 sm:$0xff]   ;;  %v13896_v60 = vld [vmem:[#allocation8 + $0x6a4] ss:$16 sps:$4 sm:$0xff]  }
 0x480   :  { %10973 = vmatprep.subr.bf16.mxu1 %v13836_v35  ;;  %v15696_v35 = vld [vmem:[#allocation34_spill] sm:$0xff] }
 0x481   :  { %10931 = vmatpush2.bf16.msra.mxu0 %v13831_v45  ;;  %v7035_v54 = vadd.f32 %v15696_v35, %v6992_v1  ;;  %v13878_v45 = vld [vmem:[#allocation8 + $0x304] ss:$16 sps:$4 sm:$0xff]   ;;  %v13894_v1 = vld [vmem:[#allocation8 + $0x6a0] ss:$16 sps:$4 sm:$0xff]  }
 0x482   :  { %10932 = vmatprep.subr.bf16.mxu0 %v13839_v28  ;;  %v15698_v28 = vld [vmem:[#allocation38_spill] sm:$0xff] }
 0x483   :  { %10974 = vmatpush2.bf16.msra.mxu1 %v13834_v42  ;;  %v15697_v42 = vld [vmem:[#allocation33_spill] sm:$0xff]  ;;  %v7082_v23 = vadd.f32 %v15698_v28, %v7039_v55  ;;  %v13903_v35 = vld [vmem:[#allocation8 + $0x460] ss:$16 sps:$4 sm:$0xff]  }
 0x484   :  { %10975 = vmatprep.subr.bf16.mxu1 %v13842_v22  ;;  %v6910_v30 = vadd.f32 %v15697_v42, %v6867_v49  ;;  %v15699_v22 = vld [vmem:[#allocation25_spill] sm:$0xff]  ;;  %v13891_v49 = vld [vmem:[#allocation8 + $0x4a0] ss:$16 sps:$4 sm:$0xff]  }
 0x485   :  { %10933 = vmatpush2.bf16.msra.mxu0 %v13837_v36  ;;  %v15234_v11 = vmax.f32 %v15699_v22, 0.0  ;;  %v15700_v36 = vld [vmem:[#allocation31_spill] sm:$0xff]  ;;  %v13912_v28 = vld [vmem:[#allocation8 + $0x640] ss:$16 sps:$4 sm:$0xff]  }
 0x486   :  { %10934 = vmatprep.subr.bf16.mxu0 %v13845_v10  ;;  %v13876_v10 = vld [vmem:[#allocation8 + $0x300] ss:$16 sps:$4 sm:$0xff]   ;;  %v13899_v55 = vld [vmem:[#allocation8 + $0x484] ss:$16 sps:$4 sm:$0xff]  }
 0x487   :  { %10976 = vmatpush2.bf16.msra.mxu1 %v13840_v27  ;;  %v6906_v27 = vadd.f32 %v15700_v36, %v6863_v37  ;;  %v13900_v37 = vld [vmem:[#allocation8 + $0x680] ss:$16 sps:$4 sm:$0xff]   ;;  %v13914_v42 = vld [vmem:[#allocation8 + $0x644] ss:$16 sps:$4 sm:$0xff]  }
 0x488   :  { %10977 = vmatprep.subr.bf16.mxu1 %v13848_v61  ;;  %v13881_v61 = vld [vmem:[#allocation8 + $0x4e4] ss:$16 sps:$4 sm:$0xff]   ;;  %v13915_v22 = vld [vmem:[#allocation8 + $0x420] ss:$16 sps:$4 sm:$0xff]  }
 0x489   :  { %10935 = vmatpush2.bf16.msra.mxu0 %v13843_v33  ;;  %v15701_v33 = vld [vmem:[#allocation28_spill] sm:$0xff] }
 0x48a   :  { %10936 = vmatprep.subr.bf16.mxu0 %v13851_v50  ;;  %v15702_v50 = vld [vmem:[#allocation36_spill] sm:$0xff] }
 0x48b   :  { %10978 = vmatpush2.bf16.msra.mxu1 %v13846_v53  ;;  %v15238_v53 = vmax.f32 %v15701_v33, 0.0  ;;  %v13918_v36 = vld [vmem:[#allocation8 + $0x620] ss:$16 sps:$4 sm:$0xff]  }
 0x48c   :  { %10979 = vmatprep.subr.bf16.mxu1 %v13854_v57  ;;  %v7078_v57 = vadd.f32 %v15702_v50, %v7035_v54  ;;  %v13906_v54 = vld [vmem:[#allocation8 + $0x660] ss:$16 sps:$4 sm:$0xff]   ;;  %v13929_v50 = vld [vmem:[#allocation8 + $0x5e4] ss:$16 sps:$4 sm:$0xff]  }
 0x48d   :  { %10937 = vmatpush2.bf16.msra.mxu0 %v13849_v24  ;;  %v13884_v24 = vld [vmem:[#allocation8 + $0x6e4] ss:$16 sps:$4 sm:$0xff]   ;;  %v13924_v33 = vld [vmem:[#allocation8 + $0x600] ss:$16 sps:$4 sm:$0xff]  }
 0x48e   :  { %10938 = vmatprep.subr.bf16.mxu0 %v13857_v40  ;;  %v15261_v31 = vmax.f32 %v7078_v57, 0.0  ;;  %v13932_v57 = vld [vmem:[#allocation8 + $0x7e4] ss:$16 sps:$4 sm:$0xff]  }
 0x48f   :  { %10980 = vmatpush2.bf16.msra.mxu1 %v13852_v47  ;;  %v15703_v47 = vld [vmem:[#allocation24_spill] sm:$0xff] }
 0x490   :  { %10981 = vmatprep.subr.bf16.mxu1 %v13860_v7  ;;  %v15242_v40 = vmax.f32 %v15703_v47, 0.0  ;;  %v15244_v7 = vmax.f32 %v6910_v30, 0.0  ;;  %v13909_v30 = vld [vmem:[#allocation8 + $0x440] ss:$16 sps:$4 sm:$0xff]  }
 0x491   :  { %10939 = vmatpush2.bf16.msra.mxu0 %v13855_v41  ;;  %v15249_v41 = vmax.f32 %v7082_v23, 0.0  ;;  %v13917_v23 = vld [vmem:[#allocation8 + $0x424] ss:$16 sps:$4 sm:$0xff]   ;;  %v13930_v47 = vld [vmem:[#allocation8 + $0x7e0] ss:$16 sps:$4 sm:$0xff]  }
 0x492   :  { %10940 = vmatprep.subr.bf16.mxu0 %v13863_v19  ;;  %15704 = vst [vmem:[#allocation29_spill] sm:$0xff] %v15244_v7  ;;  %v15255_v19 = vmax.f32 %v6906_v27, 0.0  ;;  %v13923_v27 = vld [vmem:[#allocation8 + $0x404] ss:$16 sps:$4 sm:$0xff]  }
 0x493   :  { %10982 = vmatpush2.bf16.msra.mxu1 %v13858_v0  ;;  %v15253_v0 = vpack.c.bf16 %v15234_v11, %v15242_v40 }
 0x494   :  { %10983 = vmatprep.subr.bf16.mxu1 %v13866_v25  ;;  %v15259_v25 = vpack.c.bf16 %v15238_v53, %v15247_v14 }
 0x495   :  { %10941 = vmatpush2.bf16.msra.mxu0 %v13861_v15  ;;  %v15266_v15 = vpack.c.bf16 %v15244_v7, %v15255_v19 }
 0x496   :  { %10942 = vmatprep.subr.bf16.mxu0 %v13869_v34  ;;  %v13885_v34 = vld [vmem:[#allocation8 + $0x4c0] ss:$16 sps:$4 sm:$0xff]  }
 0x497   :  { %10984 = vmatpush2.bf16.msra.mxu1 %v13864_v13  ;;  %v15271_v13 = vpack.c.bf16 %v15249_v41, %v15261_v31 }
 0x498   :  { %10985 = vmatprep.subr.bf16.mxu1 %v13872_v43  ;;  %v13893_v43 = vld [vmem:[#allocation8 + $0x4a4] ss:$16 sps:$4 sm:$0xff]  }
 0x499   :  { %10943 = vmatpush2.bf16.msra.mxu0 %v13867_v44  ;;  %v13902_v44 = vld [vmem:[#allocation8 + $0x684] ss:$16 sps:$4 sm:$0xff]  }
 0x49a   :  { %10944 = vmatprep.subr.bf16.mxu0 %v13875_v6  ;;  %v13908_v6 = vld [vmem:[#allocation8 + $0x664] ss:$16 sps:$4 sm:$0xff]  }
 0x49b   :  { %10986 = vmatpush2.bf16.msra.mxu1 %v13870_v48  ;;  %v13905_v48 = vld [vmem:[#allocation8 + $0x464] ss:$16 sps:$4 sm:$0xff]  }
 0x49c   :  { %10987 = vmatprep.subr.bf16.mxu1 %v13878_v45  ;;  %v13911_v45 = vld [vmem:[#allocation8 + $0x444] ss:$16 sps:$4 sm:$0xff]  }
 0x49d   :  { %10945 = vmatpush2.bf16.msra.mxu0 %v13873_v52  ;;  %v13920_v52 = vld [vmem:[#allocation8 + $0x624] ss:$16 sps:$4 sm:$0xff]  }
 0x49e   :  { %11000 = vmatprep.subr.bf16.mxu0 %v13881_v61  ;;  %v13921_v61 = vld [vmem:[#allocation8 + $0x400] ss:$16 sps:$4 sm:$0xff]  }
 0x49f   :  { %10988 = vmatpush2.bf16.msra.mxu1 %v13876_v10  ;;  %v13926_v10 = vld [vmem:[#allocation8 + $0x604] ss:$16 sps:$4 sm:$0xff]  }
 0x4a0   :  { %11043 = vmatprep.subr.bf16.mxu1 %v13884_v24  ;;  %10947 = vmatmul.mubr.bf16.vlgmr.msra.gmra.mxu0 %v15253_v0  ;;  %v13927_v24 = vld [vmem:[#allocation8 + $0x5e0] ss:$16 sps:$4 sm:$0xff]  }
 0x4a1   :  { %11001 = vmatpush1.bf16.msra.mxu0 %v13879_v3  ;;  %11032 = vmatprep.mubr.bf16.mxu0 %v15266_v15  ;;  %v13938_v3 = vld [vmem:[#allocation8 + $0x7c4] ss:$16 sps:$4 sm:$0xff]  }
 0x4a2   :  { %10990 = vmatmul.mubr.bf16.vlgmr.msra.gmra.mxu1 %v15259_v25  ;;  %11002 = vmatprep.subr.bf16.mxu0 %v13887_v29  ;;  %v13936_v29 = vld [vmem:[#allocation8 + $0x7c0] ss:$16 sps:$4 sm:$0xff]  }
 0x4a3   :  { %11044 = vmatpush1.bf16.msra.mxu1 %v13882_v39  ;;  %11075 = vmatprep.mubr.bf16.mxu1 %v15271_v13  ;;  %v13933_v39 = vld [vmem:[#allocation8 + $0x5c0] ss:$16 sps:$4 sm:$0xff]  }
 0x4a4   :  { %11045 = vmatprep.subr.bf16.mxu1 %v13890_v58  ;;  %v13941_v58 = vld [vmem:[#allocation8 + $0x5a4] ss:$16 sps:$4 sm:$0xff]  }
 0x4a5   :  { %11003 = vmatpush1.bf16.msra.mxu0 %v13885_v34  ;;  %v13944_v34 = vld [vmem:[#allocation8 + $0x7a4] ss:$16 sps:$4 sm:$0xff]  }
 0x4a6   :  { %11004 = vmatprep.subr.bf16.mxu0 %v13893_v43  ;;  %v13942_v43 = vld [vmem:[#allocation8 + $0x7a0] ss:$16 sps:$4 sm:$0xff]  }
 0x4a7   :  { %11046 = vmatpush1.bf16.msra.mxu1 %v13888_v8  ;;  %v13939_v8 = vld [vmem:[#allocation8 + $0x5a0] ss:$16 sps:$4 sm:$0xff]  }
 0x4a8   :  { %11047 = vmatprep.subr.bf16.mxu1 %v13896_v60  ;;  %v13947_v60 = vld [vmem:[#allocation8 + $0x584] ss:$16 sps:$4 sm:$0xff]  }
 0x4a9   :  { %11005 = vmatpush1.bf16.msra.mxu0 %v13891_v49  ;;  %v13950_v49 = vld [vmem:[#allocation8 + $0x784] ss:$16 sps:$4 sm:$0xff]  }
 0x4aa   :  { %11006 = vmatprep.subr.bf16.mxu0 %v13899_v55  ;;  %v13948_v55 = vld [vmem:[#allocation8 + $0x780] ss:$16 sps:$4 sm:$0xff]  }
 0x4ab   :  { %11048 = vmatpush1.bf16.msra.mxu1 %v13894_v1  ;;  %v13945_v1 = vld [vmem:[#allocation8 + $0x580] ss:$16 sps:$4 sm:$0xff]  }
 0x4ac   :  { %11049 = vmatprep.subr.bf16.mxu1 %v13902_v44  ;;  %v13953_v44 = vld [vmem:[#allocation8 + $0x564] ss:$16 sps:$4 sm:$0xff]  }
 0x4ad   :  { %11007 = vmatpush1.bf16.msra.mxu0 %v13897_v32  ;;  %v13956_v32 = vld [vmem:[#allocation8 + $0x764] ss:$16 sps:$4 sm:$0xff]  }
 0x4ae   :  { %11008 = vmatprep.subr.bf16.mxu0 %v13905_v48 }
 0x4af   :  { %11050 = vmatpush1.bf16.msra.mxu1 %v13900_v37  ;;  %v15275_v37 = vld [vmem:[#allocation7 + $0x8] sm:$0xff] }
 0x4b0   :  { %11051 = vmatprep.subr.bf16.mxu1 %v13908_v6  ;;  %v1195_v48 = vrot.slane %v15275_v37, %v15164_v21  ;;  %v1203_v6 = vrot.slane %v15275_v37, %v15167_v9 }
 0x4b1   :  { %11009 = vmatpush1.bf16.msra.mxu0 %v13903_v35  ;;  %v13951_v35 = vld [vmem:[#allocation8 + $0x560] ss:$16 sps:$4 sm:$0xff]  }
 0x4b2   :  { %11010 = vmatprep.subr.bf16.mxu0 %v13911_v45  ;;  %v13954_v45 = vld [vmem:[#allocation8 + $0x760] ss:$16 sps:$4 sm:$0xff]  }
 0x4b3   :  { %11052 = vmatpush1.bf16.msra.mxu1 %v13906_v54  ;;  %v7125_v54 = vadd.f32 %v15109_v20, %v1195_v48  ;;  %v13960_v20 = vld [vmem:[#allocation8 + $0x740] ss:$16 sps:$4 sm:$0xff]  }
 0x4b4   :  { %11053 = vmatprep.subr.bf16.mxu1 %v13914_v42  ;;  %v13959_v42 = vld [vmem:[#allocation8 + $0x544] ss:$16 sps:$4 sm:$0xff]  }
 0x4b5   :  { %11011 = vmatpush1.bf16.msra.mxu0 %v13909_v30  ;;  %v7297_v30 = vadd.f32 %v15145_v63, %v1203_v6  ;;  %v15708_v63 = vld [vmem:[#allocation40_spill] sm:$0xff] }
 0x4b6   :  { %11012 = vmatprep.subr.bf16.mxu0 %v13917_v23  ;;  %v15706_v23 = vld [vmem:[#allocation39_spill] sm:$0xff] }
 0x4b7   :  { %11054 = vmatpush1.bf16.msra.mxu1 %v13912_v28  ;;  %v13962_v28 = vld [vmem:[#allocation8 + $0x744] ss:$16 sps:$4 sm:$0xff]  }
 0x4b8   :  { %11055 = vmatprep.subr.bf16.mxu1 %v13920_v52  ;;  %v7121_v52 = vadd.f32 %v15706_v23, %v1195_v48  ;;  %v15714_v48 = vld [vmem:[#allocation44_spill] sm:$0xff]  ;;  %v15718_v23 = vld [vmem:[#allocation30_spill] sm:$0xff] }
 0x4b9   :  { %11013 = vmatpush1.bf16.msra.mxu0 %v13915_v22  ;;  %v7293_v22 = vadd.f32 %v15135_v38, %v1203_v6 }
 0x4ba   :  { %11014 = vmatprep.subr.bf16.mxu0 %v13923_v27  ;;  %v15707_v27 = vld [vmem:[#allocation41_spill] sm:$0xff] }
 0x4bb   :  { %11056 = vmatpush1.bf16.msra.mxu1 %v13918_v36  ;;  %v13957_v36 = vld [vmem:[#allocation8 + $0x540] ss:$16 sps:$4 sm:$0xff]  }
 0x4bc   :  { %11057 = vmatprep.subr.bf16.mxu1 %v13926_v10  ;;  %v7168_v10 = vadd.f32 %v15707_v27, %v7125_v54  ;;  %v13977_v54 = vld [vmem:[#allocation8 + $0x8e4] ss:$16 sps:$4 sm:$0xff]  }
 0x4bd   :  { %11015 = vmatpush1.bf16.msra.mxu0 %v13921_v61  ;;  %v7382_v61 = vpop.f32.mrf.mxu0 }
 0x4be   :  { %11016 = vmatprep.subr.bf16.mxu0 %v13929_v50  ;;  %v7340_v50 = vadd.f32 %v15147_v17, %v7297_v30  ;;  %v13974_v17 = vld [vmem:[#allocation8 + $0x704] ss:$16 sps:$4 sm:$0xff]  }
 0x4bf   :  { %11058 = vmatpush1.bf16.msra.mxu1 %v13924_v33  ;;  %v13965_v33 = vld [vmem:[#allocation8 + $0x524] ss:$16 sps:$4 sm:$0xff]  }
 0x4c0   :  { %11059 = vmatprep.subr.bf16.mxu1 %v13932_v57  ;;  %v13968_v57 = vld [vmem:[#allocation8 + $0x724] ss:$16 sps:$4 sm:$0xff]   ;;  %v7383_v38 = vadd.f32 %v7382_v61, %v7340_v50  ;;  %v13975_v61 = vld [vmem:[#allocation8 + $0x8e0] ss:$16 sps:$4 sm:$0xff]  }
 0x4c1   :  { %11017 = vmatpush2.bf16.msra.mxu0 %v13927_v24  ;;  %v7164_v24 = vadd.f32 %v15708_v63, %v7121_v52  ;;  %v15302_v52 = vmax.f32 %v15718_v23, 0.0  ;;  %v13978_v50 = vld [vmem:[#allocation8 + $0xae0] ss:$16 sps:$4 sm:$0xff]  }
 0x4c2   :  { %11018 = vmatprep.subr.bf16.mxu0 %v13935_v56  ;;  %v15709_v56 = vld [vmem:[#allocation47_spill] sm:$0xff]  ;;  %v14014_v23 = vld [vmem:[#allocation8 + $0xa20] ss:$16 sps:$4 sm:$0xff]  }
 0x4c3   :  { %11060 = vmatpush2.bf16.msra.mxu1 %v13930_v47  ;;  %v7211_v47 = vadd.f32 %v15129_v2, %v7168_v10  ;;  %v13969_v2 = vld [vmem:[#allocation8 + $0x500] ss:$16 sps:$4 sm:$0xff]  }
 0x4c4   :  { %11061 = vmatprep.subr.bf16.mxu1 %v13938_v3  ;;  %v7336_v3 = vadd.f32 %v15709_v56, %v7293_v22  ;;  %v13986_v56 = vld [vmem:[#allocation8 + $0xac4] ss:$16 sps:$4 sm:$0xff]  }
 0x4c5   :  { %11019 = vmatpush2.bf16.msra.mxu0 %v13933_v39  ;;  %v13963_v39 = vld [vmem:[#allocation8 + $0x520] ss:$16 sps:$4 sm:$0xff]  }
 0x4c6   :  { %11020 = vmatprep.subr.bf16.mxu0 %v13941_v58 }
 0x4c7   :  { %11062 = vmatpush2.bf16.msra.mxu1 %v13936_v29  ;;  %v15710_v29 = vld [vmem:[#allocation42_spill] sm:$0xff] }
 0x4c8   :  { %11063 = vmatprep.subr.bf16.mxu1 %v13944_v34  ;;  %v7207_v58 = vadd.f32 %v15710_v29, %v7164_v24  ;;  %v13966_v34 = vld [vmem:[#allocation8 + $0x720] ss:$16 sps:$4 sm:$0xff]   ;;  %v13983_v24 = vld [vmem:[#allocation8 + $0x8c4] ss:$16 sps:$4 sm:$0xff]  }
 0x4c9   :  { %11021 = vmatpush2.bf16.msra.mxu0 %v13939_v8  ;;  %v13971_v8 = vld [vmem:[#allocation8 + $0x504] ss:$16 sps:$4 sm:$0xff]  }
 0x4ca   :  { %11022 = vmatprep.subr.bf16.mxu0 %v13947_v60  ;;  %v15711_v60 = vld [vmem:[#allocation46_spill] sm:$0xff]  ;;  %v7250_v6 = vadd.f32 %v15714_v48, %v7207_v58 }
 0x4cb   :  { %11064 = vmatpush2.bf16.msra.mxu1 %v13942_v43  ;;  %v7379_v43 = vadd.f32 %v15152_v16, %v7336_v3  ;;  %v15717_v16 = vld [vmem:[#allocation49_spill] sm:$0xff] }
 0x4cc   :  { %11065 = vmatprep.subr.bf16.mxu1 %v13950_v49  ;;  %v7254_v49 = vadd.f32 %v15711_v60, %v7211_v47  ;;  %v13989_v29 = vld [vmem:[#allocation8 + $0x8a4] ss:$16 sps:$4 sm:$0xff]   ;;  %v13993_v60 = vld [vmem:[#allocation8 + $0x880] ss:$16 sps:$4 sm:$0xff]  }
 0x4cd   :  { %11023 = vmatpush2.bf16.msra.mxu0 %v13945_v1  ;;  %v7425_v1 = vpop.f32.mrf.mxu1  ;;  %v7422_v30 = vadd.f32 %v15717_v16, %v7379_v43  ;;  %v13992_v58 = vld [vmem:[#allocation8 + $0xaa4] ss:$16 sps:$4 sm:$0xff]  }
 0x4ce   :  { %11024 = vmatprep.subr.bf16.mxu0 %v13953_v44  ;;  %v15712_v44 = vld [vmem:[#allocation32_spill] sm:$0xff]  ;;  %v15304_v22 = vmax.f32 %v7254_v49, 0.0 }
 0x4cf   :  { %11066 = vmatpush2.bf16.msra.mxu1 %v13948_v55  ;;  %v7426_v55 = vadd.f32 %v7425_v1, %v7383_v38  ;;  %v15321_v63 = vmax.f32 %v7422_v30, 0.0  ;;  %v13981_v38 = vld [vmem:[#allocation8 + $0x8c0] ss:$16 sps:$4 sm:$0xff]   ;;  %v13995_v43 = vld [vmem:[#allocation8 + $0x884] ss:$16 sps:$4 sm:$0xff]  }
 0x4d0   :  { %11067 = vmatprep.subr.bf16.mxu1 %v13956_v32  ;;  %v15294_v32 = vmax.f32 %v15712_v44, 0.0  ;;  %v13996_v49 = vld [vmem:[#allocation8 + $0xa80] ss:$16 sps:$4 sm:$0xff]   ;;  %v14001_v1 = vld [vmem:[#allocation8 + $0x864] ss:$16 sps:$4 sm:$0xff]  }
 0x4d1   :  { %11025 = vmatpush2.bf16.msra.mxu0 %v13951_v35  ;;  %v13972_v35 = vld [vmem:[#allocation8 + $0x700] ss:$16 sps:$4 sm:$0xff]   ;;  %v15309_v10 = vmax.f32 %v7426_v55, 0.0  ;;  %v14004_v55 = vld [vmem:[#allocation8 + $0xa64] ss:$16 sps:$4 sm:$0xff]  }
 0x4d2   :  { %11026 = vmatprep.subr.bf16.mxu0 %v13959_v42  ;;  %15713 = vst [vmem:[#allocation34_spill] sm:$0xff] %v15294_v32  ;;  %v14002_v44 = vld [vmem:[#allocation8 + $0xa60] ss:$16 sps:$4 sm:$0xff]   ;;  %v14007_v48 = vld [vmem:[#allocation8 + $0x844] ss:$16 sps:$4 sm:$0xff]  }
 0x4d3   :  { %11068 = vmatpush2.bf16.msra.mxu1 %v13954_v45  ;;  %v15715_v45 = vld [vmem:[#allocation37_spill] sm:$0xff]  ;;  %v15331_v3 = vpack.c.bf16 %v15309_v10, %v15321_v63  ;;  %v14011_v30 = vld [vmem:[#allocation8 + $0x820] ss:$16 sps:$4 sm:$0xff]  }
 0x4d4   :  { %11069 = vmatprep.subr.bf16.mxu1 %v13962_v28  ;;  %v15298_v42 = vmax.f32 %v15715_v45, 0.0  ;;  %v13980_v28 = vld [vmem:[#allocation8 + $0xae4] ss:$16 sps:$4 sm:$0xff]  }
 0x4d5   :  { %11027 = vmatpush2.bf16.msra.mxu0 %v13957_v36  ;;  %v15719_v36 = vld [vmem:[#allocation35_spill] sm:$0xff]  ;;  %15723 = vst [vmem:[#allocation28_spill] sm:$0xff] %v15331_v3 }
 0x4d6   :  { %11028 = vmatprep.subr.bf16.mxu0 %v13965_v33  ;;  %15716 = vst [vmem:[#allocation33_spill] sm:$0xff] %v15298_v42  ;;  %v15307_v27 = vmax.f32 %v15719_v36, 0.0  ;;  %v15315_v33 = vmax.f32 %v7250_v6, 0.0  ;;  %v14010_v6 = vld [vmem:[#allocation8 + $0xa44] ss:$16 sps:$4 sm:$0xff]  }
 0x4d7   :  { %11070 = vmatpush2.bf16.msra.mxu1 %v13960_v20  ;;  %v15313_v20 = vpack.c.bf16 %v15294_v32, %v15302_v52  ;;  %v14013_v45 = vld [vmem:[#allocation8 + $0x824] ss:$16 sps:$4 sm:$0xff]  }
 0x4d8   :  { %11071 = vmatprep.subr.bf16.mxu1 %v13968_v57  ;;  %v15319_v57 = vpack.c.bf16 %v15298_v42, %v15307_v27  ;;  %v15326_v47 = vpack.c.bf16 %v15304_v22, %v15315_v33  ;;  %v14016_v16 = vld [vmem:[#allocation8 + $0xa24] ss:$16 sps:$4 sm:$0xff]  }
 0x4d9   :  { %11029 = vmatpush2.bf16.msra.mxu0 %v13963_v39  ;;  %15720 = vst [vmem:[#allocation38_spill] sm:$0xff] %v15313_v20  ;;  %v13984_v39 = vld [vmem:[#allocation8 + $0xac0] ss:$16 sps:$4 sm:$0xff]   ;;  %v14019_v36 = vld [vmem:[#allocation8 + $0x804] ss:$16 sps:$4 sm:$0xff]  }
 0x4da   :  { %11030 = vmatprep.subr.bf16.mxu0 %v13971_v8  ;;  %15721 = vst [vmem:[#allocation25_spill] sm:$0xff] %v15319_v57  ;;  %15722 = vst [vmem:[#allocation31_spill] sm:$0xff] %v15326_v47  ;;  %v13990_v8 = vld [vmem:[#allocation8 + $0xaa0] ss:$16 sps:$4 sm:$0xff]  }
 0x4db   :  { %11072 = vmatpush2.bf16.msra.mxu1 %v13966_v34  ;;  %v13987_v34 = vld [vmem:[#allocation8 + $0x8a0] ss:$16 sps:$4 sm:$0xff]  }
 0x4dc   :  { %11073 = vmatprep.subr.bf16.mxu1 %v13974_v17  ;;  %v13998_v17 = vld [vmem:[#allocation8 + $0xa84] ss:$16 sps:$4 sm:$0xff]  }
 0x4dd   :  { %11031 = vmatpush2.bf16.msra.mxu0 %v13969_v2  ;;  %v13999_v2 = vld [vmem:[#allocation8 + $0x860] ss:$16 sps:$4 sm:$0xff]  }
 0x4de   :  { %11086 = vmatprep.subr.bf16.mxu0 %v13977_v54  ;;  %v14008_v54 = vld [vmem:[#allocation8 + $0xa40] ss:$16 sps:$4 sm:$0xff]  }
 0x4df   :  { %11074 = vmatpush2.bf16.msra.mxu1 %v13972_v35  ;;  %v14005_v35 = vld [vmem:[#allocation8 + $0x840] ss:$16 sps:$4 sm:$0xff]  }
 0x4e0   :  { %11129 = vmatprep.subr.bf16.mxu1 %v13980_v28  ;;  %11033 = vmatmul.mubr.bf16.vlgmr.msra.gmra.mxu0 %v15313_v20  ;;  %v15335_v28 = vpop.f32.mrf.mxu0 }
 0x4e1   :  { %11087 = vmatpush1.bf16.msra.mxu0 %v13975_v61  ;;  %11118 = vmatprep.mubr.bf16.mxu0 %v15326_v47  ;;  %v15337_v61 = vpop.f32.mrf.mxu1 }
 0x4e2   :  { %11076 = vmatmul.mubr.bf16.vlgmr.msra.gmra.mxu1 %v15319_v57  ;;  %11088 = vmatprep.subr.bf16.mxu0 %v13983_v24  ;;  %v14017_v24 = vld [vmem:[#allocation8 + $0x800] ss:$16 sps:$4 sm:$0xff]   ;;  %v14055_v57 = vld [vmem:[#allocation8 + $0x944] ss:$16 sps:$4 sm:$0xff]  }
 0x4e3   :  { %11130 = vmatpush1.bf16.msra.mxu1 %v13978_v50  ;;  %11161 = vmatprep.mubr.bf16.mxu1 %v15331_v3  ;;  %v14022_v50 = vld [vmem:[#allocation8 + $0xa04] ss:$16 sps:$4 sm:$0xff]  }
 0x4e4   :  { %11131 = vmatprep.subr.bf16.mxu1 %v13986_v56  ;;  %v15339_v56 = vpop.f32.mrf.mxu0 }
 0x4e5   :  { %11089 = vmatpush1.bf16.msra.mxu0 %v13981_v38  ;;  %v14020_v38 = vld [vmem:[#allocation8 + $0xa00] ss:$16 sps:$4 sm:$0xff]  }
 0x4e6   :  { %11090 = vmatprep.subr.bf16.mxu0 %v13989_v29  ;;  %v15341_v29 = vpop.f32.mrf.mxu1 }
 0x4e7   :  { %11132 = vmatpush1.bf16.msra.mxu1 %v13984_v39  ;;  %v14025_v39 = vld [vmem:[#allocation8 + $0x9e4] ss:$16 sps:$4 sm:$0xff]  }
 0x4e8   :  { %11133 = vmatprep.subr.bf16.mxu1 %v13992_v58  ;;  %v14028_v58 = vld [vmem:[#allocation8 + $0xbe4] ss:$16 sps:$4 sm:$0xff]  }
 0x4e9   :  { %11091 = vmatpush1.bf16.msra.mxu0 %v13987_v34  ;;  %v11960_v34 = vmul.f32 %v15195_v26, %v15195_v26 }
 0x4ea   :  { %11092 = vmatprep.subr.bf16.mxu0 %v13995_v43  ;;  %v15345_v43 = vpop.f32.mrf.mxu0 }
 0x4eb   :  { %11134 = vmatpush1.bf16.msra.mxu1 %v13990_v8  ;;  %v14023_v8 = vld [vmem:[#allocation8 + $0x9e0] ss:$16 sps:$4 sm:$0xff]  }
 0x4ec   :  { %11135 = vmatprep.subr.bf16.mxu1 %v13998_v17  ;;  %v14026_v17 = vld [vmem:[#allocation8 + $0xbe0] ss:$16 sps:$4 sm:$0xff]  }
 0x4ed   :  { %11093 = vmatpush1.bf16.msra.mxu0 %v13993_v60  ;;  %v14031_v60 = vld [vmem:[#allocation8 + $0x9c4] ss:$16 sps:$4 sm:$0xff]  }
 0x4ee   :  { %11094 = vmatprep.subr.bf16.mxu0 %v14001_v1  ;;  %v11961_v1 = vmul.f32 %v15247_v14, %v15247_v14 }
 0x4ef   :  { %11136 = vmatpush1.bf16.msra.mxu1 %v13996_v49  ;;  %v11959_v49 = vmul.f32 %v15242_v40, %v15242_v40 }
 0x4f0   :  { %11137 = vmatprep.subr.bf16.mxu1 %v14004_v55  ;;  %v15351_v55 = vpop.f32.mrf.mxu1 }
 0x4f1   :  { %11095 = vmatpush1.bf16.msra.mxu0 %v13999_v2  ;;  %v14034_v2 = vld [vmem:[#allocation8 + $0xbc4] ss:$16 sps:$4 sm:$0xff]  }
 0x4f2   :  { %11096 = vmatprep.subr.bf16.mxu0 %v14007_v48  ;;  %v11976_v48 = vmul.f32 %v15191_v51, %v15191_v51 }
 0x4f3   :  { %11138 = vmatpush1.bf16.msra.mxu1 %v14002_v44  ;;  %v11991_v44 = vadd.f32 %v11960_v34, %v11959_v49 }
 0x4f4   :  { %11139 = vmatprep.subr.bf16.mxu1 %v14010_v6  ;;  %v14029_v6 = vld [vmem:[#allocation8 + $0x9c0] ss:$16 sps:$4 sm:$0xff]  }
 0x4f5   :  { %11097 = vmatpush1.bf16.msra.mxu0 %v14005_v35  ;;  %v7468_v35 = vpop.f32.mrf.mxu0 }
 0x4f6   :  { %11098 = vmatprep.subr.bf16.mxu0 %v14013_v45  ;;  %v14037_v45 = vld [vmem:[#allocation8 + $0x9a4] ss:$16 sps:$4 sm:$0xff]  }
 0x4f7   :  { %11140 = vmatpush1.bf16.msra.mxu1 %v14008_v54  ;;  %v14032_v54 = vld [vmem:[#allocation8 + $0xbc0] ss:$16 sps:$4 sm:$0xff]  }
 0x4f8   :  { %11141 = vmatprep.subr.bf16.mxu1 %v14016_v16  ;;  %v11975_v16 = vmul.f32 %v15234_v11, %v15234_v11 }
 0x4f9   :  { %11099 = vmatpush1.bf16.msra.mxu0 %v14011_v30  ;;  %v11992_v30 = vadd.f32 %v11991_v44, %v11961_v1  ;;  %v11978_v44 = vmul.f32 %v15193_v62, %v15193_v62 }
 0x4fa   :  { %11100 = vmatprep.subr.bf16.mxu0 %v14019_v36  ;;  %v11977_v36 = vmul.f32 %v15238_v53, %v15238_v53 }
 0x4fb   :  { %11142 = vmatpush1.bf16.msra.mxu1 %v14014_v23  ;;  %v11962_v23 = vmul.f32 %v15197_v59, %v15197_v59 }
 0x4fc   :  { %11143 = vmatprep.subr.bf16.mxu1 %v14022_v50  ;;  %v15361_v50 = vpop.f32.mrf.mxu1 }
 0x4fd   :  { %11101 = vmatpush1.bf16.msra.mxu0 %v14017_v24  ;;  %v14040_v24 = vld [vmem:[#allocation8 + $0xba4] ss:$16 sps:$4 sm:$0xff]   ;;  %v11993_v49 = vadd.f32 %v11992_v30, %v11962_v23  ;;  %v14041_v30 = vld [vmem:[#allocation8 + $0x980] ss:$16 sps:$4 sm:$0xff]  }
 0x4fe   :  { %11102 = vmatprep.subr.bf16.mxu0 %v14025_v39  ;;  %v12008_v39 = vadd.f32 %v11976_v48, %v11975_v16  ;;  %v15365_v34 = vpop.f32.mrf.mxu1  ;;  %v15724_v48 = vsub.s32 4, %v14937_v4  ;;  %v14044_v23 = vld [vmem:[#allocation8 + $0xb80] ss:$16 sps:$4 sm:$0xff]  }
 0x4ff   :  { %11144 = vmatpush1.bf16.msra.mxu1 %v14020_v38  ;;  %v7548_v38 = vpop.f32.mrf.mxu0 }
 0x500   :  { %11145 = vmatprep.subr.bf16.mxu1 %v14028_v58  ;;  %v11963_v58 = vmul.f32 %v15302_v52, %v15302_v52  ;;  %v12009_v1 = vadd.f32 %v12008_v39, %v11977_v36  ;;  %v1207_v16 = vrot.slane %v15275_v37, %v15724_v48  ;;  %v14049_v36 = vld [vmem:[#allocation8 + $0x964] ss:$16 sps:$4 sm:$0xff]   ;;  %v11965_v39 = vmul.f32 %v15307_v27, %v15307_v27 }
 0x501   :  { %11103 = vmatpush2.bf16.msra.mxu0 %v14023_v8  ;;  %v14035_v8 = vld [vmem:[#allocation8 + $0x9a0] ss:$16 sps:$4 sm:$0xff]   ;;  %v15372_v46 = vpop.f32.mrf.mxu0  ;;  %v15725_v48 = vsub.s32 5, %v14937_v4 }
 0x502   :  { %11104 = vmatprep.subr.bf16.mxu0 %v14031_v60  ;;  %v14043_v60 = vld [vmem:[#allocation8 + $0x984] ss:$16 sps:$4 sm:$0xff]   ;;  %v11994_v12 = vadd.f32 %v11993_v49, %v11963_v58  ;;  %v7463_v49 = vadd.f32 %v15335_v28, %v1207_v16  ;;  %v14050_v28 = vld [vmem:[#allocation8 + $0xb60] ss:$16 sps:$4 sm:$0xff]  }
 0x503   :  { %11146 = vmatpush2.bf16.msra.mxu1 %v14026_v17  ;;  %v14038_v17 = vld [vmem:[#allocation8 + $0xba0] ss:$16 sps:$4 sm:$0xff]   ;;  %v14052_v58 = vld [vmem:[#allocation8 + $0xb64] ss:$16 sps:$4 sm:$0xff]   ;;  %v1211_v9 = vrot.slane %v15275_v37, %v15725_v48  ;;  %v7552_v21 = vpop.f32.mrf.mxu0 }
 0x504   :  { %11147 = vmatprep.subr.bf16.mxu1 %v14034_v2  ;;  %v14046_v2 = vld [vmem:[#allocation8 + $0xb84] ss:$16 sps:$4 sm:$0xff]  }
 0x505   :  { %11105 = vmatpush2.bf16.msra.mxu0 %v14029_v6  ;;  %v11964_v6 = vmul.f32 %v15255_v19, %v15255_v19  ;;  %v7465_v48 = vadd.f32 %v15339_v56, %v1211_v9 }
 0x506   :  { %11106 = vmatprep.subr.bf16.mxu0 %v14037_v45  ;;  %v15378_v45 = vpop.f32.mrf.mxu1 }
 0x507   :  { %11148 = vmatpush2.bf16.msra.mxu1 %v14032_v54  ;;  %v11979_v54 = vmul.f32 %v15294_v32, %v15294_v32  ;;  %v11995_v3 = vadd.f32 %v11994_v12, %v11964_v6  ;;  %v11966_v12 = vmul.f32 %v15261_v31, %v15261_v31  ;;  %v11981_v6 = vmul.f32 %v15298_v42, %v15298_v42 }
 0x508   :  { %11149 = vmatprep.subr.bf16.mxu1 %v14040_v24  ;;  %v12010_v24 = vadd.f32 %v12009_v1, %v11978_v44  ;;  %v15391_v1 = vpop.f32.mrf.mxu1  ;;  %v14047_v44 = vld [vmem:[#allocation8 + $0x960] ss:$16 sps:$4 sm:$0xff]  }
 0x509   :  { %11107 = vmatpush2.bf16.msra.mxu0 %v14035_v8  ;;  %v11996_v20 = vadd.f32 %v11995_v3, %v11965_v39  ;;  %v15727_v3 = vld [vmem:[#allocation45_spill] sm:$0xff] }
 0x50a   :  { %11108 = vmatprep.subr.bf16.mxu0 %v14043_v60  ;;  %v12011_v8 = vadd.f32 %v12010_v24, %v11979_v54  ;;  %v15726_v60 = vld [vmem:[#allocation43_spill] sm:$0xff]  ;;  %v7506_v24 = vadd.f32 %v15337_v61, %v7463_v49  ;;  %v15403_v39 = vmax.f32 %v15727_v3, 0.0 }
 0x50b   :  { %11150 = vmatpush2.bf16.msra.mxu1 %v14038_v17  ;;  %v11980_v17 = vmul.f32 %v15244_v7, %v15244_v7  ;;  %v15389_v47 = vmax.f32 %v15726_v60, 0.0  ;;  %v14058_v54 = vld [vmem:[#allocation8 + $0xb44] ss:$16 sps:$4 sm:$0xff]   ;;  %v7597_v60 = vpop.f32.mrf.mxu1  ;;  %v14053_v7 = vld [vmem:[#allocation8 + $0x940] ss:$16 sps:$4 sm:$0xff]   ;;  %v11997_v56 = vadd.f32 %v11996_v20, %v11966_v12  ;;  %v11968_v20 = vmul.f32 %v15315_v33, %v15315_v33 }
 0x50c   :  { %11151 = vmatprep.subr.bf16.mxu1 %v14046_v2  ;;  %v7469_v2 = vadd.f32 %v7468_v35, %v1211_v9  ;;  %v7554_v35 = vpop.f32.mrf.mxu0  ;;  %v7549_v42 = vadd.f32 %v7548_v38, %v7506_v24  ;;  %v14056_v9 = vld [vmem:[#allocation8 + $0xb40] ss:$16 sps:$4 sm:$0xff]   ;;  %v14061_v61 = vld [vmem:[#allocation8 + $0x924] ss:$16 sps:$4 sm:$0xff]  }
 0x50d   :  { %11109 = vmatpush2.bf16.msra.mxu0 %v14041_v30  ;;  %v7467_v30 = vadd.f32 %v15345_v43, %v1207_v16  ;;  %v11982_v16 = vmul.f32 %v15249_v41, %v15249_v41  ;;  %v15408_v49 = vpop.f32.mrf.mxu1  ;;  %v14059_v12 = vld [vmem:[#allocation8 + $0x920] ss:$16 sps:$4 sm:$0xff]   ;;  %v14070_v3 = vld [vmem:[#allocation8 + $0xb04] ss:$16 sps:$4 sm:$0xff]  }
 0x50e   :  { %11110 = vmatprep.subr.bf16.mxu0 %v14049_v36  ;;  %v11967_v36 = vmul.f32 %v15389_v47, %v15389_v47  ;;  %v7634_v32 = vpop.f32.mrf.mxu0 }
 0x50f   :  { %11152 = vmatpush2.bf16.msra.mxu1 %v14044_v23  ;;  %v12012_v23 = vadd.f32 %v12011_v8, %v11980_v17  ;;  %v14064_v8 = vld [vmem:[#allocation8 + $0xb24] ss:$16 sps:$4 sm:$0xff]   ;;  %v7510_v38 = vadd.f32 %v15351_v55, %v7467_v30  ;;  %v15729_v30 = vsub.s32 6, %v14937_v4 }
 0x510   :  { %11153 = vmatprep.subr.bf16.mxu1 %v14052_v58  ;;  %v7512_v58 = vadd.f32 %v15361_v50, %v7469_v2  ;;  %v15728_v17 = vld [vmem:[#allocation48_spill] sm:$0xff]  ;;  %v7508_v50 = vadd.f32 %v15341_v29, %v7465_v48 }
 0x511   :  { %11111 = vmatpush2.bf16.msra.mxu0 %v14047_v44  ;;  %v12013_v43 = vadd.f32 %v12012_v23, %v11981_v6  ;;  %v15411_v44 = vmax.f32 %v15728_v17, 0.0  ;;  %v7592_v6 = vadd.f32 %v15365_v34, %v7549_v42  ;;  %v7553_v24 = vadd.f32 %v7552_v21, %v7510_v38  ;;  %v7636_v23 = vpop.f32.mrf.mxu0  ;;  %v14062_v29 = vld [vmem:[#allocation8 + $0xb20] ss:$16 sps:$4 sm:$0xff]   ;;  %v14067_v55 = vld [vmem:[#allocation8 + $0x904] ss:$16 sps:$4 sm:$0xff]  }
 0x512   :  { %11112 = vmatprep.subr.bf16.mxu0 %v14055_v57  ;;  %v7555_v2 = vadd.f32 %v7554_v35, %v7512_v58  ;;  %v11998_v57 = vadd.f32 %v11997_v56, %v11967_v36  ;;  %v1215_v35 = vrot.slane %v15275_v37, %v15729_v30  ;;  %v7679_v36 = vpop.f32.mrf.mxu1  ;;  %v15730_v42 = vld [vmem:[#allocation50_spill] sm:$0xff] }
 0x513   :  { %11154 = vmatpush2.bf16.msra.mxu1 %v14050_v28  ;;  %v11983_v28 = vmul.f32 %v15403_v39, %v15403_v39  ;;  %v12014_v48 = vadd.f32 %v12013_v43, %v11982_v16  ;;  %v15427_v34 = vmax.f32 %v15730_v42, 0.0  ;;  %v14065_v56 = vld [vmem:[#allocation8 + $0x900] ss:$16 sps:$4 sm:$0xff]   ;;  %v11984_v43 = vmul.f32 %v15304_v22, %v15304_v22  ;;  %v14073_v38 = vld [vmem:[#allocation8 + $0xce4] ss:$16 sps:$4 sm:$0xff]  }
 0x514   :  { %11155 = vmatprep.subr.bf16.mxu1 %v14058_v54  ;;  %v7551_v54 = vadd.f32 %v15372_v46, %v7508_v50  ;;  %v7598_v21 = vadd.f32 %v7597_v60, %v7555_v2  ;;  %v11999_v46 = vadd.f32 %v11998_v57, %v11968_v20  ;;  %v15434_v16 = vmax.f32 %v7592_v6, 0.0  ;;  %v7638_v50 = vpop.f32.mrf.mxu0  ;;  %v14068_v60 = vld [vmem:[#allocation8 + $0xb00] ss:$16 sps:$4 sm:$0xff]   ;;  %v14079_v42 = vld [vmem:[#allocation8 + $0xcc4] ss:$16 sps:$4 sm:$0xff]  }
 0x515   :  { %11113 = vmatpush2.bf16.msra.mxu0 %v14053_v7  ;;  %v11969_v7 = vmul.f32 %v15411_v44, %v15411_v44  ;;  %v12015_v58 = vadd.f32 %v12014_v48, %v11983_v28  ;;  %v7596_v17 = vadd.f32 %v15391_v1, %v7553_v24  ;;  %v7635_v2 = vadd.f32 %v7634_v32, %v1215_v35  ;;  %v14071_v6 = vld [vmem:[#allocation8 + $0xce0] ss:$16 sps:$4 sm:$0xff]  }
 0x516   :  { %11114 = vmatprep.subr.bf16.mxu0 %v14061_v61  ;;  %v11970_v20 = vmul.f32 %v15321_v63, %v15321_v63  ;;  %v11985_v28 = vmul.f32 %v15427_v34, %v15427_v34  ;;  %v14074_v48 = vld [vmem:[#allocation8 + $0xee0] ss:$16 sps:$4 sm:$0xff]   ;;  %v15456_v30 = vpack.c.bf16 %v15427_v34, %v15411_v44 }
 0x517   :  { %11156 = vmatpush2.bf16.msra.mxu1 %v14056_v9  ;;  %v15731_v9 = vsub.s32 7, %v14937_v4  ;;  %v7681_v4 = vpop.f32.mrf.mxu1  ;;  %v12000_v57 = vadd.f32 %v11999_v46, %v11969_v7  ;;  %v12016_v32 = vadd.f32 %v12015_v58, %v11984_v43 }
 0x518   :  { %11157 = vmatprep.subr.bf16.mxu1 %v14064_v8  ;;  %v7594_v8 = vadd.f32 %v15378_v45, %v7551_v54  ;;  %v15446_v45 = vpack.c.bf16 %v15403_v39, %v15389_v47  ;;  %v11971_v54 = vmul.f32 %v15434_v16, %v15434_v16  ;;  %15733 = vst [vmem:[#allocation24_spill] sm:$0xff] %v15456_v30 }
 0x519   :  { %v1219_v61 = vrot.slane %v15275_v37, %v15731_v9  ;;  %11115 = vmatpush2.bf16.msra.mxu0 %v14059_v12  ;;  %v14076_v37 = vld [vmem:[#allocation8 + $0xee4] ss:$16 sps:$4 sm:$0xff]   ;;  %v15442_v12 = vmax.f32 %v7598_v21, 0.0  ;;  %v7683_v7 = vpop.f32.mrf.mxu1  ;;  %v12001_v46 = vadd.f32 %v12000_v57, %v11970_v20  ;;  %v12017_v58 = vadd.f32 %v12016_v32, %v11985_v28 }
 0x51a   :  { %11116 = vmatprep.subr.bf16.mxu0 %v14067_v55  ;;  %15732 = vst [vmem:[#allocation36_spill] sm:$0xff] %v15446_v45  ;;  %v15450_v24 = vmax.f32 %v7594_v8, 0.0  ;;  %v7640_v55 = vpop.f32.mrf.mxu0  ;;  %v14082_v21 = vld [vmem:[#allocation8 + $0xec4] ss:$16 sps:$4 sm:$0xff]   ;;  %v11986_v9 = vmul.f32 %v15309_v10, %v15309_v10 }
 0x51b   :  { %11158 = vmatpush2.bf16.msra.mxu1 %v14062_v29  ;;  %v7637_v1 = vadd.f32 %v7636_v23, %v1219_v61  ;;  %v15452_v29 = vmax.f32 %v7596_v17, 0.0  ;;  %v7678_v23 = vadd.f32 %v15408_v49, %v7635_v2  ;;  %v7641_v17 = vadd.f32 %v7640_v55, %v1219_v61  ;;  %v14085_v57 = vld [vmem:[#allocation8 + $0xca4] ss:$16 sps:$4 sm:$0xff]  }
 0x51c   :  { %11159 = vmatprep.subr.bf16.mxu1 %v14070_v3  ;;  %v7639_v3 = vadd.f32 %v7638_v50, %v1215_v35  ;;  %v15464_v43 = vpack.c.bf16 %v15442_v12, %v15450_v24  ;;  %v14077_v50 = vld [vmem:[#allocation8 + $0xcc0] ss:$16 sps:$4 sm:$0xff]   ;;  %v12018_v32 = vadd.f32 %v12017_v58, %v11986_v9 }
 0x51d   :  { %11117 = vmatpush2.bf16.msra.mxu0 %v14065_v56  ;;  %v7680_v8 = vadd.f32 %v7679_v36, %v7637_v1  ;;  %v12002_v36 = vadd.f32 %v12001_v46, %v11971_v54  ;;  %v11988_v54 = vmul.f32 %v15442_v12, %v15442_v12 }
 0x51e   :  { %11172 = vmatprep.subr.bf16.mxu0 %v14073_v38  ;;  %15734 = vst [vmem:[#allocation27_spill] sm:$0xff] %v15464_v43  ;;  %v11987_v38 = vmul.f32 %v15452_v29, %v15452_v29  ;;  %v7682_v61 = vadd.f32 %v7681_v4, %v7639_v3  ;;  %v14086_v3 = vld [vmem:[#allocation8 + $0xea0] ss:$16 sps:$4 sm:$0xff]  }
 0x51f   :  { %11160 = vmatpush2.bf16.msra.mxu1 %v14068_v60  ;;  %v11972_v60 = vmul.f32 %v15450_v24, %v15450_v24 }
 0x520   :  { %11215 = vmatprep.subr.bf16.mxu1 %v14076_v37  ;;  %v7720_v56 = vpop.f32.mrf.mxu0  ;;  %11119 = vmatmul.mubr.bf16.vlgmr.msra.gmra.mxu0 %v15446_v45  ;;  %v14080_v37 = vld [vmem:[#allocation8 + $0xec0] ss:$16 sps:$4 sm:$0xff]   ;;  %v12019_v46 = vadd.f32 %v12018_v32, %v11987_v38 }
 0x521   :  { %v7721_v49 = vadd.f32 %v7720_v56, %v7678_v23  ;;  %11173 = vmatpush1.bf16.msra.mxu0 %v14071_v6  ;;  %11204 = vmatprep.mubr.bf16.mxu0 %v15464_v43  ;;  %v14088_v6 = vld [vmem:[#allocation8 + $0xea4] ss:$16 sps:$4 sm:$0xff]   ;;  %v7684_v23 = vadd.f32 %v7683_v7, %v7641_v17  ;;  %v14098_v32 = vld [vmem:[#allocation8 + $0xe60] ss:$16 sps:$4 sm:$0xff]  }
 0x522   :  { %v7763_v35 = vpop.f32.mrf.mxu1  ;;  %11162 = vmatmul.mubr.bf16.vlgmr.msra.gmra.mxu1 %v15456_v30  ;;  %v7722_v2 = vpop.f32.mrf.mxu0  ;;  %11174 = vmatprep.subr.bf16.mxu0 %v14079_v42  ;;  %v14091_v42 = vld [vmem:[#allocation8 + $0xc84] ss:$16 sps:$4 sm:$0xff]  }
 0x523   :  { %11216 = vmatpush1.bf16.msra.mxu1 %v14074_v48  ;;  %v7764_v20 = vadd.f32 %v7763_v35, %v7721_v49  ;;  %v7723_v28 = vadd.f32 %v7722_v2, %v7680_v8  ;;  %v14083_v48 = vld [vmem:[#allocation8 + $0xca0] ss:$16 sps:$4 sm:$0xff]   ;;  %v14094_v8 = vld [vmem:[#allocation8 + $0xe84] ss:$16 sps:$4 sm:$0xff]  }
 0x524   :  { %v7765_v1 = vpop.f32.mrf.mxu1  ;;  %11217 = vmatprep.subr.bf16.mxu1 %v14082_v21  ;;  %v7724_v55 = vpop.f32.mrf.mxu0  ;;  %v12003_v21 = vadd.f32 %v12002_v36, %v11972_v60  ;;  %v14089_v2 = vld [vmem:[#allocation8 + $0xc80] ss:$16 sps:$4 sm:$0xff]  }
 0x525   :  { %v15472_v56 = vmax.f32 %v7764_v20, 0.0  ;;  %v7766_v30 = vadd.f32 %v7765_v1, %v7723_v28  ;;  %v7725_v45 = vadd.f32 %v7724_v55, %v7682_v61  ;;  %11175 = vmatpush1.bf16.msra.mxu0 %v14077_v50  ;;  %v12020_v61 = vadd.f32 %v12019_v46, %v11988_v54  ;;  %v14095_v28 = vld [vmem:[#allocation8 + $0xc60] ss:$16 sps:$4 sm:$0xff]   ;;  %v14103_v55 = vld [vmem:[#allocation8 + $0xc44] ss:$16 sps:$4 sm:$0xff]  }
 0x526   :  { %v7767_v43 = vpop.f32.mrf.mxu1  ;;  %v7726_v4 = vpop.f32.mrf.mxu0  ;;  %11176 = vmatprep.subr.bf16.mxu0 %v14085_v57  ;;  %v14100_v57 = vld [vmem:[#allocation8 + $0xe64] ss:$16 sps:$4 sm:$0xff]   ;;  %v14101_v54 = vld [vmem:[#allocation8 + $0xc40] ss:$16 sps:$4 sm:$0xff]  }
 0x527   :  { %11218 = vmatpush1.bf16.msra.mxu1 %v14080_v37  ;;  %v15476_v58 = vmax.f32 %v7766_v30, 0.0  ;;  %v7768_v7 = vadd.f32 %v7767_v43, %v7725_v45  ;;  %v7727_v9 = vadd.f32 %v7726_v4, %v7684_v23  ;;  %v11973_v17 = vmul.f32 %v15472_v56, %v15472_v56  ;;  %v14092_v30 = vld [vmem:[#allocation8 + $0xe80] ss:$16 sps:$4 sm:$0xff]   ;;  %v14097_v45 = vld [vmem:[#allocation8 + $0xc64] ss:$16 sps:$4 sm:$0xff]  }
 0x528   :  { %11219 = vmatprep.subr.bf16.mxu1 %v14088_v6  ;;  %v7769_v49 = vpop.f32.mrf.mxu1  ;;  %v14104_v4 = vld [vmem:[#allocation8 + $0xe40] ss:$16 sps:$4 sm:$0xff]  }
 0x529   :  { %v15480_v35 = vmax.f32 %v7768_v7, 0.0  ;;  %v7770_v50 = vadd.f32 %v7769_v49, %v7727_v9  ;;  %11177 = vmatpush1.bf16.msra.mxu0 %v14083_v48  ;;  %v11974_v37 = vmul.f32 %v15476_v58, %v15476_v58  ;;  %v12004_v60 = vadd.f32 %v12003_v21, %v11973_v17  ;;  %v14106_v48 = vld [vmem:[#allocation8 + $0xe44] ss:$16 sps:$4 sm:$0xff]   ;;  %v14107_v21 = vld [vmem:[#allocation8 + $0xc20] ss:$16 sps:$4 sm:$0xff]  }
 0x52a   :  { %11178 = vmatprep.subr.bf16.mxu0 %v14091_v42  ;;  %v14112_v42 = vld [vmem:[#allocation8 + $0xe24] ss:$16 sps:$4 sm:$0xff]   ;;  %v14110_v46 = vld [vmem:[#allocation8 + $0xe20] ss:$16 sps:$4 sm:$0xff]  }
 0x52b   :  { %11220 = vmatpush1.bf16.msra.mxu1 %v14086_v3  ;;  %v15484_v43 = vmax.f32 %v7770_v50, 0.0  ;;  %v12005_v38 = vadd.f32 %v12004_v60, %v11974_v37  ;;  %v11989_v36 = vmul.f32 %v15480_v35, %v15480_v35  ;;  %v14109_v3 = vld [vmem:[#allocation8 + $0xc24] ss:$16 sps:$4 sm:$0xff]   ;;  %v14116_v17 = vld [vmem:[#allocation8 + $0xe00] ss:$16 sps:$4 sm:$0xff]  }
 0x52c   :  { %11221 = vmatprep.subr.bf16.mxu1 %v14094_v8  ;;  %v14115_v7 = vld [vmem:[#allocation8 + $0xc04] ss:$16 sps:$4 sm:$0xff]   ;;  %v14113_v8 = vld [vmem:[#allocation8 + $0xc00] ss:$16 sps:$4 sm:$0xff]  }
 0x52d   :  { %12006 = vadd.xlane.f32.xlu0 %v12005_v38  ;;  %11179 = vmatpush1.bf16.msra.mxu0 %v14089_v2  ;;  %v15490_v20 = vpack.c.bf16 %v15484_v43, %v15476_v58  ;;  %v11990_v1 = vmul.f32 %v15484_v43, %v15484_v43  ;;  %v12021_v6 = vadd.f32 %v12020_v61, %v11989_v36  ;;  %v14118_v9 = vld [vmem:[#allocation8 + $0xe04] ss:$16 sps:$4 sm:$0xff]   ;;  %v14119_v2 = vld [vmem:[#allocation8 + $0xde0] ss:$16 sps:$4 sm:$0xff]  }
 0x52e   :  { %11180 = vmatprep.subr.bf16.mxu0 %v14097_v45  ;;  %v14121_v49 = vld [vmem:[#allocation8 + $0xde4] ss:$16 sps:$4 sm:$0xff]   ;;  %v14122_v37 = vld [vmem:[#allocation8 + $0xfe0] ss:$16 sps:$4 sm:$0xff]  }
 0x52f   :  { %11222 = vmatpush1.bf16.msra.mxu1 %v14092_v30  ;;  %11247 = vmatprep.mubr.bf16.mxu1 %v15490_v20  ;;  %v12022_v23 = vadd.f32 %v12021_v6, %v11990_v1  ;;  %v14124_v50 = vld [vmem:[#allocation8 + $0xfe4] ss:$16 sps:$4 sm:$0xff]   ;;  %v14125_v45 = vld [vmem:[#allocation8 + $0xdc0] ss:$16 sps:$4 sm:$0xff]  }
 0x530   :  { %11223 = vmatprep.subr.bf16.mxu1 %v14100_v57  ;;  %v14127_v60 = vld [vmem:[#allocation8 + $0xdc4] ss:$16 sps:$4 sm:$0xff]   ;;  %v14128_v38 = vld [vmem:[#allocation8 + $0xfc0] ss:$16 sps:$4 sm:$0xff]  }
 0x531   :  { %12023 = vadd.xlane.f32.xlu0 %v12022_v23  ;;  %11181 = vmatpush1.bf16.msra.mxu0 %v14095_v28  ;;  %v14130_v30 = vld [vmem:[#allocation8 + $0xfc4] ss:$16 sps:$4 sm:$0xff]   ;;  %v14131_v61 = vld [vmem:[#allocation8 + $0xda0] ss:$16 sps:$4 sm:$0xff]  }
 0x532   :  { %11182 = vmatprep.subr.bf16.mxu0 %v14103_v55  ;;  %v14133_v57 = vld [vmem:[#allocation8 + $0xda4] ss:$16 sps:$4 sm:$0xff]   ;;  %v14134_v28 = vld [vmem:[#allocation8 + $0xfa0] ss:$16 sps:$4 sm:$0xff]  }
 0x533   :  { %11224 = vmatpush1.bf16.msra.mxu1 %v14098_v32  ;;  %v14136_v36 = vld [vmem:[#allocation8 + $0xfa4] ss:$16 sps:$4 sm:$0xff]   ;;  %v14137_v32 = vld [vmem:[#allocation8 + $0xd80] ss:$16 sps:$4 sm:$0xff]  }
 0x534   :  { %11225 = vmatprep.subr.bf16.mxu1 %v14106_v48  ;;  %v14139_v1 = vld [vmem:[#allocation8 + $0xd84] ss:$16 sps:$4 sm:$0xff]   ;;  %v14140_v55 = vld [vmem:[#allocation8 + $0xf80] ss:$16 sps:$4 sm:$0xff]  }
 0x535   :  { %11183 = vmatpush1.bf16.msra.mxu0 %v14101_v54  ;;  %v14142_v6 = vld [vmem:[#allocation8 + $0xf84] ss:$16 sps:$4 sm:$0xff]   ;;  %v14143_v54 = vld [vmem:[#allocation8 + $0xd60] ss:$16 sps:$4 sm:$0xff]  }
 0x536   :  { %11184 = vmatprep.subr.bf16.mxu0 %v14109_v3  ;;  %v14145_v23 = vld [vmem:[#allocation8 + $0xd64] ss:$16 sps:$4 sm:$0xff]  }
 0x537   :  { %11226 = vmatpush1.bf16.msra.mxu1 %v14104_v4  ;;  %v14148_v48 = vld [vmem:[#allocation8 + $0xf64] ss:$16 sps:$4 sm:$0xff]   ;;  %v14146_v4 = vld [vmem:[#allocation8 + $0xf60] ss:$16 sps:$4 sm:$0xff]  }
 0x538   :  { %11227 = vmatprep.subr.bf16.mxu1 %v14112_v42  ;;  %v14151_v3 = vld [vmem:[#allocation8 + $0xd44] ss:$16 sps:$4 sm:$0xff]  }
 0x539   :  { %11185 = vmatpush1.bf16.msra.mxu0 %v14107_v21  ;;  %v14154_v42 = vld [vmem:[#allocation8 + $0xf44] ss:$16 sps:$4 sm:$0xff]   ;;  %v14149_v21 = vld [vmem:[#allocation8 + $0xd40] ss:$16 sps:$4 sm:$0xff]  }
 0x53a   :  { %11186 = vmatprep.subr.bf16.mxu0 %v14115_v7  ;;  %v14157_v7 = vld [vmem:[#allocation8 + $0xd24] ss:$16 sps:$4 sm:$0xff]  }
 0x53b   :  { %11228 = vmatpush1.bf16.msra.mxu1 %v14110_v46  ;;  %v14152_v46 = vld [vmem:[#allocation8 + $0xf40] ss:$16 sps:$4 sm:$0xff]  }
 0x53c   :  { %11229 = vmatprep.subr.bf16.mxu1 %v14118_v9  ;;  %v14160_v9 = vld [vmem:[#allocation8 + $0xf24] ss:$16 sps:$4 sm:$0xff]  }
 0x53d   :  { %11187 = vmatpush1.bf16.msra.mxu0 %v14113_v8  ;;  %v14155_v8 = vld [vmem:[#allocation8 + $0xd20] ss:$16 sps:$4 sm:$0xff]  }
 0x53e   :  { %11188 = vmatprep.subr.bf16.mxu0 %v14121_v49  ;;  %v14163_v49 = vld [vmem:[#allocation8 + $0xd04] ss:$16 sps:$4 sm:$0xff]  }
 0x53f   :  { %11230 = vmatpush1.bf16.msra.mxu1 %v14116_v17  ;;  %v14158_v17 = vld [vmem:[#allocation8 + $0xf20] ss:$16 sps:$4 sm:$0xff]  }
 0x540   :  { %11231 = vmatprep.subr.bf16.mxu1 %v14124_v50  ;;  %v14166_v50 = vld [vmem:[#allocation8 + $0xf04] ss:$16 sps:$4 sm:$0xff]  }
 0x541   :  { %11189 = vmatpush2.bf16.msra.mxu0 %v14119_v2  ;;  %v14161_v2 = vld [vmem:[#allocation8 + $0xd00] ss:$16 sps:$4 sm:$0xff]  }
 0x542   :  { %11190 = vmatprep.subr.bf16.mxu0 %v14127_v60  ;;  %v14169_v60 = vld [vmem:[#allocation8 + $0xec] ss:$16 sps:$4 sm:$0xff]  }
 0x543   :  { %11232 = vmatpush2.bf16.msra.mxu1 %v14122_v37  ;;  %v14164_v37 = vld [vmem:[#allocation8 + $0xf00] ss:$16 sps:$4 sm:$0xff]  }
 0x544   :  { %11233 = vmatprep.subr.bf16.mxu1 %v14130_v30  ;;  %v14172_v30 = vld [vmem:[#allocation8 + $0x2ec] ss:$16 sps:$4 sm:$0xff]  }
 0x545   :  { %11191 = vmatpush2.bf16.msra.mxu0 %v14125_v45  ;;  %v14167_v45 = vld [vmem:[#allocation8 + $0xe8] ss:$16 sps:$4 sm:$0xff]  }
 0x546   :  { %11192 = vmatprep.subr.bf16.mxu0 %v14133_v57  ;;  %v14170_v57 = vld [vmem:[#allocation8 + $0x2e8] ss:$16 sps:$4 sm:$0xff]  }
 0x547   :  { %11234 = vmatpush2.bf16.msra.mxu1 %v14128_v38  ;;  %v15497_v38 = vpack.c.bf16 %v15452_v29, %v15434_v16 }
 0x548   :  { %11235 = vmatprep.subr.bf16.mxu1 %v14136_v36  ;;  %v15501_v36 = vpack.c.bf16 %v15480_v35, %v15472_v56 }
 0x549   :  { %11193 = vmatpush2.bf16.msra.mxu0 %v14131_v61  ;;  %v14175_v61 = vld [vmem:[#allocation8 + $0xcc] ss:$16 sps:$4 sm:$0xff]  }
 0x54a   :  { %11194 = vmatprep.subr.bf16.mxu0 %v14139_v1  ;;  %v14173_v1 = vld [vmem:[#allocation8 + $0xc8] ss:$16 sps:$4 sm:$0xff]  }
 0x54b   :  { %11236 = vmatpush2.bf16.msra.mxu1 %v14134_v28  ;;  %v14178_v28 = vld [vmem:[#allocation8 + $0x2cc] ss:$16 sps:$4 sm:$0xff]  }
 0x54c   :  { %11237 = vmatprep.subr.bf16.mxu1 %v14142_v6  ;;  %v14176_v6 = vld [vmem:[#allocation8 + $0x2c8] ss:$16 sps:$4 sm:$0xff]  }
 0x54d   :  { %11195 = vmatpush2.bf16.msra.mxu0 %v14137_v32  ;;  %v14181_v32 = vld [vmem:[#allocation8 + $0xac] ss:$16 sps:$4 sm:$0xff]  }
 0x54e   :  { %11196 = vmatprep.subr.bf16.mxu0 %v14145_v23  ;;  %v14179_v23 = vld [vmem:[#allocation8 + $0xa8] ss:$16 sps:$4 sm:$0xff]  }
 0x54f   :  { %11238 = vmatpush2.bf16.msra.mxu1 %v14140_v55  ;;  %v14184_v55 = vld [vmem:[#allocation8 + $0x2ac] ss:$16 sps:$4 sm:$0xff]  }
 0x550   :  { %11239 = vmatprep.subr.bf16.mxu1 %v14148_v48  ;;  %v14182_v48 = vld [vmem:[#allocation8 + $0x2a8] ss:$16 sps:$4 sm:$0xff]  }
 0x551   :  { %11197 = vmatpush2.bf16.msra.mxu0 %v14143_v54  ;;  %v14187_v54 = vld [vmem:[#allocation8 + $0x8c] ss:$16 sps:$4 sm:$0xff]  }
 0x552   :  { %11198 = vmatprep.subr.bf16.mxu0 %v14151_v3  ;;  %v14185_v3 = vld [vmem:[#allocation8 + $0x88] ss:$16 sps:$4 sm:$0xff]  }
 0x553   :  { %11240 = vmatpush2.bf16.msra.mxu1 %v14146_v4  ;;  %v14190_v4 = vld [vmem:[#allocation8 + $0x28c] ss:$16 sps:$4 sm:$0xff]  }
 0x554   :  { %11241 = vmatprep.subr.bf16.mxu1 %v14154_v42  ;;  %v14193_v42 = vld [vmem:[#allocation8 + $0x6c] ss:$16 sps:$4 sm:$0xff]  }
 0x555   :  { %11199 = vmatpush2.bf16.msra.mxu0 %v14149_v21  ;;  %v14196_v21 = vld [vmem:[#allocation8 + $0x26c] ss:$16 sps:$4 sm:$0xff]  }
 0x556   :  { %11200 = vmatprep.subr.bf16.mxu0 %v14157_v7  ;;  %v14199_v7 = vld [vmem:[#allocation8 + $0x4c] ss:$16 sps:$4 sm:$0xff]  }
 0x557   :  { %11242 = vmatpush2.bf16.msra.mxu1 %v14152_v46  ;;  %v14194_v46 = vld [vmem:[#allocation8 + $0x268] ss:$16 sps:$4 sm:$0xff]  }
 0x558   :  { %11243 = vmatprep.subr.bf16.mxu1 %v14160_v9  ;;  %v14202_v9 = vld [vmem:[#allocation8 + $0x24c] ss:$16 sps:$4 sm:$0xff]  }
 0x559   :  { %11201 = vmatpush2.bf16.msra.mxu0 %v14155_v8  ;;  %v14197_v8 = vld [vmem:[#allocation8 + $0x48] ss:$16 sps:$4 sm:$0xff]  }
 0x55a   :  { %11202 = vmatprep.subr.bf16.mxu0 %v14163_v49  ;;  %v14205_v49 = vld [vmem:[#allocation8 + $0x2c] ss:$16 sps:$4 sm:$0xff]  }
 0x55b   :  { %11244 = vmatpush2.bf16.msra.mxu1 %v14158_v17  ;;  %v14200_v17 = vld [vmem:[#allocation8 + $0x248] ss:$16 sps:$4 sm:$0xff]  }
 0x55c   :  { %11245 = vmatprep.subr.bf16.mxu1 %v14166_v50  ;;  %v14208_v50 = vld [vmem:[#allocation8 + $0x22c] ss:$16 sps:$4 sm:$0xff]  }
 0x55d   :  { %11203 = vmatpush2.bf16.msra.mxu0 %v14161_v2  ;;  %v14203_v2 = vld [vmem:[#allocation8 + $0x28] ss:$16 sps:$4 sm:$0xff]  }
 0x55e   :  { %11258 = vmatprep.subr.bf16.mxu0 %v14169_v60  ;;  %v14211_v60 = vld [vmem:[#allocation8 + $0xc] ss:$16 sps:$4 sm:$0xff]  }
 0x55f   :  { %11246 = vmatpush2.bf16.msra.mxu1 %v14164_v37  ;;  %v14206_v37 = vld [vmem:[#allocation8 + $0x228] ss:$16 sps:$4 sm:$0xff]  }
 0x560   :  { %11301 = vmatprep.subr.bf16.mxu1 %v14172_v30  ;;  %11205 = vmatmul.mubr.bf16.vlgmr.msra.gmra.mxu0 %v15497_v38  ;;  %v14214_v30 = vld [vmem:[#allocation8 + $0x20c] ss:$16 sps:$4 sm:$0xff]  }
 0x561   :  { %11259 = vmatpush1.bf16.msra.mxu0 %v14167_v45  ;;  %11290 = vmatprep.mubr.bf16.mxu0 %v15202_v5  ;;  %v14188_v5 = vld [vmem:[#allocation8 + $0x288] ss:$16 sps:$4 sm:$0xff]  }
 0x562   :  { %11248 = vmatmul.mubr.bf16.vlgmr.msra.gmra.mxu1 %v15501_v36  ;;  %11260 = vmatprep.subr.bf16.mxu0 %v14175_v61  ;;  %v14209_v45 = vld [vmem:[#allocation8 + $0x8] ss:$16 sps:$4 sm:$0xff]   ;;  %v14217_v61 = vld [vmem:[#allocation8 + $0x1ec] ss:$16 sps:$4 sm:$0xff]  }
 0x563   :  { %11302 = vmatpush1.bf16.msra.mxu1 %v14170_v57  ;;  %11333 = vmatprep.mubr.bf16.mxu1 %v15207_v18  ;;  %v14191_v18 = vld [vmem:[#allocation8 + $0x68] ss:$16 sps:$4 sm:$0xff]  }
 0x564   :  { %11303 = vmatprep.subr.bf16.mxu1 %v14178_v28  ;;  %v14212_v57 = vld [vmem:[#allocation8 + $0x208] ss:$16 sps:$4 sm:$0xff]   ;;  %v14220_v28 = vld [vmem:[#allocation8 + $0x3ec] ss:$16 sps:$4 sm:$0xff]  }
 0x565   :  { %11261 = vmatpush1.bf16.msra.mxu0 %v14173_v1  ;;  %v14215_v1 = vld [vmem:[#allocation8 + $0x1e8] ss:$16 sps:$4 sm:$0xff]  }
 0x566   :  { %11262 = vmatprep.subr.bf16.mxu0 %v14181_v32  ;;  %v14223_v32 = vld [vmem:[#allocation8 + $0x1cc] ss:$16 sps:$4 sm:$0xff]  }
 0x567   :  { %11304 = vmatpush1.bf16.msra.mxu1 %v14176_v6  ;;  %v14218_v6 = vld [vmem:[#allocation8 + $0x3e8] ss:$16 sps:$4 sm:$0xff]  }
 0x568   :  { %11305 = vmatprep.subr.bf16.mxu1 %v14184_v55  ;;  %v14226_v55 = vld [vmem:[#allocation8 + $0x3cc] ss:$16 sps:$4 sm:$0xff]  }
 0x569   :  { %11263 = vmatpush1.bf16.msra.mxu0 %v14179_v23  ;;  %v14221_v23 = vld [vmem:[#allocation8 + $0x1c8] ss:$16 sps:$4 sm:$0xff]  }
 0x56a   :  { %11264 = vmatprep.subr.bf16.mxu0 %v14187_v54  ;;  %v14229_v54 = vld [vmem:[#allocation8 + $0x1ac] ss:$16 sps:$4 sm:$0xff]  }
 0x56b   :  { %11306 = vmatpush1.bf16.msra.mxu1 %v14182_v48  ;;  %v14224_v48 = vld [vmem:[#allocation8 + $0x3c8] ss:$16 sps:$4 sm:$0xff]  }
 0x56c   :  { %11307 = vmatprep.subr.bf16.mxu1 %v14190_v4  ;;  %v14232_v4 = vld [vmem:[#allocation8 + $0x3ac] ss:$16 sps:$4 sm:$0xff]  }
 0x56d   :  { %11265 = vmatpush1.bf16.msra.mxu0 %v14185_v3  ;;  %v14227_v3 = vld [vmem:[#allocation8 + $0x1a8] ss:$16 sps:$4 sm:$0xff]  }
 0x56e   :  { %11266 = vmatprep.subr.bf16.mxu0 %v14193_v42  ;;  %v14235_v42 = vld [vmem:[#allocation8 + $0x18c] ss:$16 sps:$4 sm:$0xff]  }
 0x56f   :  { %11308 = vmatpush1.bf16.msra.mxu1 %v14188_v5  ;;  %v14230_v5 = vld [vmem:[#allocation8 + $0x3a8] ss:$16 sps:$4 sm:$0xff]  }
 0x570   :  { %11309 = vmatprep.subr.bf16.mxu1 %v14196_v21  ;;  %v14238_v21 = vld [vmem:[#allocation8 + $0x38c] ss:$16 sps:$4 sm:$0xff]  }
 0x571   :  { %11267 = vmatpush1.bf16.msra.mxu0 %v14191_v18  ;;  %v14233_v18 = vld [vmem:[#allocation8 + $0x188] ss:$16 sps:$4 sm:$0xff]  }
 0x572   :  { %11268 = vmatprep.subr.bf16.mxu0 %v14199_v7  ;;  %v14241_v7 = vld [vmem:[#allocation8 + $0x16c] ss:$16 sps:$4 sm:$0xff]  }
 0x573   :  { %11310 = vmatpush1.bf16.msra.mxu1 %v14194_v46  ;;  %v14236_v46 = vld [vmem:[#allocation8 + $0x388] ss:$16 sps:$4 sm:$0xff]  }
 0x574   :  { %11311 = vmatprep.subr.bf16.mxu1 %v14202_v9  ;;  %v14244_v9 = vld [vmem:[#allocation8 + $0x36c] ss:$16 sps:$4 sm:$0xff]  }
 0x575   :  { %11269 = vmatpush1.bf16.msra.mxu0 %v14197_v8  ;;  %v14239_v8 = vld [vmem:[#allocation8 + $0x168] ss:$16 sps:$4 sm:$0xff]  }
 0x576   :  { %11270 = vmatprep.subr.bf16.mxu0 %v14205_v49  ;;  %v14247_v49 = vld [vmem:[#allocation8 + $0x14c] ss:$16 sps:$4 sm:$0xff]  }
 0x577   :  { %11312 = vmatpush1.bf16.msra.mxu1 %v14200_v17  ;;  %v14242_v17 = vld [vmem:[#allocation8 + $0x368] ss:$16 sps:$4 sm:$0xff]  }
 0x578   :  { %11313 = vmatprep.subr.bf16.mxu1 %v14208_v50  ;;  %v14250_v50 = vld [vmem:[#allocation8 + $0x34c] ss:$16 sps:$4 sm:$0xff]  }
 0x579   :  { %11271 = vmatpush1.bf16.msra.mxu0 %v14203_v2  ;;  %v14245_v2 = vld [vmem:[#allocation8 + $0x148] ss:$16 sps:$4 sm:$0xff]  }
 0x57a   :  { %11272 = vmatprep.subr.bf16.mxu0 %v14211_v60  ;;  %v14253_v60 = vld [vmem:[#allocation8 + $0x12c] ss:$16 sps:$4 sm:$0xff]  }
 0x57b   :  { %11314 = vmatpush1.bf16.msra.mxu1 %v14206_v37  ;;  %v14248_v37 = vld [vmem:[#allocation8 + $0x348] ss:$16 sps:$4 sm:$0xff]  }
 0x57c   :  { %11315 = vmatprep.subr.bf16.mxu1 %v14214_v30  ;;  %v14256_v30 = vld [vmem:[#allocation8 + $0x32c] ss:$16 sps:$4 sm:$0xff]  }
 0x57d   :  { %11273 = vmatpush1.bf16.msra.mxu0 %v14209_v45  ;;  %v14251_v45 = vld [vmem:[#allocation8 + $0x128] ss:$16 sps:$4 sm:$0xff]  }
 0x57e   :  { %11274 = vmatprep.subr.bf16.mxu0 %v14217_v61  ;;  %v14259_v61 = vld [vmem:[#allocation8 + $0x10c] ss:$16 sps:$4 sm:$0xff]  }
 0x57f   :  { %11316 = vmatpush1.bf16.msra.mxu1 %v14212_v57  ;;  %v14254_v57 = vld [vmem:[#allocation8 + $0x328] ss:$16 sps:$4 sm:$0xff]  }
 0x580   :  { %11317 = vmatprep.subr.bf16.mxu1 %v14220_v28  ;;  %v14262_v28 = vld [vmem:[#allocation8 + $0x30c] ss:$16 sps:$4 sm:$0xff]  }
 0x581   :  { %11275 = vmatpush2.bf16.msra.mxu0 %v14215_v1  ;;  %v14257_v1 = vld [vmem:[#allocation8 + $0x108] ss:$16 sps:$4 sm:$0xff]  }
 0x582   :  { %11276 = vmatprep.subr.bf16.mxu0 %v14223_v32  ;;  %v14265_v32 = vld [vmem:[#allocation8 + $0x4ec] ss:$16 sps:$4 sm:$0xff]  }
 0x583   :  { %11318 = vmatpush2.bf16.msra.mxu1 %v14218_v6  ;;  %v14260_v6 = vld [vmem:[#allocation8 + $0x308] ss:$16 sps:$4 sm:$0xff]  }
 0x584   :  { %11319 = vmatprep.subr.bf16.mxu1 %v14226_v55  ;;  %v14268_v55 = vld [vmem:[#allocation8 + $0x6ec] ss:$16 sps:$4 sm:$0xff]  }
 0x585   :  { %11277 = vmatpush2.bf16.msra.mxu0 %v14221_v23  ;;  %v14263_v23 = vld [vmem:[#allocation8 + $0x4e8] ss:$16 sps:$4 sm:$0xff]  }
 0x586   :  { %11278 = vmatprep.subr.bf16.mxu0 %v14229_v54  ;;  %v14271_v54 = vld [vmem:[#allocation8 + $0x4cc] ss:$16 sps:$4 sm:$0xff]  }
 0x587   :  { %11320 = vmatpush2.bf16.msra.mxu1 %v14224_v48  ;;  %v14266_v48 = vld [vmem:[#allocation8 + $0x6e8] ss:$16 sps:$4 sm:$0xff]  }
 0x588   :  { %11321 = vmatprep.subr.bf16.mxu1 %v14232_v4  ;;  %v14274_v4 = vld [vmem:[#allocation8 + $0x6cc] ss:$16 sps:$4 sm:$0xff]  }
 0x589   :  { %11279 = vmatpush2.bf16.msra.mxu0 %v14227_v3  ;;  %v14269_v3 = vld [vmem:[#allocation8 + $0x4c8] ss:$16 sps:$4 sm:$0xff]  }
 0x58a   :  { %11280 = vmatprep.subr.bf16.mxu0 %v14235_v42  ;;  %v14277_v42 = vld [vmem:[#allocation8 + $0x4ac] ss:$16 sps:$4 sm:$0xff]  }
 0x58b   :  { %11322 = vmatpush2.bf16.msra.mxu1 %v14230_v5  ;;  %v14272_v5 = vld [vmem:[#allocation8 + $0x6c8] ss:$16 sps:$4 sm:$0xff]  }
 0x58c   :  { %11323 = vmatprep.subr.bf16.mxu1 %v14238_v21  ;;  %v14280_v21 = vld [vmem:[#allocation8 + $0x6ac] ss:$16 sps:$4 sm:$0xff]  }
 0x58d   :  { %11281 = vmatpush2.bf16.msra.mxu0 %v14233_v18  ;;  %v14275_v18 = vld [vmem:[#allocation8 + $0x4a8] ss:$16 sps:$4 sm:$0xff]  }
 0x58e   :  { %11282 = vmatprep.subr.bf16.mxu0 %v14241_v7  ;;  %v14281_v7 = vld [vmem:[#allocation8 + $0x488] ss:$16 sps:$4 sm:$0xff]  }
 0x58f   :  { %11324 = vmatpush2.bf16.msra.mxu1 %v14236_v46  ;;  %v14283_v46 = vld [vmem:[#allocation8 + $0x48c] ss:$16 sps:$4 sm:$0xff]  }
 0x590   :  { %11325 = vmatprep.subr.bf16.mxu1 %v14244_v9  ;;  %v14289_v9 = vld [vmem:[#allocation8 + $0x46c] ss:$16 sps:$4 sm:$0xff]  }
 0x591   :  { %11283 = vmatpush2.bf16.msra.mxu0 %v14239_v8  ;;  %v14292_v8 = vld [vmem:[#allocation8 + $0x66c] ss:$16 sps:$4 sm:$0xff]  }
 0x592   :  { %11284 = vmatprep.subr.bf16.mxu0 %v14247_v49  ;;  %v14295_v49 = vld [vmem:[#allocation8 + $0x44c] ss:$16 sps:$4 sm:$0xff]  }
 0x593   :  { %11326 = vmatpush2.bf16.msra.mxu1 %v14242_v17  ;;  %v14290_v17 = vld [vmem:[#allocation8 + $0x668] ss:$16 sps:$4 sm:$0xff]  }
 0x594   :  { %11327 = vmatprep.subr.bf16.mxu1 %v14250_v50  ;;  %v14298_v50 = vld [vmem:[#allocation8 + $0x64c] ss:$16 sps:$4 sm:$0xff]  }
 0x595   :  { %11285 = vmatpush2.bf16.msra.mxu0 %v14245_v2  ;;  %v14293_v2 = vld [vmem:[#allocation8 + $0x448] ss:$16 sps:$4 sm:$0xff]  }
 0x596   :  { %11286 = vmatprep.subr.bf16.mxu0 %v14253_v60  ;;  %v14301_v60 = vld [vmem:[#allocation8 + $0x42c] ss:$16 sps:$4 sm:$0xff]  }
 0x597   :  { %11328 = vmatpush2.bf16.msra.mxu1 %v14248_v37  ;;  %v14296_v37 = vld [vmem:[#allocation8 + $0x648] ss:$16 sps:$4 sm:$0xff]  }
 0x598   :  { %11329 = vmatprep.subr.bf16.mxu1 %v14256_v30  ;;  %v14304_v30 = vld [vmem:[#allocation8 + $0x62c] ss:$16 sps:$4 sm:$0xff]  }
 0x599   :  { %11287 = vmatpush2.bf16.msra.mxu0 %v14251_v45  ;;  %v14299_v45 = vld [vmem:[#allocation8 + $0x428] ss:$16 sps:$4 sm:$0xff]  }
 0x59a   :  { %11288 = vmatprep.subr.bf16.mxu0 %v14259_v61  ;;  %v14302_v61 = vld [vmem:[#allocation8 + $0x628] ss:$16 sps:$4 sm:$0xff]  }
 0x59b   :  { %11330 = vmatpush2.bf16.msra.mxu1 %v14254_v57 }
 0x59c   :  { %11331 = vmatprep.subr.bf16.mxu1 %v14262_v28  ;;  %v14307_v28 = vld [vmem:[#allocation8 + $0x40c] ss:$16 sps:$4 sm:$0xff]  }
 0x59d   :  { %11289 = vmatpush2.bf16.msra.mxu0 %v14257_v1 }
 0x59e   :  { %11344 = vmatprep.subr.bf16.mxu0 %v14265_v32  ;;  %v14305_v32 = vld [vmem:[#allocation8 + $0x408] ss:$16 sps:$4 sm:$0xff]  }
 0x59f   :  { %11332 = vmatpush2.bf16.msra.mxu1 %v14260_v6  ;;  %v14310_v6 = vld [vmem:[#allocation8 + $0x60c] ss:$16 sps:$4 sm:$0xff]  }
 0x5a0   :  { %11387 = vmatprep.subr.bf16.mxu1 %v14268_v55  ;;  %11291 = vmatmul.mubr.bf16.vlgmr.msra.gmra.mxu0 %v15253_v0  ;;  %v14278_v0 = vld [vmem:[#allocation8 + $0x6a8] ss:$16 sps:$4 sm:$0xff]  }
 0x5a1   :  { %11345 = vmatpush1.bf16.msra.mxu0 %v14263_v23  ;;  %11376 = vmatprep.mubr.bf16.mxu0 %v15266_v15  ;;  %v14284_v15 = vld [vmem:[#allocation8 + $0x688] ss:$16 sps:$4 sm:$0xff]  }
 0x5a2   :  { %11334 = vmatmul.mubr.bf16.vlgmr.msra.gmra.mxu1 %v15259_v25  ;;  %11346 = vmatprep.subr.bf16.mxu0 %v14271_v54  ;;  %v14286_v25 = vld [vmem:[#allocation8 + $0x68c] ss:$16 sps:$4 sm:$0xff]   ;;  %v14308_v23 = vld [vmem:[#allocation8 + $0x608] ss:$16 sps:$4 sm:$0xff]  }
 0x5a3   :  { %11388 = vmatpush1.bf16.msra.mxu1 %v14266_v48  ;;  %11419 = vmatprep.mubr.bf16.mxu1 %v15271_v13  ;;  %v14287_v13 = vld [vmem:[#allocation8 + $0x468] ss:$16 sps:$4 sm:$0xff]   ;;  %v14313_v48 = vld [vmem:[#allocation8 + $0x5ec] ss:$16 sps:$4 sm:$0xff]  }
 0x5a4   :  { %11389 = vmatprep.subr.bf16.mxu1 %v14274_v4  ;;  %v14316_v4 = vld [vmem:[#allocation8 + $0x7ec] ss:$16 sps:$4 sm:$0xff]  }
 0x5a5   :  { %11347 = vmatpush1.bf16.msra.mxu0 %v14269_v3  ;;  %v14311_v3 = vld [vmem:[#allocation8 + $0x5e8] ss:$16 sps:$4 sm:$0xff]  }
 0x5a6   :  { %11348 = vmatprep.subr.bf16.mxu0 %v14277_v42  ;;  %v14319_v42 = vld [vmem:[#allocation8 + $0x5cc] ss:$16 sps:$4 sm:$0xff]  }
 0x5a7   :  { %11390 = vmatpush1.bf16.msra.mxu1 %v14272_v5  ;;  %v14314_v5 = vld [vmem:[#allocation8 + $0x7e8] ss:$16 sps:$4 sm:$0xff]  }
 0x5a8   :  { %11391 = vmatprep.subr.bf16.mxu1 %v14280_v21  ;;  %v14322_v21 = vld [vmem:[#allocation8 + $0x7cc] ss:$16 sps:$4 sm:$0xff]  }
 0x5a9   :  { %11349 = vmatpush1.bf16.msra.mxu0 %v14275_v18  ;;  %v14317_v18 = vld [vmem:[#allocation8 + $0x5c8] ss:$16 sps:$4 sm:$0xff]  }
 0x5aa   :  { %11350 = vmatprep.subr.bf16.mxu0 %v14283_v46  ;;  %v14325_v46 = vld [vmem:[#allocation8 + $0x5ac] ss:$16 sps:$4 sm:$0xff]  }
 0x5ab   :  { %11392 = vmatpush1.bf16.msra.mxu1 %v14278_v0  ;;  %v14320_v0 = vld [vmem:[#allocation8 + $0x7c8] ss:$16 sps:$4 sm:$0xff]  }
 0x5ac   :  { %11393 = vmatprep.subr.bf16.mxu1 %v14286_v25  ;;  %v14328_v25 = vld [vmem:[#allocation8 + $0x7ac] ss:$16 sps:$4 sm:$0xff]  }
 0x5ad   :  { %11351 = vmatpush1.bf16.msra.mxu0 %v14281_v7  ;;  %v14323_v7 = vld [vmem:[#allocation8 + $0x5a8] ss:$16 sps:$4 sm:$0xff]  }
 0x5ae   :  { %11352 = vmatprep.subr.bf16.mxu0 %v14289_v9  ;;  %v14326_v9 = vld [vmem:[#allocation8 + $0x7a8] ss:$16 sps:$4 sm:$0xff]  }
 0x5af   :  { %11394 = vmatpush1.bf16.msra.mxu1 %v14284_v15 }
 0x5b0   :  { %11395 = vmatprep.subr.bf16.mxu1 %v14292_v8  ;;  %v14331_v8 = vld [vmem:[#allocation8 + $0x58c] ss:$16 sps:$4 sm:$0xff]  }
 0x5b1   :  { %11353 = vmatpush1.bf16.msra.mxu0 %v14287_v13  ;;  %v14334_v13 = vld [vmem:[#allocation8 + $0x78c] ss:$16 sps:$4 sm:$0xff]  }
 0x5b2   :  { %11354 = vmatprep.subr.bf16.mxu0 %v14295_v49 }
 0x5b3   :  { %11396 = vmatpush1.bf16.msra.mxu1 %v14290_v17 }
 0x5b4   :  { %11397 = vmatprep.subr.bf16.mxu1 %v14298_v50 }
 0x5b5   :  { %11355 = vmatpush1.bf16.msra.mxu0 %v14293_v2 }
 0x5b6   :  { %v12007_v57 = vpop.xlane.xlu0 %12006  ;;  %11356 = vmatprep.subr.bf16.mxu0 %v14301_v60 }
 0x5b7   :  { %11398 = vmatpush1.bf16.msra.mxu1 %v14296_v37  ;;  %v12025_v1 = vmax.f32 %v12007_v57, 1e-24  ;;  %v14329_v57 = vld [vmem:[#allocation8 + $0x588] ss:$16 sps:$4 sm:$0xff]  }
 0x5b8   :  { %11399 = vmatprep.subr.bf16.mxu1 %v14304_v30 }
 0x5b9   :  { %14583 = vrsqrt.f32 %v12025_v1  ;;  %11357 = vmatpush1.bf16.msra.mxu0 %v14299_v45 }
 0x5ba   :  { %v12024_v55 = vpop.xlane.xlu0 %12023  ;;  %11358 = vmatprep.subr.bf16.mxu0 %v14307_v28 }
 0x5bb   :  { %11400 = vmatpush1.bf16.msra.mxu1 %v14302_v61  ;;  %v12026_v54 = vmax.f32 %v12024_v55, 1e-24  ;;  %v15737_v55 = vld [vmem:[#allocation33_spill] sm:$0xff] }
 0x5bc   :  { %11401 = vmatprep.subr.bf16.mxu1 %v14310_v6  ;;  %v15736_v6 = vld [vmem:[#allocation29_spill] sm:$0xff] }
 0x5bd   :  { %14585 = vrsqrt.f32 %v12026_v54  ;;  %11359 = vmatpush1.bf16.msra.mxu0 %v14305_v32  ;;  %v14343_v54 = vld [vmem:[#allocation8 + $0x54c] ss:$16 sps:$4 sm:$0xff]  }
 0x5be   :  { %11360 = vmatprep.subr.bf16.mxu0 %v14313_v48 }
 0x5bf   :  { %11402 = vmatpush1.bf16.msra.mxu1 %v14308_v23 }
 0x5c0   :  { %11403 = vmatprep.subr.bf16.mxu1 %v14316_v4 }
 0x5c1   :  { %11361 = vmatpush2.bf16.msra.mxu0 %v14311_v3 }
 0x5c2   :  { %11362 = vmatprep.subr.bf16.mxu0 %v14319_v42  ;;  %v14355_v42 = vld [vmem:[#allocation8 + $0x50c] ss:$16 sps:$4 sm:$0xff]  }
 0x5c3   :  { %11404 = vmatpush2.bf16.msra.mxu1 %v14314_v5  ;;  %v14352_v5 = vld [vmem:[#allocation8 + $0x72c] ss:$16 sps:$4 sm:$0xff]  }
 0x5c4   :  { %11405 = vmatprep.subr.bf16.mxu1 %v14322_v21  ;;  %v14358_v21 = vld [vmem:[#allocation8 + $0x70c] ss:$16 sps:$4 sm:$0xff]  }
 0x5c5   :  { %11363 = vmatpush2.bf16.msra.mxu0 %v14317_v18  ;;  %v14353_v18 = vld [vmem:[#allocation8 + $0x508] ss:$16 sps:$4 sm:$0xff]  }
 0x5c6   :  { %v14584_v15 = vpop.eup %14583  ;;  %11364 = vmatprep.subr.bf16.mxu0 %v14325_v46  ;;  %v14361_v46 = vld [vmem:[#allocation8 + $0x8ec] ss:$16 sps:$4 sm:$0xff]  }
 0x5c7   :  { %11406 = vmatpush2.bf16.msra.mxu1 %v14320_v0  ;;  %v12029_v17 = vmul.f32 %v14584_v15, %v15242_v40  ;;  %v12030_v49 = vmul.f32 %v14584_v15, %v15195_v26  ;;  %v12031_v50 = vmul.f32 %v14584_v15, %v15247_v14  ;;  %v12032_v2 = vmul.f32 %v14584_v15, %v15197_v59  ;;  %v14356_v0 = vld [vmem:[#allocation8 + $0x708] ss:$16 sps:$4 sm:$0xff]  }
 0x5c8   :  { %11407 = vmatprep.subr.bf16.mxu1 %v14328_v25  ;;  %v12033_v37 = vmul.f32 %v14584_v15, %v15302_v52  ;;  %v12034_v60 = vmul.f32 %v14584_v15, %v15255_v19  ;;  %v12035_v30 = vmul.f32 %v14584_v15, %v15307_v27  ;;  %v12036_v45 = vmul.f32 %v14584_v15, %v15261_v31  ;;  %v14332_v19 = vld [vmem:[#allocation8 + $0x788] ss:$16 sps:$4 sm:$0xff]   ;;  %v14337_v52 = vld [vmem:[#allocation8 + $0x56c] ss:$16 sps:$4 sm:$0xff]  }
 0x5c9   :  { %11365 = vmatpush2.bf16.msra.mxu0 %v14323_v7  ;;  %v12037_v61 = vmul.f32 %v14584_v15, %v15389_v47  ;;  %v12038_v40 = vmul.f32 %v14584_v15, %v15315_v33  ;;  %v12039_v26 = vmul.f32 %v14584_v15, %v15411_v44  ;;  %v12040_v14 = vmul.f32 %v14584_v15, %v15321_v63  ;;  %v14340_v33 = vld [vmem:[#allocation8 + $0x76c] ss:$16 sps:$4 sm:$0xff]   ;;  %v14359_v7 = vld [vmem:[#allocation8 + $0x8e8] ss:$16 sps:$4 sm:$0xff]  }
 0x5ca   :  { %12061 = vst [vmem:[#allocation14] sm:$0xff] %v12029_v17  ;;  %12062 = vst [vmem:[#allocation14 + $0x8] sm:$0xff] %v12030_v49  ;;  %v14586_v59 = vpop.eup %14585  ;;  %11366 = vmatprep.subr.bf16.mxu0 %v14331_v8  ;;  %v12041_v31 = vmul.f32 %v14584_v15, %v15434_v16  ;;  %v12042_v27 = vmul.f32 %v14584_v15, %v15450_v24  ;;  %v12043_v47 = vmul.f32 %v14584_v15, %v15472_v56  ;;  %v15735_v24 = vld [vmem:[#allocation34_spill] sm:$0xff]  ;;  %v15739_v17 = vld [vmem:[#allocation25_spill] sm:$0xff] }
 0x5cb   :  { %12063 = vst [vmem:[#allocation14 + $0x10] sm:$0xff] %v12031_v50  ;;  %12064 = vst [vmem:[#allocation14 + $0x18] sm:$0xff] %v12032_v2  ;;  %11408 = vmatpush2.bf16.msra.mxu1 %v14326_v9  ;;  %v12044_v63 = vmul.f32 %v14584_v15, %v15476_v58  ;;  %v12045_v44 = vmul.f32 %v14586_v59, %v15234_v11  ;;  %v12046_v28 = vmul.f32 %v14586_v59, %v15191_v51  ;;  %v14335_v11 = vld [vmem:[#allocation8 + $0x568] ss:$16 sps:$4 sm:$0xff]   ;;  %v14364_v25 = vld [vmem:[#allocation8 + $0xaec] ss:$16 sps:$4 sm:$0xff]  }
 0x5cc   :  { %12065 = vst [vmem:[#allocation14 + $0x20] sm:$0xff] %v12033_v37  ;;  %12066 = vst [vmem:[#allocation14 + $0x28] sm:$0xff] %v12034_v60  ;;  %11409 = vmatprep.subr.bf16.mxu1 %v14334_v13  ;;  %v12047_v1 = vmul.f32 %v14586_v59, %v15238_v53  ;;  %v12048_v16 = vmul.f32 %v14586_v59, %v15193_v62  ;;  %v12049_v56 = vmul.f32 %v14586_v59, %v15735_v24  ;;  %v14338_v62 = vld [vmem:[#allocation8 + $0x768] ss:$16 sps:$4 sm:$0xff]   ;;  %v14367_v9 = vld [vmem:[#allocation8 + $0x8cc] ss:$16 sps:$4 sm:$0xff]  }
 0x5cd   :  { %12067 = vst [vmem:[#allocation14 + $0x30] sm:$0xff] %v12035_v30  ;;  %12068 = vst [vmem:[#allocation14 + $0x38] sm:$0xff] %v12036_v45  ;;  %v12050_v32 = vmul.f32 %v14586_v59, %v15736_v6  ;;  %v12051_v23 = vmul.f32 %v14586_v59, %v15737_v55  ;;  %11367 = vmatpush2.bf16.msra.mxu0 %v14329_v57  ;;  %v12052_v51 = vmul.f32 %v14586_v59, %v15249_v41  ;;  %v14362_v15 = vld [vmem:[#allocation8 + $0xae8] ss:$16 sps:$4 sm:$0xff]   ;;  %v15738_v8 = vld [vmem:[#allocation38_spill] sm:$0xff] }
 0x5ce   :  { %12069 = vst [vmem:[#allocation14 + $0x40] sm:$0xff] %v12037_v61  ;;  %12070 = vst [vmem:[#allocation14 + $0x48] sm:$0xff] %v12038_v40  ;;  %v12053_v53 = vmul.f32 %v14586_v59, %v15403_v39  ;;  %v12054_v58 = vmul.f32 %v14586_v59, %v15304_v22  ;;  %v12055_v48 = vmul.f32 %v14586_v59, %v15427_v34  ;;  %11368 = vmatprep.subr.bf16.mxu0 %v14337_v52  ;;  %v14346_v22 = vld [vmem:[#allocation8 + $0x74c] ss:$16 sps:$4 sm:$0xff]   ;;  %v14365_v49 = vld [vmem:[#allocation8 + $0x8c8] ss:$16 sps:$4 sm:$0xff]  }
 0x5cf   :  { %12071 = vst [vmem:[#allocation14 + $0x50] sm:$0xff] %v12039_v26  ;;  %12072 = vst [vmem:[#allocation14 + $0x58] sm:$0xff] %v12040_v14  ;;  %11410 = vmatpush2.bf16.msra.mxu1 %v14332_v19  ;;  %v12056_v4 = vmul.f32 %v14586_v59, %v15309_v10  ;;  %v12057_v3 = vmul.f32 %v14586_v59, %v15452_v29  ;;  %v12058_v41 = vmul.f32 %v14586_v59, %v15442_v12  ;;  %v14341_v10 = vld [vmem:[#allocation8 + $0x548] ss:$16 sps:$4 sm:$0xff]   ;;  %v14349_v29 = vld [vmem:[#allocation8 + $0x52c] ss:$16 sps:$4 sm:$0xff]  }
 0x5d0   :  { %12073 = vst [vmem:[#allocation14 + $0x60] sm:$0xff] %v12041_v31  ;;  %12074 = vst [vmem:[#allocation14 + $0x68] sm:$0xff] %v12042_v27  ;;  %11411 = vmatprep.subr.bf16.mxu1 %v14340_v33  ;;  %v12059_v39 = vmul.f32 %v14586_v59, %v15480_v35  ;;  %v12060_v34 = vmul.f32 %v14586_v59, %v15484_v43  ;;  %v14344_v12 = vld [vmem:[#allocation8 + $0x748] ss:$16 sps:$4 sm:$0xff]   ;;  %v14370_v13 = vld [vmem:[#allocation8 + $0xacc] ss:$16 sps:$4 sm:$0xff]  }
 0x5d1   :  { %12075 = vst [vmem:[#allocation14 + $0x70] sm:$0xff] %v12043_v47  ;;  %12076 = vst [vmem:[#allocation14 + $0x78] sm:$0xff] %v12044_v63  ;;  %11369 = vmatpush2.bf16.msra.mxu0 %v14335_v11  ;;  %v14347_v35 = vld [vmem:[#allocation8 + $0x528] ss:$16 sps:$4 sm:$0xff]   ;;  %v14373_v37 = vld [vmem:[#allocation8 + $0x8ac] ss:$16 sps:$4 sm:$0xff]  }
 0x5d2   :  { %12077 = vst [vmem:[#allocation14 + $0x80] sm:$0xff] %v12045_v44  ;;  %12078 = vst [vmem:[#allocation14 + $0x88] sm:$0xff] %v12046_v28  ;;  %11370 = vmatprep.subr.bf16.mxu0 %v14343_v54  ;;  %v14350_v43 = vld [vmem:[#allocation8 + $0x728] ss:$16 sps:$4 sm:$0xff]   ;;  %v15741_v60 = vld [vmem:[#allocation28_spill] sm:$0xff] }
 0x5d3   :  { %12079 = vst [vmem:[#allocation14 + $0x90] sm:$0xff] %v12047_v1  ;;  %12080 = vst [vmem:[#allocation14 + $0x98] sm:$0xff] %v12048_v16  ;;  %11412 = vmatpush2.bf16.msra.mxu1 %v14338_v62  ;;  %v15740_v50 = vld [vmem:[#allocation31_spill] sm:$0xff] }
 0x5d4   :  { %12081 = vst [vmem:[#allocation14 + $0xa0] sm:$0xff] %v12049_v56  ;;  %12082 = vst [vmem:[#allocation14 + $0xa8] sm:$0xff] %v12050_v32  ;;  %11413 = vmatprep.subr.bf16.mxu1 %v14346_v22  ;;  %v14368_v2 = vld [vmem:[#allocation8 + $0xac8] ss:$16 sps:$4 sm:$0xff]   ;;  %v14376_v30 = vld [vmem:[#allocation8 + $0xaac] ss:$16 sps:$4 sm:$0xff]  }
 0x5d5   :  { %12083 = vst [vmem:[#allocation14 + $0xb0] sm:$0xff] %v12051_v23  ;;  %12084 = vst [vmem:[#allocation14 + $0xb8] sm:$0xff] %v12052_v51  ;;  %11371 = vmatpush2.bf16.msra.mxu0 %v14341_v10  ;;  %v14371_v45 = vld [vmem:[#allocation8 + $0x8a8] ss:$16 sps:$4 sm:$0xff]   ;;  %v14379_v61 = vld [vmem:[#allocation8 + $0x88c] ss:$16 sps:$4 sm:$0xff]  }
 0x5d6   :  { %12085 = vst [vmem:[#allocation14 + $0xc0] sm:$0xff] %v12053_v53  ;;  %12086 = vst [vmem:[#allocation14 + $0xc8] sm:$0xff] %v12054_v58  ;;  %11372 = vmatprep.subr.bf16.mxu0 %v14349_v29  ;;  %v14374_v57 = vld [vmem:[#allocation8 + $0xaa8] ss:$16 sps:$4 sm:$0xff]   ;;  %v14382_v40 = vld [vmem:[#allocation8 + $0xa8c] ss:$16 sps:$4 sm:$0xff]  }
 0x5d7   :  { %12087 = vst [vmem:[#allocation14 + $0xd0] sm:$0xff] %v12055_v48  ;;  %12088 = vst [vmem:[#allocation14 + $0xd8] sm:$0xff] %v12056_v4  ;;  %11414 = vmatpush2.bf16.msra.mxu1 %v14344_v12  ;;  %v14377_v26 = vld [vmem:[#allocation8 + $0x888] ss:$16 sps:$4 sm:$0xff]   ;;  %v14385_v59 = vld [vmem:[#allocation8 + $0x86c] ss:$16 sps:$4 sm:$0xff]  }
 0x5d8   :  { %12089 = vst [vmem:[#allocation14 + $0xe0] sm:$0xff] %v12057_v3  ;;  %12090 = vst [vmem:[#allocation14 + $0xe8] sm:$0xff] %v12058_v41  ;;  %11415 = vmatprep.subr.bf16.mxu1 %v14352_v5  ;;  %v14380_v14 = vld [vmem:[#allocation8 + $0xa88] ss:$16 sps:$4 sm:$0xff]   ;;  %v14388_v19 = vld [vmem:[#allocation8 + $0xa6c] ss:$16 sps:$4 sm:$0xff]  }
 0x5d9   :  { %12091 = vst [vmem:[#allocation14 + $0xf0] sm:$0xff] %v12059_v39  ;;  %12092 = vst [vmem:[#allocation14 + $0xf8] sm:$0xff] %v12060_v34  ;;  %11373 = vmatpush2.bf16.msra.mxu0 %v14347_v35  ;;  %v14383_v52 = vld [vmem:[#allocation8 + $0x868] ss:$16 sps:$4 sm:$0xff]   ;;  %v14391_v27 = vld [vmem:[#allocation8 + $0x84c] ss:$16 sps:$4 sm:$0xff]  }
 0x5da   :  { %11374 = vmatprep.subr.bf16.mxu0 %v14355_v42  ;;  %v14386_v31 = vld [vmem:[#allocation8 + $0xa68] ss:$16 sps:$4 sm:$0xff]   ;;  %v14394_v47 = vld [vmem:[#allocation8 + $0xa4c] ss:$16 sps:$4 sm:$0xff]  }
 0x5db   :  { %11416 = vmatpush2.bf16.msra.mxu1 %v14350_v43  ;;  %v14389_v33 = vld [vmem:[#allocation8 + $0x848] ss:$16 sps:$4 sm:$0xff]   ;;  %v14397_v44 = vld [vmem:[#allocation8 + $0x82c] ss:$16 sps:$4 sm:$0xff]  }
 0x5dc   :  { %11417 = vmatprep.subr.bf16.mxu1 %v14358_v21  ;;  %v14392_v63 = vld [vmem:[#allocation8 + $0xa48] ss:$16 sps:$4 sm:$0xff]   ;;  %v14400_v28 = vld [vmem:[#allocation8 + $0xa2c] ss:$16 sps:$4 sm:$0xff]  }
 0x5dd   :  { %11375 = vmatpush2.bf16.msra.mxu0 %v14353_v18  ;;  %v14395_v1 = vld [vmem:[#allocation8 + $0x828] ss:$16 sps:$4 sm:$0xff]   ;;  %v14403_v24 = vld [vmem:[#allocation8 + $0x80c] ss:$16 sps:$4 sm:$0xff]  }
 0x5de   :  { %11430 = vmatprep.subr.bf16.mxu0 %v14361_v46  ;;  %v14398_v16 = vld [vmem:[#allocation8 + $0xa28] ss:$16 sps:$4 sm:$0xff]   ;;  %v14406_v56 = vld [vmem:[#allocation8 + $0xa0c] ss:$16 sps:$4 sm:$0xff]  }
 0x5df   :  { %11418 = vmatpush2.bf16.msra.mxu1 %v14356_v0  ;;  %v14401_v6 = vld [vmem:[#allocation8 + $0x808] ss:$16 sps:$4 sm:$0xff]   ;;  %v14409_v55 = vld [vmem:[#allocation8 + $0x9ec] ss:$16 sps:$4 sm:$0xff]  }
 0x5e0   :  { %11473 = vmatprep.subr.bf16.mxu1 %v14364_v25  ;;  %11377 = vmatmul.mubr.bf16.vlgmr.msra.gmra.mxu0 %v15738_v8  ;;  %v14404_v32 = vld [vmem:[#allocation8 + $0xa08] ss:$16 sps:$4 sm:$0xff]   ;;  %v14412_v23 = vld [vmem:[#allocation8 + $0xbec] ss:$16 sps:$4 sm:$0xff]  }
 0x5e1   :  { %11431 = vmatpush1.bf16.msra.mxu0 %v14359_v7  ;;  %11462 = vmatprep.mubr.bf16.mxu0 %v15740_v50  ;;  %v14407_v11 = vld [vmem:[#allocation8 + $0x9e8] ss:$16 sps:$4 sm:$0xff]   ;;  %v14415_v53 = vld [vmem:[#allocation8 + $0x9cc] ss:$16 sps:$4 sm:$0xff]  }
 0x5e2   :  { %11420 = vmatmul.mubr.bf16.vlgmr.msra.gmra.mxu1 %v15739_v17  ;;  %11432 = vmatprep.subr.bf16.mxu0 %v14367_v9  ;;  %v14410_v51 = vld [vmem:[#allocation8 + $0xbe8] ss:$16 sps:$4 sm:$0xff]   ;;  %v14418_v58 = vld [vmem:[#allocation8 + $0xbcc] ss:$16 sps:$4 sm:$0xff]  }
 0x5e3   :  { %11474 = vmatpush1.bf16.msra.mxu1 %v14362_v15  ;;  %11505 = vmatprep.mubr.bf16.mxu1 %v15741_v60  ;;  %v14413_v48 = vld [vmem:[#allocation8 + $0x9c8] ss:$16 sps:$4 sm:$0xff]   ;;  %v14421_v54 = vld [vmem:[#allocation8 + $0x9ac] ss:$16 sps:$4 sm:$0xff]  }
 0x5e4   :  { %11475 = vmatprep.subr.bf16.mxu1 %v14370_v13  ;;  %v14416_v62 = vld [vmem:[#allocation8 + $0xbc8] ss:$16 sps:$4 sm:$0xff]   ;;  %v14424_v4 = vld [vmem:[#allocation8 + $0xbac] ss:$16 sps:$4 sm:$0xff]  }
 0x5e5   :  { %11433 = vmatpush1.bf16.msra.mxu0 %v14365_v49  ;;  %v14419_v3 = vld [vmem:[#allocation8 + $0x9a8] ss:$16 sps:$4 sm:$0xff]   ;;  %v14427_v22 = vld [vmem:[#allocation8 + $0x98c] ss:$16 sps:$4 sm:$0xff]   ;;  %v15547_v49 = vpop.f32.mrf.mxu0 }
 0x5e6   :  { %11434 = vmatprep.subr.bf16.mxu0 %v14373_v37  ;;  %v14422_v41 = vld [vmem:[#allocation8 + $0xba8] ss:$16 sps:$4 sm:$0xff]   ;;  %v14430_v39 = vld [vmem:[#allocation8 + $0xb8c] ss:$16 sps:$4 sm:$0xff]  }
 0x5e7   :  { %11476 = vmatpush1.bf16.msra.mxu1 %v14368_v2  ;;  %v14425_v34 = vld [vmem:[#allocation8 + $0x988] ss:$16 sps:$4 sm:$0xff]   ;;  %v14433_v12 = vld [vmem:[#allocation8 + $0x96c] ss:$16 sps:$4 sm:$0xff]   ;;  %v15549_v60 = vpop.f32.mrf.mxu0 }
 0x5e8   :  { %11477 = vmatprep.subr.bf16.mxu1 %v14376_v30  ;;  %v14428_v10 = vld [vmem:[#allocation8 + $0xb88] ss:$16 sps:$4 sm:$0xff]   ;;  %v14436_v29 = vld [vmem:[#allocation8 + $0xb6c] ss:$16 sps:$4 sm:$0xff]  }
 0x5e9   :  { %11435 = vmatpush1.bf16.msra.mxu0 %v14371_v45  ;;  %v14431_v5 = vld [vmem:[#allocation8 + $0x968] ss:$16 sps:$4 sm:$0xff]   ;;  %v14439_v43 = vld [vmem:[#allocation8 + $0x94c] ss:$16 sps:$4 sm:$0xff]  }
 0x5ea   :  { %11436 = vmatprep.subr.bf16.mxu0 %v14379_v61  ;;  %v14434_v35 = vld [vmem:[#allocation8 + $0xb68] ss:$16 sps:$4 sm:$0xff]   ;;  %v14442_v42 = vld [vmem:[#allocation8 + $0xb4c] ss:$16 sps:$4 sm:$0xff]   ;;  %v15552_v61 = vpop.f32.mrf.mxu1 }
 0x5eb   :  { %11478 = vmatpush1.bf16.msra.mxu1 %v14374_v57  ;;  %v14437_v21 = vld [vmem:[#allocation8 + $0x948] ss:$16 sps:$4 sm:$0xff]   ;;  %v14445_v0 = vld [vmem:[#allocation8 + $0x92c] ss:$16 sps:$4 sm:$0xff]  }
 0x5ec   :  { %11479 = vmatprep.subr.bf16.mxu1 %v14382_v40  ;;  %v14440_v18 = vld [vmem:[#allocation8 + $0xb48] ss:$16 sps:$4 sm:$0xff]   ;;  %v14448_v46 = vld [vmem:[#allocation8 + $0xb2c] ss:$16 sps:$4 sm:$0xff]  }
 0x5ed   :  { %11437 = vmatpush1.bf16.msra.mxu0 %v14377_v26  ;;  %v14443_v25 = vld [vmem:[#allocation8 + $0x928] ss:$16 sps:$4 sm:$0xff]   ;;  %v14451_v15 = vld [vmem:[#allocation8 + $0x90c] ss:$16 sps:$4 sm:$0xff]  }
 0x5ee   :  { %11438 = vmatprep.subr.bf16.mxu0 %v14385_v59  ;;  %v14446_v7 = vld [vmem:[#allocation8 + $0xb28] ss:$16 sps:$4 sm:$0xff]   ;;  %v14454_v9 = vld [vmem:[#allocation8 + $0xb0c] ss:$16 sps:$4 sm:$0xff]  }
 0x5ef   :  { %11480 = vmatpush1.bf16.msra.mxu1 %v14380_v14  ;;  %v14449_v8 = vld [vmem:[#allocation8 + $0x908] ss:$16 sps:$4 sm:$0xff]   ;;  %v14457_v17 = vld [vmem:[#allocation8 + $0xcec] ss:$16 sps:$4 sm:$0xff]  }
 0x5f0   :  { %11481 = vmatprep.subr.bf16.mxu1 %v14388_v19  ;;  %v14452_v13 = vld [vmem:[#allocation8 + $0xb08] ss:$16 sps:$4 sm:$0xff]   ;;  %v14460_v50 = vld [vmem:[#allocation8 + $0xeec] ss:$16 sps:$4 sm:$0xff]  }
 0x5f1   :  { %11439 = vmatpush1.bf16.msra.mxu0 %v14383_v52  ;;  %v14455_v2 = vld [vmem:[#allocation8 + $0xce8] ss:$16 sps:$4 sm:$0xff]   ;;  %v14463_v30 = vld [vmem:[#allocation8 + $0xccc] ss:$16 sps:$4 sm:$0xff]   ;;  %v15556_v52 = vpop.f32.mrf.mxu0 }
 0x5f2   :  { %11440 = vmatprep.subr.bf16.mxu0 %v14391_v27  ;;  %v14458_v37 = vld [vmem:[#allocation8 + $0xee8] ss:$16 sps:$4 sm:$0xff]   ;;  %v15742_v45 = vld [vmem:[#allocation36_spill] sm:$0xff]  ;;  %v15559_v27 = vpop.f32.mrf.mxu1 }
 0x5f3   :  { %11482 = vmatpush1.bf16.msra.mxu1 %v14386_v31  ;;  %v14466_v57 = vld [vmem:[#allocation8 + $0xecc] ss:$16 sps:$4 sm:$0xff]   ;;  %v14461_v26 = vld [vmem:[#allocation8 + $0xcc8] ss:$16 sps:$4 sm:$0xff]  }
 0x5f4   :  { %11483 = vmatprep.subr.bf16.mxu1 %v14394_v47  ;;  %v15743_v40 = vld [vmem:[#allocation24_spill] sm:$0xff]  ;;  %v15744_v14 = vld [vmem:[#allocation27_spill] sm:$0xff] }
 0x5f5   :  { %11441 = vmatpush1.bf16.msra.mxu0 %v14389_v33  ;;  %v14464_v59 = vld [vmem:[#allocation8 + $0xec8] ss:$16 sps:$4 sm:$0xff]   ;;  %v14469_v19 = vld [vmem:[#allocation8 + $0xcac] ss:$16 sps:$4 sm:$0xff]  }
 0x5f6   :  { %11442 = vmatprep.subr.bf16.mxu0 %v14397_v44  ;;  %v14472_v31 = vld [vmem:[#allocation8 + $0xeac] ss:$16 sps:$4 sm:$0xff]   ;;  %v14467_v47 = vld [vmem:[#allocation8 + $0xca8] ss:$16 sps:$4 sm:$0xff]   ;;  %v15561_v44 = vpop.f32.mrf.mxu0 }
 0x5f7   :  { %11484 = vmatpush1.bf16.msra.mxu1 %v14392_v63  ;;  %v14470_v33 = vld [vmem:[#allocation8 + $0xea8] ss:$16 sps:$4 sm:$0xff]   ;;  %v14475_v63 = vld [vmem:[#allocation8 + $0xc8c] ss:$16 sps:$4 sm:$0xff]  }
 0x5f8   :  { %11485 = vmatprep.subr.bf16.mxu1 %v14400_v28  ;;  %v14478_v28 = vld [vmem:[#allocation8 + $0xe8c] ss:$16 sps:$4 sm:$0xff]  }
 0x5f9   :  { %11443 = vmatpush1.bf16.msra.mxu0 %v14395_v1  ;;  %v15563_v1 = vpop.f32.mrf.mxu1 }
 0x5fa   :  { %11444 = vmatprep.subr.bf16.mxu0 %v14403_v24  ;;  %v14476_v24 = vld [vmem:[#allocation8 + $0xe88] ss:$16 sps:$4 sm:$0xff]  }
 0x5fb   :  { %11486 = vmatpush1.bf16.msra.mxu1 %v14398_v16  ;;  %v15565_v16 = vpop.f32.mrf.mxu0 }
 0x5fc   :  { %11487 = vmatprep.subr.bf16.mxu1 %v14406_v56  ;;  %v14481_v56 = vld [vmem:[#allocation8 + $0xc6c] ss:$16 sps:$4 sm:$0xff]  }
 0x5fd   :  { %11445 = vmatpush1.bf16.msra.mxu0 %v14401_v6  ;;  %v14484_v6 = vld [vmem:[#allocation8 + $0xe6c] ss:$16 sps:$4 sm:$0xff]  }
 0x5fe   :  { %11446 = vmatprep.subr.bf16.mxu0 %v14409_v55  ;;  %v15569_v55 = vpop.f32.mrf.mxu0 }
 0x5ff   :  { %11488 = vmatpush1.bf16.msra.mxu1 %v14404_v32  ;;  %v15567_v32 = vpop.f32.mrf.mxu1 }
 0x600   :  { %11489 = vmatprep.subr.bf16.mxu1 %v14412_v23  ;;  %v14479_v23 = vld [vmem:[#allocation8 + $0xc68] ss:$16 sps:$4 sm:$0xff]  }
 0x601   :  { %11447 = vmatpush2.bf16.msra.mxu0 %v14407_v11  ;;  %v14482_v11 = vld [vmem:[#allocation8 + $0xe68] ss:$16 sps:$4 sm:$0xff]  }
 0x602   :  { %11448 = vmatprep.subr.bf16.mxu0 %v14415_v53  ;;  %v15571_v53 = vpop.f32.mrf.mxu1 }
 0x603   :  { %11490 = vmatpush2.bf16.msra.mxu1 %v14410_v51  ;;  %v14487_v51 = vld [vmem:[#allocation8 + $0xc4c] ss:$16 sps:$4 sm:$0xff]  }
 0x604   :  { %11491 = vmatprep.subr.bf16.mxu1 %v14418_v58  ;;  %v14490_v58 = vld [vmem:[#allocation8 + $0xe4c] ss:$16 sps:$4 sm:$0xff]  }
 0x605   :  { %11449 = vmatpush2.bf16.msra.mxu0 %v14413_v48  ;;  %v15573_v48 = vpop.f32.mrf.mxu0 }
 0x606   :  { %11450 = vmatprep.subr.bf16.mxu0 %v14421_v54  ;;  %v14488_v54 = vld [vmem:[#allocation8 + $0xe48] ss:$16 sps:$4 sm:$0xff]  }
 0x607   :  { %11492 = vmatpush2.bf16.msra.mxu1 %v14416_v62  ;;  %v14485_v62 = vld [vmem:[#allocation8 + $0xc48] ss:$16 sps:$4 sm:$0xff]  }
 0x608   :  { %11493 = vmatprep.subr.bf16.mxu1 %v14424_v4  ;;  %v14493_v4 = vld [vmem:[#allocation8 + $0xc2c] ss:$16 sps:$4 sm:$0xff]  }
 0x609   :  { %11451 = vmatpush2.bf16.msra.mxu0 %v14419_v3  ;;  %v15575_v3 = vpop.f32.mrf.mxu1 }
 0x60a   :  { %11452 = vmatprep.subr.bf16.mxu0 %v14427_v22  ;;  %v11040_v22 = vpop.f32.mrf.mxu0 }
 0x60b   :  { %11494 = vmatpush2.bf16.msra.mxu1 %v14422_v41  ;;  %v14496_v41 = vld [vmem:[#allocation8 + $0xe2c] ss:$16 sps:$4 sm:$0xff]  }
 0x60c   :  { %11495 = vmatprep.subr.bf16.mxu1 %v14430_v39  ;;  %v14491_v39 = vld [vmem:[#allocation8 + $0xc28] ss:$16 sps:$4 sm:$0xff]  }
 0x60d   :  { %11453 = vmatpush2.bf16.msra.mxu0 %v14425_v34  ;;  %v14494_v34 = vld [vmem:[#allocation8 + $0xe28] ss:$16 sps:$4 sm:$0xff]  }
 0x60e   :  { %11454 = vmatprep.subr.bf16.mxu0 %v14433_v12  ;;  %v15577_v12 = vpop.f32.mrf.mxu1 }
 0x60f   :  { %11496 = vmatpush2.bf16.msra.mxu1 %v14428_v10  ;;  %v14499_v10 = vld [vmem:[#allocation8 + $0xc0c] ss:$16 sps:$4 sm:$0xff]  }
 0x610   :  { %11497 = vmatprep.subr.bf16.mxu1 %v14436_v29  ;;  %v15579_v29 = vpop.f32.mrf.mxu0 }
 0x611   :  { %11455 = vmatpush2.bf16.msra.mxu0 %v14431_v5  ;;  %v14502_v5 = vld [vmem:[#allocation8 + $0xe0c] ss:$16 sps:$4 sm:$0xff]  }
 0x612   :  { %11456 = vmatprep.subr.bf16.mxu0 %v14439_v43  ;;  %v14500_v43 = vld [vmem:[#allocation8 + $0xe08] ss:$16 sps:$4 sm:$0xff]  }
 0x613   :  { %11498 = vmatpush2.bf16.msra.mxu1 %v14434_v35  ;;  %v14497_v35 = vld [vmem:[#allocation8 + $0xc08] ss:$16 sps:$4 sm:$0xff]  }
 0x614   :  { %11499 = vmatprep.subr.bf16.mxu1 %v14442_v42  ;;  %v14505_v42 = vld [vmem:[#allocation8 + $0xdec] ss:$16 sps:$4 sm:$0xff]  }
 0x615   :  { %11457 = vmatpush2.bf16.msra.mxu0 %v14437_v21  ;;  %v11083_v21 = vpop.f32.mrf.mxu1 }
 0x616   :  { %11458 = vmatprep.subr.bf16.mxu0 %v14445_v0  ;;  %v14508_v0 = vld [vmem:[#allocation8 + $0xfec] ss:$16 sps:$4 sm:$0xff]  }
 0x617   :  { %11500 = vmatpush2.bf16.msra.mxu1 %v14440_v18  ;;  %v15581_v18 = vpop.f32.mrf.mxu0 }
 0x618   :  { %11501 = vmatprep.subr.bf16.mxu1 %v14448_v46  ;;  %v15583_v46 = vpop.f32.mrf.mxu1 }
 0x619   :  { %11459 = vmatpush2.bf16.msra.mxu0 %v14443_v25  ;;  %v14503_v25 = vld [vmem:[#allocation8 + $0xde8] ss:$16 sps:$4 sm:$0xff]  }
 0x61a   :  { %11460 = vmatprep.subr.bf16.mxu0 %v14451_v15  ;;  %v14511_v15 = vld [vmem:[#allocation8 + $0xdcc] ss:$16 sps:$4 sm:$0xff]  }
 0x61b   :  { %11502 = vmatpush2.bf16.msra.mxu1 %v14446_v7  ;;  %v14506_v7 = vld [vmem:[#allocation8 + $0xfe8] ss:$16 sps:$4 sm:$0xff]  }
 0x61c   :  { %11503 = vmatprep.subr.bf16.mxu1 %v14454_v9  ;;  %v15585_v9 = vld [vmem:[#allocation10] sm:$0xf] }
 0x61d   :  { %11461 = vmatpush2.bf16.msra.mxu0 %v14449_v8  ;;  %v15587_v8 = vpop.f32.mrf.mxu0 }
 0x61e   :  { %11516 = vmatprep.subr.bf16.mxu0 %v14457_v17  ;;  %v15745_v17 = vld [vmem:[#allocation51_spill] sm:$0xff] }
 0x61f   :  { %11504 = vmatpush2.bf16.msra.mxu1 %v14452_v13  ;;  %v14514_v13 = vld [vmem:[#allocation8 + $0xfcc] ss:$16 sps:$4 sm:$0xff]  }
 0x620   :  { %11559 = vmatprep.subr.bf16.mxu1 %v14460_v50  ;;  %11463 = vmatmul.mubr.bf16.vlgmr.msra.gmra.mxu0 %v15742_v45  ;;  %v8341_v50 = vrot.slane %v15585_v9, %v15745_v17  ;;  %v14512_v45 = vld [vmem:[#allocation8 + $0xfc8] ss:$16 sps:$4 sm:$0xff]  }
 0x621   :  { %11517 = vmatpush1.bf16.msra.mxu0 %v14455_v2  ;;  %11548 = vmatprep.mubr.bf16.mxu0 %v15744_v14  ;;  %v11165_v2 = vpop.f32.mrf.mxu1 }
 0x622   :  { %11506 = vmatmul.mubr.bf16.vlgmr.msra.gmra.mxu1 %v15743_v40  ;;  %11518 = vmatprep.subr.bf16.mxu0 %v14463_v30  ;;  %v10955_v30 = vadd.f32 %v15561_v44, %v8341_v50  ;;  %v11126_v40 = vpop.f32.mrf.mxu0  ;;  %v10951_v14 = vadd.f32 %v15549_v60, %v8341_v50  ;;  %v14526_v44 = vld [vmem:[#allocation8 + $0xf8c] ss:$16 sps:$4 sm:$0xff]   ;;  %v14521_v60 = vld [vmem:[#allocation8 + $0xd88] ss:$16 sps:$4 sm:$0xff]  }
 0x623   :  { %11560 = vmatpush1.bf16.msra.mxu1 %v14458_v37  ;;  %11591 = vmatprep.mubr.bf16.mxu1 %v15490_v20  ;;  %v14473_v20 = vld [vmem:[#allocation8 + $0xc88] ss:$16 sps:$4 sm:$0xff]   ;;  %v14550_v50 = vld [vmem:[#allocation8 + $0xf0c] ss:$16 sps:$4 sm:$0xff]  }
 0x624   :  { %11561 = vmatprep.subr.bf16.mxu1 %v14466_v57  ;;  %v14509_v37 = vld [vmem:[#allocation8 + $0xdc8] ss:$16 sps:$4 sm:$0xff]   ;;  %v14517_v57 = vld [vmem:[#allocation8 + $0xdac] ss:$16 sps:$4 sm:$0xff]  }
 0x625   :  { %11519 = vmatpush1.bf16.msra.mxu0 %v14461_v26  ;;  %v14520_v26 = vld [vmem:[#allocation8 + $0xfac] ss:$16 sps:$4 sm:$0xff]  }
 0x626   :  { %11520 = vmatprep.subr.bf16.mxu0 %v14469_v19  ;;  %v15595_v19 = vpop.f32.mrf.mxu0 }
 0x627   :  { %11562 = vmatpush1.bf16.msra.mxu1 %v14464_v59  ;;  %v15593_v59 = vpop.f32.mrf.mxu1 }
 0x628   :  { %11563 = vmatprep.subr.bf16.mxu1 %v14472_v31  ;;  %v14515_v31 = vld [vmem:[#allocation8 + $0xda8] ss:$16 sps:$4 sm:$0xff]  }
 0x629   :  { %11521 = vmatpush1.bf16.msra.mxu0 %v14467_v47  ;;  %v10998_v47 = vadd.f32 %v15567_v32, %v10955_v30  ;;  %v14545_v30 = vld [vmem:[#allocation8 + $0xd08] ss:$16 sps:$4 sm:$0xff]  }
 0x62a   :  { %11522 = vmatprep.subr.bf16.mxu0 %v14475_v63  ;;  %v14523_v63 = vld [vmem:[#allocation8 + $0xd8c] ss:$16 sps:$4 sm:$0xff]  }
 0x62b   :  { %11564 = vmatpush1.bf16.msra.mxu1 %v14470_v33  ;;  %v14518_v33 = vld [vmem:[#allocation8 + $0xfa8] ss:$16 sps:$4 sm:$0xff]  }
 0x62c   :  { %11565 = vmatprep.subr.bf16.mxu1 %v14478_v28  ;;  %v10994_v28 = vadd.f32 %v15559_v27, %v10951_v14  ;;  %v14527_v27 = vld [vmem:[#allocation8 + $0xd68] ss:$16 sps:$4 sm:$0xff]  }
 0x62d   :  { %11523 = vmatpush1.bf16.msra.mxu0 %v14473_v20  ;;  %v11041_v20 = vadd.f32 %v11040_v22, %v10998_v47  ;;  %v15746_v14 = vld [vmem:[#allocation23_spill] sm:$0xff] }
 0x62e   :  { %11524 = vmatprep.subr.bf16.mxu0 %v14481_v56  ;;  %v11208_v56 = vpop.f32.mrf.mxu0 }
 0x62f   :  { %11566 = vmatpush1.bf16.msra.mxu1 %v14476_v24  ;;  %v11169_v24 = vpop.f32.mrf.mxu1 }
 0x630   :  { %11567 = vmatprep.subr.bf16.mxu1 %v14484_v6  ;;  %v11037_v6 = vadd.f32 %v15569_v55, %v10994_v28  ;;  %v14535_v55 = vld [vmem:[#allocation8 + $0xd4c] ss:$16 sps:$4 sm:$0xff]   ;;  %v14554_v28 = vld [vmem:[#allocation11 + $0x30] sm:$0xff]  }
 0x631   :  { %11525 = vmatpush1.bf16.msra.mxu0 %v14479_v23  ;;  %v14524_v23 = vld [vmem:[#allocation8 + $0xf88] ss:$16 sps:$4 sm:$0xff]   ;;  %v15600_v32 = vpop.f32.mrf.mxu1 }
 0x632   :  { %11526 = vmatprep.subr.bf16.mxu0 %v14487_v51  ;;  %v14532_v51 = vld [vmem:[#allocation8 + $0xf6c] ss:$16 sps:$4 sm:$0xff]  }
 0x633   :  { %11568 = vmatpush1.bf16.msra.mxu1 %v14482_v11  ;;  %v14529_v11 = vld [vmem:[#allocation8 + $0xd6c] ss:$16 sps:$4 sm:$0xff]   ;;  %v11251_v22 = vpop.f32.mrf.mxu1 }
 0x634   :  { %11569 = vmatprep.subr.bf16.mxu1 %v14490_v58  ;;  %v11084_v58 = vadd.f32 %v11083_v21, %v11041_v20 }
 0x635   :  { %11527 = vmatpush1.bf16.msra.mxu0 %v14485_v62  ;;  %v15602_v62 = vpop.f32.mrf.mxu0  ;;  %v15606_v21 = vpop.f32.mrf.mxu1 }
 0x636   :  { %11528 = vmatprep.subr.bf16.mxu0 %v14493_v4  ;;  %v11127_v4 = vadd.f32 %v11126_v40, %v11084_v58  ;;  %v14551_v40 = vld [vmem:[#allocation11 + $0x78] sm:$0xff]  }
 0x637   :  { %11570 = vmatpush1.bf16.msra.mxu1 %v14488_v54  ;;  %v11080_v54 = vadd.f32 %v15575_v3, %v11037_v6  ;;  %v14544_v3 = vld [vmem:[#allocation8 + $0xf2c] ss:$16 sps:$4 sm:$0xff]   ;;  %v11255_v17 = vpop.f32.mrf.mxu1 }
 0x638   :  { %11571 = vmatprep.subr.bf16.mxu1 %v14496_v41  ;;  %v14530_v41 = vld [vmem:[#allocation8 + $0xf68] ss:$16 sps:$4 sm:$0xff]  }
 0x639   :  { %11529 = vmatpush1.bf16.msra.mxu0 %v14491_v39  ;;  %v14538_v39 = vld [vmem:[#allocation8 + $0xf4c] ss:$16 sps:$4 sm:$0xff]  }
 0x63a   :  { %11530 = vmatprep.subr.bf16.mxu0 %v14499_v10  ;;  %v11212_v10 = vpop.f32.mrf.mxu0 }
 0x63b   :  { %11572 = vmatpush1.bf16.msra.mxu1 %v14494_v34  ;;  %v11123_v34 = vadd.f32 %v15581_v18, %v11080_v54  ;;  %v14542_v18 = vld [vmem:[#allocation8 + $0xf28] ss:$16 sps:$4 sm:$0xff]   ;;  %v14560_v54 = vld [vmem:[#allocation11 + $0x18] sm:$0xff]  }
 0x63c   :  { %11573 = vmatprep.subr.bf16.mxu1 %v14502_v5  ;;  %v14533_v5 = vld [vmem:[#allocation8 + $0xd48] ss:$16 sps:$4 sm:$0xff]  }
 0x63d   :  { %11531 = vmatpush1.bf16.msra.mxu0 %v14497_v35  ;;  %v11170_v35 = vadd.f32 %v11169_v24, %v11127_v4  ;;  %v14555_v24 = vld [vmem:[#allocation11 + $0x68] sm:$0xff]  }
 0x63e   :  { %11532 = vmatprep.subr.bf16.mxu0 %v14505_v42  ;;  %v14541_v42 = vld [vmem:[#allocation8 + $0xd2c] ss:$16 sps:$4 sm:$0xff]  }
 0x63f   :  { %11574 = vmatpush1.bf16.msra.mxu1 %v14500_v43  ;;  %v14536_v43 = vld [vmem:[#allocation8 + $0xf48] ss:$16 sps:$4 sm:$0xff]  }
 0x640   :  { %11575 = vmatprep.subr.bf16.mxu1 %v14508_v0  ;;  %v11166_v0 = vadd.f32 %v11165_v2, %v11123_v34  ;;  %v14563_v34 = vld [vmem:[#allocation11 + $0x48] sm:$0xff]  }
 0x641   :  { %11533 = vmatpush2.bf16.msra.mxu0 %v14503_v25  ;;  %v11213_v25 = vadd.f32 %v11212_v10, %v11170_v35  ;;  %v14565_v35 = vld [vmem:[#allocation11 + $0x40] sm:$0xff]  }
 0x642   :  { %11534 = vmatprep.subr.bf16.mxu0 %v14511_v15  ;;  %v11209_v15 = vadd.f32 %v11208_v56, %v11166_v0  ;;  %v14576_v0 = vld [vmem:[#allocation11 + $0x98] sm:$0xff]  }
 0x643   :  { %11576 = vmatpush2.bf16.msra.mxu1 %v14506_v7  ;;  %v14539_v7 = vld [vmem:[#allocation8 + $0xd28] ss:$16 sps:$4 sm:$0xff]  }
 0x644   :  { %11577 = vmatprep.subr.bf16.mxu1 %v14514_v13  ;;  %v14547_v13 = vld [vmem:[#allocation8 + $0xd0c] ss:$16 sps:$4 sm:$0xff]  }
 0x645   :  { %11535 = vmatpush2.bf16.msra.mxu0 %v14509_v37  ;;  %v11256_v37 = vadd.f32 %v11255_v17, %v11213_v25  ;;  %v14577_v25 = vld [vmem:[#allocation11 + $0xd0] sm:$0xff]  }
 0x646   :  { %11536 = vmatprep.subr.bf16.mxu0 %v14517_v57  ;;  %v14548_v57 = vld [vmem:[#allocation8 + $0xf08] ss:$16 sps:$4 sm:$0xff]  }
 0x647   :  { %11578 = vmatpush2.bf16.msra.mxu1 %v14512_v45  ;;  %v11252_v45 = vadd.f32 %v11251_v22, %v11209_v15  ;;  %v11607_v2 = vmax.f32 %v11256_v37, 0.0  ;;  %v14562_v22 = vld [vmem:[#allocation11 + $0x10] sm:$0xff]   ;;  %v14580_v15 = vld [vmem:[#allocation11 + $0x88] sm:$0xff]  }
 0x648   :  { %11579 = vmatprep.subr.bf16.mxu1 %v14520_v26  ;;  %v14552_v26 = vld [vmem:[#allocation11 + $0x38] sm:$0xff]  }
 0x649   :  { %11537 = vmatpush2.bf16.msra.mxu0 %v14515_v31  ;;  %v8337_v31 = vrot.slane %v15585_v9, %v15746_v14  ;;  %v11603_v47 = vmax.f32 %v11252_v45, 0.0 }
 0x64a   :  { %11538 = vmatprep.subr.bf16.mxu0 %v14523_v63 }
 0x64b   :  { %11580 = vmatpush2.bf16.msra.mxu1 %v14518_v33  ;;  %v14553_v33 = vld [vmem:[#allocation11 + $0x70] sm:$0xff]   ;;  %v10953_v63 = vadd.f32 %v15556_v52, %v8337_v31  ;;  %v10949_v20 = vadd.f32 %v15547_v49, %v8337_v31 }
 0x64c   :  { %11581 = vmatprep.subr.bf16.mxu1 %v14526_v44  ;;  %v11611_v44 = vpack.c.bf16 %v11607_v2, %v11603_v47  ;;  %v14569_v49 = vld [vmem:[#allocation11 + $0xf0] sm:$0xff]  }
 0x64d   :  { %11539 = vmatpush2.bf16.msra.mxu0 %v14521_v60  ;;  %v10996_v56 = vadd.f32 %v15563_v1, %v10953_v63  ;;  %v14556_v60 = vld [vmem:[#allocation11 + $0x28] sm:$0xff]   ;;  %v10992_v6 = vadd.f32 %v15552_v61, %v10949_v20 }
 0x64e   :  { %11540 = vmatprep.subr.bf16.mxu0 %v14529_v11  ;;  %v14567_v11 = vld [vmem:[#allocation11 + $0xf8] sm:$0xff]  }
 0x64f   :  { %11582 = vmatpush2.bf16.msra.mxu1 %v14524_v23  ;;  %v11039_v52 = vadd.f32 %v15573_v48, %v10996_v56  ;;  %v14557_v23 = vld [vmem:[#allocation11 + $0x60] sm:$0xff]   ;;  %v14570_v48 = vld [vmem:[#allocation11 + $0xb0] sm:$0xff]  }
 0x650   :  { %11583 = vmatprep.subr.bf16.mxu1 %v14532_v51  ;;  %v14568_v51 = vld [vmem:[#allocation11 + $0xb8] sm:$0xff]  }
 0x651   :  { %11541 = vmatpush2.bf16.msra.mxu0 %v14527_v27  ;;  %v11082_v58 = vadd.f32 %v15577_v12, %v11039_v52  ;;  %v14559_v27 = vld [vmem:[#allocation11 + $0x58] sm:$0xff]   ;;  %v14572_v12 = vld [vmem:[#allocation11 + $0xa8] sm:$0xff]  }
 0x652   :  { %11542 = vmatprep.subr.bf16.mxu0 %v14535_v55 }
 0x653   :  { %11584 = vmatpush2.bf16.msra.mxu1 %v14530_v41  ;;  %v11125_v61 = vadd.f32 %v15587_v8, %v11082_v58  ;;  %v14561_v41 = vld [vmem:[#allocation11 + $0x50] sm:$0xff]  }
 0x654   :  { %11585 = vmatprep.subr.bf16.mxu1 %v14538_v39 }
 0x655   :  { %11543 = vmatpush2.bf16.msra.mxu0 %v14533_v5  ;;  %v11168_v55 = vadd.f32 %v15593_v59, %v11125_v61  ;;  %v14564_v5 = vld [vmem:[#allocation11 + $0x8] sm:$0xff]  }
 0x656   :  { %11544 = vmatprep.subr.bf16.mxu0 %v14541_v42 }
 0x657   :  { %11586 = vmatpush2.bf16.msra.mxu1 %v14536_v43  ;;  %v11211_v39 = vadd.f32 %v15602_v62, %v11168_v55 }
 0x658   :  { %11587 = vmatprep.subr.bf16.mxu1 %v14544_v3 }
 0x659   :  { %11545 = vmatpush2.bf16.msra.mxu0 %v14539_v7  ;;  %v11254_v59 = vadd.f32 %v15606_v21, %v11211_v39  ;;  %v14578_v7 = vld [vmem:[#allocation11 + $0x90] sm:$0xff]   ;;  %v14579_v21 = vld [vmem:[#allocation11 + $0xc8] sm:$0xff]  }
 0x65a   :  { %11546 = vmatprep.subr.bf16.mxu0 %v14547_v13 }
 0x65b   :  { %11588 = vmatpush2.bf16.msra.mxu1 %v14542_v18  ;;  %v11606_v42 = vmax.f32 %v11254_v59, 0.0  ;;  %v14582_v18 = vld [vmem:[#allocation11 + $0x80] sm:$0xff]  }
 0x65c   :  { %11589 = vmatprep.subr.bf16.mxu1 %v14550_v50 }
 0x65d   :  { %11547 = vmatpush2.bf16.msra.mxu0 %v14545_v30 }
 0x65e   :  { %13720 = vmatprep.subr.bf16.mxu0 %v14551_v40 }
 0x65f   :  { %11590 = vmatpush2.bf16.msra.mxu1 %v14548_v57 }
 0x660   :  { %11549 = vmatmul.mubr.bf16.vlgmr.msra.gmra.mxu0 %v15497_v38  ;;  %v11035_v38 = vadd.f32 %v15565_v16, %v10992_v6  ;;  %13742 = vmatprep.subr.bf16.mxu1 %v14567_v11  ;;  %v14571_v16 = vld [vmem:[#allocation11 + $0xe8] sm:$0xff]   ;;  %v11292_v13 = vpop.f32.mrf.mxu0 }
 0x661   :  { %13721 = vmatpush3.bf16.msra.mxu0 %v14552_v26  ;;  %11909 = vmatprep.mubr.bf16.mxu0 %v11611_v44 }
 0x662   :  { %11592 = vmatmul.mubr.bf16.vlgmr.msra.gmra.mxu1 %v15501_v36  ;;  %13722 = vmatprep.subr.bf16.mxu0 %v14553_v33  ;;  %v14558_v36 = vld [vmem:[#allocation11 + $0x20] sm:$0xff]   ;;  %v11078_v1 = vadd.f32 %v15571_v53, %v11035_v38  ;;  %v11335_v17 = vpop.f32.mrf.mxu1  ;;  %v11294_v50 = vpop.f32.mrf.mxu0 }
 0x663   :  { %13743 = vmatpush3.bf16.msra.mxu1 %v14568_v51  ;;  %v14573_v53 = vld [vmem:[#allocation11 + $0xe0] sm:$0xff]  }
 0x664   :  { %13744 = vmatprep.subr.bf16.mxu1 %v14569_v49  ;;  %v11121_v4 = vadd.f32 %v15579_v29, %v11078_v1  ;;  %v14574_v29 = vld [vmem:[#allocation11 + $0xa0] sm:$0xff]   ;;  %v11337_v37 = vpop.f32.mrf.mxu1  ;;  %v11296_v30 = vpop.f32.mrf.mxu0 }
 0x665   :  { %13723 = vmatpush3.bf16.msra.mxu0 %v14554_v28  ;;  %v15747_v33 = vld [vmem:[#allocation52_spill] sm:$0xff]  ;;  %v15748_v28 = vld [vmem:[#allocation26_spill] sm:$0xff] }
 0x666   :  { %13724 = vmatprep.subr.bf16.mxu0 %v14555_v24  ;;  %v11164_v8 = vadd.f32 %v15583_v46, %v11121_v4  ;;  %v14566_v46 = vld [vmem:[#allocation11] sm:$0xff]   ;;  %v11339_v45 = vpop.f32.mrf.mxu1  ;;  %v11298_v57 = vpop.f32.mrf.mxu0  ;;  %v8349_v63 = vrot.slane %v15585_v9, %v15747_v33  ;;  %v8345_v20 = vrot.slane %v15585_v9, %v15748_v28 }
 0x667   :  { %13745 = vmatpush3.bf16.msra.mxu1 %v14570_v48 }
 0x668   :  { %13746 = vmatprep.subr.bf16.mxu1 %v14571_v16  ;;  %v11207_v10 = vadd.f32 %v15595_v19, %v11164_v8  ;;  %v14575_v19 = vld [vmem:[#allocation11 + $0xd8] sm:$0xff]   ;;  %v11341_v40 = vpop.f32.mrf.mxu1  ;;  %v11295_v56 = vadd.f32 %v11294_v50, %v8349_v63  ;;  %v11293_v6 = vadd.f32 %v11292_v13, %v8345_v20  ;;  %v11299_v11 = vadd.f32 %v11298_v57, %v8349_v63  ;;  %v13687_v63 = vld [vmem:[#allocation13] ss:$0 sm:$0xff] }
 0x669   :  { %13725 = vmatpush3.bf16.msra.mxu0 %v14556_v60 }
 0x66a   :  { %13726 = vmatprep.subr.bf16.mxu0 %v14557_v23  ;;  %v11250_v43 = vadd.f32 %v15600_v32, %v11207_v10  ;;  %v14581_v32 = vld [vmem:[#allocation11 + $0xc0] sm:$0xff]   ;;  %v11297_v23 = vadd.f32 %v11296_v30, %v8345_v20  ;;  %v11336_v51 = vadd.f32 %v11335_v17, %v11293_v6  ;;  %v11342_v48 = vadd.f32 %v11341_v40, %v11299_v11 }
 0x66b   :  { %13747 = vmatpush3.bf16.msra.mxu1 %v14572_v12 }
 0x66c   :  { %13748 = vmatprep.subr.bf16.mxu1 %v14573_v53  ;;  %v11602_v62 = vmax.f32 %v11250_v43, 0.0  ;;  %v11340_v58 = vadd.f32 %v11339_v45, %v11297_v23 }
 0x66d   :  { %13727 = vmatpush3.bf16.msra.mxu0 %v14558_v36  ;;  %v11338_v36 = vadd.f32 %v11337_v37, %v11295_v56 }
 0x66e   :  { %13728 = vmatprep.subr.bf16.mxu0 %v14559_v27  ;;  %v11610_v3 = vpack.c.bf16 %v11606_v42, %v11602_v62 }
 0x66f   :  { %13749 = vmatpush3.bf16.msra.mxu1 %v14574_v29 }
 0x670   :  { %13750 = vmatprep.subr.bf16.mxu1 %v14575_v19 }
 0x671   :  { %13729 = vmatpush3.bf16.msra.mxu0 %v14560_v54 }
 0x672   :  { %13730 = vmatprep.subr.bf16.mxu0 %v14561_v41 }
 0x673   :  { %13751 = vmatpush3.bf16.msra.mxu1 %v14576_v0 }
 0x674   :  { %13752 = vmatprep.subr.bf16.mxu1 %v14577_v25 }
 0x675   :  { %13731 = vmatpush3.bf16.msra.mxu0 %v14562_v22 }
 0x676   :  { %13732 = vmatprep.subr.bf16.mxu0 %v14563_v34 }
 0x677   :  { %13753 = vmatpush3.bf16.msra.mxu1 %v14578_v7 }
 0x678   :  { %13754 = vmatprep.subr.bf16.mxu1 %v14579_v21 }
 0x679   :  { %13733 = vmatpush3.bf16.msra.mxu0 %v14564_v5 }
 0x67a   :  { %13734 = vmatprep.subr.bf16.mxu0 %v14565_v35 }
 0x67b   :  { %13755 = vmatpush3.bf16.msra.mxu1 %v14580_v15 }
 0x67c   :  { %13756 = vmatprep.subr.bf16.mxu1 %v14581_v32 }
 0x67d   :  { %13735 = vmatpush3.bf16.msra.mxu0 %v14566_v46 }
 0x67f   :  { %13757 = vmatpush3.bf16.msra.mxu1 %v14582_v18 }
 0x680   :  { %11910 = vmatmul.mubr.bf16.vlgmr.msra.gmra.mxu0 %v11610_v3 }
 0x6a0   :  { %v11378_v2 = vpop.f32.mrf.mxu0 }
 0x6a1   :  { %v11379_v61 = vadd.f32 %v11378_v2, %v11336_v51 }
 0x6a2   :  { %v11421_v26 = vpop.f32.mrf.mxu1  ;;  %v11380_v14 = vpop.f32.mrf.mxu0 }
 0x6a3   :  { %v11381_v27 = vadd.f32 %v11380_v14, %v11338_v36  ;;  %v11422_v55 = vadd.f32 %v11421_v26, %v11379_v61 }
 0x6a4   :  { %v11423_v31 = vpop.f32.mrf.mxu1  ;;  %v11382_v47 = vpop.f32.mrf.mxu0 }
 0x6a5   :  { %v11383_v54 = vadd.f32 %v11382_v47, %v11340_v58  ;;  %v11424_v4 = vadd.f32 %v11423_v31, %v11381_v27 }
 0x6a6   :  { %v11425_v44 = vpop.f32.mrf.mxu1  ;;  %v11384_v24 = vpop.f32.mrf.mxu0 }
 0x6a7   :  { %v11385_v9 = vadd.f32 %v11384_v24, %v11342_v48  ;;  %v11426_v12 = vadd.f32 %v11425_v44, %v11383_v54 }
 0x6a8   :  { %v11427_v60 = vpop.f32.mrf.mxu1 }
 0x6a9   :  { %v11428_v39 = vadd.f32 %v11427_v60, %v11385_v9 }
 0x6e0   :  { %v11464_v52 = vpop.f32.mrf.mxu0 }
 0x6e1   :  { %v11465_v53 = vadd.f32 %v11464_v52, %v11422_v55 }
 0x6e2   :  { %v11507_v38 = vpop.f32.mrf.mxu1  ;;  %v11466_v49 = vpop.f32.mrf.mxu0 }
 0x6e3   :  { %v11467_v22 = vadd.f32 %v11466_v49, %v11424_v4  ;;  %v11508_v43 = vadd.f32 %v11507_v38, %v11465_v53 }
 0x6e4   :  { %v11509_v1 = vpop.f32.mrf.mxu1  ;;  %v11468_v16 = vpop.f32.mrf.mxu0 }
 0x6e5   :  { %v11469_v34 = vadd.f32 %v11468_v16, %v11426_v12  ;;  %v11510_v5 = vadd.f32 %v11509_v1, %v11467_v22 }
 0x6e6   :  { %v11511_v41 = vpop.f32.mrf.mxu1  ;;  %v11470_v8 = vpop.f32.mrf.mxu0 }
 0x6e7   :  { %v11471_v59 = vadd.f32 %v11470_v8, %v11428_v39  ;;  %v11512_v42 = vadd.f32 %v11511_v41, %v11469_v34 }
 0x6e8   :  { %v11513_v10 = vpop.f32.mrf.mxu1 }
 0x6e9   :  { %v11514_v25 = vadd.f32 %v11513_v10, %v11471_v59 }
 0x720   :  { %v11550_v29 = vpop.f32.mrf.mxu0 }
 0x721   :  { %v11551_v19 = vadd.f32 %v11550_v29, %v11508_v43 }
 0x722   :  { %v11593_v35 = vpop.f32.mrf.mxu1  ;;  %v11552_v46 = vpop.f32.mrf.mxu0 }
 0x723   :  { %v11553_v62 = vadd.f32 %v11552_v46, %v11510_v5  ;;  %v11594_v17 = vadd.f32 %v11593_v35, %v11551_v19 }
 0x724   :  { %v11595_v3 = vpop.f32.mrf.mxu1  ;;  %v11554_v0 = vpop.f32.mrf.mxu0 }
 0x725   :  { %v11555_v7 = vadd.f32 %v11554_v0, %v11512_v42  ;;  %v11596_v32 = vadd.f32 %v11595_v3, %v11553_v62  ;;  %v11604_v40 = vmax.f32 %v11594_v17, 0.0 }
 0x726   :  { %v11597_v21 = vpop.f32.mrf.mxu1  ;;  %v11556_v15 = vpop.f32.mrf.mxu0 }
 0x727   :  { %v11598_v18 = vadd.f32 %v11597_v21, %v11555_v7  ;;  %v11557_v13 = vadd.f32 %v11556_v15, %v11514_v25  ;;  %v11605_v45 = vmax.f32 %v11596_v32, 0.0 }
 0x728   :  { %v11599_v50 = vpop.f32.mrf.mxu1 }
 0x729   :  { %v11600_v37 = vadd.f32 %v11599_v50, %v11557_v13  ;;  %v11608_v30 = vmax.f32 %v11598_v18, 0.0 }
 0x72b   :  { %v11609_v57 = vmax.f32 %v11600_v37, 0.0  ;;  %v11612_v26 = vpack.c.bf16 %v11608_v30, %v11604_v40 }
 0x72d   :  { %v11613_v2 = vpack.c.bf16 %v11609_v57, %v11605_v45 }
 0x72f   :  { %11950 = vmatprep.mubr.bf16.mxu1 %v11613_v2 }
 0x730   :  { %11951 = vmatmul.mubr.bf16.vlgmr.msra.gmra.mxu1 %v11612_v26 }
 0x740   :  { %v13736_v14 = vpop.f32.mrf.mxu0 }
 0x742   :  { %v13737_v31 = vpop.f32.mrf.mxu0 }
 0x743   :  { %v13738_v33 = vadd.f32 %v13737_v31, %v13736_v14 }
 0x744   :  { %v13739_v47 = vpop.f32.mrf.mxu0 }
 0x745   :  { %v11912_v24 = vadd.f32 %v13738_v33, %v13687_v63 }
 0x746   :  { %v13740_v44 = vpop.f32.mrf.mxu0 }
 0x747   :  { %v13741_v56 = vadd.f32 %v13740_v44, %v13739_v47 }
 0x749   :  { %v11915_v38 = vadd.f32 %v13741_v56, %v13687_v63 }
 0x7f0   :  { %v13758_v28 = vpop.f32.mrf.mxu1 }
 0x7f2   :  { %v13759_v20 = vpop.f32.mrf.mxu1 }
 0x7f3   :  { %v13760_v60 = vadd.f32 %v13759_v20, %v13758_v28 }
 0x7f4   :  { %v13761_v6 = vpop.f32.mrf.mxu1 }
 0x7f5   :  { %v11953_v52 = vadd.f32 %v13760_v60, %v11912_v24 }
 0x7f6   :  { %v13762_v23 = vpop.f32.mrf.mxu1 }
 0x7f7   :  { %v13763_v36 = vadd.f32 %v13762_v23, %v13761_v6  ;;  %v12093_v11 = vmul.f32 %v11953_v52, %v11953_v52 }
 0x7f9   :  { %v11956_v51 = vadd.f32 %v13763_v36, %v11915_v38  ;;  %12095 = vadd.xlane.f32.xlu1 %v12093_v11 }
 0x7fb   :  { %v12094_v49 = vmul.f32 %v11956_v51, %v11956_v51 }
 0x7fd   :  { %12097 = vadd.xlane.f32.xlu1 %v12094_v49 }
 0x7fe   :  { %14746 = shalt.err (!%p14743_p11)
}
 0x7ff   :  { %s14802_s21 = smov 2048   ;;  %s14803_s22 = smov 128  }
 0x800   :  { %12118 = dma.vmem_to_hbm [thread:$0]  %s12113_s6, 4096, %s15645_s7, [#allocation4], %s14802_s21, %s14802_s21, %s14803_s22  }
 0x801   :  { %s14804_s25 = smov [#allocation15]  }
 0x802   :  { %s12124_s3 = sshll.u32 %s14804_s25, 4  ;;  %s12125_s3 = int_to_ptr.vmem [resolvable:$true] %s12124_s3 }
 0x803   :  { %s14755_s26 = scalar_lea.vmem %s12125_s3, 256  ;;  %p14760_p13 = scmp.lt.s32.totalorder %s12125_s3, %s12125_s3 }
 0x804   :  { %p14756_p12 = scmp.ne.s32.totalorder %s12125_s3, %s14755_s26  ;;  %p14761_p0 = scmp.lt.s32.totalorder %s14755_s26, %s14755_s26 }
 0x806   :  { %p14762_p1 = por %p14761_p0, %p14760_p13 }
 0x808   :  { %p14763_p2 = pnand %p14762_p1, %p14756_p12 }
 0x882   :  { %v12096_v58 = vpop.xlane.xlu1 %12095 }
 0x883   :  { %v12099_v27 = vmax.f32 %v12096_v58, 1e-24 }
 0x885   :  { %14587 = vrsqrt.f32 %v12099_v27 }
 0x886   :  { %v12098_v1 = vpop.xlane.xlu1 %12097 }
 0x887   :  { %v12100_v61 = vmax.f32 %v12098_v1, 1e-24 }
 0x889   :  { %14589 = vrsqrt.f32 %v12100_v61 }
 0x892   :  { %v14588_v48 = vpop.eup %14587 }
 0x893   :  { %v12103_v54 = vmul.f32 %v14588_v48, %v11953_v52 }
 0x895   :  { %12105 = vst [vmem:[#allocation15] sm:$0xff] %v12103_v54 }
 0x896   :  { %v14590_v16 = vpop.eup %14589 }
 0x897   :  { %v12104_v4 = vmul.f32 %v14590_v16, %v11956_v51 }
 0x899   :  { %12106 = vst [vmem:[#allocation15 + $0x8] sm:$0xff] %v12104_v4 }
 0x89a   :  { %14766 = shalt.err (!%p14763_p2)
}
 0x89b   :  { %s14805_s7 = smov 8  }
 0x89c   :  { %12130 = dma.vmem_to_hbm [thread:$0]  %s12125_s3, 256, %s15646_s8, [#allocation16], %s14803_s22, %s14803_s22, %s14805_s7  }
 0x89d   :  { %14783 = dma.done.wait [#allocation4], 4096  }
 0x89e   :  { %14784 = vsyncadd [#allocation4], 4294963200 }
 0x89f   :  { %14785 = dma.done.wait [#allocation16], 256  }
 0x8a0   :  { %14786 = vsyncadd [#allocation16], 4294967040 }
 0x8a1   :  { %12137 = vsyncpa [#allocation3], 1 }
 0x8a2   :  { %12138 = vsyncpa [#allocation6], 1 }
 0x8a3   :  { %12139 = vsyncpa [#allocation9], 1 }
 0x8a4   :  { %12140 = vsyncpa [#allocation12], 1 }
 0x8a5   :  { %12141 = vsyncpa [#allocation4], 1 }
 0x8a6   :  { %12142 = vsyncpa [#allocation16], 1 }

</bundles_post_ra>
